<compile_context>
chip_gen: v7x
topology: tpu7x:2x2x1
jax: 0.10.0
libtpu: 0.0.40
codegen_flags: <defaults>
</compile_context>

<pallas_src>
import functools

import jax
import jax.numpy as jnp
from jax import lax
from jax.experimental import pallas as pl
from jax.experimental.pallas import tpu as pltpu


def _attack_model_kernel(
    x_ref, y_ref,
    # inp branch: C -> 1024 -> 512 -> 256 -> 64 (weights [out, in] bf16, biases [out, 1] f32)
    wi0, bi0, wi1, bi1, wi2, bi2, wi3, bi3,
    # feat branch: C -> 256 -> 128 -> 64
    wf0, bf0, wf1, bf1, wf2, bf2,
    # out head: 128 -> 64 (wo0 pre-split into inp/feat halves) -> 1
    wo0a, wo0b, bo0, wo1, bo1,
    out_ref,
):
    # x_ref / y_ref are (batch_tile, C) bf16, batch-major straight from HBM.
    # First layer contracts dim 1 of both operands (w (out,C) . x (bt,C) over C),
    # i.e. the MXU "NT" matmul -- no explicit transpose of the input tile needed.
    def first_lin_relu(w_ref, inp_ref, b_ref):
        z = lax.dot_general(
            w_ref[...], inp_ref[...],
            dimension_numbers=(((1,), (1,)), ((), ())),
            preferred_element_type=jnp.float32,
        ) + b_ref[...]
        return jnp.maximum(z, 0.0).astype(jnp.bfloat16)   # (out, bt) feature-major

    def lin_relu(w_ref, act_bf16, b_ref):
        z = jnp.dot(w_ref[...], act_bf16,
                    preferred_element_type=jnp.float32) + b_ref[...]
        return jnp.maximum(z, 0.0).astype(jnp.bfloat16)

    # ---- inp branch ----
    a = first_lin_relu(wi0, x_ref, bi0)    # (1024, bt)
    a = lin_relu(wi1, a, bi1)              # (512, bt)
    a = lin_relu(wi2, a, bi2)              # (256, bt)
    a = lin_relu(wi3, a, bi3)              # (64, bt)

    # ---- feat branch ----
    b = first_lin_relu(wf0, y_ref, bf0)    # (256, bt)
    b = lin_relu(wf1, b, bf1)              # (128, bt)
    b = lin_relu(wf2, b, bf2)              # (64, bt)

    # ---- head, concat eliminated: cat((a,b)) @ W.T == Wa @ a + Wb @ b ----
    h = (jnp.dot(wo0a[...], a, preferred_element_type=jnp.float32)
         + jnp.dot(wo0b[...], b, preferred_element_type=jnp.float32)
         + bo0[...])
    h = jnp.maximum(h, 0.0)                # (64, bt) f32

    # ---- final 64 -> 1: VPU multiply + sublane (XLU) reduce, skip M=1 MXU pass ----
    z = jnp.sum(h * wo1[...].astype(jnp.float32), axis=0, keepdims=True) + bo1[...]  # (1, bt)

    # ---- exact sigmoid epilogue (exp on EUP; divide is cheap at (1, bt)) ----
    out_ref[...] = 1.0 / (1.0 + jnp.exp(-z))


def init_params(num_classes, key):
    """Deterministic PyTorch-Linear-like init.

    Storage convention (kernel-friendly):
      * weights: [out_features, in_features], bf16
      * biases:  [out_features, 1], f32
      * out-head layer 0 weight pre-split into its inp-half / feat-half
        (matching torch.cat((inp_out, feat_out), dim=1) column order)
      * final 64->1 weight stored as a (64, 1) column (for the VPU reduce)
    """
    def linear(key, fan_in, fan_out):
        kw, kb = jax.random.split(key)
        bound = 1.0 / jnp.sqrt(jnp.float32(fan_in))
        w = jax.random.uniform(kw, (fan_out, fan_in), jnp.float32, -bound, bound)
        b = jax.random.uniform(kb, (fan_out, 1), jnp.float32, -bound, bound)
        return w, b

    dims = [
        (num_classes, 1024), (1024, 512), (512, 256), (256, 64),   # inp
        (num_classes, 256), (256, 128), (128, 64),                 # feat
        (128, 64), (64, 1),                                        # out head
    ]
    keys = jax.random.split(key, len(dims))
    layers = [linear(k, di, do) for k, (di, do) in zip(keys, dims)]

    (wi0, bi0), (wi1, bi1), (wi2, bi2), (wi3, bi3) = layers[0:4]
    (wf0, bf0), (wf1, bf1), (wf2, bf2) = layers[4:7]
    (wo0, bo0), (wo1, bo1) = layers[7:9]

    bf16 = lambda w: w.astype(jnp.bfloat16)
    return (
        bf16(wi0), bi0, bf16(wi1), bi1, bf16(wi2), bi2, bf16(wi3), bi3,
        bf16(wf0), bf0, bf16(wf1), bf1, bf16(wf2), bf2,
        bf16(wo0[:, :64]), bf16(wo0[:, 64:]), bo0,   # concat eliminated at param level
        bf16(wo1.T), bo1,                            # (64, 1) column + (1, 1) bias
    )


def _pick_batch_tile(B, requested):
    t = min(requested, B)
    # Keep >= 2 grid tiles so both v7x TensorCores get work, while staying
    # lane-dense (multiple of 128) and dividing B exactly.
    while t >= 256 and (B // t) < 2:
        t //= 2
    assert B % t == 0, "batch must be divisible by the chosen batch_tile"
    assert t % 128 == 0, "batch_tile must be a multiple of 128 (lane-dense output)"
    return t


@functools.partial(jax.jit, static_argnums=(3,))
def attack_model_forward(x, y, params, batch_tile=256):
    B, C = x.shape
    tile = _pick_batch_tile(B, batch_tile)
    grid = (B // tile,)

    # Halve input DMA + match the bf16-weight path; no transpose pass needed.
    x_bf16 = x.astype(jnp.bfloat16)
    y_bf16 = y.astype(jnp.bfloat16)

    io_spec = pl.BlockSpec((tile, C), lambda i: (i, 0))

    def whole(arr):  # weights/biases fully resident in VMEM, constant block index
        return pl.BlockSpec(arr.shape, lambda i: (0, 0))

    in_specs = [io_spec, io_spec] + [whole(p) for p in params]
    # Lane-dense output row per tile; reshaped to (B, 1) below.
    out_spec = pl.BlockSpec((1, tile), lambda i: (0, i))

    # Advisory cost hint so XLA schedules/overlaps around this tiny custom call.
    flops_per_example = 2 * (C * 1024 + 1024 * 512 + 512 * 256 + 256 * 64
                             + C * 256 + 256 * 128 + 128 * 64
                             + 128 * 64 + 64 * 1)
    param_bytes = sum(int(p.size) * p.dtype.itemsize for p in params)
    cost = pl.CostEstimate(
        flops=B * flops_per_example,
        transcendentals=B,                                   # one exp per example
        bytes_accessed=param_bytes + 2 * (B * C * 2) + B * 4,
    )

    out = pl.pallas_call(
        _attack_model_kernel,
        out_shape=jax.ShapeDtypeStruct((1, B), jnp.float32),
        grid=grid,
        in_specs=in_specs,
        out_specs=out_spec,
        compiler_params=pltpu.CompilerParams(
            dimension_semantics=("parallel",),        # megacore sharding over batch tiles
            vmem_limit_bytes=32 * 1024 * 1024,        # headroom for larger tiles
        ),
        cost_estimate=cost,
    )(x_bf16, y_bf16, *params)

    return out.reshape(B, 1)


def reference_forward(x, y, params):
    """Plain-JAX reference mirroring the kernel's bf16-weight / f32-accumulate numerics."""
    (wi0, bi0, wi1, bi1, wi2, bi2, wi3, bi3,
     wf0, bf0, wf1, bf1, wf2, bf2,
     wo0a, wo0b, bo0, wo1, bo1) = params

    x_bf16 = x.astype(jnp.bfloat16)
    y_bf16 = y.astype(jnp.bfloat16)

    def first(w, inp, b_):
        z = lax.dot_general(w, inp, dimension_numbers=(((1,), (1,)), ((), ())),
                            preferred_element_type=jnp.float32) + b_
        return jnp.maximum(z, 0.0).astype(jnp.bfloat16)

    def lin_relu(w, act, b_):
        z = jnp.dot(w, act, preferred_element_type=jnp.float32) + b_
        return jnp.maximum(z, 0.0).astype(jnp.bfloat16)

    a = first(wi0, x_bf16, bi0)
    for w, b_ in ((wi1, bi1), (wi2, bi2), (wi3, bi3)):
        a = lin_relu(w, a, b_)

    bb = first(wf0, y_bf16, bf0)
    for w, b_ in ((wf1, bf1), (wf2, bf2)):
        bb = lin_relu(w, bb, b_)

    h = (jnp.dot(wo0a, a, preferred_element_type=jnp.float32)
         + jnp.dot(wo0b, bb, preferred_element_type=jnp.float32)
         + bo0)
    h = jnp.maximum(h, 0.0)
    z = jnp.sum(h * wo1.astype(jnp.float32), axis=0, keepdims=True) + bo1
    return (1.0 / (1.0 + jnp.exp(-z))).T  # (B, 1)


if __name__ == "__main__":
    num_classes = 10
    batch = 512        # grid = 2 tiles of 256: fills the 256-wide MXU and keeps both v7x TCs busy
    batch_tile = 256

    key = jax.random.PRNGKey(0)
    k_params, kx, ky = jax.random.split(key, 3)

    params = init_params(num_classes, k_params)
    x = jax.random.normal(kx, (batch, num_classes), jnp.float32)
    y = jax.random.normal(ky, (batch, num_classes), jnp.float32)

    out = attack_model_forward(x, y, params, batch_tile)
    out = jax.block_until_ready(out)

    ref = reference_forward(x, y, params)
    assert out.shape == (batch, 1)
    # Exact sigmoid now; reference mirrors the kernel's bf16/f32 numerics exactly.
    assert jnp.allclose(out, ref, atol=1e-4, rtol=1e-4), (out, ref)

    print("KERNEL_OK")
</pallas_src>

<mosaic_0001>
module attributes {stable_mosaic.version = 11 : i64} {
  func.func @_attack_model_kernel(%arg0: i32, %arg1: memref<256x10xbf16, #tpu.memory_space<vmem>>, %arg2: memref<256x10xbf16, #tpu.memory_space<vmem>>, %arg3: memref<1024x10xbf16, #tpu.memory_space<vmem>>, %arg4: memref<1024x1xf32, #tpu.memory_space<vmem>>, %arg5: memref<512x1024xbf16, #tpu.memory_space<vmem>>, %arg6: memref<512x1xf32, #tpu.memory_space<vmem>>, %arg7: memref<256x512xbf16, #tpu.memory_space<vmem>>, %arg8: memref<256x1xf32, #tpu.memory_space<vmem>>, %arg9: memref<64x256xbf16, #tpu.memory_space<vmem>>, %arg10: memref<64x1xf32, #tpu.memory_space<vmem>>, %arg11: memref<256x10xbf16, #tpu.memory_space<vmem>>, %arg12: memref<256x1xf32, #tpu.memory_space<vmem>>, %arg13: memref<128x256xbf16, #tpu.memory_space<vmem>>, %arg14: memref<128x1xf32, #tpu.memory_space<vmem>>, %arg15: memref<64x128xbf16, #tpu.memory_space<vmem>>, %arg16: memref<64x1xf32, #tpu.memory_space<vmem>>, %arg17: memref<64x64xbf16, #tpu.memory_space<vmem>>, %arg18: memref<64x64xbf16, #tpu.memory_space<vmem>>, %arg19: memref<64x1xf32, #tpu.memory_space<vmem>>, %arg20: memref<64x1xbf16, #tpu.memory_space<vmem>>, %arg21: memref<1x1xf32, #tpu.memory_space<vmem>>, %arg22: memref<1x256xf32, #tpu.memory_space<vmem>>) attributes {dimension_semantics = [#tpu.dimension_semantics<parallel>], iteration_bounds = array<i64: 2>, scalar_prefetch = 0 : i64, scratch_operands = 0 : i64, tpu.core_type = #tpu.core_type<tc>, window_params = [{transform_indices = @transform_0, window_bounds = array<i64: 256, 10>}, {transform_indices = @transform_1, window_bounds = array<i64: 256, 10>}, {pipeline_mode = #tpu.pipeline_mode<synchronous>, transform_indices = @transform_2, window_bounds = array<i64: 1024, 10>}, {pipeline_mode = #tpu.pipeline_mode<synchronous>, transform_indices = @transform_3, window_bounds = array<i64: 1024, 1>}, {pipeline_mode = #tpu.pipeline_mode<synchronous>, transform_indices = @transform_4, window_bounds = array<i64: 512, 1024>}, {pipeline_mode = #tpu.pipeline_mode<synchronous>, transform_indices = @transform_5, window_bounds = array<i64: 512, 1>}, {pipeline_mode = #tpu.pipeline_mode<synchronous>, transform_indices = @transform_6, window_bounds = array<i64: 256, 512>}, {pipeline_mode = #tpu.pipeline_mode<synchronous>, transform_indices = @transform_7, window_bounds = array<i64: 256, 1>}, {pipeline_mode = #tpu.pipeline_mode<synchronous>, transform_indices = @transform_8, window_bounds = array<i64: 64, 256>}, {pipeline_mode = #tpu.pipeline_mode<synchronous>, transform_indices = @transform_9, window_bounds = array<i64: 64, 1>}, {pipeline_mode = #tpu.pipeline_mode<synchronous>, transform_indices = @transform_10, window_bounds = array<i64: 256, 10>}, {pipeline_mode = #tpu.pipeline_mode<synchronous>, transform_indices = @transform_11, window_bounds = array<i64: 256, 1>}, {pipeline_mode = #tpu.pipeline_mode<synchronous>, transform_indices = @transform_12, window_bounds = array<i64: 128, 256>}, {pipeline_mode = #tpu.pipeline_mode<synchronous>, transform_indices = @transform_13, window_bounds = array<i64: 128, 1>}, {pipeline_mode = #tpu.pipeline_mode<synchronous>, transform_indices = @transform_14, window_bounds = array<i64: 64, 128>}, {pipeline_mode = #tpu.pipeline_mode<synchronous>, transform_indices = @transform_15, window_bounds = array<i64: 64, 1>}, {pipeline_mode = #tpu.pipeline_mode<synchronous>, transform_indices = @transform_16, window_bounds = array<i64: 64, 64>}, {pipeline_mode = #tpu.pipeline_mode<synchronous>, transform_indices = @transform_17, window_bounds = array<i64: 64, 64>}, {pipeline_mode = #tpu.pipeline_mode<synchronous>, transform_indices = @transform_18, window_bounds = array<i64: 64, 1>}, {pipeline_mode = #tpu.pipeline_mode<synchronous>, transform_indices = @transform_19, window_bounds = array<i64: 64, 1>}, {pipeline_mode = #tpu.pipeline_mode<synchronous>, transform_indices = @transform_20, window_bounds = array<i64: 1, 1>}, {transform_indices = @transform_21, window_bounds = array<i64: 1, 256>}]} {
    %c0 = arith.constant 0 : index
    %c0_0 = arith.constant 0 : index
    %0 = vector.load %arg3[%c0, %c0_0] : memref<1024x10xbf16, #tpu.memory_space<vmem>>, vector<1024x10xbf16>
    %c0_1 = arith.constant 0 : index
    %c0_2 = arith.constant 0 : index
    %1 = vector.load %arg1[%c0_1, %c0_2] : memref<256x10xbf16, #tpu.memory_space<vmem>>, vector<256x10xbf16>
    %cst = arith.constant dense<0.000000e+00> : vector<1024x256xf32>
    %2 = tpu.matmul %0, %1, %cst {dimension_numbers = #tpu.dot_dimension_numbers<[1], [1], [0], [0], [0, 0, 1, 0], [], []>} : vector<1024x10xbf16>, vector<256x10xbf16>, vector<1024x256xf32> -> vector<1024x256xf32>
    %c0_3 = arith.constant 0 : index
    %c0_4 = arith.constant 0 : index
    %3 = vector.load %arg4[%c0_3, %c0_4] : memref<1024x1xf32, #tpu.memory_space<vmem>>, vector<1024x1xf32>
    %4 = vector.broadcast %3 : vector<1024x1xf32> to vector<1024x256xf32>
    %5 = arith.addf %2, %4 : vector<1024x256xf32>
    %cst_5 = arith.constant 0.000000e+00 : f32
    %6 = vector.broadcast %cst_5 : f32 to vector<1024x256xf32>
    %7 = arith.maximumf %5, %6 : vector<1024x256xf32>
    %8 = arith.truncf %7 : vector<1024x256xf32> to vector<1024x256xbf16>
    %c0_6 = arith.constant 0 : index
    %c0_7 = arith.constant 0 : index
    %9 = vector.load %arg5[%c0_6, %c0_7] : memref<512x1024xbf16, #tpu.memory_space<vmem>>, vector<512x1024xbf16>
    %cst_8 = arith.constant dense<0.000000e+00> : vector<512x256xf32>
    %10 = tpu.matmul %9, %8, %cst_8 {dimension_numbers = #tpu.dot_dimension_numbers<[1], [0], [0], [1], [0, 0, 1, 1], [], []>} : vector<512x1024xbf16>, vector<1024x256xbf16>, vector<512x256xf32> -> vector<512x256xf32>
    %c0_9 = arith.constant 0 : index
    %c0_10 = arith.constant 0 : index
    %11 = vector.load %arg6[%c0_9, %c0_10] : memref<512x1xf32, #tpu.memory_space<vmem>>, vector<512x1xf32>
    %12 = vector.broadcast %11 : vector<512x1xf32> to vector<512x256xf32>
    %13 = arith.addf %10, %12 : vector<512x256xf32>
    %cst_11 = arith.constant 0.000000e+00 : f32
    %14 = vector.broadcast %cst_11 : f32 to vector<512x256xf32>
    %15 = arith.maximumf %13, %14 : vector<512x256xf32>
    %16 = arith.truncf %15 : vector<512x256xf32> to vector<512x256xbf16>
    %c0_12 = arith.constant 0 : index
    %c0_13 = arith.constant 0 : index
    %17 = vector.load %arg7[%c0_12, %c0_13] : memref<256x512xbf16, #tpu.memory_space<vmem>>, vector<256x512xbf16>
    %cst_14 = arith.constant dense<0.000000e+00> : vector<256x256xf32>
    %18 = tpu.matmul %17, %16, %cst_14 {dimension_numbers = #tpu.dot_dimension_numbers<[1], [0], [0], [1], [0, 0, 1, 1], [], []>} : vector<256x512xbf16>, vector<512x256xbf16>, vector<256x256xf32> -> vector<256x256xf32>
    %c0_15 = arith.constant 0 : index
    %c0_16 = arith.constant 0 : index
    %19 = vector.load %arg8[%c0_15, %c0_16] : memref<256x1xf32, #tpu.memory_space<vmem>>, vector<256x1xf32>
    %20 = vector.broadcast %19 : vector<256x1xf32> to vector<256x256xf32>
    %21 = arith.addf %18, %20 : vector<256x256xf32>
    %cst_17 = arith.constant 0.000000e+00 : f32
    %22 = vector.broadcast %cst_17 : f32 to vector<256x256xf32>
    %23 = arith.maximumf %21, %22 : vector<256x256xf32>
    %24 = arith.truncf %23 : vector<256x256xf32> to vector<256x256xbf16>
    %c0_18 = arith.constant 0 : index
    %c0_19 = arith.constant 0 : index
    %25 = vector.load %arg9[%c0_18, %c0_19] : memref<64x256xbf16, #tpu.memory_space<vmem>>, vector<64x256xbf16>
    %cst_20 = arith.constant dense<0.000000e+00> : vector<64x256xf32>
    %26 = tpu.matmul %25, %24, %cst_20 {dimension_numbers = #tpu.dot_dimension_numbers<[1], [0], [0], [1], [0, 0, 1, 1], [], []>} : vector<64x256xbf16>, vector<256x256xbf16>, vector<64x256xf32> -> vector<64x256xf32>
    %c0_21 = arith.constant 0 : index
    %c0_22 = arith.constant 0 : index
    %27 = vector.load %arg10[%c0_21, %c0_22] : memref<64x1xf32, #tpu.memory_space<vmem>>, vector<64x1xf32>
    %28 = vector.broadcast %27 : vector<64x1xf32> to vector<64x256xf32>
    %29 = arith.addf %26, %28 : vector<64x256xf32>
    %cst_23 = arith.constant 0.000000e+00 : f32
    %30 = vector.broadcast %cst_23 : f32 to vector<64x256xf32>
    %31 = arith.maximumf %29, %30 : vector<64x256xf32>
    %32 = arith.truncf %31 : vector<64x256xf32> to vector<64x256xbf16>
    %c0_24 = arith.constant 0 : index
    %c0_25 = arith.constant 0 : index
    %33 = vector.load %arg11[%c0_24, %c0_25] : memref<256x10xbf16, #tpu.memory_space<vmem>>, vector<256x10xbf16>
    %c0_26 = arith.constant 0 : index
    %c0_27 = arith.constant 0 : index
    %34 = vector.load %arg2[%c0_26, %c0_27] : memref<256x10xbf16, #tpu.memory_space<vmem>>, vector<256x10xbf16>
    %cst_28 = arith.constant dense<0.000000e+00> : vector<256x256xf32>
    %35 = tpu.matmul %33, %34, %cst_28 {dimension_numbers = #tpu.dot_dimension_numbers<[1], [1], [0], [0], [0, 0, 1, 0], [], []>} : vector<256x10xbf16>, vector<256x10xbf16>, vector<256x256xf32> -> vector<256x256xf32>
    %c0_29 = arith.constant 0 : index
    %c0_30 = arith.constant 0 : index
    %36 = vector.load %arg12[%c0_29, %c0_30] : memref<256x1xf32, #tpu.memory_space<vmem>>, vector<256x1xf32>
    %37 = vector.broadcast %36 : vector<256x1xf32> to vector<256x256xf32>
    %38 = arith.addf %35, %37 : vector<256x256xf32>
    %cst_31 = arith.constant 0.000000e+00 : f32
    %39 = vector.broadcast %cst_31 : f32 to vector<256x256xf32>
    %40 = arith.maximumf %38, %39 : vector<256x256xf32>
    %41 = arith.truncf %40 : vector<256x256xf32> to vector<256x256xbf16>
    %c0_32 = arith.constant 0 : index
    %c0_33 = arith.constant 0 : index
    %42 = vector.load %arg13[%c0_32, %c0_33] : memref<128x256xbf16, #tpu.memory_space<vmem>>, vector<128x256xbf16>
    %cst_34 = arith.constant dense<0.000000e+00> : vector<128x256xf32>
    %43 = tpu.matmul %42, %41, %cst_34 {dimension_numbers = #tpu.dot_dimension_numbers<[1], [0], [0], [1], [0, 0, 1, 1], [], []>} : vector<128x256xbf16>, vector<256x256xbf16>, vector<128x256xf32> -> vector<128x256xf32>
    %c0_35 = arith.constant 0 : index
    %c0_36 = arith.constant 0 : index
    %44 = vector.load %arg14[%c0_35, %c0_36] : memref<128x1xf32, #tpu.memory_space<vmem>>, vector<128x1xf32>
    %45 = vector.broadcast %44 : vector<128x1xf32> to vector<128x256xf32>
    %46 = arith.addf %43, %45 : vector<128x256xf32>
    %cst_37 = arith.constant 0.000000e+00 : f32
    %47 = vector.broadcast %cst_37 : f32 to vector<128x256xf32>
    %48 = arith.maximumf %46, %47 : vector<128x256xf32>
    %49 = arith.truncf %48 : vector<128x256xf32> to vector<128x256xbf16>
    %c0_38 = arith.constant 0 : index
    %c0_39 = arith.constant 0 : index
    %50 = vector.load %arg15[%c0_38, %c0_39] : memref<64x128xbf16, #tpu.memory_space<vmem>>, vector<64x128xbf16>
    %cst_40 = arith.constant dense<0.000000e+00> : vector<64x256xf32>
    %51 = tpu.matmul %50, %49, %cst_40 {dimension_numbers = #tpu.dot_dimension_numbers<[1], [0], [0], [1], [0, 0, 1, 1], [], []>} : vector<64x128xbf16>, vector<128x256xbf16>, vector<64x256xf32> -> vector<64x256xf32>
    %c0_41 = arith.constant 0 : index
    %c0_42 = arith.constant 0 : index
    %52 = vector.load %arg16[%c0_41, %c0_42] : memref<64x1xf32, #tpu.memory_space<vmem>>, vector<64x1xf32>
    %53 = vector.broadcast %52 : vector<64x1xf32> to vector<64x256xf32>
    %54 = arith.addf %51, %53 : vector<64x256xf32>
    %cst_43 = arith.constant 0.000000e+00 : f32
    %55 = vector.broadcast %cst_43 : f32 to vector<64x256xf32>
    %56 = arith.maximumf %54, %55 : vector<64x256xf32>
    %57 = arith.truncf %56 : vector<64x256xf32> to vector<64x256xbf16>
    %c0_44 = arith.constant 0 : index
    %c0_45 = arith.constant 0 : index
    %58 = vector.load %arg17[%c0_44, %c0_45] : memref<64x64xbf16, #tpu.memory_space<vmem>>, vector<64x64xbf16>
    %cst_46 = arith.constant dense<0.000000e+00> : vector<64x256xf32>
    %59 = tpu.matmul %58, %32, %cst_46 {dimension_numbers = #tpu.dot_dimension_numbers<[1], [0], [0], [1], [0, 0, 1, 1], [], []>} : vector<64x64xbf16>, vector<64x256xbf16>, vector<64x256xf32> -> vector<64x256xf32>
    %c0_47 = arith.constant 0 : index
    %c0_48 = arith.constant 0 : index
    %60 = vector.load %arg18[%c0_47, %c0_48] : memref<64x64xbf16, #tpu.memory_space<vmem>>, vector<64x64xbf16>
    %cst_49 = arith.constant dense<0.000000e+00> : vector<64x256xf32>
    %61 = tpu.matmul %60, %57, %cst_49 {dimension_numbers = #tpu.dot_dimension_numbers<[1], [0], [0], [1], [0, 0, 1, 1], [], []>} : vector<64x64xbf16>, vector<64x256xbf16>, vector<64x256xf32> -> vector<64x256xf32>
    %62 = arith.addf %59, %61 : vector<64x256xf32>
    %c0_50 = arith.constant 0 : index
    %c0_51 = arith.constant 0 : index
    %63 = vector.load %arg19[%c0_50, %c0_51] : memref<64x1xf32, #tpu.memory_space<vmem>>, vector<64x1xf32>
    %64 = vector.broadcast %63 : vector<64x1xf32> to vector<64x256xf32>
    %65 = arith.addf %62, %64 : vector<64x256xf32>
    %cst_52 = arith.constant 0.000000e+00 : f32
    %66 = vector.broadcast %cst_52 : f32 to vector<64x256xf32>
    %67 = arith.maximumf %65, %66 : vector<64x256xf32>
    %c0_53 = arith.constant 0 : index
    %c0_54 = arith.constant 0 : index
    %68 = vector.load %arg20[%c0_53, %c0_54] : memref<64x1xbf16, #tpu.memory_space<vmem>>, vector<64x1xbf16>
    %69 = arith.extf %68 : vector<64x1xbf16> to vector<64x1xf32>
    %70 = vector.broadcast %69 : vector<64x1xf32> to vector<64x256xf32>
    %71 = arith.mulf %67, %70 : vector<64x256xf32>
    %cst_55 = arith.constant dense<0.000000e+00> : vector<256xf32>
    %72 = vector.multi_reduction <add>, %71, %cst_55 [0] : vector<64x256xf32> to vector<256xf32>
    %73 = vector.shape_cast %72 : vector<256xf32> to vector<1x256xf32>
    %c0_56 = arith.constant 0 : index
    %c0_57 = arith.constant 0 : index
    %74 = vector.load %arg21[%c0_56, %c0_57] : memref<1x1xf32, #tpu.memory_space<vmem>>, vector<1x1xf32>
    %75 = vector.broadcast %74 : vector<1x1xf32> to vector<1x256xf32>
    %76 = arith.addf %73, %75 : vector<1x256xf32>
    %cst_58 = arith.constant 0.000000e+00 : f32
    %77 = vector.broadcast %cst_58 : f32 to vector<1x256xf32>
    %78 = arith.subf %77, %76 : vector<1x256xf32>
    %79 = math.exp %78 : vector<1x256xf32>
    %cst_59 = arith.constant 1.000000e+00 : f32
    %80 = vector.broadcast %cst_59 : f32 to vector<1x256xf32>
    %81 = arith.addf %80, %79 : vector<1x256xf32>
    %cst_60 = arith.constant 1.000000e+00 : f32
    %82 = vector.broadcast %cst_60 : f32 to vector<1x256xf32>
    %83 = arith.divf %82, %81 : vector<1x256xf32>
    %c0_61 = arith.constant 0 : index
    %c0_62 = arith.constant 0 : index
    %84 = vector.load %arg22[%c0_61, %c0_62] : memref<1x256xf32, #tpu.memory_space<vmem>>, vector<1x256xf32>
    tpu.vector_store %arg22[%c0_61, %c0_62], %83 {strides = array<i32>} : memref<1x256xf32, #tpu.memory_space<vmem>>, vector<1x256xf32>,
    return
  }
  func.func @transform_0(%arg0: i32) -> (i32, i32) {
    %c0_i32 = arith.constant 0 : i32
    %c0_i32_0 = arith.constant 0 : i32
    return %arg0, %c0_i32 : i32, i32
  }
  func.func @transform_1(%arg0: i32) -> (i32, i32) {
    %c0_i32 = arith.constant 0 : i32
    %c0_i32_0 = arith.constant 0 : i32
    return %arg0, %c0_i32 : i32, i32
  }
  func.func @transform_2(%arg0: i32) -> (i32, i32) {
    %c0_i32 = arith.constant 0 : i32
    %c0_i32_0 = arith.constant 0 : i32
    %c0_i32_1 = arith.constant 0 : i32
    return %c0_i32, %c0_i32_0 : i32, i32
  }
  func.func @transform_3(%arg0: i32) -> (i32, i32) {
    %c0_i32 = arith.constant 0 : i32
    %c0_i32_0 = arith.constant 0 : i32
    %c0_i32_1 = arith.constant 0 : i32
    return %c0_i32, %c0_i32_0 : i32, i32
  }
  func.func @transform_4(%arg0: i32) -> (i32, i32) {
    %c0_i32 = arith.constant 0 : i32
    %c0_i32_0 = arith.constant 0 : i32
    %c0_i32_1 = arith.constant 0 : i32
    return %c0_i32, %c0_i32_0 : i32, i32
  }
  func.func @transform_5(%arg0: i32) -> (i32, i32) {
    %c0_i32 = arith.constant 0 : i32
    %c0_i32_0 = arith.constant 0 : i32
    %c0_i32_1 = arith.constant 0 : i32
    return %c0_i32, %c0_i32_0 : i32, i32
  }
  func.func @transform_6(%arg0: i32) -> (i32, i32) {
    %c0_i32 = arith.constant 0 : i32
    %c0_i32_0 = arith.constant 0 : i32
    %c0_i32_1 = arith.constant 0 : i32
    return %c0_i32, %c0_i32_0 : i32, i32
  }
  func.func @transform_7(%arg0: i32) -> (i32, i32) {
    %c0_i32 = arith.constant 0 : i32
    %c0_i32_0 = arith.constant 0 : i32
    %c0_i32_1 = arith.constant 0 : i32
    return %c0_i32, %c0_i32_0 : i32, i32
  }
  func.func @transform_8(%arg0: i32) -> (i32, i32) {
    %c0_i32 = arith.constant 0 : i32
    %c0_i32_0 = arith.constant 0 : i32
    %c0_i32_1 = arith.constant 0 : i32
    return %c0_i32, %c0_i32_0 : i32, i32
  }
  func.func @transform_9(%arg0: i32) -> (i32, i32) {
    %c0_i32 = arith.constant 0 : i32
    %c0_i32_0 = arith.constant 0 : i32
    %c0_i32_1 = arith.constant 0 : i32
    return %c0_i32, %c0_i32_0 : i32, i32
  }
  func.func @transform_10(%arg0: i32) -> (i32, i32) {
    %c0_i32 = arith.constant 0 : i32
    %c0_i32_0 = arith.constant 0 : i32
    %c0_i32_1 = arith.constant 0 : i32
    return %c0_i32, %c0_i32_0 : i32, i32
  }
  func.func @transform_11(%arg0: i32) -> (i32, i32) {
    %c0_i32 = arith.constant 0 : i32
    %c0_i32_0 = arith.constant 0 : i32
    %c0_i32_1 = arith.constant 0 : i32
    return %c0_i32, %c0_i32_0 : i32, i32
  }
  func.func @transform_12(%arg0: i32) -> (i32, i32) {
    %c0_i32 = arith.constant 0 : i32
    %c0_i32_0 = arith.constant 0 : i32
    %c0_i32_1 = arith.constant 0 : i32
    return %c0_i32, %c0_i32_0 : i32, i32
  }
  func.func @transform_13(%arg0: i32) -> (i32, i32) {
    %c0_i32 = arith.constant 0 : i32
    %c0_i32_0 = arith.constant 0 : i32
    %c0_i32_1 = arith.constant 0 : i32
    return %c0_i32, %c0_i32_0 : i32, i32
  }
  func.func @transform_14(%arg0: i32) -> (i32, i32) {
    %c0_i32 = arith.constant 0 : i32
    %c0_i32_0 = arith.constant 0 : i32
    %c0_i32_1 = arith.constant 0 : i32
    return %c0_i32, %c0_i32_0 : i32, i32
  }
  func.func @transform_15(%arg0: i32) -> (i32, i32) {
    %c0_i32 = arith.constant 0 : i32
    %c0_i32_0 = arith.constant 0 : i32
    %c0_i32_1 = arith.constant 0 : i32
    return %c0_i32, %c0_i32_0 : i32, i32
  }
  func.func @transform_16(%arg0: i32) -> (i32, i32) {
    %c0_i32 = arith.constant 0 : i32
    %c0_i32_0 = arith.constant 0 : i32
    %c0_i32_1 = arith.constant 0 : i32
    return %c0_i32, %c0_i32_0 : i32, i32
  }
  func.func @transform_17(%arg0: i32) -> (i32, i32) {
    %c0_i32 = arith.constant 0 : i32
    %c0_i32_0 = arith.constant 0 : i32
    %c0_i32_1 = arith.constant 0 : i32
    return %c0_i32, %c0_i32_0 : i32, i32
  }
  func.func @transform_18(%arg0: i32) -> (i32, i32) {
    %c0_i32 = arith.constant 0 : i32
    %c0_i32_0 = arith.constant 0 : i32
    %c0_i32_1 = arith.constant 0 : i32
    return %c0_i32, %c0_i32_0 : i32, i32
  }
  func.func @transform_19(%arg0: i32) -> (i32, i32) {
    %c0_i32 = arith.constant 0 : i32
    %c0_i32_0 = arith.constant 0 : i32
    %c0_i32_1 = arith.constant 0 : i32
    return %c0_i32, %c0_i32_0 : i32, i32
  }
  func.func @transform_20(%arg0: i32) -> (i32, i32) {
    %c0_i32 = arith.constant 0 : i32
    %c0_i32_0 = arith.constant 0 : i32
    %c0_i32_1 = arith.constant 0 : i32
    return %c0_i32, %c0_i32_0 : i32, i32
  }
  func.func @transform_21(%arg0: i32) -> (i32, i32) {
    %c0_i32 = arith.constant 0 : i32
    %c0_i32_0 = arith.constant 0 : i32
    return %c0_i32, %arg0 : i32, i32
  }
}

</mosaic_0001>

<bundles_post_ra>
// kernel: attack_model_forward.1
= control target key start
LH: loop header
LB: loop body
LE: loop exit
PB: predicated region body
PF: predicated region fallthrough
CT: control target
= control target key end

     0   :  { %s15795_s0 = inlined_call_operand.vmem [shape: bf16[512,10], index: 0, kind: input, shape index: {}]   ;;  %s15796_s1 = inlined_call_operand.vmem [shape: bf16[512,10], index: 1, kind: input, shape index: {}]   ;;  %s15797_s2 = inlined_call_operand.vmem [shape: bf16[1024,10], index: 2, kind: input, shape index: {}]   ;;  %s15798_s3 = inlined_call_operand.vmem [shape: f32[1024,1], index: 3, kind: input, shape index: {}]   ;;  %s15799_s4 = inlined_call_operand.vmem [shape: bf16[512,1024], index: 4, kind: input, shape index: {}]   ;;  %s15800_s5 = inlined_call_operand.vmem [shape: f32[512,1], index: 5, kind: input, shape index: {}]   ;;  %s15801_s6 = inlined_call_operand.vmem [shape: bf16[256,512], index: 6, kind: input, shape index: {}]   ;;  %s15802_s7 = inlined_call_operand.vmem [shape: f32[256,1], index: 7, kind: input, shape index: {}]   ;;  %s15803_s8 = inlined_call_operand.vmem [shape: bf16[64,256], index: 8, kind: input, shape index: {}]   ;;  %s15804_s9 = inlined_call_operand.vmem [shape: f32[64,1], index: 9, kind: input, shape index: {}]   ;;  %s15805_s10 = inlined_call_operand.vmem [shape: bf16[256,10], index: 10, kind: input, shape index: {}]   ;;  %s15806_s11 = inlined_call_operand.vmem [shape: f32[256,1], index: 11, kind: input, shape index: {}]   ;;  %s15807_s12 = inlined_call_operand.vmem [shape: bf16[128,256], index: 12, kind: input, shape index: {}]   ;;  %s15808_s13 = inlined_call_operand.vmem [shape: f32[128,1], index: 13, kind: input, shape index: {}]   ;;  %s15809_s14 = inlined_call_operand.vmem [shape: bf16[64,128], index: 14, kind: input, shape index: {}]   ;;  %s15810_s15 = inlined_call_operand.vmem [shape: f32[64,1], index: 15, kind: input, shape index: {}]   ;;  %s15811_s16 = inlined_call_operand.vmem [shape: bf16[64,64], index: 16, kind: input, shape index: {}]   ;;  %s15812_s17 = inlined_call_operand.vmem [shape: bf16[64,64], index: 17, kind: input, shape index: {}]   ;;  %s15813_s18 = inlined_call_operand.vmem [shape: f32[64,1], index: 18, kind: input, shape index: {}]   ;;  %s15814_s19 = inlined_call_operand.vmem [shape: bf16[64,1], index: 19, kind: input, shape index: {}]   ;;  %s15815_s20 = inlined_call_operand.<no memory space> [shape: f32[1,1], index: 20, kind: input, shape index: {}]   ;;  %s15816_s21 = inlined_call_operand.hbm [shape: f32[1,512], index: 21, kind: output, shape index: {}]  }
   0x1   :  { %15988 = sst [smem:[#allocation117_spill]] %s15795_s0  ;;  %v26_v0 = vstv %s15815_s20 }
   0x2   :  { %15989 = sst [smem:[#allocation118_spill]] %s15796_s1  ;;  %27 = vst [vmem:[#allocation2] sm:$0x1] %v26_v0 }
   0x3   :  { %15990 = sst [smem:[#allocation119_spill]] %s15797_s2 }
   0x4   :  { %15991 = sst [smem:[#allocation120_spill]] %s15798_s3 }
   0x5   :  { %15992 = sst [smem:[#allocation121_spill]] %s15799_s4 }
   0x6   :  { %15993 = sst [smem:[#allocation122_spill]] %s15800_s5 }
   0x7   :  { %28 = vsyncpa [#allocation4], 0 }
   0x8   :  { %30 = vsyncpa [#allocation4 + $0x1], 0  ;;  %s11912_s26 = smov 0   ;;  %s11914_s27 = smov 0  }
   0x9   :  { %s11916_s3 = smov 0   ;;  %s11918_s28 = smov 0  }
   0xa LB: > { %15994 = sst [smem:[#allocation6_spill]] %s11782_s26  ;;  %s9952_s20 = sadd.s32 4294967295, %s11794_s28   ;;  %s11794_s28 = sphi %s11918_s28, %s16335_s28   ;;  %s11790_s3 = sphi %s11916_s3, %s16337_s3   ;;  %s11786_s27 = sphi %s11914_s27, %s16339_s27   ;;  %s11782_s26 = sphi %s11912_s26, %s16338_s26  }
   0xb   : > { %15995 = sst [smem:[#allocation7_spill]] %s11790_s3  ;;  %s9953_s29 = sadd.s32 4294967294, %s11794_s28  }
   0xc   : > { %15996 = sst [smem:[#allocation8_spill]] %s11794_s28  ;;  %s11935_s0 = sadd.s32 1, %s11794_s28  }
   0xd   : > { %15997 = sst [smem:[#allocation9_spill]] %s11935_s0  ;;  %s494_s4 = sadd.s32 1, %s11790_s3 }
   0xe   : > { %s491_s30 = ssub.s32 %s11794_s28, %s11935_s0  ;;  %p504_p0 = scmp.ne.s32.totalorder %s11790_s3, %s11786_s27 }
   0xf   : > { %p492_p1 = scmp.eq.s32.totalorder %s491_s30, 0  ;;  %p505_p2 = scmp.eq.s32.totalorder %s9952_s20, 1 }
  0x10   : > { %p510_p3 = scmp.ne.s32.totalorder %s11786_s27, %s11782_s26  ;;  %p511_p4 = scmp.eq.s32.totalorder %s9953_s29, 1 }
  0x11   : > { %s11945_s5 = scalar_select %p492_p1, %s11790_s3, %s494_s4  }
  0x12   : > { %p11947_p5 = por %p505_p2, %p504_p0  ;;  %p11951_p6 = por %p511_p4, %p510_p3 }
  0x13   : > { %15998 = sst [smem:[#allocation10_spill]] %s11945_s5  ;;  %p9956_p7 = scmp.ge.s32.totalorder %s11794_s28, 1 }
  0x14   : > { %s16000_s23 = scalar_select %p11951_p6, 1, 0 }
  0x15   : > { %p604_p8 = scmp.lt.s32.totalorder %s11794_s28, 3 }
  0x16   : > { %16001 = sst [smem:[#allocation11_spill]] %s16000_s23 }
  0x17   : > { %p605_p9 = pnand %p9956_p7, %p604_p8 }
  0x19   : > { %608 = sbr.rel (%p605_p9) target bundleno = 3309 (0xced), region = 104 }
  0x20   : > { %s16002_s2 = sld [smem:[#allocation120_spill]]  ;;  %s11963_s4 = sshll.u32 %s9952_s20, 5  ;;  %v15828_v3 = vmov 0   ;;  %vm2011_vm0 = vcmask 80896   ;;  %vm9451_vm1 = vcmask 523264  }
  0x21   : > { %11457 = vset.pattern.permute.xlu1 %v15828_v3  ;;  %11456 = vset.pattern.permute.xlu0 %v15828_v3  ;;  %p670_p10 = scmp.lt.s32.totalorder %s11963_s4, 63  ;;  %s16003_s1 = sld [smem:[#allocation117_spill]] }
  0x22   : > { %s16004_s30 = sld [smem:[#allocation119_spill]]  ;;  %s16006_s28 = sld [smem:[#allocation118_spill]] }
  0x23   : > { %s11975_s20 = scalar_select %p670_p10, %s11963_s4, 63 }
  0x24   : > { %s16043_s26 = sld [smem:[#allocation121_spill]]  ;;  %s11798_s23 = smov [#allocation3]  }
  0x25   : > { %s15825_s25 = sshll.u32 %s11975_s20, 2  ;;  %s11736_s29 = sshll.u32 %s11798_s23, 4  ;;  %s11737_s29 = int_to_ptr.vmem [resolvable:$false] %s11736_s29 }
  0x26   : > { %v845_v1 = vld [vmem:[%s16002_s2 + $0x10] sm:$0xff]  ;;  %v843_v2 = vld [vmem:[%s16002_s2] sm:$0xff]  ;;  %v846_v4 = vld [vmem:[%s16002_s2 + $0x18] sm:$0xff] }
  0x27   : > { %983 = vperm.xlu1 %11457, %v845_v1   ;;  %973 = vperm.xlu0 %11456, %v843_v2   ;;  %v844_v5 = vld [vmem:[%s16002_s2 + $0x8] sm:$0xff]  ;;  %v847_v7 = vld [vmem:[%s16002_s2 + $0x20] sm:$0xff]  ;;  %s11989_s24 = scalar_lea.vmem %s16003_s1, %s15825_s25  ;;  %v850_v12 = vld [vmem:[%s16002_s2 + $0x38] sm:$0xff]  ;;  %s16005_s25 = sshll.u32 %s11975_s20, 2 }
  0x28   : > { %v848_v6 = vld [vmem:[%s16002_s2 + $0x28] sm:$0xff]  ;;  %v11468_v8 = vld [vmem:[%s11989_s24 + $0x40] sm:$0xff]   ;;  %v849_v13 = vld [vmem:[%s16002_s2 + $0x30] sm:$0xff]  ;;  %s12264_s3 = scalar_lea.vmem %s16006_s28, %s16005_s25  ;;  %s16026_s20 = sld [smem:[#allocation122_spill]] }
  0x29   : > { %v11469_v9 = vld [vmem:[%s11989_s24] sm:$0xff]   ;;  %11399 = vmatprep.subr.msk.bf16.mxu0 %vm2011_vm0, %v11468_v8  ;;  %v11470_v10 = vld [vmem:[%s11989_s24 + $0x48] sm:$0xff]   ;;  %v11472_v18 = vld [vmem:[%s11989_s24 + $0x50] sm:$0xff]   ;;  %s15753_s1 = scalar_lea.hbm %s15816_s21, %s11963_s4 }
  0x2a   : > { %v2205_v11 = vsel %vm2011_vm0, %v11469_v9, 0  ;;  %v11471_v14 = vld [vmem:[%s11989_s24 + $0x8] sm:$0xff]   ;;  %v851_v16 = vld [vmem:[%s16002_s2 + $0x40] sm:$0xff]  ;;  %v854_v19 = vld [vmem:[%s16002_s2 + $0x58] sm:$0xff] }
  0x2b   : > { %988 = vperm.xlu1 %11457, %v846_v4   ;;  %978 = vperm.xlu0 %11456, %v844_v5   ;;  %v852_v15 = vld [vmem:[%s16002_s2 + $0x48] sm:$0xff]  ;;  %v2208_v17 = vsel %vm2011_vm0, %v11471_v14, 0  ;;  %v853_v20 = vld [vmem:[%s16002_s2 + $0x50] sm:$0xff]  ;;  %v855_v23 = vld [vmem:[%s16002_s2 + $0x60] sm:$0xff] }
  0x2c   : > { %10544 = vmatpush3.bf16.xpose.msra.mxu0 %v2205_v11  ;;  %v11473_v21 = vld [vmem:[%s11989_s24 + $0x10] sm:$0xff]   ;;  %v856_v22 = vld [vmem:[%s16002_s2 + $0x68] sm:$0xff]  ;;  %v11474_v25 = vld [vmem:[%s11989_s24 + $0x58] sm:$0xff]  }
  0x2d   : > { %11400 = vmatprep.subr.msk.bf16.mxu0 %vm2011_vm0, %v11470_v10  ;;  %v2211_v24 = vsel %vm2011_vm0, %v11473_v21, 0  ;;  %v858_v26 = vld [vmem:[%s16002_s2 + $0x78] sm:$0xff]  ;;  %v857_v27 = vld [vmem:[%s16002_s2 + $0x70] sm:$0xff]  ;;  %v12039_v29 = vld [vmem:[%s16004_s30] sm:$0xff]  }
  0x2e   : > { %v11475_v28 = vld [vmem:[%s11989_s24 + $0x18] sm:$0xff]   ;;  %v860_v30 = vld [vmem:[%s16002_s2 + $0x88] sm:$0xff]  ;;  %v859_v31 = vld [vmem:[%s16002_s2 + $0x80] sm:$0xff]  ;;  %10559 = vmatprep.mubr.msk.bf16.mxu0 %vm2011_vm0, %v12039_v29 }
  0x2f   : > { %998 = vperm.xlu1 %11457, %v848_v6   ;;  %993 = vperm.xlu0 %11456, %v847_v7   ;;  %v2214_v32 = vsel %vm2011_vm0, %v11475_v28, 0  ;;  %v11476_v33 = vld [vmem:[%s11989_s24 + $0x60] sm:$0xff]   ;;  %v862_v34 = vld [vmem:[%s16002_s2 + $0x98] sm:$0xff]  ;;  %v861_v35 = vld [vmem:[%s16002_s2 + $0x90] sm:$0xff] }
  0x30   : > { %v11477_v36 = vld [vmem:[%s11989_s24 + $0x20] sm:$0xff]   ;;  %v864_v37 = vld [vmem:[%s16002_s2 + $0xa8] sm:$0xff]  ;;  %v866_v41 = vld [vmem:[%s16002_s2 + $0xb8] sm:$0xff] }
  0x31   : > { %v863_v38 = vld [vmem:[%s16002_s2 + $0xa0] sm:$0xff]  ;;  %v2217_v39 = vsel %vm2011_vm0, %v11477_v36, 0  ;;  %v11478_v40 = vld [vmem:[%s11989_s24 + $0x68] sm:$0xff]   ;;  %v865_v42 = vld [vmem:[%s16002_s2 + $0xb0] sm:$0xff] }
  0x32   : > { %v11479_v43 = vld [vmem:[%s11989_s24 + $0x28] sm:$0xff]   ;;  %v867_v45 = vld [vmem:[%s16002_s2 + $0xc0] sm:$0xff]  ;;  %v11480_v47 = vld [vmem:[%s11989_s24 + $0x70] sm:$0xff]  }
  0x33   : > { %1008 = vperm.xlu1 %11457, %v850_v12   ;;  %1003 = vperm.xlu0 %11456, %v849_v13   ;;  %v868_v44 = vld [vmem:[%s16002_s2 + $0xc8] sm:$0xff]  ;;  %v2220_v46 = vsel %vm2011_vm0, %v11479_v43, 0  ;;  %v870_v48 = vld [vmem:[%s16002_s2 + $0xd8] sm:$0xff]  ;;  %v869_v49 = vld [vmem:[%s16002_s2 + $0xd0] sm:$0xff] }
  0x34   : > { %10546 = vmatpush3.bf16.xpose.msra.mxu0 %v2208_v17  ;;  %v11481_v50 = vld [vmem:[%s11989_s24 + $0x30] sm:$0xff]   ;;  %v872_v51 = vld [vmem:[%s16002_s2 + $0xe8] sm:$0xff]  ;;  %v871_v52 = vld [vmem:[%s16002_s2 + $0xe0] sm:$0xff] }
  0x35   : > { %11401 = vmatprep.subr.msk.bf16.mxu0 %vm2011_vm0, %v11472_v18  ;;  %v2223_v53 = vsel %vm2011_vm0, %v11481_v50, 0  ;;  %v11482_v54 = vld [vmem:[%s11989_s24 + $0x78] sm:$0xff]   ;;  %v873_v56 = vld [vmem:[%s16002_s2 + $0xf0] sm:$0xff]  ;;  %v876_v58 = vld [vmem:[%s16002_s2 + $0x108] sm:$0xff] }
  0x36   : > { %v874_v55 = vld [vmem:[%s16002_s2 + $0xf8] sm:$0xff]  ;;  %v875_v59 = vld [vmem:[%s16002_s2 + $0x100] sm:$0xff]  ;;  %v877_v62 = vld [vmem:[%s16002_s2 + $0x110] sm:$0xff] }
  0x37   : > { %1018 = vperm.xlu1 %11457, %v852_v15   ;;  %1013 = vperm.xlu0 %11456, %v851_v16   ;;  %v11483_v57 = vld [vmem:[%s11989_s24 + $0x38] sm:$0xff]   ;;  %v880_v63 = vld [vmem:[%s16002_s2 + $0x128] sm:$0xff]  ;;  %v879_v0 = vld [vmem:[%s16002_s2 + $0x120] sm:$0xff] }
  0x38   : > { %v2226_v60 = vsel %vm2011_vm0, %v11483_v57, 0  ;;  %v878_v61 = vld [vmem:[%s16002_s2 + $0x118] sm:$0xff]  ;;  %v11485_v1 = vld [vmem:[%s16004_s30 + $0x8] sm:$0xff]   ;;  %v881_v4 = vld [vmem:[%s16002_s2 + $0x130] sm:$0xff] }
  0x39   : > { %v882_v2 = vld [vmem:[%s16002_s2 + $0x138] sm:$0xff]  ;;  %v884_v5 = vld [vmem:[%s16002_s2 + $0x148] sm:$0xff]  ;;  %v883_v6 = vld [vmem:[%s16002_s2 + $0x140] sm:$0xff] }
  0x3a   : > { %v11486_v7 = vld [vmem:[%s16004_s30 + $0x10] sm:$0xff]   ;;  %v886_v8 = vld [vmem:[%s16002_s2 + $0x158] sm:$0xff]  ;;  %v888_v10 = vld [vmem:[%s16002_s2 + $0x168] sm:$0xff] }
  0x3b   : > { %1028 = vperm.xlu1 %11457, %v854_v19   ;;  %1023 = vperm.xlu0 %11456, %v853_v20   ;;  %v885_v9 = vld [vmem:[%s16002_s2 + $0x150] sm:$0xff]  ;;  %v887_v11 = vld [vmem:[%s16002_s2 + $0x160] sm:$0xff]  ;;  %v11487_v12 = vld [vmem:[%s16004_s30 + $0x18] sm:$0xff]  }
  0x3c   : > { %10548 = vmatpush3.bf16.xpose.msra.mxu0 %v2211_v24  ;;  %v890_v13 = vld [vmem:[%s16002_s2 + $0x178] sm:$0xff]  ;;  %v889_v14 = vld [vmem:[%s16002_s2 + $0x170] sm:$0xff]  ;;  %v892_v15 = vld [vmem:[%s16002_s2 + $0x188] sm:$0xff] }
  0x3d   : > { %11402 = vmatprep.subr.msk.bf16.mxu0 %vm2011_vm0, %v11474_v25  ;;  %v891_v16 = vld [vmem:[%s16002_s2 + $0x180] sm:$0xff]  ;;  %v894_v18 = vld [vmem:[%s16002_s2 + $0x198] sm:$0xff]  ;;  %v893_v19 = vld [vmem:[%s16002_s2 + $0x190] sm:$0xff] }
  0x3e   : > { %v11488_v17 = vld [vmem:[%s16004_s30 + $0x20] sm:$0xff]   ;;  %v896_v20 = vld [vmem:[%s16002_s2 + $0x1a8] sm:$0xff]  ;;  %v897_v24 = vld [vmem:[%s16002_s2 + $0x1b0] sm:$0xff] }
  0x3f   : > { %1038 = vperm.xlu1 %11457, %v856_v22   ;;  %1033 = vperm.xlu0 %11456, %v855_v23   ;;  %v895_v21 = vld [vmem:[%s16002_s2 + $0x1a0] sm:$0xff]  ;;  %v11489_v22 = vld [vmem:[%s16004_s30 + $0x28] sm:$0xff]   ;;  %v898_v23 = vld [vmem:[%s16002_s2 + $0x1b8] sm:$0xff] }
  0x40   : > { %v900_v25 = vld [vmem:[%s16002_s2 + $0x1c8] sm:$0xff]  ;;  %v902_v28 = vld [vmem:[%s16002_s2 + $0x1d8] sm:$0xff]  ;;  %v907_v36 = vld [vmem:[%s16002_s2 + $0x200] sm:$0xff] }
  0x41   : > { %v913_v50 = vld [vmem:[%s16002_s2 + $0x230] sm:$0xff] }
  0x43   : > { %1048 = vperm.xlu1 %11457, %v858_v26   ;;  %1043 = vperm.xlu0 %11456, %v857_v27   ;;  %v899_v26 = vld [vmem:[%s16002_s2 + $0x1c0] sm:$0xff]  ;;  %v11490_v27 = vld [vmem:[%s16004_s30 + $0x30] sm:$0xff]  }
  0x44   : > { %10550 = vmatpush3.bf16.xpose.msra.mxu0 %v2214_v32  ;;  %v11491_v32 = vld [vmem:[%s16004_s30 + $0x38] sm:$0xff]  }
  0x45   : > { %11403 = vmatprep.subr.msk.bf16.mxu0 %vm2011_vm0, %v11476_v33  ;;  %v906_v33 = vld [vmem:[%s16002_s2 + $0x1f8] sm:$0xff] }
  0x47   : > { %1058 = vperm.xlu1 %11457, %v860_v30   ;;  %1053 = vperm.xlu0 %11456, %v859_v31   ;;  %v904_v30 = vld [vmem:[%s16002_s2 + $0x1e8] sm:$0xff]  ;;  %v903_v31 = vld [vmem:[%s16002_s2 + $0x1e0] sm:$0xff] }
  0x4b   : > { %1068 = vperm.xlu1 %11457, %v862_v34   ;;  %1063 = vperm.xlu0 %11456, %v861_v35   ;;  %v905_v34 = vld [vmem:[%s16002_s2 + $0x1f0] sm:$0xff]  ;;  %v908_v35 = vld [vmem:[%s16002_s2 + $0x208] sm:$0xff] }
  0x4c   : > { %10552 = vmatpush3.bf16.xpose.msra.mxu0 %v2217_v39 }
  0x4d   : > { %11404 = vmatprep.subr.msk.bf16.mxu0 %vm2011_vm0, %v11478_v40  ;;  %v910_v40 = vld [vmem:[%s16002_s2 + $0x218] sm:$0xff] }
  0x4f   : > { %1078 = vperm.xlu1 %11457, %v864_v37   ;;  %1073 = vperm.xlu0 %11456, %v863_v38   ;;  %v11492_v37 = vld [vmem:[%s16004_s30 + $0x40] sm:$0xff]  }
  0x53   : > { %1088 = vperm.xlu1 %11457, %v866_v41   ;;  %1083 = vperm.xlu0 %11456, %v865_v42   ;;  %v909_v41 = vld [vmem:[%s16002_s2 + $0x210] sm:$0xff] }
  0x54   : > { %10554 = vmatpush3.bf16.xpose.msra.mxu0 %v2220_v46  ;;  %v11493_v46 = vld [vmem:[%s16004_s30 + $0x48] sm:$0xff]  }
  0x55   : > { %11405 = vmatprep.subr.msk.bf16.mxu0 %vm2011_vm0, %v11480_v47 }
  0x57   : > { %1098 = vperm.xlu1 %11457, %v868_v44   ;;  %1093 = vperm.xlu0 %11456, %v867_v45   ;;  %v912_v44 = vld [vmem:[%s16002_s2 + $0x228] sm:$0xff]  ;;  %v911_v45 = vld [vmem:[%s16002_s2 + $0x220] sm:$0xff] }
  0x5b   : > { %1108 = vperm.xlu1 %11457, %v870_v48   ;;  %1103 = vperm.xlu0 %11456, %v869_v49   ;;  %v914_v49 = vld [vmem:[%s16002_s2 + $0x238] sm:$0xff] }
  0x5c   : > { %10556 = vmatpush3.bf16.xpose.msra.mxu0 %v2223_v53  ;;  %v916_v53 = vld [vmem:[%s16002_s2 + $0x248] sm:$0xff] }
  0x5d   : > { %11406 = vmatprep.subr.msk.bf16.mxu0 %vm2011_vm0, %v11482_v54  ;;  %v915_v54 = vld [vmem:[%s16002_s2 + $0x240] sm:$0xff] }
  0x5f   : > { %1118 = vperm.xlu1 %11457, %v872_v51   ;;  %1113 = vperm.xlu0 %11456, %v871_v52  }
  0x63   : > { %1128 = vperm.xlu1 %11457, %v874_v55   ;;  %1123 = vperm.xlu0 %11456, %v873_v56   ;;  %v11494_v55 = vld [vmem:[%s16004_s30 + $0x50] sm:$0xff]  }
  0x64   : > { %10558 = vmatpush3.bf16.xpose.msra.mxu0 %v2226_v60 }
  0x67   : > { %1138 = vperm.xlu1 %11457, %v876_v58   ;;  %1133 = vperm.xlu0 %11456, %v875_v59   ;;  %v918_v58 = vld [vmem:[%s16002_s2 + $0x258] sm:$0xff]  ;;  %v917_v59 = vld [vmem:[%s16002_s2 + $0x250] sm:$0xff] }
  0x6b   : > { %1148 = vperm.xlu1 %11457, %v878_v61   ;;  %1143 = vperm.xlu0 %11456, %v877_v62   ;;  %v920_v62 = vld [vmem:[%s16002_s2 + $0x268] sm:$0xff] }
  0x6c   : > { %10560 = vmatmul.mubr.msk.bf16.vlgmr.msra.gmra.mrb[0].mxu0 %vm2011_vm0, %v12039_v29  ;;  %v901_v29 = vld [vmem:[%s16002_s2 + $0x1d0] sm:$0xff] }
  0x6d   : > { %10561 = vmatprep.mubr.msk.bf16.mxu0 %vm2011_vm0, %v11485_v1 }
  0x6f   : > { %1158 = vperm.xlu1 %11457, %v880_v63   ;;  %1153 = vperm.xlu0 %11456, %v879_v0   ;;  %v919_v63 = vld [vmem:[%s16002_s2 + $0x260] sm:$0xff]  ;;  %v11495_v0 = vld [vmem:[%s16004_s30 + $0x58] sm:$0xff]  }
  0x73   : > { %1168 = vperm.xlu1 %11457, %v882_v2   ;;  %1163 = vperm.xlu0 %11456, %v881_v4   ;;  %v922_v4 = vld [vmem:[%s16002_s2 + $0x278] sm:$0xff] }
  0x74   : > { %10562 = vmatmul.mubr.msk.bf16.gmra.mrb[4].mxu0 %vm2011_vm0, %v11485_v1 }
  0x75   : > { %10563 = vmatprep.mubr.msk.bf16.mxu0 %vm2011_vm0, %v11486_v7 }
  0x77   : > { %1178 = vperm.xlu1 %11457, %v884_v5   ;;  %1173 = vperm.xlu0 %11456, %v883_v6   ;;  %v921_v5 = vld [vmem:[%s16002_s2 + $0x270] sm:$0xff] }
  0x7b   : > { %1188 = vperm.xlu1 %11457, %v886_v8   ;;  %1183 = vperm.xlu0 %11456, %v885_v9   ;;  %v924_v8 = vld [vmem:[%s16002_s2 + $0x288] sm:$0xff]  ;;  %v923_v9 = vld [vmem:[%s16002_s2 + $0x280] sm:$0xff] }
  0x7c   : > { %10564 = vmatmul.mubr.msk.bf16.gmra.mrb[8].mxu0 %vm2011_vm0, %v11486_v7 }
  0x7d   : > { %10565 = vmatprep.mubr.msk.bf16.mxu0 %vm2011_vm0, %v11487_v12 }
  0x7f   : > { %1198 = vperm.xlu1 %11457, %v888_v10   ;;  %1193 = vperm.xlu0 %11456, %v887_v11   ;;  %v11496_v10 = vld [vmem:[%s16004_s30 + $0x60] sm:$0xff]  }
  0x83   : > { %1208 = vperm.xlu1 %11457, %v890_v13   ;;  %1203 = vperm.xlu0 %11456, %v889_v14   ;;  %v926_v13 = vld [vmem:[%s16002_s2 + $0x298] sm:$0xff]  ;;  %v925_v14 = vld [vmem:[%s16002_s2 + $0x290] sm:$0xff] }
  0x84   : > { %10566 = vmatmul.mubr.msk.bf16.gmra.mrb[12].mxu0 %vm2011_vm0, %v11487_v12 }
  0x85   : > { %10567 = vmatprep.mubr.msk.bf16.mxu0 %vm2011_vm0, %v11488_v17 }
  0x87   : > { %1218 = vperm.xlu1 %11457, %v892_v15   ;;  %1213 = vperm.xlu0 %11456, %v891_v16  }
  0x8b   : > { %1228 = vperm.xlu1 %11457, %v894_v18   ;;  %1223 = vperm.xlu0 %11456, %v893_v19   ;;  %v927_v18 = vld [vmem:[%s16002_s2 + $0x2a0] sm:$0xff]  ;;  %v11497_v19 = vld [vmem:[%s16004_s30 + $0x68] sm:$0xff]  }
  0x8c   : > { %10568 = vmatmul.mubr.msk.bf16.gmra.mrb[16].mxu0 %vm2011_vm0, %v11488_v17  ;;  %v928_v17 = vld [vmem:[%s16002_s2 + $0x2a8] sm:$0xff] }
  0x8d   : > { %10569 = vmatprep.mubr.msk.bf16.mxu0 %vm2011_vm0, %v11489_v22 }
  0x8f   : > { %1238 = vperm.xlu1 %11457, %v896_v20   ;;  %1233 = vperm.xlu0 %11456, %v895_v21  }
  0x93   : > { %1248 = vperm.xlu1 %11457, %v898_v23   ;;  %1243 = vperm.xlu0 %11456, %v897_v24   ;;  %v929_v23 = vld [vmem:[%s16002_s2 + $0x2b0] sm:$0xff] }
  0x94   : > { %10570 = vmatmul.mubr.msk.bf16.gmra.mrb[20].mxu0 %vm2011_vm0, %v11489_v22  ;;  %v930_v22 = vld [vmem:[%s16002_s2 + $0x2b8] sm:$0xff] }
  0x95   : > { %10571 = vmatprep.mubr.msk.bf16.mxu0 %vm2011_vm0, %v11490_v27 }
  0x97   : > { %1258 = vperm.xlu1 %11457, %v900_v25   ;;  %1253 = vperm.xlu0 %11456, %v899_v26   ;;  %v932_v26 = vld [vmem:[%s16002_s2 + $0x2c8] sm:$0xff] }
  0x9b   : > { %1268 = vperm.xlu1 %11457, %v902_v28   ;;  %1263 = vperm.xlu0 %11456, %v901_v29   ;;  %v11498_v28 = vld [vmem:[%s16004_s30 + $0x70] sm:$0xff]  }
  0x9c   : > { %10572 = vmatmul.mubr.msk.bf16.gmra.mrb[24].mxu0 %vm2011_vm0, %v11490_v27  ;;  %v931_v27 = vld [vmem:[%s16002_s2 + $0x2c0] sm:$0xff] }
  0x9d   : > { %10573 = vmatprep.mubr.msk.bf16.mxu0 %vm2011_vm0, %v11491_v32 }
  0x9f   : > { %1278 = vperm.xlu1 %11457, %v904_v30   ;;  %1273 = vperm.xlu0 %11456, %v903_v31   ;;  %v934_v31 = vld [vmem:[%s16002_s2 + $0x2d8] sm:$0xff] }
  0xa3   : > { %1288 = vperm.xlu1 %11457, %v906_v33   ;;  %1283 = vperm.xlu0 %11456, %v905_v34  }
  0xa4   : > { %10574 = vmatmul.mubr.msk.bf16.gmra.mrb[28].mxu0 %vm2011_vm0, %v11491_v32  ;;  %v933_v32 = vld [vmem:[%s16002_s2 + $0x2d0] sm:$0xff] }
  0xa5   : > { %10575 = vmatprep.mubr.msk.bf16.mxu0 %vm2011_vm0, %v11492_v37 }
  0xa6   : > { %v12249_v38 = vpop.permute.xlu1 %983  ;;  %v12251_v39 = vpop.permute.xlu0 %973 }
  0xa7   : > { %1298 = vperm.xlu1 %11457, %v908_v35   ;;  %1293 = vperm.xlu0 %11456, %v907_v36   ;;  %v936_v35 = vld [vmem:[%s16002_s2 + $0x2e8] sm:$0xff]  ;;  %v935_v36 = vld [vmem:[%s16002_s2 + $0x2e0] sm:$0xff] }
  0xaa   : > { %v12268_v42 = vpop.permute.xlu1 %988  ;;  %v12270_v43 = vpop.permute.xlu0 %978 }
  0xab   : > { %1308 = vperm.xlu1 %11457, %v910_v40   ;;  %1303 = vperm.xlu0 %11456, %v909_v41  }
  0xac   : > { %10576 = vmatmul.mubr.msk.bf16.gmra.mrb[32].mxu0 %vm2011_vm0, %v11492_v37  ;;  %v11499_v37 = vld [vmem:[%s16004_s30 + $0x78] sm:$0xff]  }
  0xad   : > { %10577 = vmatprep.mubr.msk.bf16.mxu0 %vm2011_vm0, %v11493_v46 }
  0xae   : > { %v12281_v47 = vpop.permute.xlu1 %998  ;;  %v12283_v48 = vpop.permute.xlu0 %993 }
  0xaf   : > { %1318 = vperm.xlu1 %11457, %v912_v44   ;;  %1313 = vperm.xlu0 %11456, %v911_v45   ;;  %v938_v44 = vld [vmem:[%s16002_s2 + $0x2f8] sm:$0xff]  ;;  %v937_v45 = vld [vmem:[%s16002_s2 + $0x2f0] sm:$0xff] }
  0xb2   : > { %v12293_v51 = vpop.permute.xlu1 %1008  ;;  %v12295_v52 = vpop.permute.xlu0 %1003 }
  0xb3   : > { %1328 = vperm.xlu1 %11457, %v914_v49   ;;  %1323 = vperm.xlu0 %11456, %v913_v50   ;;  %v940_v50 = vld [vmem:[%s16002_s2 + $0x308] sm:$0xff] }
  0xb4   : > { %10578 = vmatmul.mubr.msk.bf16.gmra.mrb[36].mxu0 %vm2011_vm0, %v11493_v46 }
  0xb5   : > { %10579 = vmatprep.mubr.msk.bf16.mxu0 %vm2011_vm0, %v11494_v55 }
  0xb6   : > { %v12306_v56 = vpop.permute.xlu1 %1018  ;;  %v12308_v57 = vpop.permute.xlu0 %1013 }
  0xb7   : > { %1338 = vperm.xlu1 %11457, %v916_v53   ;;  %1333 = vperm.xlu0 %11456, %v915_v54   ;;  %v939_v53 = vld [vmem:[%s16002_s2 + $0x300] sm:$0xff] }
  0xb8   : > { %v11500_v54 = vld [vmem:[%s16004_s30 + $0x80] sm:$0xff]  }
  0xba   : > { %v12318_v60 = vpop.permute.xlu1 %1028  ;;  %v12320_v61 = vpop.permute.xlu0 %1023 }
  0xbb   : > { %1348 = vperm.xlu1 %11457, %v918_v58   ;;  %1343 = vperm.xlu0 %11456, %v917_v59   ;;  %v942_v59 = vld [vmem:[%s16002_s2 + $0x318] sm:$0xff] }
  0xbc   : > { %10580 = vmatmul.mubr.msk.bf16.gmra.mrb[40].mxu0 %vm2011_vm0, %v11494_v55 }
  0xbd   : > { %10581 = vmatprep.mubr.msk.bf16.mxu0 %vm2011_vm0, %v11495_v0 }
  0xbe   : > { %v12331_v1 = vpop.permute.xlu1 %1038  ;;  %v12333_v2 = vpop.permute.xlu0 %1033 }
  0xbf   : > { %1358 = vperm.xlu1 %11457, %v920_v62   ;;  %1353 = vperm.xlu0 %11456, %v919_v63   ;;  %v941_v62 = vld [vmem:[%s16002_s2 + $0x310] sm:$0xff] }
  0xc2   : > { %v12343_v6 = vpop.permute.xlu1 %1048  ;;  %v12345_v7 = vpop.permute.xlu0 %1043 }
  0xc3   : > { %1368 = vperm.xlu1 %11457, %v922_v4   ;;  %1363 = vperm.xlu0 %11456, %v921_v5   ;;  %v944_v4 = vld [vmem:[%s16002_s2 + $0x328] sm:$0xff]  ;;  %v943_v5 = vld [vmem:[%s16002_s2 + $0x320] sm:$0xff] }
  0xc4   : > { %10582 = vmatmul.mubr.msk.bf16.gmra.mrb[44].mxu0 %vm2011_vm0, %v11495_v0 }
  0xc5   : > { %10583 = vmatprep.mubr.msk.bf16.mxu0 %vm2011_vm0, %v11496_v10 }
  0xc6   : > { %v12356_v11 = vpop.permute.xlu1 %1058  ;;  %v12358_v12 = vpop.permute.xlu0 %1053 }
  0xc7   : > { %1378 = vperm.xlu1 %11457, %v924_v8   ;;  %1373 = vperm.xlu0 %11456, %v923_v9   ;;  %v11501_v8 = vld [vmem:[%s16004_s30 + $0x88] sm:$0xff]  }
  0xca   : > { %v12368_v15 = vpop.permute.xlu1 %1068  ;;  %v12370_v16 = vpop.permute.xlu0 %1063 }
  0xcb   : > { %1388 = vperm.xlu1 %11457, %v926_v13   ;;  %1383 = vperm.xlu0 %11456, %v925_v14   ;;  %v946_v13 = vld [vmem:[%s16002_s2 + $0x338] sm:$0xff]  ;;  %v945_v14 = vld [vmem:[%s16002_s2 + $0x330] sm:$0xff] }
  0xcc   : > { %10584 = vmatmul.mubr.msk.bf16.gmra.mrb[48].mxu0 %vm2011_vm0, %v11496_v10 }
  0xcd   : > { %10585 = vmatprep.mubr.msk.bf16.mxu0 %vm2011_vm0, %v11497_v19 }
  0xce   : > { %v12381_v20 = vpop.permute.xlu1 %1078  ;;  %v12383_v21 = vpop.permute.xlu0 %1073 }
  0xcf   : > { %1398 = vperm.xlu1 %11457, %v928_v17   ;;  %1393 = vperm.xlu0 %11456, %v927_v18  }
  0xd2   : > { %v12393_v24 = vpop.permute.xlu1 %1088  ;;  %v12395_v25 = vpop.permute.xlu0 %1083 }
  0xd3   : > { %1408 = vperm.xlu1 %11457, %v930_v22   ;;  %1403 = vperm.xlu0 %11456, %v929_v23   ;;  %v947_v22 = vld [vmem:[%s16002_s2 + $0x340] sm:$0xff]  ;;  %v11502_v23 = vld [vmem:[%s16004_s30 + $0x90] sm:$0xff]  }
  0xd4   : > { %10586 = vmatmul.mubr.msk.bf16.gmra.mrb[52].mxu0 %vm2011_vm0, %v11497_v19  ;;  %v948_v19 = vld [vmem:[%s16002_s2 + $0x348] sm:$0xff] }
  0xd5   : > { %10587 = vmatprep.mubr.msk.bf16.mxu0 %vm2011_vm0, %v11498_v28 }
  0xd6   : > { %v12406_v29 = vpop.permute.xlu1 %1098  ;;  %v12408_v30 = vpop.permute.xlu0 %1093 }
  0xd7   : > { %1418 = vperm.xlu1 %11457, %v932_v26   ;;  %1413 = vperm.xlu0 %11456, %v931_v27  }
  0xda   : > { %v12418_v33 = vpop.permute.xlu1 %1108  ;;  %v12420_v34 = vpop.permute.xlu0 %1103 }
  0xdb   : > { %1428 = vperm.xlu1 %11457, %v934_v31   ;;  %1423 = vperm.xlu0 %11456, %v933_v32   ;;  %v949_v31 = vld [vmem:[%s16002_s2 + $0x350] sm:$0xff] }
  0xdc   : > { %10588 = vmatmul.mubr.msk.bf16.gmra.mrb[56].mxu0 %vm2011_vm0, %v11498_v28  ;;  %v950_v28 = vld [vmem:[%s16002_s2 + $0x358] sm:$0xff] }
  0xdd   : > { %10589 = vmatprep.mubr.msk.bf16.mxu0 %vm2011_vm0, %v11499_v37 }
  0xde   : > { %v12431_v40 = vpop.permute.xlu1 %1118  ;;  %v12433_v41 = vpop.permute.xlu0 %1113 }
  0xdf   : > { %1438 = vperm.xlu1 %11457, %v936_v35   ;;  %1433 = vperm.xlu0 %11456, %v935_v36   ;;  %v952_v36 = vld [vmem:[%s16002_s2 + $0x368] sm:$0xff] }
  0xe2   : > { %v12443_v46 = vpop.permute.xlu1 %1128  ;;  %v12445_v49 = vpop.permute.xlu0 %1123 }
  0xe3   : > { %1448 = vperm.xlu1 %11457, %v938_v44   ;;  %1443 = vperm.xlu0 %11456, %v937_v45   ;;  %v11503_v44 = vld [vmem:[%s16004_s30 + $0x98] sm:$0xff]  }
  0xe4   : > { %10590 = vmatmul.mubr.msk.bf16.gmra.mrb[60].mxu0 %vm2011_vm0, %v11499_v37  ;;  %v951_v37 = vld [vmem:[%s16002_s2 + $0x360] sm:$0xff] }
  0xe5   : > { %10591 = vmatprep.mubr.msk.bf16.mxu0 %vm2011_vm0, %v11500_v54 }
  0xe6   : > { %v12456_v55 = vpop.permute.xlu1 %1138  ;;  %v12458_v58 = vpop.permute.xlu0 %1133 }
  0xe7   : > { %1458 = vperm.xlu1 %11457, %v940_v50   ;;  %1453 = vperm.xlu0 %11456, %v939_v53   ;;  %v954_v53 = vld [vmem:[%s16002_s2 + $0x378] sm:$0xff] }
  0xea   : > { %v12468_v63 = vpop.permute.xlu1 %1148  ;;  %v12470_v0 = vpop.permute.xlu0 %1143 }
  0xeb   : > { %1468 = vperm.xlu1 %11457, %v942_v59   ;;  %1463 = vperm.xlu0 %11456, %v941_v62  }
  0xec   : > { %10592 = vmatmul.mubr.msk.bf16.gmra.mrb[64].mxu0 %vm2011_vm0, %v11500_v54  ;;  %v953_v54 = vld [vmem:[%s16002_s2 + $0x370] sm:$0xff] }
  0xed   : > { %10593 = vmatprep.mubr.msk.bf16.mxu0 %vm2011_vm0, %v11501_v8 }
  0xee   : > { %v12481_v9 = vpop.permute.xlu1 %1158  ;;  %v12483_v10 = vpop.permute.xlu0 %1153 }
  0xef   : > { %1478 = vperm.xlu1 %11457, %v944_v4   ;;  %1473 = vperm.xlu0 %11456, %v943_v5   ;;  %v956_v4 = vld [vmem:[%s16002_s2 + $0x388] sm:$0xff]  ;;  %v955_v5 = vld [vmem:[%s16002_s2 + $0x380] sm:$0xff] }
  0xf2   : > { %v12493_v17 = vpop.permute.xlu1 %1168  ;;  %v12495_v18 = vpop.permute.xlu0 %1163 }
  0xf3   : > { %1488 = vperm.xlu1 %11457, %v946_v13   ;;  %1483 = vperm.xlu0 %11456, %v945_v14  }
  0xf4   : > { %10594 = vmatmul.mubr.msk.bf16.gmra.mrb[68].mxu0 %vm2011_vm0, %v11501_v8  ;;  %v11504_v8 = vld [vmem:[%s16004_s30 + $0xa0] sm:$0xff]  }
  0xf5   : > { %10595 = vmatprep.mubr.msk.bf16.mxu0 %vm2011_vm0, %v11502_v23 }
  0xf6   : > { %v12506_v26 = vpop.permute.xlu1 %1178  ;;  %v12508_v27 = vpop.permute.xlu0 %1173 }
  0xf7   : > { %1498 = vperm.xlu1 %11457, %v948_v19   ;;  %1493 = vperm.xlu0 %11456, %v947_v22   ;;  %v958_v19 = vld [vmem:[%s16002_s2 + $0x398] sm:$0xff]  ;;  %v957_v22 = vld [vmem:[%s16002_s2 + $0x390] sm:$0xff] }
  0xfa   : > { %v12518_v32 = vpop.permute.xlu1 %1188  ;;  %v12520_v35 = vpop.permute.xlu0 %1183 }
  0xfb   : > { %1508 = vperm.xlu1 %11457, %v950_v28   ;;  %1503 = vperm.xlu0 %11456, %v949_v31   ;;  %v960_v31 = vld [vmem:[%s16002_s2 + $0x3a8] sm:$0xff] }
  0xfc   : > { %10596 = vmatmul.mubr.msk.bf16.gmra.mrb[72].mxu0 %vm2011_vm0, %v11502_v23 }
  0xfd   : > { %10597 = vmatprep.mubr.msk.bf16.mxu0 %vm2011_vm0, %v11503_v44 }
  0xfe   : > { %v12531_v45 = vpop.permute.xlu1 %1198  ;;  %v12533_v50 = vpop.permute.xlu0 %1193 }
  0xff   : > { %16007 = vst [vmem:[#allocation12_spill] sm:$0xff] %v12531_v45  ;;  %1518 = vperm.xlu1 %11457, %v952_v36   ;;  %1513 = vperm.xlu0 %11456, %v951_v37   ;;  %v959_v36 = vld [vmem:[%s16002_s2 + $0x3a0] sm:$0xff]  ;;  %v11505_v37 = vld [vmem:[%s16004_s30 + $0xa8] sm:$0xff]  }
 0x102   : > { %v12543_v59 = vpop.permute.xlu1 %1208  ;;  %v12545_v62 = vpop.permute.xlu0 %1203 }
 0x103   : > { %16008 = vst [vmem:[#allocation13_spill] sm:$0xff] %v12543_v59  ;;  %16009 = vst [vmem:[#allocation14_spill] sm:$0xff] %v12545_v62  ;;  %1528 = vperm.xlu1 %11457, %v954_v53   ;;  %1523 = vperm.xlu0 %11456, %v953_v54   ;;  %v962_v54 = vld [vmem:[%s16002_s2 + $0x3b8] sm:$0xff] }
 0x104   : > { %10598 = vmatmul.mubr.msk.bf16.gmra.mrb[76].mxu0 %vm2011_vm0, %v11503_v44 }
 0x105   : > { %10599 = vmatprep.mubr.msk.bf16.mxu0 %vm2011_vm0, %v11504_v8 }
 0x106   : > { %v12556_v13 = vpop.permute.xlu1 %1218  ;;  %v12558_v14 = vpop.permute.xlu0 %1213 }
 0x107   : > { %16010 = vst [vmem:[#allocation15_spill] sm:$0xff] %v12556_v13  ;;  %16011 = vst [vmem:[#allocation16_spill] sm:$0xff] %v12558_v14  ;;  %1538 = vperm.xlu1 %11457, %v956_v4   ;;  %1533 = vperm.xlu0 %11456, %v955_v5   ;;  %v961_v4 = vld [vmem:[%s16002_s2 + $0x3b0] sm:$0xff] }
 0x10a   : > { %v12568_v23 = vpop.permute.xlu1 %1228  ;;  %v12570_v28 = vpop.permute.xlu0 %1223 }
 0x10b   : > { %16012 = vst [vmem:[#allocation17_spill] sm:$0xff] %v12568_v23  ;;  %16013 = vst [vmem:[#allocation18_spill] sm:$0xff] %v12570_v28  ;;  %1548 = vperm.xlu1 %11457, %v958_v19   ;;  %1543 = vperm.xlu0 %11456, %v957_v22   ;;  %v963_v22 = vld [vmem:[%s16002_s2 + $0x3c0] sm:$0xff] }
 0x10c   : > { %10600 = vmatmul.mubr.msk.bf16.gmra.mrb[80].mxu0 %vm2011_vm0, %v11504_v8  ;;  %v964_v8 = vld [vmem:[%s16002_s2 + $0x3c8] sm:$0xff] }
 0x10d   : > { %10601 = vmatprep.mubr.msk.bf16.mxu0 %vm2011_vm0, %v11505_v37 }
 0x10e   : > { %v12581_v44 = vpop.permute.xlu1 %1238  ;;  %v12583_v53 = vpop.permute.xlu0 %1233 }
 0x10f   : > { %16014 = vst [vmem:[#allocation19_spill] sm:$0xff] %v12581_v44  ;;  %16015 = vst [vmem:[#allocation20_spill] sm:$0xff] %v12583_v53  ;;  %1558 = vperm.xlu1 %11457, %v960_v31   ;;  %1553 = vperm.xlu0 %11456, %v959_v36   ;;  %v11506_v31 = vld [vmem:[%s16004_s30 + $0xb0] sm:$0xff]  }
 0x112   : > { %v12593_v5 = vpop.permute.xlu1 %1248  ;;  %v12595_v19 = vpop.permute.xlu0 %1243 }
 0x113   : > { %16016 = vst [vmem:[#allocation21_spill] sm:$0xff] %v12593_v5  ;;  %16017 = vst [vmem:[#allocation22_spill] sm:$0xff] %v12595_v19  ;;  %1568 = vperm.xlu1 %11457, %v962_v54   ;;  %1563 = vperm.xlu0 %11456, %v961_v4   ;;  %v966_v54 = vld [vmem:[%s16002_s2 + $0x3d8] sm:$0xff]  ;;  %v965_v4 = vld [vmem:[%s16002_s2 + $0x3d0] sm:$0xff] }
 0x114   : > { %10602 = vmatmul.mubr.msk.bf16.gmra.mrb[84].mxu0 %vm2011_vm0, %v11505_v37  ;;  %v968_v37 = vld [vmem:[%s16002_s2 + $0x3e8] sm:$0xff] }
 0x115   : > { %10603 = vmatprep.mubr.msk.bf16.mxu0 %vm2011_vm0, %v11506_v31 }
 0x116   : > { %v12606_v36 = vpop.permute.xlu1 %1258  ;;  %v12608_v3 = vpop.permute.xlu0 %1253 }
 0x117   : > { %16018 = vst [vmem:[#allocation23_spill] sm:$0xff] %v12606_v36  ;;  %16019 = vst [vmem:[#allocation24_spill] sm:$0xff] %v12608_v3  ;;  %1578 = vperm.xlu1 %11457, %v964_v8   ;;  %1573 = vperm.xlu0 %11456, %v963_v22   ;;  %v967_v8 = vld [vmem:[%s16002_s2 + $0x3e0] sm:$0xff]  ;;  %v11507_v22 = vld [vmem:[%s16004_s30 + $0xb8] sm:$0xff]  }
 0x11a   : > { %v12618_v5 = vpop.permute.xlu1 %1268  ;;  %v12620_v19 = vpop.permute.xlu0 %1263 }
 0x11b   : > { %16020 = vst [vmem:[#allocation25_spill] sm:$0xff] %v12618_v5  ;;  %16021 = vst [vmem:[#allocation26_spill] sm:$0xff] %v12620_v19  ;;  %1588 = vperm.xlu1 %11457, %v966_v54   ;;  %1583 = vperm.xlu0 %11456, %v965_v4   ;;  %v970_v54 = vld [vmem:[%s16002_s2 + $0x3f8] sm:$0xff]  ;;  %v969_v4 = vld [vmem:[%s16002_s2 + $0x3f0] sm:$0xff]  ;;  %s16044_s2 = smov %s16043_s26 }
 0x11c   : > { %10604 = vmatmul.mubr.msk.bf16.gmra.mrb[88].mxu0 %vm2011_vm0, %v11506_v31  ;;  %v3566_v31 = vld [vmem:[%s16026_s20 + $0x8] sm:$0xff] }
 0x11d   : > { %10605 = vmatprep.mubr.msk.bf16.mxu0 %vm2011_vm0, %v11507_v22 }
 0x11e   : > { %v12631_v36 = vpop.permute.xlu1 %1278  ;;  %v12633_v3 = vpop.permute.xlu0 %1273 }
 0x11f   : > { %16022 = vst [vmem:[#allocation27_spill] sm:$0xff] %v12631_v36  ;;  %16023 = vst [vmem:[#allocation28_spill] sm:$0xff] %v12633_v3  ;;  %1598 = vperm.xlu1 %11457, %v968_v37   ;;  %1593 = vperm.xlu0 %11456, %v967_v8   ;;  %v3565_v37 = vld [vmem:[%s16026_s20] sm:$0xff] }
 0x120   : > { %v11508_v8 = vld [vmem:[%s16004_s30 + $0xc0] sm:$0xff]  }
 0x122   : > { %v12643_v5 = vpop.permute.xlu1 %1288  ;;  %v12645_v19 = vpop.permute.xlu0 %1283 }
 0x123   : > { %16024 = vst [vmem:[#allocation29_spill] sm:$0xff] %v12643_v5  ;;  %16025 = vst [vmem:[#allocation30_spill] sm:$0xff] %v12645_v19  ;;  %1608 = vperm.xlu1 %11457, %v970_v54   ;;  %1603 = vperm.xlu0 %11456, %v969_v4   ;;  %v3568_v54 = vld [vmem:[%s16026_s20 + $0x18] sm:$0xff]  ;;  %v3567_v4 = vld [vmem:[%s16026_s20 + $0x10] sm:$0xff] }
 0x124   : > { %10606 = vmatmul.mubr.msk.bf16.gmra.mrb[92].mxu0 %vm2011_vm0, %v11507_v22  ;;  %v3570_v22 = vld [vmem:[%s16026_s20 + $0x28] sm:$0xff] }
 0x125   : > { %10607 = vmatprep.mubr.msk.bf16.mxu0 %vm2011_vm0, %v11508_v8 }
 0x126   : > { %v12656_v36 = vpop.permute.xlu1 %1298  ;;  %v12658_v3 = vpop.permute.xlu0 %1293 }
 0x127   : > { %16027 = vst [vmem:[#allocation31_spill] sm:$0xff] %v12656_v36  ;;  %16028 = vst [vmem:[#allocation32_spill] sm:$0xff] %v12658_v3  ;;  %3636 = vperm.xlu1 %11457, %v3566_v31   ;;  %3631 = vperm.xlu0 %11456, %v3565_v37   ;;  %v3569_v31 = vld [vmem:[%s16026_s20 + $0x20] sm:$0xff]  ;;  %v11509_v37 = vld [vmem:[%s16004_s30 + $0xc8] sm:$0xff]  }
 0x12a   : > { %v12668_v5 = vpop.permute.xlu1 %1308  ;;  %v12670_v19 = vpop.permute.xlu0 %1303 }
 0x12b   : > { %16029 = vst [vmem:[#allocation33_spill] sm:$0xff] %v12668_v5  ;;  %16030 = vst [vmem:[#allocation34_spill] sm:$0xff] %v12670_v19  ;;  %3646 = vperm.xlu1 %11457, %v3568_v54   ;;  %3641 = vperm.xlu0 %11456, %v3567_v4   ;;  %v3572_v54 = vld [vmem:[%s16026_s20 + $0x38] sm:$0xff]  ;;  %v3571_v4 = vld [vmem:[%s16026_s20 + $0x30] sm:$0xff] }
 0x12c   : > { %10608 = vmatmul.mubr.msk.bf16.gmra.mrb[96].mxu0 %vm2011_vm0, %v11508_v8  ;;  %v3574_v8 = vld [vmem:[%s16026_s20 + $0x48] sm:$0xff] }
 0x12d   : > { %10609 = vmatprep.mubr.msk.bf16.mxu0 %vm2011_vm0, %v11509_v37 }
 0x12e   : > { %v12681_v36 = vpop.permute.xlu1 %1318  ;;  %v12683_v3 = vpop.permute.xlu0 %1313 }
 0x12f   : > { %16031 = vst [vmem:[#allocation35_spill] sm:$0xff] %v12681_v36  ;;  %16032 = vst [vmem:[#allocation36_spill] sm:$0xff] %v12683_v3  ;;  %3656 = vperm.xlu1 %11457, %v3570_v22   ;;  %3651 = vperm.xlu0 %11456, %v3569_v31   ;;  %v3573_v22 = vld [vmem:[%s16026_s20 + $0x40] sm:$0xff]  ;;  %v11510_v31 = vld [vmem:[%s16004_s30 + $0xd0] sm:$0xff]  }
 0x132   : > { %v12693_v5 = vpop.permute.xlu1 %1328  ;;  %v12695_v19 = vpop.permute.xlu0 %1323 }
 0x133   : > { %16033 = vst [vmem:[#allocation37_spill] sm:$0xff] %v12693_v5  ;;  %16034 = vst [vmem:[#allocation38_spill] sm:$0xff] %v12695_v19  ;;  %3666 = vperm.xlu1 %11457, %v3572_v54   ;;  %3661 = vperm.xlu0 %11456, %v3571_v4   ;;  %v3576_v54 = vld [vmem:[%s16026_s20 + $0x58] sm:$0xff]  ;;  %v3575_v4 = vld [vmem:[%s16026_s20 + $0x50] sm:$0xff] }
 0x134   : > { %10610 = vmatmul.mubr.msk.bf16.gmra.mrb[100].mxu0 %vm2011_vm0, %v11509_v37  ;;  %v3578_v37 = vld [vmem:[%s16026_s20 + $0x68] sm:$0xff] }
 0x135   : > { %10611 = vmatprep.mubr.msk.bf16.mxu0 %vm2011_vm0, %v11510_v31 }
 0x136   : > { %v12706_v36 = vpop.permute.xlu1 %1338  ;;  %v12708_v3 = vpop.permute.xlu0 %1333 }
 0x137   : > { %16035 = vst [vmem:[#allocation39_spill] sm:$0xff] %v12706_v36  ;;  %16036 = vst [vmem:[#allocation40_spill] sm:$0xff] %v12708_v3  ;;  %3676 = vperm.xlu1 %11457, %v3574_v8   ;;  %3671 = vperm.xlu0 %11456, %v3573_v22   ;;  %v3577_v8 = vld [vmem:[%s16026_s20 + $0x60] sm:$0xff]  ;;  %v11511_v22 = vld [vmem:[%s16004_s30 + $0xd8] sm:$0xff]  }
 0x13a   : > { %v12718_v5 = vpop.permute.xlu1 %1348  ;;  %v12720_v19 = vpop.permute.xlu0 %1343 }
 0x13b   : > { %16037 = vst [vmem:[#allocation41_spill] sm:$0xff] %v12718_v5  ;;  %16038 = vst [vmem:[#allocation42_spill] sm:$0xff] %v12720_v19  ;;  %3686 = vperm.xlu1 %11457, %v3576_v54   ;;  %3681 = vperm.xlu0 %11456, %v3575_v4   ;;  %v3580_v54 = vld [vmem:[%s16026_s20 + $0x78] sm:$0xff]  ;;  %v3579_v4 = vld [vmem:[%s16026_s20 + $0x70] sm:$0xff] }
 0x13c   : > { %10612 = vmatmul.mubr.msk.bf16.gmra.mrb[104].mxu0 %vm2011_vm0, %v11510_v31  ;;  %v3582_v31 = vld [vmem:[%s16026_s20 + $0x88] sm:$0xff] }
 0x13d   : > { %10613 = vmatprep.mubr.msk.bf16.mxu0 %vm2011_vm0, %v11511_v22 }
 0x13e   : > { %v12731_v36 = vpop.permute.xlu1 %1358  ;;  %v12733_v3 = vpop.permute.xlu0 %1353 }
 0x13f   : > { %16039 = vst [vmem:[#allocation43_spill] sm:$0xff] %v12731_v36  ;;  %16040 = vst [vmem:[#allocation44_spill] sm:$0xff] %v12733_v3  ;;  %3696 = vperm.xlu1 %11457, %v3578_v37   ;;  %3691 = vperm.xlu0 %11456, %v3577_v8   ;;  %v2286_v36 = vpop.f32.mrb[0].mxu0  ;;  %v3581_v8 = vld [vmem:[%s16026_s20 + $0x80] sm:$0xff] }
 0x140   : > { %v2288_v37 = vpop.f32.mrb[1].mxu0  ;;  %v2287_v3 = vadd.f32 %v2286_v36, %v12251_v39 }
 0x141   : > { %v2290_v44 = vpop.f32.mrb[2].mxu0  ;;  %v2289_v53 = vadd.f32 %v2288_v37, %v12251_v39 }
 0x142   : > { %v12743_v5 = vpop.permute.xlu1 %1368  ;;  %v12745_v19 = vpop.permute.xlu0 %1363  ;;  %v2291_v36 = vadd.f32 %v2290_v44, %v12270_v43  ;;  %v3583_v44 = vld [vmem:[%s16026_s20 + $0x90] sm:$0xff]  ;;  %v2925_v14 = vmax.f32 %v2287_v3, 0.0  ;;  %v3586_v3 = vld [vmem:[%s16026_s20 + $0xa8] sm:$0xff] }
 0x143   : > { %16041 = vst [vmem:[#allocation45_spill] sm:$0xff] %v12743_v5  ;;  %16042 = vst [vmem:[#allocation46_spill] sm:$0xff] %v12745_v19  ;;  %3706 = vperm.xlu1 %11457, %v3580_v54   ;;  %3701 = vperm.xlu0 %11456, %v3579_v4   ;;  %v11512_v5 = vld [vmem:[%s16004_s30 + $0xe0] sm:$0xff]   ;;  %v2292_v19 = vpop.f32.mrb[3].mxu0 }
 0x144   : > { %v12761_v54 = vld [vmem:[%s16043_s26] sm:$0xff]  ;;  %v2293_v28 = vadd.f32 %v2292_v19, %v12270_v43  ;;  %10614 = vmatmul.mubr.msk.bf16.gmra.mrb[108].mxu0 %vm2011_vm0, %v11511_v22  ;;  %v2927_v59 = vmax.f32 %v2291_v36, 0.0  ;;  %s666_s26 = sand.u32 1, %s11786_s27  }
 0x145   : > { %v12766_v4 = vld [vmem:[%s16044_s2 + $0x20] sm:$0xff]  ;;  %10615 = vmatprep.mubr.msk.bf16.mxu0 %vm2011_vm0, %v11512_v5  ;;  %s9957_s24 = sshll.u32 %s666_s26, 1  ;;  %s9868_s28 = scalar_lea.sflag [#allocation4], %s666_s26 }
 0x146   : > { %v12768_v23 = vpop.permute.xlu1 %1378  ;;  %v10107_v39 = vcombine.high %v12761_v54, %v12766_v4  ;;  %v12773_v37 = vpop.permute.xlu0 %1373  ;;  %v3181_v19 = vpack.c.bf16 %v2927_v59, %v2925_v14  ;;  %v11513_v14 = vld [vmem:[%s16004_s30 + $0xe8] sm:$0xff]  }
 0x147   : > { %16045 = vst [vmem:[#allocation47_spill] sm:$0xff] %v12768_v23  ;;  %16046 = vst [vmem:[#allocation48_spill] sm:$0xff] %v12773_v37  ;;  %3716 = vperm.xlu1 %11457, %v3582_v31   ;;  %3711 = vperm.xlu0 %11456, %v3581_v8   ;;  %v3584_v23 = vld [vmem:[%s16026_s20 + $0x98] sm:$0xff]  ;;  %v2926_v31 = vmax.f32 %v2289_v53, 0.0  ;;  %v2928_v8 = vmax.f32 %v2293_v28, 0.0  ;;  %v2296_v22 = vpop.f32.mrb[4].mxu0 }
 0x148   : > { %5261 = vmatprep.mubr.bf16.mxu1 %v10107_v39  ;;  %v2297_v62 = vadd.f32 %v2296_v22, %v12249_v38  ;;  %v2298_v45 = vpop.f32.mrb[5].mxu0  ;;  %v3585_v28 = vld [vmem:[%s16026_s20 + $0xa0] sm:$0xff] }
 0x149   : > { %v3182_v37 = vpack.c.bf16 %v2928_v8, %v2926_v31  ;;  %v2299_v53 = vadd.f32 %v2298_v45, %v12249_v38  ;;  %v2300_v59 = vpop.f32.mrb[6].mxu0  ;;  %v3588_v38 = vld [vmem:[%s16026_s20 + $0xb8] sm:$0xff]  ;;  %v3587_v45 = vld [vmem:[%s16026_s20 + $0xb0] sm:$0xff] }
 0x14a   : > { %v12786_v43 = vpop.permute.xlu1 %1388  ;;  %v12788_v13 = vpop.permute.xlu0 %1383 }
 0x14b   : > { %3726 = vperm.xlu1 %11457, %v3584_v23   ;;  %3721 = vperm.xlu0 %11456, %v3583_v44   ;;  %v2301_v23 = vadd.f32 %v2300_v59, %v12268_v42  ;;  %v2302_v36 = vpop.f32.mrb[7].mxu0 }
 0x14c   : > { %5229 = vmatprep.subr.bf16.mxu1 %v3182_v37  ;;  %v2303_v44 = vadd.f32 %v2302_v36, %v12268_v42  ;;  %10616 = vmatmul.mubr.msk.bf16.gmra.mrb[112].mxu0 %vm2011_vm0, %v11512_v5  ;;  %v2929_v37 = vmax.f32 %v2297_v62, 0.0  ;;  %v3590_v62 = vld [vmem:[%s16026_s20 + $0xc8] sm:$0xff] }
 0x14d   : > { %5230 = vmatpush1.bf16.msra.mxu1 %v3181_v19  ;;  %v2931_v8 = vmax.f32 %v2301_v23, 0.0  ;;  %v2930_v19 = vmax.f32 %v2299_v53, 0.0  ;;  %10617 = vmatprep.mubr.msk.bf16.mxu0 %vm2011_vm0, %v11513_v14  ;;  %v3589_v53 = vld [vmem:[%s16026_s20 + $0xc0] sm:$0xff] }
 0x14e   : > { %v12802_v39 = vpop.permute.xlu1 %1398  ;;  %v12805_v31 = vpop.permute.xlu0 %1393  ;;  %v2932_v22 = vmax.f32 %v2303_v44, 0.0 }
 0x14f   : > { %16047 = vst [vmem:[#allocation49_spill] sm:$0xff] %v12802_v39  ;;  %3736 = vperm.xlu1 %11457, %v3586_v3   ;;  %3731 = vperm.xlu0 %11456, %v3585_v28   ;;  %v3183_v3 = vpack.c.bf16 %v2931_v8, %v2929_v37  ;;  %v2306_v5 = vpop.f32.mrb[8].mxu0 }
 0x150   : > { %v3184_v59 = vpack.c.bf16 %v2932_v22, %v2930_v19  ;;  %v2307_v36 = vadd.f32 %v2306_v5, %v12283_v48  ;;  %v2308_v39 = vpop.f32.mrb[9].mxu0 }
 0x151   : > { %v2309_v23 = vadd.f32 %v2308_v39, %v12283_v48  ;;  %v2310_v44 = vpop.f32.mrb[10].mxu0  ;;  %v3592_v48 = vld [vmem:[%s16026_s20 + $0xd8] sm:$0xff]  ;;  %v3591_v39 = vld [vmem:[%s16026_s20 + $0xd0] sm:$0xff] }
 0x152   : > { %v12815_v42 = vpop.permute.xlu1 %1408  ;;  %v12817_v28 = vpop.permute.xlu0 %1403  ;;  %5231 = vmatprep.subr.bf16.mxu1 %v3184_v59  ;;  %v2933_v5 = vmax.f32 %v2307_v36, 0.0  ;;  %v3594_v36 = vld [vmem:[%s16026_s20 + $0xe8] sm:$0xff] }
 0x153   : > { %3746 = vperm.xlu1 %11457, %v3588_v38   ;;  %3741 = vperm.xlu0 %11456, %v3587_v45   ;;  %v11514_v38 = vld [vmem:[%s16004_s30 + $0xf0] sm:$0xff]   ;;  %v2311_v45 = vadd.f32 %v2310_v44, %v12281_v47  ;;  %v2312_v37 = vpop.f32.mrb[11].mxu0  ;;  %v2934_v59 = vmax.f32 %v2309_v23, 0.0  ;;  %v3593_v23 = vld [vmem:[%s16026_s20 + $0xe0] sm:$0xff] }
 0x154   : > { %5232 = vmatpush1.bf16.msra.mxu1 %v3183_v3  ;;  %v2313_v19 = vadd.f32 %v2312_v37, %v12281_v47  ;;  %10618 = vmatmul.mubr.msk.bf16.gmra.mrb[116].mxu0 %vm2011_vm0, %v11513_v14 }
 0x155   : > { %v2935_v3 = vmax.f32 %v2311_v45, 0.0  ;;  %10619 = vmatprep.mubr.msk.bf16.mxu0 %vm2011_vm0, %v11514_v38 }
 0x156   : > { %v12831_v8 = vpop.permute.xlu1 %1418  ;;  %v12834_v22 = vpop.permute.xlu0 %1413  ;;  %v2936_v44 = vmax.f32 %v2313_v19, 0.0 }
 0x157   : > { %16048 = vst [vmem:[#allocation50_spill] sm:$0xff] %v12831_v8  ;;  %16049 = vst [vmem:[#allocation51_spill] sm:$0xff] %v12834_v22  ;;  %3756 = vperm.xlu1 %11457, %v3590_v62   ;;  %3751 = vperm.xlu0 %11456, %v3589_v53   ;;  %v3185_v62 = vpack.c.bf16 %v2935_v3, %v2933_v5  ;;  %v2316_v14 = vpop.f32.mrb[12].mxu0 }
 0x158   : > { %v3186_v37 = vpack.c.bf16 %v2936_v44, %v2934_v59  ;;  %v2317_v8 = vadd.f32 %v2316_v14, %v12295_v52  ;;  %v2318_v22 = vpop.f32.mrb[13].mxu0 }
 0x159   : > { %v2319_v45 = vadd.f32 %v2318_v22, %v12295_v52  ;;  %v2320_v19 = vpop.f32.mrb[14].mxu0  ;;  %v3596_v52 = vld [vmem:[%s16026_s20 + $0xf8] sm:$0xff]  ;;  %v3595_v22 = vld [vmem:[%s16026_s20 + $0xf0] sm:$0xff] }
 0x15a   : > { %v12844_v47 = vpop.permute.xlu1 %1428  ;;  %v12846_v53 = vpop.permute.xlu0 %1423  ;;  %5233 = vmatprep.subr.bf16.mxu1 %v3186_v37  ;;  %v2937_v14 = vmax.f32 %v2317_v8, 0.0  ;;  %v3598_v8 = vld [vmem:[%s16026_s20 + $0x108] sm:$0xff] }
 0x15b   : > { %3766 = vperm.xlu1 %11457, %v3592_v48   ;;  %3761 = vperm.xlu0 %11456, %v3591_v39   ;;  %v11515_v48 = vld [vmem:[%s16004_s30 + $0xf8] sm:$0xff]   ;;  %v2321_v39 = vadd.f32 %v2320_v19, %v12293_v51  ;;  %v2322_v5 = vpop.f32.mrb[15].mxu0  ;;  %v2938_v37 = vmax.f32 %v2319_v45, 0.0  ;;  %v3597_v45 = vld [vmem:[%s16026_s20 + $0x100] sm:$0xff] }
 0x15c   : > { %5234 = vmatpush1.bf16.msra.mxu1 %v3185_v62  ;;  %v2323_v59 = vadd.f32 %v2322_v5, %v12293_v51  ;;  %10620 = vmatmul.mubr.msk.bf16.gmra.mrb[120].mxu0 %vm2011_vm0, %v11514_v38 }
 0x15d   : > { %v2939_v62 = vmax.f32 %v2321_v39, 0.0  ;;  %10621 = vmatprep.mubr.msk.bf16.mxu0 %vm2011_vm0, %v11515_v48 }
 0x15e   : > { %v12860_v3 = vpop.permute.xlu1 %1438  ;;  %v12863_v44 = vpop.permute.xlu0 %1433  ;;  %v2940_v19 = vmax.f32 %v2323_v59, 0.0 }
 0x15f   : > { %16050 = vst [vmem:[#allocation52_spill] sm:$0xff] %v12860_v3  ;;  %16051 = vst [vmem:[#allocation53_spill] sm:$0xff] %v12863_v44  ;;  %3776 = vperm.xlu1 %11457, %v3594_v36   ;;  %3771 = vperm.xlu0 %11456, %v3593_v23   ;;  %v3187_v36 = vpack.c.bf16 %v2939_v62, %v2937_v14  ;;  %v2326_v38 = vpop.f32.mrb[16].mxu0 }
 0x160   : > { %v3188_v5 = vpack.c.bf16 %v2940_v19, %v2938_v37  ;;  %v2327_v3 = vadd.f32 %v2326_v38, %v12308_v57  ;;  %v2328_v44 = vpop.f32.mrb[17].mxu0 }
 0x161   : > { %v2329_v39 = vadd.f32 %v2328_v44, %v12308_v57  ;;  %v2330_v59 = vpop.f32.mrb[18].mxu0  ;;  %v3600_v57 = vld [vmem:[%s16026_s20 + $0x118] sm:$0xff]  ;;  %v3599_v44 = vld [vmem:[%s16026_s20 + $0x110] sm:$0xff] }
 0x162   : > { %v12873_v51 = vpop.permute.xlu1 %1448  ;;  %v12875_v23 = vpop.permute.xlu0 %1443  ;;  %5235 = vmatprep.subr.bf16.mxu1 %v3188_v5  ;;  %v2941_v38 = vmax.f32 %v2327_v3, 0.0  ;;  %v3602_v3 = vld [vmem:[%s16026_s20 + $0x128] sm:$0xff] }
 0x163   : > { %3786 = vperm.xlu1 %11457, %v3596_v52   ;;  %3781 = vperm.xlu0 %11456, %v3595_v22   ;;  %v11516_v52 = vld [vmem:[%s16004_s30 + $0x100] sm:$0xff]   ;;  %v2331_v22 = vadd.f32 %v2330_v59, %v12306_v56  ;;  %v2332_v14 = vpop.f32.mrb[19].mxu0  ;;  %v2942_v5 = vmax.f32 %v2329_v39, 0.0 }
 0x164   : > { %5236 = vmatpush1.bf16.msra.mxu1 %v3187_v36  ;;  %v2333_v37 = vadd.f32 %v2332_v14, %v12306_v56  ;;  %10622 = vmatmul.mubr.msk.bf16.gmra.mrb[124].mxu0 %vm2011_vm0, %v11515_v48  ;;  %v3601_v39 = vld [vmem:[%s16026_s20 + $0x120] sm:$0xff] }
 0x165   : > { %v2943_v36 = vmax.f32 %v2331_v22, 0.0  ;;  %10623 = vmatprep.mubr.msk.bf16.mxu0 %vm2011_vm0, %v11516_v52 }
 0x166   : > { %v12889_v62 = vpop.permute.xlu1 %1458  ;;  %v12892_v19 = vpop.permute.xlu0 %1453  ;;  %v2944_v59 = vmax.f32 %v2333_v37, 0.0 }
 0x167   : > { %16052 = vst [vmem:[#allocation54_spill] sm:$0xff] %v12889_v62  ;;  %16053 = vst [vmem:[#allocation55_spill] sm:$0xff] %v12892_v19  ;;  %3796 = vperm.xlu1 %11457, %v3598_v8   ;;  %3791 = vperm.xlu0 %11456, %v3597_v45   ;;  %v3189_v8 = vpack.c.bf16 %v2943_v36, %v2941_v38  ;;  %v2336_v48 = vpop.f32.mrb[20].mxu0 }
 0x168   : > { %v3190_v14 = vpack.c.bf16 %v2944_v59, %v2942_v5  ;;  %v2337_v62 = vadd.f32 %v2336_v48, %v12320_v61  ;;  %v2338_v19 = vpop.f32.mrb[21].mxu0 }
 0x169   : > { %v2339_v22 = vadd.f32 %v2338_v19, %v12320_v61  ;;  %v2340_v37 = vpop.f32.mrb[22].mxu0  ;;  %v3604_v61 = vld [vmem:[%s16026_s20 + $0x138] sm:$0xff]  ;;  %v3603_v19 = vld [vmem:[%s16026_s20 + $0x130] sm:$0xff] }
 0x16a   : > { %v12902_v56 = vpop.permute.xlu1 %1468  ;;  %v12904_v45 = vpop.permute.xlu0 %1463  ;;  %5237 = vmatprep.subr.bf16.mxu1 %v3190_v14  ;;  %v2945_v48 = vmax.f32 %v2337_v62, 0.0  ;;  %v3606_v62 = vld [vmem:[%s16026_s20 + $0x148] sm:$0xff] }
 0x16b   : > { %3806 = vperm.xlu1 %11457, %v3600_v57   ;;  %3801 = vperm.xlu0 %11456, %v3599_v44   ;;  %v11517_v57 = vld [vmem:[%s16004_s30 + $0x108] sm:$0xff]   ;;  %v2341_v44 = vadd.f32 %v2340_v37, %v12318_v60  ;;  %v2342_v38 = vpop.f32.mrb[23].mxu0  ;;  %v2946_v14 = vmax.f32 %v2339_v22, 0.0  ;;  %v3605_v22 = vld [vmem:[%s16026_s20 + $0x140] sm:$0xff] }
 0x16c   : > { %5238 = vmatpush1.bf16.msra.mxu1 %v3189_v8  ;;  %v2343_v5 = vadd.f32 %v2342_v38, %v12318_v60  ;;  %10624 = vmatmul.mubr.msk.bf16.gmra.mrb[128].mxu0 %vm2011_vm0, %v11516_v52 }
 0x16d   : > { %v2947_v8 = vmax.f32 %v2341_v44, 0.0  ;;  %10625 = vmatprep.mubr.msk.bf16.mxu0 %vm2011_vm0, %v11517_v57 }
 0x16e   : > { %v12918_v36 = vpop.permute.xlu1 %1478  ;;  %v12921_v59 = vpop.permute.xlu0 %1473  ;;  %v2948_v37 = vmax.f32 %v2343_v5, 0.0 }
 0x16f   : > { %16054 = vst [vmem:[#allocation56_spill] sm:$0xff] %v12918_v36  ;;  %16055 = vst [vmem:[#allocation57_spill] sm:$0xff] %v12921_v59  ;;  %3816 = vperm.xlu1 %11457, %v3602_v3   ;;  %3811 = vperm.xlu0 %11456, %v3601_v39   ;;  %v3191_v3 = vpack.c.bf16 %v2947_v8, %v2945_v48  ;;  %v2346_v52 = vpop.f32.mrb[24].mxu0 }
 0x170   : > { %v3192_v38 = vpack.c.bf16 %v2948_v37, %v2946_v14  ;;  %v2347_v36 = vadd.f32 %v2346_v52, %v12333_v2  ;;  %v2348_v59 = vpop.f32.mrb[25].mxu0 }
 0x171   : > { %v2349_v44 = vadd.f32 %v2348_v59, %v12333_v2  ;;  %v2350_v5 = vpop.f32.mrb[26].mxu0  ;;  %v3608_v2 = vld [vmem:[%s16026_s20 + $0x158] sm:$0xff]  ;;  %v3607_v59 = vld [vmem:[%s16026_s20 + $0x150] sm:$0xff] }
 0x172   : > { %v12931_v60 = vpop.permute.xlu1 %1488  ;;  %v12933_v39 = vpop.permute.xlu0 %1483  ;;  %5239 = vmatprep.subr.bf16.mxu1 %v3192_v38  ;;  %v2949_v52 = vmax.f32 %v2347_v36, 0.0  ;;  %v3610_v36 = vld [vmem:[%s16026_s20 + $0x168] sm:$0xff] }
 0x173   : > { %3826 = vperm.xlu1 %11457, %v3604_v61   ;;  %3821 = vperm.xlu0 %11456, %v3603_v19   ;;  %v11518_v61 = vld [vmem:[%s16004_s30 + $0x110] sm:$0xff]   ;;  %v2351_v19 = vadd.f32 %v2350_v5, %v12331_v1  ;;  %v2352_v48 = vpop.f32.mrb[27].mxu0  ;;  %v2950_v38 = vmax.f32 %v2349_v44, 0.0  ;;  %v3609_v44 = vld [vmem:[%s16026_s20 + $0x160] sm:$0xff] }
 0x174   : > { %5240 = vmatpush1.bf16.msra.mxu1 %v3191_v3  ;;  %v2353_v14 = vadd.f32 %v2352_v48, %v12331_v1  ;;  %10626 = vmatmul.mubr.msk.bf16.gmra.mrb[132].mxu0 %vm2011_vm0, %v11517_v57 }
 0x175   : > { %v2951_v3 = vmax.f32 %v2351_v19, 0.0  ;;  %10627 = vmatprep.mubr.msk.bf16.mxu0 %vm2011_vm0, %v11518_v61 }
 0x176   : > { %v12947_v8 = vpop.permute.xlu1 %1498  ;;  %v12950_v37 = vpop.permute.xlu0 %1493  ;;  %v2952_v5 = vmax.f32 %v2353_v14, 0.0 }
 0x177   : > { %16056 = vst [vmem:[#allocation58_spill] sm:$0xff] %v12947_v8  ;;  %16057 = vst [vmem:[#allocation59_spill] sm:$0xff] %v12950_v37  ;;  %3836 = vperm.xlu1 %11457, %v3606_v62   ;;  %3831 = vperm.xlu0 %11456, %v3605_v22   ;;  %v3193_v62 = vpack.c.bf16 %v2951_v3, %v2949_v52  ;;  %v2356_v57 = vpop.f32.mrb[28].mxu0 }
 0x178   : > { %v3194_v48 = vpack.c.bf16 %v2952_v5, %v2950_v38  ;;  %v2357_v8 = vadd.f32 %v2356_v57, %v12345_v7  ;;  %v2358_v37 = vpop.f32.mrb[29].mxu0 }
 0x179   : > { %v2359_v19 = vadd.f32 %v2358_v37, %v12345_v7  ;;  %v2360_v14 = vpop.f32.mrb[30].mxu0  ;;  %v3612_v7 = vld [vmem:[%s16026_s20 + $0x178] sm:$0xff]  ;;  %v3611_v37 = vld [vmem:[%s16026_s20 + $0x170] sm:$0xff] }
 0x17a   : > { %v12960_v1 = vpop.permute.xlu1 %1508  ;;  %v12962_v22 = vpop.permute.xlu0 %1503  ;;  %5241 = vmatprep.subr.bf16.mxu1 %v3194_v48  ;;  %v2953_v57 = vmax.f32 %v2357_v8, 0.0  ;;  %v3614_v8 = vld [vmem:[%s16026_s20 + $0x188] sm:$0xff] }
 0x17b   : > { %3846 = vperm.xlu1 %11457, %v3608_v2   ;;  %3841 = vperm.xlu0 %11456, %v3607_v59   ;;  %v11519_v2 = vld [vmem:[%s16004_s30 + $0x118] sm:$0xff]   ;;  %v2361_v59 = vadd.f32 %v2360_v14, %v12343_v6  ;;  %v2362_v52 = vpop.f32.mrb[31].mxu0  ;;  %v2954_v48 = vmax.f32 %v2359_v19, 0.0  ;;  %v3613_v19 = vld [vmem:[%s16026_s20 + $0x180] sm:$0xff] }
 0x17c   : > { %5242 = vmatpush1.bf16.msra.mxu1 %v3193_v62  ;;  %v2363_v38 = vadd.f32 %v2362_v52, %v12343_v6  ;;  %10628 = vmatmul.mubr.msk.bf16.gmra.mrb[136].mxu0 %vm2011_vm0, %v11518_v61 }
 0x17d   : > { %v2955_v62 = vmax.f32 %v2361_v59, 0.0  ;;  %10629 = vmatprep.mubr.msk.bf16.mxu0 %vm2011_vm0, %v11519_v2 }
 0x17e   : > { %v12976_v3 = vpop.permute.xlu1 %1518  ;;  %v12979_v5 = vpop.permute.xlu0 %1513  ;;  %v2956_v14 = vmax.f32 %v2363_v38, 0.0 }
 0x17f   : > { %16058 = vst [vmem:[#allocation60_spill] sm:$0xff] %v12976_v3  ;;  %16059 = vst [vmem:[#allocation61_spill] sm:$0xff] %v12979_v5  ;;  %3856 = vperm.xlu1 %11457, %v3610_v36   ;;  %3851 = vperm.xlu0 %11456, %v3609_v44   ;;  %v3195_v36 = vpack.c.bf16 %v2955_v62, %v2953_v57  ;;  %v2366_v61 = vpop.f32.mrb[32].mxu0 }
 0x180   : > { %v3196_v52 = vpack.c.bf16 %v2956_v14, %v2954_v48  ;;  %v2367_v3 = vadd.f32 %v2366_v61, %v12358_v12  ;;  %v2368_v5 = vpop.f32.mrb[33].mxu0 }
 0x181   : > { %v2369_v59 = vadd.f32 %v2368_v5, %v12358_v12  ;;  %v2370_v38 = vpop.f32.mrb[34].mxu0  ;;  %v3616_v12 = vld [vmem:[%s16026_s20 + $0x198] sm:$0xff]  ;;  %v3615_v5 = vld [vmem:[%s16026_s20 + $0x190] sm:$0xff] }
 0x182   : > { %v12989_v6 = vpop.permute.xlu1 %1528  ;;  %v12991_v44 = vpop.permute.xlu0 %1523  ;;  %5243 = vmatprep.subr.bf16.mxu1 %v3196_v52  ;;  %v2957_v61 = vmax.f32 %v2367_v3, 0.0  ;;  %v3618_v3 = vld [vmem:[%s16026_s20 + $0x1a8] sm:$0xff] }
 0x183   : > { %3866 = vperm.xlu1 %11457, %v3612_v7   ;;  %3861 = vperm.xlu0 %11456, %v3611_v37   ;;  %v11520_v7 = vld [vmem:[%s16004_s30 + $0x120] sm:$0xff]   ;;  %v2371_v37 = vadd.f32 %v2370_v38, %v12356_v11  ;;  %v2372_v57 = vpop.f32.mrb[35].mxu0  ;;  %v2958_v52 = vmax.f32 %v2369_v59, 0.0 }
 0x184   : > { %5244 = vmatpush1.bf16.msra.mxu1 %v3195_v36  ;;  %v2373_v48 = vadd.f32 %v2372_v57, %v12356_v11  ;;  %10630 = vmatmul.mubr.msk.bf16.gmra.mrb[140].mxu0 %vm2011_vm0, %v11519_v2  ;;  %v3617_v59 = vld [vmem:[%s16026_s20 + $0x1a0] sm:$0xff] }
 0x185   : > { %v2959_v36 = vmax.f32 %v2371_v37, 0.0  ;;  %10631 = vmatprep.mubr.msk.bf16.mxu0 %vm2011_vm0, %v11520_v7 }
 0x186   : > { %v13005_v62 = vpop.permute.xlu1 %1538  ;;  %v13008_v14 = vpop.permute.xlu0 %1533  ;;  %v2960_v38 = vmax.f32 %v2373_v48, 0.0 }
 0x187   : > { %16060 = vst [vmem:[#allocation62_spill] sm:$0xff] %v13005_v62  ;;  %16061 = vst [vmem:[#allocation63_spill] sm:$0xff] %v13008_v14  ;;  %3876 = vperm.xlu1 %11457, %v3614_v8   ;;  %3871 = vperm.xlu0 %11456, %v3613_v19   ;;  %v3197_v8 = vpack.c.bf16 %v2959_v36, %v2957_v61  ;;  %v2376_v2 = vpop.f32.mrb[36].mxu0 }
 0x188   : > { %v3198_v57 = vpack.c.bf16 %v2960_v38, %v2958_v52  ;;  %v2377_v62 = vadd.f32 %v2376_v2, %v12370_v16  ;;  %v2378_v14 = vpop.f32.mrb[37].mxu0 }
 0x189   : > { %v2379_v37 = vadd.f32 %v2378_v14, %v12370_v16  ;;  %v2380_v48 = vpop.f32.mrb[38].mxu0  ;;  %v3620_v16 = vld [vmem:[%s16026_s20 + $0x1b8] sm:$0xff]  ;;  %v3619_v14 = vld [vmem:[%s16026_s20 + $0x1b0] sm:$0xff] }
 0x18a   : > { %v13018_v11 = vpop.permute.xlu1 %1548  ;;  %v13020_v19 = vpop.permute.xlu0 %1543  ;;  %5245 = vmatprep.subr.bf16.mxu1 %v3198_v57  ;;  %v2961_v2 = vmax.f32 %v2377_v62, 0.0  ;;  %v3622_v62 = vld [vmem:[%s16026_s20 + $0x1c8] sm:$0xff] }
 0x18b   : > { %3886 = vperm.xlu1 %11457, %v3616_v12   ;;  %3881 = vperm.xlu0 %11456, %v3615_v5   ;;  %v11521_v12 = vld [vmem:[%s16004_s30 + $0x128] sm:$0xff]   ;;  %v2381_v5 = vadd.f32 %v2380_v48, %v12368_v15  ;;  %v2382_v61 = vpop.f32.mrb[39].mxu0  ;;  %v2962_v57 = vmax.f32 %v2379_v37, 0.0  ;;  %v3621_v37 = vld [vmem:[%s16026_s20 + $0x1c0] sm:$0xff] }
 0x18c   : > { %5246 = vmatpush1.bf16.msra.mxu1 %v3197_v8  ;;  %v2383_v52 = vadd.f32 %v2382_v61, %v12368_v15  ;;  %10632 = vmatmul.mubr.msk.bf16.gmra.mrb[144].mxu0 %vm2011_vm0, %v11520_v7 }
 0x18d   : > { %v2963_v8 = vmax.f32 %v2381_v5, 0.0  ;;  %10633 = vmatprep.mubr.msk.bf16.mxu0 %vm2011_vm0, %v11521_v12 }
 0x18e   : > { %v13034_v36 = vpop.permute.xlu1 %1558  ;;  %v13037_v38 = vpop.permute.xlu0 %1553  ;;  %v2964_v48 = vmax.f32 %v2383_v52, 0.0 }
 0x18f   : > { %16062 = vst [vmem:[#allocation64_spill] sm:$0xff] %v13034_v36  ;;  %16063 = vst [vmem:[#allocation65_spill] sm:$0xff] %v13037_v38  ;;  %3896 = vperm.xlu1 %11457, %v3618_v3   ;;  %3891 = vperm.xlu0 %11456, %v3617_v59   ;;  %v3199_v3 = vpack.c.bf16 %v2963_v8, %v2961_v2  ;;  %v2386_v7 = vpop.f32.mrb[40].mxu0 }
 0x190   : > { %v3200_v61 = vpack.c.bf16 %v2964_v48, %v2962_v57  ;;  %v2387_v36 = vadd.f32 %v2386_v7, %v12383_v21  ;;  %v2388_v38 = vpop.f32.mrb[41].mxu0 }
 0x191   : > { %v2389_v5 = vadd.f32 %v2388_v38, %v12383_v21  ;;  %v2390_v52 = vpop.f32.mrb[42].mxu0  ;;  %v3624_v21 = vld [vmem:[%s16026_s20 + $0x1d8] sm:$0xff]  ;;  %v3623_v38 = vld [vmem:[%s16026_s20 + $0x1d0] sm:$0xff] }
 0x192   : > { %v13047_v15 = vpop.permute.xlu1 %1568  ;;  %v13049_v59 = vpop.permute.xlu0 %1563  ;;  %5247 = vmatprep.subr.bf16.mxu1 %v3200_v61  ;;  %v2965_v7 = vmax.f32 %v2387_v36, 0.0  ;;  %v3626_v36 = vld [vmem:[%s16026_s20 + $0x1e8] sm:$0xff] }
 0x193   : > { %16064 = vst [vmem:[#allocation66_spill] sm:$0xff] %v13047_v15  ;;  %3906 = vperm.xlu1 %11457, %v3620_v16   ;;  %3901 = vperm.xlu0 %11456, %v3619_v14   ;;  %v11522_v16 = vld [vmem:[%s16004_s30 + $0x130] sm:$0xff]   ;;  %v2391_v14 = vadd.f32 %v2390_v52, %v12381_v20  ;;  %v2392_v2 = vpop.f32.mrb[43].mxu0  ;;  %v2966_v61 = vmax.f32 %v2389_v5, 0.0  ;;  %v3625_v5 = vld [vmem:[%s16026_s20 + $0x1e0] sm:$0xff] }
 0x194   : > { %5248 = vmatpush1.bf16.msra.mxu1 %v3199_v3  ;;  %v2393_v57 = vadd.f32 %v2392_v2, %v12381_v20  ;;  %10634 = vmatmul.mubr.msk.bf16.gmra.mrb[148].mxu0 %vm2011_vm0, %v11521_v12 }
 0x195   : > { %v2967_v3 = vmax.f32 %v2391_v14, 0.0  ;;  %10635 = vmatprep.mubr.msk.bf16.mxu0 %vm2011_vm0, %v11522_v16 }
 0x196   : > { %v13063_v8 = vpop.permute.xlu1 %1578  ;;  %v13066_v48 = vpop.permute.xlu0 %1573  ;;  %v2968_v52 = vmax.f32 %v2393_v57, 0.0 }
 0x197   : > { %16065 = vst [vmem:[#allocation67_spill] sm:$0xff] %v13063_v8  ;;  %16066 = vst [vmem:[#allocation68_spill] sm:$0xff] %v13066_v48  ;;  %3916 = vperm.xlu1 %11457, %v3622_v62   ;;  %3911 = vperm.xlu0 %11456, %v3621_v37   ;;  %v3201_v62 = vpack.c.bf16 %v2967_v3, %v2965_v7  ;;  %v2396_v12 = vpop.f32.mrb[44].mxu0 }
 0x198   : > { %v3202_v2 = vpack.c.bf16 %v2968_v52, %v2966_v61  ;;  %v2397_v8 = vadd.f32 %v2396_v12, %v12395_v25  ;;  %v2398_v48 = vpop.f32.mrb[45].mxu0 }
 0x199   : > { %v2399_v14 = vadd.f32 %v2398_v48, %v12395_v25  ;;  %v2400_v57 = vpop.f32.mrb[46].mxu0  ;;  %v3628_v25 = vld [vmem:[%s16026_s20 + $0x1f8] sm:$0xff]  ;;  %v3627_v48 = vld [vmem:[%s16026_s20 + $0x1f0] sm:$0xff] }
 0x19a   : > { %v13076_v20 = vpop.permute.xlu1 %1588  ;;  %v13078_v37 = vpop.permute.xlu0 %1583  ;;  %5249 = vmatprep.subr.bf16.mxu1 %v3202_v2  ;;  %v2969_v12 = vmax.f32 %v2397_v8, 0.0  ;;  %v6898_v8 = vld [vmem:[%s15802_s7 + $0x8] sm:$0xff] }
 0x19b   : > { %16067 = vst [vmem:[#allocation69_spill] sm:$0xff] %v13076_v20  ;;  %16068 = vst [vmem:[#allocation70_spill] sm:$0xff] %v13078_v37  ;;  %3926 = vperm.xlu1 %11457, %v3624_v21   ;;  %3921 = vperm.xlu0 %11456, %v3623_v38   ;;  %v11523_v21 = vld [vmem:[%s16004_s30 + $0x138] sm:$0xff]   ;;  %v2401_v38 = vadd.f32 %v2400_v57, %v12393_v24  ;;  %v2402_v7 = vpop.f32.mrb[47].mxu0  ;;  %v2970_v2 = vmax.f32 %v2399_v14, 0.0  ;;  %v6897_v14 = vld [vmem:[%s15802_s7] sm:$0xff] }
 0x19c   : > { %5250 = vmatpush1.bf16.msra.mxu1 %v3201_v62  ;;  %v2403_v61 = vadd.f32 %v2402_v7, %v12393_v24  ;;  %10636 = vmatmul.mubr.msk.bf16.gmra.mrb[152].mxu0 %vm2011_vm0, %v11522_v16 }
 0x19d   : > { %v2971_v62 = vmax.f32 %v2401_v38, 0.0  ;;  %10637 = vmatprep.mubr.msk.bf16.mxu0 %vm2011_vm0, %v11523_v21 }
 0x19e   : > { %v13092_v3 = vpop.permute.xlu1 %1598  ;;  %v13095_v52 = vpop.permute.xlu0 %1593  ;;  %v2972_v57 = vmax.f32 %v2403_v61, 0.0 }
 0x19f   : > { %16069 = vst [vmem:[#allocation71_spill] sm:$0xff] %v13092_v3  ;;  %16070 = vst [vmem:[#allocation72_spill] sm:$0xff] %v13095_v52  ;;  %3936 = vperm.xlu1 %11457, %v3626_v36   ;;  %3931 = vperm.xlu0 %11456, %v3625_v5   ;;  %v3203_v36 = vpack.c.bf16 %v2971_v62, %v2969_v12  ;;  %v2406_v16 = vpop.f32.mrb[48].mxu0 }
 0x1a0   : > { %v3204_v7 = vpack.c.bf16 %v2972_v57, %v2970_v2  ;;  %v2407_v3 = vadd.f32 %v2406_v16, %v12408_v30  ;;  %v2408_v52 = vpop.f32.mrb[49].mxu0 }
 0x1a1   : > { %v2409_v38 = vadd.f32 %v2408_v52, %v12408_v30  ;;  %v2410_v61 = vpop.f32.mrb[50].mxu0  ;;  %v6900_v30 = vld [vmem:[%s15802_s7 + $0x18] sm:$0xff]  ;;  %v6899_v52 = vld [vmem:[%s15802_s7 + $0x10] sm:$0xff] }
 0x1a2   : > { %v13105_v24 = vpop.permute.xlu1 %1608  ;;  %v13107_v5 = vpop.permute.xlu0 %1603  ;;  %5251 = vmatprep.subr.bf16.mxu1 %v3204_v7  ;;  %v2973_v16 = vmax.f32 %v2407_v3, 0.0  ;;  %v6902_v3 = vld [vmem:[%s15802_s7 + $0x28] sm:$0xff] }
 0x1a3   : > { %16071 = vst [vmem:[#allocation73_spill] sm:$0xff] %v13105_v24  ;;  %16072 = vst [vmem:[#allocation74_spill] sm:$0xff] %v13107_v5  ;;  %3946 = vperm.xlu1 %11457, %v3628_v25   ;;  %3941 = vperm.xlu0 %11456, %v3627_v48   ;;  %v11524_v25 = vld [vmem:[%s16004_s30 + $0x140] sm:$0xff]   ;;  %v2411_v48 = vadd.f32 %v2410_v61, %v12406_v29  ;;  %v2412_v12 = vpop.f32.mrb[51].mxu0  ;;  %v2974_v7 = vmax.f32 %v2409_v38, 0.0 }
 0x1a4   : > { %5252 = vmatpush1.bf16.msra.mxu1 %v3203_v36  ;;  %v2413_v2 = vadd.f32 %v2412_v12, %v12406_v29  ;;  %10638 = vmatmul.mubr.msk.bf16.gmra.mrb[156].mxu0 %vm2011_vm0, %v11523_v21  ;;  %v6901_v38 = vld [vmem:[%s15802_s7 + $0x20] sm:$0xff] }
 0x1a5   : > { %v2975_v36 = vmax.f32 %v2411_v48, 0.0  ;;  %10639 = vmatprep.mubr.msk.bf16.mxu0 %vm2011_vm0, %v11524_v25 }
 0x1a6   : > { %v13121_v62 = vpop.permute.xlu1 %3636  ;;  %v13124_v57 = vpop.permute.xlu0 %3631  ;;  %v2976_v61 = vmax.f32 %v2413_v2, 0.0 }
 0x1a7   : > { %16073 = vst [vmem:[#allocation75_spill] sm:$0xff] %v13121_v62  ;;  %16074 = vst [vmem:[#allocation76_spill] sm:$0xff] %v13124_v57  ;;  %6936 = vperm.xlu1 %11457, %v6898_v8   ;;  %6931 = vperm.xlu0 %11456, %v6897_v14   ;;  %v3205_v8 = vpack.c.bf16 %v2975_v36, %v2973_v16  ;;  %v2416_v21 = vpop.f32.mrb[52].mxu0 }
 0x1a8   : > { %v3206_v12 = vpack.c.bf16 %v2976_v61, %v2974_v7  ;;  %v2417_v62 = vadd.f32 %v2416_v21, %v12420_v34  ;;  %v2418_v57 = vpop.f32.mrb[53].mxu0 }
 0x1a9   : > { %v2419_v48 = vadd.f32 %v2418_v57, %v12420_v34  ;;  %v2420_v2 = vpop.f32.mrb[54].mxu0  ;;  %v6904_v34 = vld [vmem:[%s15802_s7 + $0x38] sm:$0xff]  ;;  %v6903_v57 = vld [vmem:[%s15802_s7 + $0x30] sm:$0xff] }
 0x1aa   : > { %v13134_v29 = vpop.permute.xlu1 %3646  ;;  %v13136_v14 = vpop.permute.xlu0 %3641  ;;  %5253 = vmatprep.subr.bf16.mxu1 %v3206_v12  ;;  %v2977_v21 = vmax.f32 %v2417_v62, 0.0  ;;  %v6906_v62 = vld [vmem:[%s15802_s7 + $0x48] sm:$0xff] }
 0x1ab   : > { %16075 = vst [vmem:[#allocation77_spill] sm:$0xff] %v13134_v29  ;;  %16076 = vst [vmem:[#allocation78_spill] sm:$0xff] %v13136_v14  ;;  %6946 = vperm.xlu1 %11457, %v6900_v30   ;;  %6941 = vperm.xlu0 %11456, %v6899_v52   ;;  %v11525_v30 = vld [vmem:[%s16004_s30 + $0x148] sm:$0xff]   ;;  %v2421_v52 = vadd.f32 %v2420_v2, %v12418_v33  ;;  %v2422_v16 = vpop.f32.mrb[55].mxu0  ;;  %v2978_v12 = vmax.f32 %v2419_v48, 0.0  ;;  %v6905_v48 = vld [vmem:[%s15802_s7 + $0x40] sm:$0xff] }
 0x1ac   : > { %5254 = vmatpush1.bf16.msra.mxu1 %v3205_v8  ;;  %v2423_v7 = vadd.f32 %v2422_v16, %v12418_v33  ;;  %10640 = vmatmul.mubr.msk.bf16.gmra.mrb[160].mxu0 %vm2011_vm0, %v11524_v25 }
 0x1ad   : > { %v2979_v8 = vmax.f32 %v2421_v52, 0.0  ;;  %10641 = vmatprep.mubr.msk.bf16.mxu0 %vm2011_vm0, %v11525_v30 }
 0x1ae   : > { %v13150_v36 = vpop.permute.xlu1 %3656  ;;  %v13153_v61 = vpop.permute.xlu0 %3651  ;;  %v2980_v2 = vmax.f32 %v2423_v7, 0.0 }
 0x1af   : > { %16077 = vst [vmem:[#allocation79_spill] sm:$0xff] %v13150_v36  ;;  %16078 = vst [vmem:[#allocation80_spill] sm:$0xff] %v13153_v61  ;;  %6956 = vperm.xlu1 %11457, %v6902_v3   ;;  %6951 = vperm.xlu0 %11456, %v6901_v38   ;;  %v3207_v3 = vpack.c.bf16 %v2979_v8, %v2977_v21  ;;  %v2426_v25 = vpop.f32.mrb[56].mxu0 }
 0x1b0   : > { %v3208_v16 = vpack.c.bf16 %v2980_v2, %v2978_v12  ;;  %v2427_v36 = vadd.f32 %v2426_v25, %v12433_v41  ;;  %v2428_v61 = vpop.f32.mrb[57].mxu0 }
 0x1b1   : > { %v2429_v52 = vadd.f32 %v2428_v61, %v12433_v41  ;;  %v2430_v7 = vpop.f32.mrb[58].mxu0  ;;  %v6908_v41 = vld [vmem:[%s15802_s7 + $0x58] sm:$0xff]  ;;  %v6907_v61 = vld [vmem:[%s15802_s7 + $0x50] sm:$0xff] }
 0x1b2   : > { %v13163_v33 = vpop.permute.xlu1 %3666  ;;  %v13165_v38 = vpop.permute.xlu0 %3661  ;;  %5255 = vmatprep.subr.bf16.mxu1 %v3208_v16  ;;  %v2981_v2 = vmax.f32 %v2427_v36, 0.0  ;;  %v6909_v36 = vld [vmem:[%s15802_s7 + $0x60] sm:$0xff] }
 0x1b3   : > { %16079 = vst [vmem:[#allocation81_spill] sm:$0xff] %v13163_v33  ;;  %16080 = vst [vmem:[#allocation82_spill] sm:$0xff] %v13165_v38  ;;  %6966 = vperm.xlu1 %11457, %v6904_v34   ;;  %6961 = vperm.xlu0 %11456, %v6903_v57   ;;  %v11526_v34 = vld [vmem:[%s16004_s30 + $0x150] sm:$0xff]   ;;  %v2431_v57 = vadd.f32 %v2430_v7, %v12431_v40  ;;  %v2432_v21 = vpop.f32.mrb[59].mxu0 }
 0x1b4   : > { %5256 = vmatpush1.bf16.msra.mxu1 %v3207_v3  ;;  %v2433_v8 = vadd.f32 %v2432_v21, %v12431_v40  ;;  %10642 = vmatmul.mubr.msk.bf16.gmra.mrb[164].mxu0 %vm2011_vm0, %v11525_v30  ;;  %v2982_v3 = vmax.f32 %v2429_v52, 0.0 }
 0x1b5   : > { %v2983_v25 = vmax.f32 %v2431_v57, 0.0  ;;  %10643 = vmatprep.mubr.msk.bf16.mxu0 %vm2011_vm0, %v11526_v34 }
 0x1b6   : > { %v13180_v12 = vpop.permute.xlu0 %3671  ;;  %v13189_v16 = vpop.permute.xlu1 %3676  ;;  %v2984_v40 = vmax.f32 %v2433_v8, 0.0 }
 0x1b7   : > { %16081 = vst [vmem:[#allocation83_spill] sm:$0xff] %v13180_v12  ;;  %6976 = vperm.xlu1 %11457, %v6906_v62   ;;  %6971 = vperm.xlu0 %11456, %v6905_v48   ;;  %16082 = vst [vmem:[#allocation84_spill] sm:$0xff] %v13189_v16  ;;  %v3209_v62 = vpack.c.bf16 %v2983_v25, %v2981_v2  ;;  %v2436_v48 = vpop.f32.mrb[60].mxu0  ;;  %v6910_v12 = vld [vmem:[%s15802_s7 + $0x68] sm:$0xff] }
 0x1b8   : > { %v3210_v30 = vpack.c.bf16 %v2984_v40, %v2982_v3  ;;  %v2437_v7 = vadd.f32 %v2436_v48, %v12445_v49  ;;  %v2438_v21 = vpop.f32.mrb[61].mxu0  ;;  %v6911_v40 = vld [vmem:[%s15802_s7 + $0x70] sm:$0xff] }
 0x1b9   : > { %v2439_v57 = vadd.f32 %v2438_v21, %v12445_v49  ;;  %v2440_v8 = vpop.f32.mrb[62].mxu0  ;;  %v6912_v49 = vld [vmem:[%s15802_s7 + $0x78] sm:$0xff] }
 0x1ba   : > { %v13199_v52 = vpop.permute.xlu0 %3681  ;;  %5257 = vmatprep.subr.bf16.mxu1 %v3210_v30  ;;  %v2442_v2 = vpop.f32.mrb[63].mxu0  ;;  %v2985_v48 = vmax.f32 %v2437_v7, 0.0  ;;  %v3321_v7 = vld [vmem:[%s16044_s2 + $0x60] sm:$0xff] }
 0x1bb   : > { %6986 = vperm.xlu1 %11457, %v6908_v41   ;;  %6981 = vperm.xlu0 %11456, %v6907_v61   ;;  %16083 = vst [vmem:[#allocation85_spill] sm:$0xff] %v13199_v52  ;;  %v11527_v41 = vld [vmem:[%s16004_s30 + $0x158] sm:$0xff]   ;;  %v2441_v61 = vadd.f32 %v2440_v8, %v12443_v46  ;;  %v13206_v25 = vpop.permute.xlu1 %3686  ;;  %v2443_v3 = vadd.f32 %v2442_v2, %v12443_v46  ;;  %v2986_v21 = vmax.f32 %v2439_v57, 0.0  ;;  %v6914_v2 = vld [vmem:[%s15802_s7 + $0x88] sm:$0xff] }
 0x1bc   : > { %5258 = vmatpush1.bf16.msra.mxu1 %v3209_v62  ;;  %16084 = vst [vmem:[#allocation86_spill] sm:$0xff] %v13206_v25  ;;  %10644 = vmatmul.mubr.msk.bf16.gmra.mrb[168].mxu0 %vm2011_vm0, %v11526_v34 }
 0x1bd   : > { %v2987_v30 = vmax.f32 %v2441_v61, 0.0  ;;  %v2988_v62 = vmax.f32 %v2443_v3, 0.0  ;;  %10645 = vmatprep.mubr.msk.bf16.mxu0 %vm2011_vm0, %v11527_v41  ;;  %v6913_v3 = vld [vmem:[%s15802_s7 + $0x80] sm:$0xff] }
 0x1be   : > { %v13217_v46 = vpop.permute.xlu0 %3691 }
 0x1bf   : > { %6996 = vperm.xlu1 %11457, %v6910_v12   ;;  %6991 = vperm.xlu0 %11456, %v6909_v36   ;;  %v3211_v8 = vpack.c.bf16 %v2987_v30, %v2985_v48  ;;  %16085 = vst [vmem:[#allocation87_spill] sm:$0xff] %v13217_v46  ;;  %v2446_v12 = vpop.f32.mrb[64].mxu0  ;;  %v3212_v34 = vpack.c.bf16 %v2988_v62, %v2986_v21  ;;  %v3317_v36 = vld [vmem:[%s16044_s2 + $0x40] sm:$0xff] }
 0x1c0   : > { %v2447_v57 = vadd.f32 %v2446_v12, %v12458_v58  ;;  %v2448_v61 = vpop.f32.mrb[65].mxu0  ;;  %v11528_v30 = vld [vmem:[%s16004_s30 + $0x160] sm:$0xff]   ;;  %v10115_v12 = vcombine.high %v3317_v36, %v3321_v7 }
 0x1c1   : > { %v2450_v48 = vpop.f32.mrb[66].mxu0  ;;  %5259 = vmatprep.subr.bf16.mxu1 %v3212_v34  ;;  %v6915_v34 = vld [vmem:[%s15802_s7 + $0x90] sm:$0xff] }
 0x1c2   : > { %v2451_v21 = vadd.f32 %v2450_v48, %v12456_v55  ;;  %v2452_v62 = vpop.f32.mrb[67].mxu0  ;;  %5260 = vmatpush1.bf16.msra.mxu1 %v3211_v8  ;;  %v2989_v25 = vmax.f32 %v2447_v57, 0.0 }
 0x1c3   : > { %7006 = vperm.xlu1 %11457, %v6912_v49   ;;  %7001 = vperm.xlu0 %11456, %v6911_v40   ;;  %v13232_v49 = vpop.permute.xlu1 %3696  ;;  %v2449_v40 = vadd.f32 %v2448_v61, %v12458_v58  ;;  %v2453_v46 = vadd.f32 %v2452_v62, %v12456_v55  ;;  %v6916_v58 = vld [vmem:[%s15802_s7 + $0x98] sm:$0xff]  ;;  %v13247_v61 = vpop.permute.xlu0 %3701  ;;  %v16088_v55 = vcombine.low %v12761_v54, %v12766_v4 }
 0x1c4   : > { %16086 = vst [vmem:[#allocation88_spill] sm:$0xff] %v13232_v49  ;;  %v2991_v52 = vmax.f32 %v2451_v21, 0.0  ;;  %10646 = vmatmul.mubr.msk.bf16.gmra.mrb[172].mxu0 %vm2011_vm0, %v11527_v41  ;;  %16087 = vst [vmem:[#allocation89_spill] sm:$0xff] %v13247_v61  ;;  %v3325_v21 = vld [vmem:[%s16044_s2 + $0x80] sm:$0xff]  ;;  %v9649_v49 = vld [vmem:[%s15813_s18 + $0x38] sm:$0xff] }
 0x1c5   : > { %v2990_v8 = vmax.f32 %v2449_v40, 0.0  ;;  %v2992_v48 = vmax.f32 %v2453_v46, 0.0  ;;  %5262 = vmatmul.mubr.bf16.vlgmr.msra.gmra.mrb[0].mxu1 %v16088_v55  ;;  %10647 = vmatprep.mubr.msk.bf16.mxu0 %vm2011_vm0, %v11528_v30  ;;  %v3329_v46 = vld [vmem:[%s16044_s2 + $0xa0] sm:$0xff] }
 0x1c6   : > { %v3213_v57 = vpack.c.bf16 %v2991_v52, %v2989_v25  ;;  %5271 = vmatprep.mubr.bf16.mxu1 %v10115_v12  ;;  %v6918_v52 = vld [vmem:[%s15802_s7 + $0xa8] sm:$0xff]  ;;  %v6917_v25 = vld [vmem:[%s15802_s7 + $0xa0] sm:$0xff]  ;;  %v10114_v12 = vcombine.low %v3317_v36, %v3321_v7  ;;  %v6920_v36 = vld [vmem:[%s15802_s7 + $0xb8] sm:$0xff] }
 0x1c7   : > { %7016 = vperm.xlu1 %11457, %v6914_v2   ;;  %7011 = vperm.xlu0 %11456, %v6913_v3   ;;  %v13253_v41 = vpop.permute.xlu1 %3706  ;;  %v2456_v2 = vpop.f32.mrb[68].mxu0  ;;  %v3214_v3 = vpack.c.bf16 %v2992_v48, %v2990_v8  ;;  %v10123_v48 = vcombine.high %v3325_v21, %v3329_v46  ;;  %v6919_v7 = vld [vmem:[%s15802_s7 + $0xb0] sm:$0xff] }
 0x1c8   : > { %16089 = vst [vmem:[#allocation90_spill] sm:$0xff] %v13253_v41  ;;  %v2457_v54 = vadd.f32 %v2456_v2, %v12470_v0  ;;  %v2458_v4 = vpop.f32.mrb[69].mxu0  ;;  %v13273_v55 = vpop.permute.xlu0 %3711 }
 0x1c9   : > { %v2459_v40 = vadd.f32 %v2458_v4, %v12470_v0  ;;  %v2460_v62 = vpop.f32.mrb[70].mxu0  ;;  %5582 = vmatprep.subr.bf16.mxu1 %v3214_v3  ;;  %16090 = vst [vmem:[#allocation91_spill] sm:$0xff] %v13273_v55 }
 0x1ca   : > { %v2462_v8 = vpop.f32.mrb[71].mxu0  ;;  %5583 = vmatpush1.bf16.msra.mxu1 %v3213_v57  ;;  %v2993_v41 = vmax.f32 %v2457_v54, 0.0 }
 0x1cb   : > { %7026 = vperm.xlu1 %11457, %v6916_v58   ;;  %7021 = vperm.xlu0 %11456, %v6915_v34   ;;  %v11529_v58 = vld [vmem:[%s16004_s30 + $0x168] sm:$0xff]   ;;  %v2461_v34 = vadd.f32 %v2460_v62, %v12468_v63  ;;  %v2463_v2 = vadd.f32 %v2462_v8, %v12468_v63  ;;  %v13283_v57 = vpop.permute.xlu1 %3716  ;;  %v2994_v3 = vmax.f32 %v2459_v40, 0.0 }
 0x1cc   : > { %10648 = vmatmul.mubr.msk.bf16.gmra.mrb[176].mxu0 %vm2011_vm0, %v11528_v30  ;;  %16091 = vst [vmem:[#allocation92_spill] sm:$0xff] %v13283_v57 }
 0x1cd   : > { %v2995_v0 = vmax.f32 %v2461_v34, 0.0  ;;  %v2996_v4 = vmax.f32 %v2463_v2, 0.0  ;;  %5272 = vmatmul.mubr.bf16.gmra.mrb[4].mxu1 %v10114_v12  ;;  %10649 = vmatprep.mubr.msk.bf16.mxu0 %vm2011_vm0, %v11529_v58  ;;  %v6921_v12 = vld [vmem:[%s15802_s7 + $0xc0] sm:$0xff]  ;;  %v13301_v34 = vpop.permute.xlu0 %3721  ;;  %v10122_v2 = vcombine.low %v3325_v21, %v3329_v46  ;;  %v6924_v21 = vld [vmem:[%s15802_s7 + $0xd8] sm:$0xff]  ;;  %v6923_v46 = vld [vmem:[%s15802_s7 + $0xd0] sm:$0xff] }
 0x1ce   : > { %5281 = vmatprep.mubr.bf16.mxu1 %v10123_v48  ;;  %16092 = vst [vmem:[#allocation93_spill] sm:$0xff] %v13301_v34 }
 0x1cf   : > { %7036 = vperm.xlu1 %11457, %v6918_v52   ;;  %7031 = vperm.xlu0 %11456, %v6917_v25   ;;  %v3215_v63 = vpack.c.bf16 %v2995_v0, %v2993_v41  ;;  %v2466_v54 = vpop.f32.mrb[72].mxu0  ;;  %v3216_v30 = vpack.c.bf16 %v2996_v4, %v2994_v3  ;;  %v13289_v52 = vld [vmem:[%s16044_s2 + $0xc0] sm:$0xff]  ;;  %v6922_v41 = vld [vmem:[%s15802_s7 + $0xc8] sm:$0xff]  ;;  %v11530_v0 = vld [vmem:[%s16004_s30 + $0x170] sm:$0xff]   ;;  %v13309_v4 = vpop.permute.xlu1 %3726 }
 0x1d0   : > { %v3337_v25 = vld [vmem:[%s16044_s2 + $0xe0] sm:$0xff]  ;;  %v2467_v40 = vadd.f32 %v2466_v54, %v12483_v10  ;;  %v2468_v62 = vpop.f32.mrb[73].mxu0  ;;  %16093 = vst [vmem:[#allocation94_spill] sm:$0xff] %v13309_v4 }
 0x1d1   : > { %v2469_v8 = vadd.f32 %v2468_v62, %v12483_v10  ;;  %v2470_v48 = vpop.f32.mrb[74].mxu0  ;;  %5584 = vmatprep.subr.bf16.mxu1 %v3216_v30  ;;  %v10131_v3 = vcombine.high %v13289_v52, %v3337_v25 }
 0x1d2   : > { %5585 = vmatpush1.bf16.msra.mxu1 %v3215_v63  ;;  %v2997_v10 = vmax.f32 %v2467_v40, 0.0 }
 0x1d3   : > { %7046 = vperm.xlu1 %11457, %v6920_v36   ;;  %7041 = vperm.xlu0 %11456, %v6919_v7   ;;  %v2471_v36 = vadd.f32 %v2470_v48, %v12481_v9  ;;  %v2472_v7 = vpop.f32.mrb[75].mxu0  ;;  %v2998_v63 = vmax.f32 %v2469_v8, 0.0  ;;  %v3345_v8 = vld [vmem:[%s16044_s2 + $0x120] sm:$0xff] }
 0x1d4   : > { %v2473_v54 = vadd.f32 %v2472_v7, %v12481_v9  ;;  %10650 = vmatmul.mubr.msk.bf16.gmra.mrb[180].mxu0 %vm2011_vm0, %v11529_v58  ;;  %v6925_v7 = vld [vmem:[%s15802_s7 + $0xe0] sm:$0xff] }
 0x1d5   : > { %v2999_v62 = vmax.f32 %v2471_v36, 0.0  ;;  %5282 = vmatmul.mubr.bf16.gmra.mrb[8].mxu1 %v10122_v2  ;;  %10651 = vmatprep.mubr.msk.bf16.mxu0 %vm2011_vm0, %v11530_v0  ;;  %v6926_v36 = vld [vmem:[%s15802_s7 + $0xe8] sm:$0xff] }
 0x1d6   : > { %v3000_v30 = vmax.f32 %v2473_v54, 0.0  ;;  %5291 = vmatprep.mubr.bf16.mxu1 %v10131_v3  ;;  %v13337_v3 = vpop.permute.xlu1 %3736 }
 0x1d7   : > { %7056 = vperm.xlu1 %11457, %v6922_v41   ;;  %7051 = vperm.xlu0 %11456, %v6921_v12   ;;  %v3217_v9 = vpack.c.bf16 %v2999_v62, %v2997_v10  ;;  %v13320_v41 = vpop.permute.xlu0 %3731  ;;  %v2476_v40 = vpop.f32.mrb[76].mxu0  ;;  %v13325_v12 = vld [vmem:[%s16044_s2 + $0x100] sm:$0xff]  ;;  %16095 = vst [vmem:[#allocation96_spill] sm:$0xff] %v13337_v3  ;;  %v10130_v62 = vcombine.low %v13289_v52, %v3337_v25  ;;  %v6928_v52 = vld [vmem:[%s15802_s7 + $0xf8] sm:$0xff]  ;;  %v6927_v25 = vld [vmem:[%s15802_s7 + $0xf0] sm:$0xff] }
 0x1d8   : > { %16094 = vst [vmem:[#allocation95_spill] sm:$0xff] %v13320_v41  ;;  %v3218_v58 = vpack.c.bf16 %v3000_v30, %v2998_v63  ;;  %v2477_v48 = vadd.f32 %v2476_v40, %v12495_v18  ;;  %v2478_v2 = vpop.f32.mrb[77].mxu0  ;;  %v10139_v30 = vcombine.high %v13325_v12, %v3345_v8 }
 0x1d9   : > { %v2479_v54 = vadd.f32 %v2478_v2, %v12495_v18  ;;  %v2480_v10 = vpop.f32.mrb[78].mxu0 }
 0x1da   : > { %5586 = vmatprep.subr.bf16.mxu1 %v3218_v58  ;;  %v2482_v63 = vpop.f32.mrb[79].mxu0  ;;  %v3001_v3 = vmax.f32 %v2477_v48, 0.0  ;;  %v13357_v48 = vpop.permute.xlu1 %3746 }
 0x1db   : > { %7066 = vperm.xlu1 %11457, %v6924_v21   ;;  %7061 = vperm.xlu0 %11456, %v6923_v46   ;;  %v11531_v21 = vld [vmem:[%s16004_s30 + $0x178] sm:$0xff]   ;;  %v2481_v46 = vadd.f32 %v2480_v10, %v12493_v17  ;;  %v2483_v40 = vadd.f32 %v2482_v63, %v12493_v17  ;;  %v13354_v58 = vpop.permute.xlu0 %3741  ;;  %16097 = vst [vmem:[#allocation98_spill] sm:$0xff] %v13357_v48 }
 0x1dc   : > { %5587 = vmatpush1.bf16.msra.mxu1 %v3217_v9  ;;  %10652 = vmatmul.mubr.msk.bf16.gmra.mrb[184].mxu0 %vm2011_vm0, %v11530_v0  ;;  %16096 = vst [vmem:[#allocation97_spill] sm:$0xff] %v13354_v58  ;;  %v3002_v9 = vmax.f32 %v2479_v54, 0.0  ;;  %v3353_v54 = vld [vmem:[%s16044_s2 + $0x160] sm:$0xff] }
 0x1dd   : > { %v3003_v18 = vmax.f32 %v2481_v46, 0.0  ;;  %v3004_v2 = vmax.f32 %v2483_v40, 0.0  ;;  %5292 = vmatmul.mubr.bf16.gmra.mrb[12].mxu1 %v10130_v62  ;;  %10653 = vmatprep.mubr.msk.bf16.mxu0 %vm2011_vm0, %v11531_v21  ;;  %v8148_v46 = vld [vmem:[%s15806_s11] sm:$0xff]  ;;  %v10138_v40 = vcombine.low %v13325_v12, %v3345_v8  ;;  %v8151_v12 = vld [vmem:[%s15806_s11 + $0x18] sm:$0xff]  ;;  %v8150_v8 = vld [vmem:[%s15806_s11 + $0x10] sm:$0xff] }
 0x1de   : > { %5301 = vmatprep.mubr.bf16.mxu1 %v10139_v30 }
 0x1df   : > { %7076 = vperm.xlu1 %11457, %v6926_v36   ;;  %7071 = vperm.xlu0 %11456, %v6925_v7   ;;  %v3219_v17 = vpack.c.bf16 %v3003_v18, %v3001_v3  ;;  %v2486_v0 = vpop.f32.mrb[80].mxu0  ;;  %v3220_v36 = vpack.c.bf16 %v3004_v2, %v3002_v9  ;;  %v3349_v7 = vld [vmem:[%s16044_s2 + $0x140] sm:$0xff]  ;;  %v8149_v3 = vld [vmem:[%s15806_s11 + $0x8] sm:$0xff]  ;;  %v13378_v2 = vpop.permute.xlu0 %3751 }
 0x1e0   : > { %v2487_v10 = vadd.f32 %v2486_v0, %v12508_v27  ;;  %v2488_v62 = vpop.f32.mrb[81].mxu0  ;;  %v11532_v18 = vld [vmem:[%s16004_s30 + $0x180] sm:$0xff]   ;;  %v10147_v9 = vcombine.high %v3349_v7, %v3353_v54  ;;  %16098 = vst [vmem:[#allocation99_spill] sm:$0xff] %v13378_v2 }
 0x1e1   : > { %v2489_v63 = vadd.f32 %v2488_v62, %v12508_v27  ;;  %v2490_v30 = vpop.f32.mrb[82].mxu0  ;;  %5588 = vmatprep.subr.bf16.mxu1 %v3220_v36 }
 0x1e2   : > { %5589 = vmatpush1.bf16.msra.mxu1 %v3219_v17  ;;  %v3005_v27 = vmax.f32 %v2487_v10, 0.0  ;;  %v13388_v17 = vpop.permute.xlu1 %3756 }
 0x1e3   : > { %7086 = vperm.xlu1 %11457, %v6928_v52   ;;  %7081 = vperm.xlu0 %11456, %v6927_v25   ;;  %v2491_v52 = vadd.f32 %v2490_v30, %v12506_v26  ;;  %v2492_v25 = vpop.f32.mrb[83].mxu0  ;;  %16099 = vst [vmem:[#allocation100_spill] sm:$0xff] %v13388_v17  ;;  %v3006_v36 = vmax.f32 %v2489_v63, 0.0 }
 0x1e4   : > { %v2493_v0 = vadd.f32 %v2492_v25, %v12506_v26  ;;  %10654 = vmatmul.mubr.msk.bf16.gmra.mrb[188].mxu0 %vm2011_vm0, %v11531_v21  ;;  %v8152_v25 = vld [vmem:[%s15806_s11 + $0x20] sm:$0xff] }
 0x1e5   : > { %v3007_v62 = vmax.f32 %v2491_v52, 0.0  ;;  %5302 = vmatmul.mubr.bf16.gmra.mrb[16].mxu1 %v10138_v40  ;;  %10655 = vmatprep.mubr.msk.bf16.mxu0 %vm2011_vm0, %v11532_v18  ;;  %v8153_v52 = vld [vmem:[%s15806_s11 + $0x28] sm:$0xff] }
 0x1e6   : > { %v3008_v30 = vmax.f32 %v2493_v0, 0.0  ;;  %5311 = vmatprep.mubr.bf16.mxu1 %v10147_v9  ;;  %v13406_v9 = vpop.permute.xlu0 %3761 }
 0x1e7   : > { %8187 = vperm.xlu1 %11457, %v8149_v3   ;;  %8182 = vperm.xlu0 %11456, %v8148_v46   ;;  %v3221_v26 = vpack.c.bf16 %v3007_v62, %v3005_v27  ;;  %v2496_v10 = vpop.f32.mrb[84].mxu0  ;;  %v13394_v3 = vld [vmem:[%s16044_s2 + $0x180] sm:$0xff]  ;;  %16100 = vst [vmem:[#allocation101_spill] sm:$0xff] %v13406_v9  ;;  %v10146_v62 = vcombine.low %v3349_v7, %v3353_v54  ;;  %v8155_v7 = vld [vmem:[%s15806_s11 + $0x38] sm:$0xff]  ;;  %v8154_v54 = vld [vmem:[%s15806_s11 + $0x30] sm:$0xff] }
 0x1e8   : > { %v3222_v21 = vpack.c.bf16 %v3008_v30, %v3006_v36  ;;  %v3361_v46 = vld [vmem:[%s16044_s2 + $0x1a0] sm:$0xff]  ;;  %v2497_v63 = vadd.f32 %v2496_v10, %v12520_v35  ;;  %v2498_v40 = vpop.f32.mrb[85].mxu0  ;;  %v13414_v10 = vpop.permute.xlu1 %3766 }
 0x1e9   : > { %v2499_v0 = vadd.f32 %v2498_v40, %v12520_v35  ;;  %v2500_v27 = vpop.f32.mrb[86].mxu0  ;;  %v10155_v30 = vcombine.high %v13394_v3, %v3361_v46  ;;  %16101 = vst [vmem:[#allocation102_spill] sm:$0xff] %v13414_v10 }
 0x1ea   : > { %5590 = vmatprep.subr.bf16.mxu1 %v3222_v21  ;;  %v2502_v36 = vpop.f32.mrb[87].mxu0  ;;  %v3009_v35 = vmax.f32 %v2497_v63, 0.0 }
 0x1eb   : > { %8197 = vperm.xlu1 %11457, %v8151_v12   ;;  %8192 = vperm.xlu0 %11456, %v8150_v8   ;;  %v11533_v12 = vld [vmem:[%s16004_s30 + $0x188] sm:$0xff]   ;;  %v2501_v8 = vadd.f32 %v2500_v27, %v12518_v32  ;;  %v2503_v17 = vadd.f32 %v2502_v36, %v12518_v32 }
 0x1ec   : > { %5591 = vmatpush1.bf16.msra.mxu1 %v3221_v26  ;;  %10656 = vmatmul.mubr.msk.bf16.gmra.mrb[192].mxu0 %vm2011_vm0, %v11532_v18  ;;  %v3010_v26 = vmax.f32 %v2499_v0, 0.0  ;;  %v13442_v36 = vpop.permute.xlu1 %3776 }
 0x1ed   : > { %v3011_v40 = vmax.f32 %v2501_v8, 0.0  ;;  %v3012_v21 = vmax.f32 %v2503_v17, 0.0  ;;  %5312 = vmatmul.mubr.bf16.gmra.mrb[20].mxu1 %v10146_v62  ;;  %10657 = vmatprep.mubr.msk.bf16.mxu0 %vm2011_vm0, %v11533_v12  ;;  %v3369_v17 = vld [vmem:[%s16044_s2 + $0x1e0] sm:$0xff]  ;;  %v8157_v62 = vld [vmem:[%s15806_s11 + $0x48] sm:$0xff]  ;;  %16103 = vst [vmem:[#allocation104_spill] sm:$0xff] %v13442_v36 }
 0x1ee   : > { %5321 = vmatprep.mubr.bf16.mxu1 %v10155_v30  ;;  %v8156_v8 = vld [vmem:[%s15806_s11 + $0x40] sm:$0xff] }
 0x1ef   : > { %8207 = vperm.xlu1 %11457, %v8153_v52   ;;  %8202 = vperm.xlu0 %11456, %v8152_v25   ;;  %v3223_v32 = vpack.c.bf16 %v3011_v40, %v3009_v35  ;;  %v13425_v52 = vpop.permute.xlu0 %3771  ;;  %v2506_v63 = vpop.f32.mrb[88].mxu0  ;;  %v3224_v18 = vpack.c.bf16 %v3012_v21, %v3010_v26  ;;  %v13430_v25 = vld [vmem:[%s16044_s2 + $0x1c0] sm:$0xff]  ;;  %v10154_v40 = vcombine.low %v13394_v3, %v3361_v46  ;;  %v8159_v3 = vld [vmem:[%s15806_s11 + $0x58] sm:$0xff]  ;;  %v8158_v46 = vld [vmem:[%s15806_s11 + $0x50] sm:$0xff] }
 0x1f0   : > { %16102 = vst [vmem:[#allocation103_spill] sm:$0xff] %v13425_v52  ;;  %v2507_v0 = vadd.f32 %v2506_v63, %v12533_v50  ;;  %v2508_v27 = vpop.f32.mrb[89].mxu0  ;;  %v10163_v63 = vcombine.high %v13430_v25, %v3369_v17 }
 0x1f1   : > { %v2509_v30 = vadd.f32 %v2508_v27, %v12533_v50  ;;  %v2510_v35 = vpop.f32.mrb[90].mxu0  ;;  %5592 = vmatprep.subr.bf16.mxu1 %v3224_v18 }
 0x1f2   : > { %v2512_v21 = vpop.f32.mrb[91].mxu0  ;;  %5593 = vmatpush1.bf16.msra.mxu1 %v3223_v32  ;;  %v3013_v36 = vmax.f32 %v2507_v0, 0.0  ;;  %v13462_v0 = vpop.permute.xlu1 %3786 }
 0x1f3   : > { %8217 = vperm.xlu1 %11457, %v8155_v7   ;;  %8212 = vperm.xlu0 %11456, %v8154_v54   ;;  %v11534_v7 = vld [vmem:[%s16004_s30 + $0x190] sm:$0xff]   ;;  %v16104_v54 = vld [vmem:[#allocation12_spill] sm:$0xff]  ;;  %v13459_v18 = vpop.permute.xlu0 %3781  ;;  %v3014_v32 = vmax.f32 %v2509_v30, 0.0  ;;  %16106 = vst [vmem:[#allocation105_spill] sm:$0xff] %v13462_v0 }
 0x1f4   : > { %v2511_v26 = vadd.f32 %v2510_v35, %v16104_v54  ;;  %v2513_v52 = vadd.f32 %v2512_v21, %v16104_v54  ;;  %10658 = vmatmul.mubr.msk.bf16.gmra.mrb[196].mxu0 %vm2011_vm0, %v11533_v12  ;;  %16105 = vst [vmem:[#allocation12_spill] sm:$0xff] %v13459_v18  ;;  %v3373_v35 = vld [vmem:[%s16044_s2 + $0x200] sm:$0xff] }
 0x1f5   : > { %5322 = vmatmul.mubr.bf16.gmra.mrb[24].mxu1 %v10154_v40  ;;  %10659 = vmatprep.mubr.msk.bf16.mxu0 %vm2011_vm0, %v11534_v7  ;;  %v3377_v30 = vld [vmem:[%s16044_s2 + $0x220] sm:$0xff] }
 0x1f6   : > { %v3015_v50 = vmax.f32 %v2511_v26, 0.0  ;;  %v3016_v27 = vmax.f32 %v2513_v52, 0.0  ;;  %5331 = vmatprep.mubr.bf16.mxu1 %v10163_v63  ;;  %v16107_v52 = vld [vmem:[#allocation14_spill] sm:$0xff]  ;;  %v8160_v26 = vld [vmem:[%s15806_s11 + $0x60] sm:$0xff] }
 0x1f7   : > { %8227 = vperm.xlu1 %11457, %v8157_v62   ;;  %8222 = vperm.xlu0 %11456, %v8156_v8   ;;  %v2516_v12 = vpop.f32.mrb[92].mxu0  ;;  %v13483_v0 = vpop.permute.xlu0 %3791 }
 0x1f8   : > { %v3225_v62 = vpack.c.bf16 %v3015_v50, %v3013_v36  ;;  %v3226_v8 = vpack.c.bf16 %v3016_v27, %v3014_v32  ;;  %v2517_v40 = vadd.f32 %v2516_v12, %v16107_v52  ;;  %v2518_v54 = vpop.f32.mrb[93].mxu0  ;;  %v8161_v36 = vld [vmem:[%s15806_s11 + $0x68] sm:$0xff]  ;;  %v10162_v50 = vcombine.low %v13430_v25, %v3369_v17  ;;  %16109 = vst [vmem:[#allocation14_spill] sm:$0xff] %v13483_v0  ;;  %v8163_v25 = vld [vmem:[%s15806_s11 + $0x78] sm:$0xff]  ;;  %v8162_v17 = vld [vmem:[%s15806_s11 + $0x70] sm:$0xff] }
 0x1f9   : > { %v2519_v21 = vadd.f32 %v2518_v54, %v16107_v52  ;;  %v2520_v63 = vpop.f32.mrb[94].mxu0  ;;  %v10171_v12 = vcombine.high %v3373_v35, %v3377_v30 }
 0x1fa   : > { %5594 = vmatprep.subr.bf16.mxu1 %v3226_v8  ;;  %v2522_v27 = vpop.f32.mrb[95].mxu0  ;;  %v3017_v52 = vmax.f32 %v2517_v40, 0.0 }
 0x1fb   : > { %8237 = vperm.xlu1 %11457, %v8159_v3   ;;  %8232 = vperm.xlu0 %11456, %v8158_v46   ;;  %v11535_v3 = vld [vmem:[%s16004_s30 + $0x198] sm:$0xff]   ;;  %v16108_v46 = vld [vmem:[#allocation13_spill] sm:$0xff]  ;;  %v3018_v8 = vmax.f32 %v2519_v21, 0.0  ;;  %v16111_v21 = vld [vmem:[#allocation16_spill] sm:$0xff] }
 0x1fc   : > { %v2521_v32 = vadd.f32 %v2520_v63, %v16108_v46  ;;  %5595 = vmatpush1.bf16.msra.mxu1 %v3225_v62  ;;  %v2523_v18 = vadd.f32 %v2522_v27, %v16108_v46  ;;  %10660 = vmatmul.mubr.msk.bf16.gmra.mrb[200].mxu0 %vm2011_vm0, %v11534_v7  ;;  %v13493_v62 = vpop.permute.xlu1 %3796  ;;  %v3385_v46 = vld [vmem:[%s16044_s2 + $0x260] sm:$0xff] }
 0x1fd   : > { %16110 = vst [vmem:[#allocation13_spill] sm:$0xff] %v13493_v62  ;;  %5332 = vmatmul.mubr.bf16.gmra.mrb[28].mxu1 %v10162_v50  ;;  %10661 = vmatprep.mubr.msk.bf16.mxu0 %vm2011_vm0, %v11535_v3  ;;  %v8164_v27 = vld [vmem:[%s15806_s11 + $0x80] sm:$0xff] }
 0x1fe   : > { %v3019_v54 = vmax.f32 %v2521_v32, 0.0  ;;  %v3020_v63 = vmax.f32 %v2523_v18, 0.0  ;;  %5341 = vmatprep.mubr.bf16.mxu1 %v10171_v12  ;;  %v8165_v32 = vld [vmem:[%s15806_s11 + $0x88] sm:$0xff]  ;;  %v13511_v12 = vpop.permute.xlu0 %3801 }
 0x1ff   : > { %8247 = vperm.xlu1 %11457, %v8161_v36   ;;  %8242 = vperm.xlu0 %11456, %v8160_v26   ;;  %v2526_v40 = vpop.f32.mrb[96].mxu0  ;;  %v13499_v26 = vld [vmem:[%s16044_s2 + $0x240] sm:$0xff]  ;;  %16112 = vst [vmem:[#allocation16_spill] sm:$0xff] %v13511_v12 }
 0x200   : > { %v3227_v36 = vpack.c.bf16 %v3019_v54, %v3017_v52  ;;  %v3228_v7 = vpack.c.bf16 %v3020_v63, %v3018_v8  ;;  %v2527_v18 = vadd.f32 %v2526_v40, %v16111_v21  ;;  %v2528_v50 = vpop.f32.mrb[97].mxu0  ;;  %v16113_v8 = vld [vmem:[#allocation15_spill] sm:$0xff]  ;;  %v10179_v62 = vcombine.high %v13499_v26, %v3385_v46  ;;  %v13519_v0 = vpop.permute.xlu1 %3806 }
 0x201   : > { %v2529_v52 = vadd.f32 %v2528_v50, %v16111_v21  ;;  %v2530_v54 = vpop.f32.mrb[98].mxu0  ;;  %16114 = vst [vmem:[#allocation15_spill] sm:$0xff] %v13519_v0 }
 0x202   : > { %5596 = vmatprep.subr.bf16.mxu1 %v3228_v7  ;;  %v2531_v63 = vadd.f32 %v2530_v54, %v16113_v8  ;;  %v2532_v40 = vpop.f32.mrb[99].mxu0  ;;  %v3021_v21 = vmax.f32 %v2527_v18, 0.0 }
 0x203   : > { %8257 = vperm.xlu1 %11457, %v8163_v25   ;;  %8252 = vperm.xlu0 %11456, %v8162_v17   ;;  %v10170_v25 = vcombine.low %v3373_v35, %v3377_v30  ;;  %v11536_v17 = vld [vmem:[%s16004_s30 + $0x1a0] sm:$0xff]   ;;  %v2533_v10 = vadd.f32 %v2532_v40, %v16113_v8  ;;  %v8167_v35 = vld [vmem:[%s15806_s11 + $0x98] sm:$0xff]  ;;  %v8166_v30 = vld [vmem:[%s15806_s11 + $0x90] sm:$0xff] }
 0x204   : > { %5597 = vmatpush1.bf16.msra.mxu1 %v3227_v36  ;;  %v3023_v50 = vmax.f32 %v2531_v63, 0.0  ;;  %10662 = vmatmul.mubr.msk.bf16.gmra.mrb[204].mxu0 %vm2011_vm0, %v11535_v3  ;;  %v3022_v36 = vmax.f32 %v2529_v52, 0.0  ;;  %v16116_v52 = vld [vmem:[#allocation18_spill] sm:$0xff]  ;;  %v8168_v63 = vld [vmem:[%s15806_s11 + $0xa0] sm:$0xff]  ;;  %v13547_v40 = vpop.permute.xlu1 %3816 }
 0x205   : > { %v3024_v7 = vmax.f32 %v2533_v10, 0.0  ;;  %5342 = vmatmul.mubr.bf16.gmra.mrb[32].mxu1 %v10170_v25  ;;  %10663 = vmatprep.mubr.msk.bf16.mxu0 %vm2011_vm0, %v11536_v17  ;;  %v3393_v10 = vld [vmem:[%s16044_s2 + $0x2a0] sm:$0xff]  ;;  %16117 = vst [vmem:[#allocation18_spill] sm:$0xff] %v13547_v40 }
 0x206   : > { %v3229_v54 = vpack.c.bf16 %v3023_v50, %v3021_v21  ;;  %5351 = vmatprep.mubr.bf16.mxu1 %v10179_v62  ;;  %v8169_v62 = vld [vmem:[%s15806_s11 + $0xa8] sm:$0xff] }
 0x207   : > { %8267 = vperm.xlu1 %11457, %v8165_v32   ;;  %8262 = vperm.xlu0 %11456, %v8164_v27   ;;  %v13530_v32 = vpop.permute.xlu0 %3811  ;;  %v2536_v18 = vpop.f32.mrb[100].mxu0  ;;  %v3230_v3 = vpack.c.bf16 %v3024_v7, %v3022_v36  ;;  %v13535_v27 = vld [vmem:[%s16044_s2 + $0x280] sm:$0xff]  ;;  %v16118_v36 = vld [vmem:[#allocation17_spill] sm:$0xff] }
 0x208   : > { %16115 = vst [vmem:[#allocation106_spill] sm:$0xff] %v13530_v32  ;;  %v2537_v25 = vadd.f32 %v2536_v18, %v16116_v52  ;;  %v2538_v8 = vpop.f32.mrb[101].mxu0  ;;  %v10187_v32 = vcombine.high %v13535_v27, %v3393_v10 }
 0x209   : > { %v2539_v21 = vadd.f32 %v2538_v8, %v16116_v52  ;;  %v2540_v50 = vpop.f32.mrb[102].mxu0  ;;  %5598 = vmatprep.subr.bf16.mxu1 %v3230_v3 }
 0x20a   : > { %v2541_v7 = vadd.f32 %v2540_v50, %v16118_v36  ;;  %v2542_v18 = vpop.f32.mrb[103].mxu0  ;;  %5599 = vmatpush1.bf16.msra.mxu1 %v3229_v54  ;;  %v3025_v40 = vmax.f32 %v2537_v25, 0.0  ;;  %v13567_v25 = vpop.permute.xlu1 %3826  ;;  %v3397_v50 = vld [vmem:[%s16044_s2 + $0x2c0] sm:$0xff] }
 0x20b   : > { %8277 = vperm.xlu1 %11457, %v8167_v35   ;;  %8272 = vperm.xlu0 %11456, %v8166_v30   ;;  %v10178_v35 = vcombine.low %v13499_v26, %v3385_v46  ;;  %v11537_v30 = vld [vmem:[%s16004_s30 + $0x1a8] sm:$0xff]   ;;  %v2543_v0 = vadd.f32 %v2542_v18, %v16118_v36  ;;  %v8171_v26 = vld [vmem:[%s15806_s11 + $0xb8] sm:$0xff]  ;;  %v8170_v46 = vld [vmem:[%s15806_s11 + $0xb0] sm:$0xff]  ;;  %v13564_v3 = vpop.permute.xlu0 %3821  ;;  %v3026_v54 = vmax.f32 %v2539_v21, 0.0  ;;  %16120 = vst [vmem:[#allocation107_spill] sm:$0xff] %v13567_v25 }
 0x20c   : > { %v3027_v52 = vmax.f32 %v2541_v7, 0.0  ;;  %10664 = vmatmul.mubr.msk.bf16.gmra.mrb[208].mxu0 %vm2011_vm0, %v11536_v17  ;;  %16119 = vst [vmem:[#allocation17_spill] sm:$0xff] %v13564_v3  ;;  %v3401_v21 = vld [vmem:[%s16044_s2 + $0x2e0] sm:$0xff] }
 0x20d   : > { %v3028_v8 = vmax.f32 %v2543_v0, 0.0  ;;  %5352 = vmatmul.mubr.bf16.gmra.mrb[36].mxu1 %v10178_v35  ;;  %10665 = vmatprep.mubr.msk.bf16.mxu0 %vm2011_vm0, %v11537_v30  ;;  %v16121_v0 = vld [vmem:[#allocation20_spill] sm:$0xff] }
 0x20e   : > { %5361 = vmatprep.mubr.bf16.mxu1 %v10187_v32  ;;  %v8173_v32 = vld [vmem:[%s15806_s11 + $0xc8] sm:$0xff] }
 0x20f   : > { %8287 = vperm.xlu1 %11457, %v8169_v62   ;;  %8282 = vperm.xlu0 %11456, %v8168_v63   ;;  %v3231_v62 = vpack.c.bf16 %v3027_v52, %v3025_v40  ;;  %v2546_v17 = vpop.f32.mrb[104].mxu0  ;;  %v3232_v63 = vpack.c.bf16 %v3028_v8, %v3026_v54  ;;  %v8172_v40 = vld [vmem:[%s15806_s11 + $0xc0] sm:$0xff]  ;;  %v10186_v52 = vcombine.low %v13535_v27, %v3393_v10  ;;  %v13588_v25 = vpop.permute.xlu0 %3831  ;;  %v8175_v27 = vld [vmem:[%s15806_s11 + $0xd8] sm:$0xff]  ;;  %v8174_v10 = vld [vmem:[%s15806_s11 + $0xd0] sm:$0xff] }
 0x210   : > { %v2547_v35 = vadd.f32 %v2546_v17, %v16121_v0  ;;  %v2548_v36 = vpop.f32.mrb[105].mxu0  ;;  %v10195_v17 = vcombine.high %v3397_v50, %v3401_v21  ;;  %16123 = vst [vmem:[#allocation20_spill] sm:$0xff] %v13588_v25 }
 0x211   : > { %v2549_v7 = vadd.f32 %v2548_v36, %v16121_v0  ;;  %v2550_v18 = vpop.f32.mrb[106].mxu0  ;;  %5600 = vmatprep.subr.bf16.mxu1 %v3232_v63 }
 0x212   : > { %v2552_v8 = vpop.f32.mrb[107].mxu0  ;;  %5601 = vmatpush1.bf16.msra.mxu1 %v3231_v62  ;;  %v3029_v0 = vmax.f32 %v2547_v35, 0.0  ;;  %v13598_v62 = vpop.permute.xlu1 %3836 }
 0x213   : > { %8297 = vperm.xlu1 %11457, %v8171_v26   ;;  %8292 = vperm.xlu0 %11456, %v8170_v46   ;;  %v11538_v26 = vld [vmem:[%s16004_s30 + $0x1b0] sm:$0xff]   ;;  %v16122_v46 = vld [vmem:[#allocation19_spill] sm:$0xff]  ;;  %v3030_v63 = vmax.f32 %v2549_v7, 0.0 }
 0x214   : > { %v2551_v54 = vadd.f32 %v2550_v18, %v16122_v46  ;;  %v2553_v3 = vadd.f32 %v2552_v8, %v16122_v46  ;;  %10666 = vmatmul.mubr.msk.bf16.gmra.mrb[212].mxu0 %vm2011_vm0, %v11537_v30  ;;  %16124 = vst [vmem:[#allocation19_spill] sm:$0xff] %v13598_v62  ;;  %v3409_v46 = vld [vmem:[%s16044_s2 + $0x320] sm:$0xff]  ;;  %v16125_v7 = vld [vmem:[#allocation22_spill] sm:$0xff] }
 0x215   : > { %5362 = vmatmul.mubr.bf16.gmra.mrb[40].mxu1 %v10186_v52  ;;  %10667 = vmatprep.mubr.msk.bf16.mxu0 %vm2011_vm0, %v11538_v26  ;;  %v8176_v8 = vld [vmem:[%s15806_s11 + $0xe0] sm:$0xff] }
 0x216   : > { %v3031_v36 = vmax.f32 %v2551_v54, 0.0  ;;  %v3032_v18 = vmax.f32 %v2553_v3, 0.0  ;;  %5371 = vmatprep.mubr.bf16.mxu1 %v10195_v17  ;;  %v8177_v54 = vld [vmem:[%s15806_s11 + $0xe8] sm:$0xff]  ;;  %v13616_v17 = vpop.permute.xlu0 %3841  ;;  %v13624_v25 = vpop.permute.xlu1 %3846 }
 0x217   : > { %8307 = vperm.xlu1 %11457, %v8173_v32   ;;  %8302 = vperm.xlu0 %11456, %v8172_v40   ;;  %v2556_v35 = vpop.f32.mrb[108].mxu0  ;;  %v13604_v40 = vld [vmem:[%s16044_s2 + $0x300] sm:$0xff]  ;;  %16126 = vst [vmem:[#allocation22_spill] sm:$0xff] %v13616_v17 }
 0x218   : > { %v3233_v32 = vpack.c.bf16 %v3031_v36, %v3029_v0  ;;  %v3234_v30 = vpack.c.bf16 %v3032_v18, %v3030_v63  ;;  %v2557_v3 = vadd.f32 %v2556_v35, %v16125_v7  ;;  %v2558_v52 = vpop.f32.mrb[109].mxu0  ;;  %v16127_v63 = vld [vmem:[#allocation21_spill] sm:$0xff]  ;;  %v10203_v62 = vcombine.high %v13604_v40, %v3409_v46 }
 0x219   : > { %v2559_v0 = vadd.f32 %v2558_v52, %v16125_v7  ;;  %v2560_v36 = vpop.f32.mrb[110].mxu0  ;;  %16128 = vst [vmem:[#allocation21_spill] sm:$0xff] %v13624_v25 }
 0x21a   : > { %5602 = vmatprep.subr.bf16.mxu1 %v3234_v30  ;;  %v2561_v18 = vadd.f32 %v2560_v36, %v16127_v63  ;;  %v2562_v35 = vpop.f32.mrb[111].mxu0  ;;  %v3033_v7 = vmax.f32 %v2557_v3, 0.0 }
 0x21b   : > { %8317 = vperm.xlu1 %11457, %v8175_v27   ;;  %8312 = vperm.xlu0 %11456, %v8174_v10   ;;  %v10194_v27 = vcombine.low %v3397_v50, %v3401_v21  ;;  %v11539_v10 = vld [vmem:[%s16004_s30 + $0x1b8] sm:$0xff]   ;;  %v2563_v12 = vadd.f32 %v2562_v35, %v16127_v63  ;;  %v8178_v21 = vld [vmem:[%s15806_s11 + $0xf0] sm:$0xff]  ;;  %v13652_v35 = vpop.permute.xlu1 %3856 }
 0x21c   : > { %5603 = vmatpush1.bf16.msra.mxu1 %v3233_v32  ;;  %v3035_v52 = vmax.f32 %v2561_v18, 0.0  ;;  %10668 = vmatmul.mubr.msk.bf16.gmra.mrb[216].mxu0 %vm2011_vm0, %v11538_v26  ;;  %v8179_v50 = vld [vmem:[%s15806_s11 + $0xf8] sm:$0xff]  ;;  %v3034_v32 = vmax.f32 %v2559_v0, 0.0  ;;  %v16130_v0 = vld [vmem:[#allocation24_spill] sm:$0xff] }
 0x21d   : > { %v3036_v30 = vmax.f32 %v2563_v12, 0.0  ;;  %5372 = vmatmul.mubr.bf16.gmra.mrb[44].mxu1 %v10194_v27  ;;  %10669 = vmatprep.mubr.msk.bf16.mxu0 %vm2011_vm0, %v11539_v10  ;;  %v3417_v12 = vld [vmem:[%s16044_s2 + $0x360] sm:$0xff]  ;;  %16131 = vst [vmem:[#allocation24_spill] sm:$0xff] %v13652_v35 }
 0x21e   : > { %v3235_v36 = vpack.c.bf16 %v3035_v52, %v3033_v7  ;;  %5381 = vmatprep.mubr.bf16.mxu1 %v10203_v62  ;;  %v8902_v62 = vld [vmem:[%s15808_s13 + $0x8] sm:$0xff]  ;;  %v8901_v18 = vld [vmem:[%s15808_s13] sm:$0xff] }
 0x21f   : > { %8327 = vperm.xlu1 %11457, %v8177_v54   ;;  %8322 = vperm.xlu0 %11456, %v8176_v8   ;;  %v13635_v54 = vpop.permute.xlu0 %3851  ;;  %v2566_v3 = vpop.f32.mrb[112].mxu0  ;;  %v3236_v26 = vpack.c.bf16 %v3036_v30, %v3034_v32  ;;  %v13640_v8 = vld [vmem:[%s16044_s2 + $0x340] sm:$0xff] }
 0x220   : > { %16129 = vst [vmem:[#allocation108_spill] sm:$0xff] %v13635_v54  ;;  %v2567_v27 = vadd.f32 %v2566_v3, %v16130_v0  ;;  %v2568_v63 = vpop.f32.mrb[113].mxu0  ;;  %v16132_v32 = vld [vmem:[#allocation23_spill] sm:$0xff]  ;;  %v10211_v54 = vcombine.high %v13640_v8, %v3417_v12 }
 0x221   : > { %v2569_v7 = vadd.f32 %v2568_v63, %v16130_v0  ;;  %v2570_v52 = vpop.f32.mrb[114].mxu0  ;;  %5604 = vmatprep.subr.bf16.mxu1 %v3236_v26 }
 0x222   : > { %v2571_v30 = vadd.f32 %v2570_v52, %v16132_v32  ;;  %v2572_v3 = vpop.f32.mrb[115].mxu0  ;;  %5605 = vmatpush1.bf16.msra.mxu1 %v3235_v36  ;;  %v3037_v35 = vmax.f32 %v2567_v27, 0.0  ;;  %v13672_v27 = vpop.permute.xlu1 %3866  ;;  %v3421_v52 = vld [vmem:[%s16044_s2 + $0x380] sm:$0xff] }
 0x223   : > { %8337 = vperm.xlu1 %11457, %v8179_v50   ;;  %8332 = vperm.xlu0 %11456, %v8178_v21   ;;  %v10202_v50 = vcombine.low %v13604_v40, %v3409_v46  ;;  %v11540_v21 = vld [vmem:[%s16004_s30 + $0x1c0] sm:$0xff]   ;;  %v2573_v25 = vadd.f32 %v2572_v3, %v16132_v32  ;;  %v8904_v40 = vld [vmem:[%s15808_s13 + $0x18] sm:$0xff]  ;;  %v8903_v46 = vld [vmem:[%s15808_s13 + $0x10] sm:$0xff]  ;;  %v13669_v26 = vpop.permute.xlu0 %3861  ;;  %v3038_v36 = vmax.f32 %v2569_v7, 0.0  ;;  %16134 = vst [vmem:[#allocation109_spill] sm:$0xff] %v13672_v27 }
 0x224   : > { %v3039_v0 = vmax.f32 %v2571_v30, 0.0  ;;  %10670 = vmatmul.mubr.msk.bf16.gmra.mrb[220].mxu0 %vm2011_vm0, %v11539_v10  ;;  %16133 = vst [vmem:[#allocation23_spill] sm:$0xff] %v13669_v26  ;;  %v3425_v7 = vld [vmem:[%s16044_s2 + $0x3a0] sm:$0xff] }
 0x225   : > { %v3040_v63 = vmax.f32 %v2573_v25, 0.0  ;;  %5382 = vmatmul.mubr.bf16.gmra.mrb[48].mxu1 %v10202_v50  ;;  %10671 = vmatprep.mubr.msk.bf16.mxu0 %vm2011_vm0, %v11540_v21  ;;  %v16135_v25 = vld [vmem:[#allocation26_spill] sm:$0xff] }
 0x226   : > { %5391 = vmatprep.mubr.bf16.mxu1 %v10211_v54  ;;  %v8906_v54 = vld [vmem:[%s15808_s13 + $0x28] sm:$0xff] }
 0x227   : > { %8924 = vperm.xlu1 %11457, %v8902_v62   ;;  %8919 = vperm.xlu0 %11456, %v8901_v18   ;;  %v3237_v62 = vpack.c.bf16 %v3039_v0, %v3037_v35  ;;  %v2576_v10 = vpop.f32.mrb[116].mxu0  ;;  %v3238_v18 = vpack.c.bf16 %v3040_v63, %v3038_v36  ;;  %v8905_v35 = vld [vmem:[%s15808_s13 + $0x20] sm:$0xff]  ;;  %v10210_v0 = vcombine.low %v13640_v8, %v3417_v12  ;;  %v13693_v27 = vpop.permute.xlu0 %3871  ;;  %v8908_v8 = vld [vmem:[%s15808_s13 + $0x38] sm:$0xff]  ;;  %v8907_v12 = vld [vmem:[%s15808_s13 + $0x30] sm:$0xff] }
 0x228   : > { %v2577_v50 = vadd.f32 %v2576_v10, %v16135_v25  ;;  %v2578_v32 = vpop.f32.mrb[117].mxu0  ;;  %v10219_v10 = vcombine.high %v3421_v52, %v3425_v7  ;;  %16137 = vst [vmem:[#allocation26_spill] sm:$0xff] %v13693_v27 }
 0x229   : > { %v2579_v30 = vadd.f32 %v2578_v32, %v16135_v25  ;;  %v2580_v3 = vpop.f32.mrb[118].mxu0  ;;  %5606 = vmatprep.subr.bf16.mxu1 %v3238_v18 }
 0x22a   : > { %v2582_v63 = vpop.f32.mrb[119].mxu0  ;;  %5607 = vmatpush1.bf16.msra.mxu1 %v3237_v62  ;;  %v3041_v25 = vmax.f32 %v2577_v50, 0.0  ;;  %v13703_v62 = vpop.permute.xlu1 %3876 }
 0x22b   : > { %8934 = vperm.xlu1 %11457, %v8904_v40   ;;  %8929 = vperm.xlu0 %11456, %v8903_v46   ;;  %v11541_v40 = vld [vmem:[%s16004_s30 + $0x1c8] sm:$0xff]   ;;  %v3042_v18 = vmax.f32 %v2579_v30, 0.0 }
 0x22c   : > { %v16136_v46 = vld [vmem:[#allocation25_spill] sm:$0xff]  ;;  %10672 = vmatmul.mubr.msk.bf16.gmra.mrb[224].mxu0 %vm2011_vm0, %v11540_v21  ;;  %v16139_v30 = vld [vmem:[#allocation28_spill] sm:$0xff] }
 0x22d   : > { %v2581_v36 = vadd.f32 %v2580_v3, %v16136_v46  ;;  %v2583_v26 = vadd.f32 %v2582_v63, %v16136_v46  ;;  %16138 = vst [vmem:[#allocation25_spill] sm:$0xff] %v13703_v62  ;;  %5392 = vmatmul.mubr.bf16.gmra.mrb[52].mxu1 %v10210_v0  ;;  %10673 = vmatprep.mubr.msk.bf16.mxu0 %vm2011_vm0, %v11541_v40  ;;  %v3433_v46 = vld [vmem:[%s16044_s2 + $0x3e0] sm:$0xff] }
 0x22e   : > { %5401 = vmatprep.mubr.bf16.mxu1 %v10219_v10  ;;  %v8909_v63 = vld [vmem:[%s15808_s13 + $0x40] sm:$0xff]  ;;  %v13721_v10 = vpop.permute.xlu0 %3881  ;;  %v13729_v27 = vpop.permute.xlu1 %3886 }
 0x22f   : > { %8944 = vperm.xlu1 %11457, %v8906_v54   ;;  %8939 = vperm.xlu0 %11456, %v8905_v35   ;;  %v3043_v32 = vmax.f32 %v2581_v36, 0.0  ;;  %v3044_v3 = vmax.f32 %v2583_v26, 0.0  ;;  %v2586_v50 = vpop.f32.mrb[120].mxu0  ;;  %v13709_v35 = vld [vmem:[%s16044_s2 + $0x3c0] sm:$0xff]  ;;  %v8910_v36 = vld [vmem:[%s15808_s13 + $0x48] sm:$0xff]  ;;  %16140 = vst [vmem:[#allocation28_spill] sm:$0xff] %v13721_v10 }
 0x230   : > { %v2587_v26 = vadd.f32 %v2586_v50, %v16139_v30  ;;  %v2588_v0 = vpop.f32.mrb[121].mxu0  ;;  %v10227_v62 = vcombine.high %v13709_v35, %v3433_v46 }
 0x231   : > { %v3239_v54 = vpack.c.bf16 %v3043_v32, %v3041_v25  ;;  %v3240_v21 = vpack.c.bf16 %v3044_v3, %v3042_v18  ;;  %v2589_v25 = vadd.f32 %v2588_v0, %v16139_v30  ;;  %v2590_v32 = vpop.f32.mrb[122].mxu0  ;;  %v16141_v18 = vld [vmem:[#allocation27_spill] sm:$0xff] }
 0x232   : > { %v2591_v3 = vadd.f32 %v2590_v32, %v16141_v18  ;;  %v2592_v50 = vpop.f32.mrb[123].mxu0  ;;  %16142 = vst [vmem:[#allocation27_spill] sm:$0xff] %v13729_v27  ;;  %v3045_v30 = vmax.f32 %v2587_v26, 0.0 }
 0x233   : > { %8954 = vperm.xlu1 %11457, %v8908_v8   ;;  %8949 = vperm.xlu0 %11456, %v8907_v12   ;;  %v10218_v8 = vcombine.low %v3421_v52, %v3425_v7  ;;  %v11542_v12 = vld [vmem:[%s16004_s30 + $0x1d0] sm:$0xff]   ;;  %v2593_v17 = vadd.f32 %v2592_v50, %v16141_v18  ;;  %v8912_v52 = vld [vmem:[%s15808_s13 + $0x58] sm:$0xff]  ;;  %v13757_v50 = vpop.permute.xlu1 %3896 }
 0x234   : > { %5608 = vmatprep.subr.bf16.mxu1 %v3240_v21  ;;  %v3047_v0 = vmax.f32 %v2591_v3, 0.0  ;;  %10674 = vmatmul.mubr.msk.bf16.gmra.mrb[228].mxu0 %vm2011_vm0, %v11541_v40  ;;  %v8911_v7 = vld [vmem:[%s15808_s13 + $0x50] sm:$0xff]  ;;  %v8913_v3 = vld [vmem:[%s15808_s13 + $0x60] sm:$0xff] }
 0x235   : > { %5609 = vmatpush1.bf16.msra.mxu1 %v3239_v54  ;;  %v3046_v54 = vmax.f32 %v2589_v25, 0.0  ;;  %v3048_v21 = vmax.f32 %v2593_v17, 0.0  ;;  %10675 = vmatprep.mubr.msk.bf16.mxu0 %vm2011_vm0, %v11542_v12  ;;  %v3441_v17 = vld [vmem:[%s16044_s2 + $0x420] sm:$0xff]  ;;  %v16144_v25 = vld [vmem:[#allocation30_spill] sm:$0xff] }
 0x236   : > { %5402 = vmatmul.mubr.bf16.gmra.mrb[56].mxu1 %v10218_v8  ;;  %v3241_v32 = vpack.c.bf16 %v3047_v0, %v3045_v30  ;;  %16145 = vst [vmem:[#allocation30_spill] sm:$0xff] %v13757_v50 }
 0x237   : > { %8964 = vperm.xlu1 %11457, %v8910_v36   ;;  %8959 = vperm.xlu0 %11456, %v8909_v63   ;;  %v13740_v36 = vpop.permute.xlu0 %3891  ;;  %v2596_v26 = vpop.f32.mrb[124].mxu0  ;;  %v3242_v40 = vpack.c.bf16 %v3048_v21, %v3046_v54  ;;  %v13745_v63 = vld [vmem:[%s16044_s2 + $0x400] sm:$0xff]  ;;  %v16146_v54 = vld [vmem:[#allocation29_spill] sm:$0xff] }
 0x238   : > { %5411 = vmatprep.mubr.bf16.mxu1 %v10227_v62  ;;  %16143 = vst [vmem:[#allocation110_spill] sm:$0xff] %v13740_v36  ;;  %v2597_v8 = vadd.f32 %v2596_v26, %v16144_v25  ;;  %v2598_v18 = vpop.f32.mrb[125].mxu0  ;;  %v8914_v62 = vld [vmem:[%s15808_s13 + $0x68] sm:$0xff]  ;;  %v10235_v36 = vcombine.high %v13745_v63, %v3441_v17 }
 0x239   : > { %v2599_v30 = vadd.f32 %v2598_v18, %v16144_v25  ;;  %v2600_v0 = vpop.f32.mrb[126].mxu0  ;;  %5610 = vmatprep.subr.bf16.mxu1 %v3242_v40 }
 0x23a   : > { %v2601_v21 = vadd.f32 %v2600_v0, %v16146_v54  ;;  %v2602_v26 = vpop.f32.mrb[127].mxu0  ;;  %5611 = vmatpush1.bf16.msra.mxu1 %v3241_v32  ;;  %v3049_v50 = vmax.f32 %v2597_v8, 0.0  ;;  %v13777_v8 = vpop.permute.xlu1 %3906  ;;  %v3445_v0 = vld [vmem:[%s16044_s2 + $0x440] sm:$0xff] }
 0x23b   : > { %8974 = vperm.xlu1 %11457, %v8912_v52   ;;  %8969 = vperm.xlu0 %11456, %v8911_v7   ;;  %v10226_v52 = vcombine.low %v13709_v35, %v3433_v46  ;;  %v11543_v7 = vld [vmem:[%s16004_s30 + $0x1d8] sm:$0xff]   ;;  %v2603_v27 = vadd.f32 %v2602_v26, %v16146_v54  ;;  %v8915_v46 = vld [vmem:[%s15808_s13 + $0x70] sm:$0xff]  ;;  %v13774_v40 = vpop.permute.xlu0 %3901  ;;  %v3050_v32 = vmax.f32 %v2599_v30, 0.0  ;;  %16148 = vst [vmem:[#allocation111_spill] sm:$0xff] %v13777_v8  ;;  %v3449_v30 = vld [vmem:[%s16044_s2 + $0x460] sm:$0xff] }
 0x23c   : > { %v3051_v25 = vmax.f32 %v2601_v21, 0.0  ;;  %10676 = vmatmul.mubr.msk.bf16.gmra.mrb[232].mxu0 %vm2011_vm0, %v11542_v12  ;;  %v8916_v35 = vld [vmem:[%s15808_s13 + $0x78] sm:$0xff]  ;;  %16147 = vst [vmem:[#allocation29_spill] sm:$0xff] %v13774_v40 }
 0x23d   : > { %v3052_v18 = vmax.f32 %v2603_v27, 0.0  ;;  %10677 = vmatprep.mubr.msk.bf16.mxu0 %vm2011_vm0, %v11543_v7  ;;  %v16149_v27 = vld [vmem:[#allocation32_spill] sm:$0xff] }
 0x23e   : > { %5412 = vmatmul.mubr.bf16.gmra.mrb[60].mxu1 %v10226_v52 }
 0x23f   : > { %8984 = vperm.xlu1 %11457, %v8914_v62   ;;  %8979 = vperm.xlu0 %11456, %v8913_v3   ;;  %v3243_v62 = vpack.c.bf16 %v3051_v25, %v3049_v50  ;;  %v2606_v12 = vpop.f32.mrb[128].mxu0  ;;  %v3244_v3 = vpack.c.bf16 %v3052_v18, %v3050_v32  ;;  %v9246_v50 = vld [vmem:[%s15810_s15] sm:$0xff]  ;;  %v10234_v25 = vcombine.low %v13745_v63, %v3441_v17  ;;  %v13798_v8 = vpop.permute.xlu0 %3911  ;;  %v9249_v63 = vld [vmem:[%s15810_s15 + $0x18] sm:$0xff]  ;;  %v9248_v17 = vld [vmem:[%s15810_s15 + $0x10] sm:$0xff] }
 0x240   : > { %5421 = vmatprep.mubr.bf16.mxu1 %v10235_v36  ;;  %v2607_v52 = vadd.f32 %v2606_v12, %v16149_v27  ;;  %v2608_v54 = vpop.f32.mrb[129].mxu0  ;;  %v9247_v36 = vld [vmem:[%s15810_s15 + $0x8] sm:$0xff]  ;;  %v10243_v12 = vcombine.high %v3445_v0, %v3449_v30  ;;  %16151 = vst [vmem:[#allocation32_spill] sm:$0xff] %v13798_v8 }
 0x241   : > { %v2609_v21 = vadd.f32 %v2608_v54, %v16149_v27  ;;  %v2610_v26 = vpop.f32.mrb[130].mxu0  ;;  %5612 = vmatprep.subr.bf16.mxu1 %v3244_v3 }
 0x242   : > { %v2612_v18 = vpop.f32.mrb[131].mxu0  ;;  %5613 = vmatpush1.bf16.msra.mxu1 %v3243_v62  ;;  %v3053_v27 = vmax.f32 %v2607_v52, 0.0  ;;  %v13808_v62 = vpop.permute.xlu1 %3916 }
 0x243   : > { %8994 = vperm.xlu1 %11457, %v8916_v35   ;;  %8989 = vperm.xlu0 %11456, %v8915_v46   ;;  %v11544_v35 = vld [vmem:[%s16004_s30 + $0x1e0] sm:$0xff]   ;;  %v3054_v3 = vmax.f32 %v2609_v21, 0.0  ;;  %v16153_v21 = vld [vmem:[#allocation34_spill] sm:$0xff] }
 0x244   : > { %v16150_v46 = vld [vmem:[#allocation31_spill] sm:$0xff]  ;;  %10678 = vmatmul.mubr.msk.bf16.gmra.mrb[236].mxu0 %vm2011_vm0, %v11543_v7 }
 0x245   : > { %v2611_v32 = vadd.f32 %v2610_v26, %v16150_v46  ;;  %v2613_v40 = vadd.f32 %v2612_v18, %v16150_v46  ;;  %16152 = vst [vmem:[#allocation31_spill] sm:$0xff] %v13808_v62  ;;  %10679 = vmatprep.mubr.msk.bf16.mxu0 %vm2011_vm0, %v11544_v35  ;;  %v3457_v46 = vld [vmem:[%s16044_s2 + $0x4a0] sm:$0xff] }
 0x246   : > { %5422 = vmatmul.mubr.bf16.gmra.mrb[64].mxu1 %v10234_v25  ;;  %v9250_v18 = vld [vmem:[%s15810_s15 + $0x20] sm:$0xff]  ;;  %v13833_v8 = vpop.permute.xlu1 %3926 }
 0x247   : > { %9261 = vperm.xlu1 %11457, %v9247_v36   ;;  %9256 = vperm.xlu0 %11456, %v9246_v50   ;;  %v3055_v54 = vmax.f32 %v2611_v32, 0.0  ;;  %v3056_v26 = vmax.f32 %v2613_v40, 0.0  ;;  %v2616_v52 = vpop.f32.mrb[132].mxu0  ;;  %v3453_v50 = vld [vmem:[%s16044_s2 + $0x480] sm:$0xff]  ;;  %v9251_v32 = vld [vmem:[%s15810_s15 + $0x28] sm:$0xff] }
 0x248   : > { %5431 = vmatprep.mubr.bf16.mxu1 %v10243_v12  ;;  %v2617_v40 = vadd.f32 %v2616_v52, %v16153_v21  ;;  %v2618_v25 = vpop.f32.mrb[133].mxu0  ;;  %v13826_v12 = vpop.permute.xlu0 %3921  ;;  %v10251_v62 = vcombine.high %v3453_v50, %v3457_v46 }
 0x249   : > { %v13811_v36 = vpack.c.bf16 %v3055_v54, %v3053_v27  ;;  %v3246_v7 = vpack.c.bf16 %v3056_v26, %v3054_v3  ;;  %16154 = vst [vmem:[#allocation34_spill] sm:$0xff] %v13826_v12  ;;  %v2619_v27 = vadd.f32 %v2618_v25, %v16153_v21  ;;  %v2620_v54 = vpop.f32.mrb[134].mxu0  ;;  %v16155_v3 = vld [vmem:[#allocation33_spill] sm:$0xff] }
 0x24a   : > { %v2621_v26 = vadd.f32 %v2620_v54, %v16155_v3  ;;  %v2622_v52 = vpop.f32.mrb[135].mxu0  ;;  %16156 = vst [vmem:[#allocation33_spill] sm:$0xff] %v13833_v8  ;;  %v3057_v12 = vmax.f32 %v2617_v40, 0.0 }
 0x24b   : > { %9271 = vperm.xlu1 %11457, %v9249_v63   ;;  %9266 = vperm.xlu0 %11456, %v9248_v17   ;;  %v10242_v63 = vcombine.low %v3445_v0, %v3449_v30  ;;  %v11545_v17 = vld [vmem:[%s16004_s30 + $0x1e8] sm:$0xff]   ;;  %v2623_v10 = vadd.f32 %v2622_v52, %v16155_v3  ;;  %v9253_v0 = vld [vmem:[%s15810_s15 + $0x38] sm:$0xff]  ;;  %v9252_v30 = vld [vmem:[%s15810_s15 + $0x30] sm:$0xff]  ;;  %v10250_v52 = vcombine.low %v3453_v50, %v3457_v46 }
 0x24c   : > { %5935 = vmatprep.subr.bf16.mxu1 %v3246_v7  ;;  %v3059_v9 = vmax.f32 %v2621_v26, 0.0  ;;  %10680 = vmatmul.mubr.msk.bf16.gmra.mrb[240].mxu0 %vm2011_vm0, %v11544_v35  ;;  %v3058_v7 = vmax.f32 %v2619_v27, 0.0  ;;  %v13846_v40 = vpop.permute.xlu0 %3931  ;;  %v3461_v35 = vld [vmem:[%s16044_s2 + $0x4c0] sm:$0xff]  ;;  %v7902_v50 = vld [vmem:[%s15804_s9 + $0x18] sm:$0xff]  ;;  %v7901_v46 = vld [vmem:[%s15804_s9 + $0x10] sm:$0xff] }
 0x24d   : > { %v3060_v21 = vmax.f32 %v2623_v10, 0.0  ;;  %10681 = vmatprep.mubr.msk.bf16.mxu0 %vm2011_vm0, %v11545_v17  ;;  %16157 = vst [vmem:[#allocation112_spill] sm:$0xff] %v13846_v40  ;;  %v16158_v27 = vld [vmem:[#allocation36_spill] sm:$0xff] }
 0x24e   : > { %5432 = vmatmul.mubr.bf16.gmra.mrb[68].mxu1 %v10242_v63  ;;  %v13844_v25 = vpack.c.bf16 %v3059_v9, %v3057_v12  ;;  %v7899_v12 = vld [vmem:[%s15804_s9] sm:$0xff]  ;;  %v13863_v63 = vpop.permute.xlu1 %3936 }
 0x24f   : > { %9281 = vperm.xlu1 %11457, %v9251_v32   ;;  %9276 = vperm.xlu0 %11456, %v9250_v18   ;;  %v2626_v32 = vpop.f32.mrb[136].mxu0  ;;  %v3465_v18 = vld [vmem:[%s16044_s2 + $0x4e0] sm:$0xff]  ;;  %v13854_v10 = vpack.c.bf16 %v3060_v21, %v3058_v7  ;;  %16159 = vst [vmem:[#allocation36_spill] sm:$0xff] %v13863_v63 }
 0x250   : > { %5441 = vmatprep.mubr.bf16.mxu1 %v10251_v62  ;;  %v2627_v54 = vadd.f32 %v2626_v32, %v16158_v27  ;;  %v2628_v9 = vpop.f32.mrb[137].mxu0  ;;  %v7900_v62 = vld [vmem:[%s15804_s9 + $0x8] sm:$0xff]  ;;  %v10259_v32 = vcombine.high %v3461_v35, %v3465_v18 }
 0x251   : > { %v2629_v3 = vadd.f32 %v2628_v9, %v16158_v27  ;;  %v2630_v26 = vpop.f32.mrb[138].mxu0  ;;  %v13878_v27 = vpop.permute.xlu0 %3941 }
 0x252   : > { %v2632_v21 = vpop.f32.mrb[139].mxu0  ;;  %v3061_v8 = vmax.f32 %v2627_v54, 0.0  ;;  %v13883_v54 = vpop.permute.xlu1 %3946 }
 0x253   : > { %9291 = vperm.xlu1 %11457, %v9253_v0   ;;  %9286 = vperm.xlu0 %11456, %v9252_v30   ;;  %v11546_v0 = vld [vmem:[%s16004_s30 + $0x1f0] sm:$0xff]   ;;  %v16160_v30 = vld [vmem:[#allocation35_spill] sm:$0xff]  ;;  %v3062_v9 = vmax.f32 %v2629_v3, 0.0  ;;  %16162 = vst [vmem:[#allocation113_spill] sm:$0xff] %v13883_v54 }
 0x254   : > { %v2631_v7 = vadd.f32 %v2630_v26, %v16160_v30  ;;  %v2633_v40 = vadd.f32 %v2632_v21, %v16160_v30  ;;  %10682 = vmatmul.mubr.msk.bf16.gmra.mrb[244].mxu0 %vm2011_vm0, %v11545_v17  ;;  %16161 = vst [vmem:[#allocation35_spill] sm:$0xff] %v13878_v27  ;;  %v3473_v3 = vld [vmem:[%s16044_s2 + $0x520] sm:$0xff] }
 0x255   : > { %10683 = vmatprep.mubr.msk.bf16.mxu0 %vm2011_vm0, %v11546_v0  ;;  %v13905_v27 = vpop.permute.xlu0 %6931 }
 0x256   : > { %v3063_v2 = vmax.f32 %v2631_v7, 0.0  ;;  %v3064_v26 = vmax.f32 %v2633_v40, 0.0  ;;  %5442 = vmatmul.mubr.bf16.gmra.mrb[72].mxu1 %v10250_v52  ;;  %v16163_v52 = vld [vmem:[#allocation38_spill] sm:$0xff]  ;;  %v7903_v7 = vld [vmem:[%s15804_s9 + $0x20] sm:$0xff] }
 0x257   : > { %7914 = vperm.xlu1 %11457, %v7900_v62   ;;  %7909 = vperm.xlu0 %11456, %v7899_v12   ;;  %v2636_v17 = vpop.f32.mrb[140].mxu0  ;;  %v3469_v12 = vld [vmem:[%s16044_s2 + $0x500] sm:$0xff]  ;;  %16165 = vst [vmem:[#allocation38_spill] sm:$0xff] %v13905_v27 }
 0x258   : > { %v13881_v62 = vpack.c.bf16 %v3063_v2, %v3061_v8  ;;  %5451 = vmatprep.mubr.bf16.mxu1 %v10259_v32  ;;  %v13891_v40 = vpack.c.bf16 %v3064_v26, %v3062_v9  ;;  %v2637_v30 = vadd.f32 %v2636_v17, %v16163_v52  ;;  %v2638_v2 = vpop.f32.mrb[141].mxu0  ;;  %v7904_v8 = vld [vmem:[%s15804_s9 + $0x28] sm:$0xff]  ;;  %v10267_v54 = vcombine.high %v3469_v12, %v3473_v3 }
 0x259   : > { %v2639_v21 = vadd.f32 %v2638_v2, %v16163_v52  ;;  %v2640_v32 = vpop.f32.mrb[142].mxu0  ;;  %v16164_v9 = vld [vmem:[#allocation37_spill] sm:$0xff]  ;;  %v13915_v52 = vpop.permute.xlu1 %6936 }
 0x25a   : > { %v2641_v26 = vadd.f32 %v2640_v32, %v16164_v9  ;;  %v2642_v17 = vpop.f32.mrb[143].mxu0  ;;  %v3065_v48 = vmax.f32 %v2637_v30, 0.0  ;;  %16166 = vst [vmem:[#allocation37_spill] sm:$0xff] %v13915_v52 }
 0x25b   : > { %7924 = vperm.xlu1 %11457, %v7902_v50   ;;  %7919 = vperm.xlu0 %11456, %v7901_v46   ;;  %v10258_v50 = vcombine.low %v3461_v35, %v3465_v18  ;;  %v11547_v46 = vld [vmem:[%s16004_s30 + $0x1f8] sm:$0xff]   ;;  %v2643_v63 = vadd.f32 %v2642_v17, %v16164_v9  ;;  %v7905_v18 = vld [vmem:[%s15804_s9 + $0x30] sm:$0xff]  ;;  %v3066_v2 = vmax.f32 %v2639_v21, 0.0 }
 0x25c   : > { %v3067_v58 = vmax.f32 %v2641_v26, 0.0  ;;  %10684 = vmatmul.mubr.msk.bf16.gmra.mrb[248].mxu0 %vm2011_vm0, %v11546_v0  ;;  %v7906_v35 = vld [vmem:[%s15804_s9 + $0x38] sm:$0xff]  ;;  %v13923_v0 = vld [vmem:[%s16044_s2 + $0x540] sm:$0xff]  ;;  %v13940_v26 = vpop.permute.xlu0 %6941 }
 0x25d   : > { %v3068_v32 = vmax.f32 %v2643_v63, 0.0  ;;  %10685 = vmatprep.mubr.msk.bf16.mxu0 %vm2011_vm0, %v11547_v46  ;;  %v16167_v63 = vld [vmem:[#allocation40_spill] sm:$0xff]  ;;  %v13945_v27 = vpop.permute.xlu1 %6946 }
 0x25e   : > { %5452 = vmatmul.mubr.bf16.gmra.mrb[76].mxu1 %v10258_v50  ;;  %16168 = vst [vmem:[#allocation40_spill] sm:$0xff] %v13940_v26 }
 0x25f   : > { %7934 = vperm.xlu1 %11457, %v7904_v8   ;;  %7929 = vperm.xlu0 %11456, %v7903_v7   ;;  %v13918_v8 = vpack.c.bf16 %v3067_v58, %v3065_v48  ;;  %v2646_v30 = vpop.f32.mrb[144].mxu0  ;;  %v3481_v7 = vld [vmem:[%s16044_s2 + $0x560] sm:$0xff]  ;;  %v13928_v21 = vpack.c.bf16 %v3068_v32, %v3066_v2  ;;  %v9643_v58 = vld [vmem:[%s15813_s18 + $0x8] sm:$0xff] }
 0x260   : > { %5461 = vmatprep.mubr.bf16.mxu1 %v10267_v54  ;;  %v2647_v50 = vadd.f32 %v2646_v30, %v16167_v63  ;;  %v2648_v9 = vpop.f32.mrb[145].mxu0  ;;  %v9642_v48 = vld [vmem:[%s15813_s18] sm:$0xff]  ;;  %v10275_v52 = vcombine.high %v13923_v0, %v3481_v7 }
 0x261   : > { %v10525_v54 = vld [vmem:[%s15814_s19] sm:$0xff]   ;;  %v2649_v17 = vadd.f32 %v2648_v9, %v16167_v63  ;;  %v10540_v63 = vld [vmem:[%s15814_s19 + $0x8] sm:$0xff]  }
 0x262   : > { %v16169_v2 = vld [vmem:[#allocation39_spill] sm:$0xff]  ;;  %v10526_v4 = vunpack.c.l.bf16 %v10525_v54  ;;  %v10527_v34 = vunpack.c.h.bf16 %v10525_v54  ;;  %v3069_v57 = vmax.f32 %v2647_v50, 0.0  ;;  %v13960_v50 = vpop.permute.xlu0 %6951 }
 0x263   : > { %7944 = vperm.xlu1 %11457, %v7906_v35   ;;  %7939 = vperm.xlu0 %11456, %v7905_v18   ;;  %v2650_v35 = vpop.f32.mrb[146].mxu0  ;;  %v10266_v18 = vcombine.low %v3469_v12, %v3473_v3  ;;  %16170 = vst [vmem:[#allocation39_spill] sm:$0xff] %v13945_v27  ;;  %v9645_v12 = vld [vmem:[%s15813_s18 + $0x18] sm:$0xff]  ;;  %v9644_v3 = vld [vmem:[%s15813_s18 + $0x10] sm:$0xff]  ;;  %v3070_v9 = vmax.f32 %v2649_v17, 0.0  ;;  %16171 = vst [vmem:[#allocation114_spill] sm:$0xff] %v13960_v50 }
 0x264   : > { %v2651_v32 = vadd.f32 %v2650_v35, %v16169_v2  ;;  %v2652_v30 = vpop.f32.mrb[147].mxu0  ;;  %10686 = vmatmul.mubr.msk.bf16.gmra.mrb[252].mxu0 %vm2011_vm0, %v11547_v46  ;;  %v11458_v54 = vpack.i.bf16 %v10527_v34, %v10526_v4  ;;  %v10530_v35 = vunpack.c.l.bf16 %v10540_v63  ;;  %v13974_v34 = vpop.permute.xlu1 %6956 }
 0x265   : > { %v2653_v41 = vadd.f32 %v2652_v30, %v16169_v2  ;;  %v10531_v2 = vunpack.c.h.bf16 %v10540_v63 }
 0x266   : > { %v3071_v55 = vmax.f32 %v2651_v32, 0.0  ;;  %5462 = vmatmul.mubr.bf16.gmra.mrb[80].mxu1 %v10266_v18  ;;  %v3485_v32 = vld [vmem:[%s16044_s2 + $0x580] sm:$0xff] }
 0x267   : > { %9657 = vperm.xlu1 %11457, %v9643_v58   ;;  %9652 = vperm.xlu0 %11456, %v9642_v48   ;;  %v3072_v58 = vmax.f32 %v2653_v41, 0.0  ;;  %v2656_v46 = vpop.f32.mrb[148].mxu0  ;;  %v3489_v41 = vld [vmem:[%s16044_s2 + $0x5a0] sm:$0xff] }
 0x268   : > { %v13958_v48 = vpack.c.bf16 %v3071_v55, %v3069_v57  ;;  %5471 = vmatprep.mubr.bf16.mxu1 %v10275_v52  ;;  %v16172_v55 = vld [vmem:[#allocation42_spill] sm:$0xff]  ;;  %v2658_v52 = vpop.f32.mrb[149].mxu0  ;;  %v9646_v18 = vld [vmem:[%s15813_s18 + $0x20] sm:$0xff]  ;;  %v10283_v27 = vcombine.high %v3485_v32, %v3489_v41 }
 0x269   : > { %v13968_v17 = vpack.c.bf16 %v3072_v58, %v3070_v9  ;;  %v2657_v57 = vadd.f32 %v2656_v46, %v16172_v55  ;;  %16173 = vst [vmem:[#allocation42_spill] sm:$0xff] %v13974_v34  ;;  %v2659_v4 = vadd.f32 %v2658_v52, %v16172_v55  ;;  %v2660_v30 = vpop.f32.mrb[150].mxu0  ;;  %v11463_v58 = vpack.i.bf16 %v10531_v2, %v10530_v35  ;;  %v9647_v34 = vld [vmem:[%s15813_s18 + $0x28] sm:$0xff]  ;;  %v10541_v55 = vld [vmem:[%s15814_s19 + $0x10] sm:$0xff]   ;;  %v3493_v2 = vld [vmem:[%s16044_s2 + $0x5c0] sm:$0xff] }
 0x26a   : > { %v2662_v50 = vpop.f32.mrb[151].mxu0  ;;  %v10534_v35 = vunpack.c.l.bf16 %v10541_v55 }
 0x26b   : > { %9667 = vperm.xlu1 %11457, %v9645_v12   ;;  %9662 = vperm.xlu0 %11456, %v9644_v3   ;;  %v10274_v12 = vcombine.low %v13923_v0, %v3481_v7  ;;  %v16174_v3 = vld [vmem:[#allocation41_spill] sm:$0xff]  ;;  %v3073_v46 = vmax.f32 %v2657_v57, 0.0  ;;  %v13986_v0 = vpop.permute.xlu0 %6961  ;;  %v3074_v7 = vmax.f32 %v2659_v4, 0.0  ;;  %v3497_v57 = vld [vmem:[%s16044_s2 + $0x5e0] sm:$0xff] }
 0x26c   : > { %v2661_v63 = vadd.f32 %v2660_v30, %v16174_v3  ;;  %v2663_v9 = vadd.f32 %v2662_v50, %v16174_v3  ;;  %16175 = vst [vmem:[#allocation41_spill] sm:$0xff] %v13986_v0  ;;  %v13990_v50 = vpop.permute.xlu1 %6966  ;;  %v16177_v4 = vld [vmem:[#allocation44_spill] sm:$0xff] }
 0x26d   : > { %16176 = vst [vmem:[#allocation115_spill] sm:$0xff] %v13990_v50  ;;  %v10291_v50 = vcombine.high %v3493_v2, %v3497_v57 }
 0x26e   : > { %v3075_v26 = vmax.f32 %v2661_v63, 0.0  ;;  %v3076_v52 = vmax.f32 %v2663_v9, 0.0  ;;  %5472 = vmatmul.mubr.bf16.gmra.mrb[84].mxu1 %v10274_v12  ;;  %v10282_v63 = vcombine.low %v3485_v32, %v3489_v41  ;;  %v16178_v9 = vld [vmem:[#allocation43_spill] sm:$0xff] }
 0x26f   : > { %9672 = vperm.xlu1 %11457, %v9646_v18   ;;  %11459 = vperm.xlu0 %11456, %v11458_v54   ;;  %v2666_v54 = vpop.f32.mrb[152].mxu0  ;;  %v14006_v0 = vpop.permute.xlu0 %6971  ;;  %v10542_v32 = vld [vmem:[%s15814_s19 + $0x18] sm:$0xff]  }
 0x270   : > { %v13988_v30 = vpack.c.bf16 %v3075_v26, %v3073_v46  ;;  %5481 = vmatprep.mubr.bf16.mxu1 %v10283_v27  ;;  %v13998_v18 = vpack.c.bf16 %v3076_v52, %v3074_v7  ;;  %v2667_v26 = vadd.f32 %v2666_v54, %v16177_v4  ;;  %v2668_v12 = vpop.f32.mrb[153].mxu0  ;;  %v9648_v27 = vld [vmem:[%s15813_s18 + $0x30] sm:$0xff]  ;;  %16179 = vst [vmem:[#allocation44_spill] sm:$0xff] %v14006_v0  ;;  %v10535_v52 = vunpack.c.h.bf16 %v10541_v55  ;;  %v14015_v41 = vpop.permute.xlu1 %6976 }
 0x271   : > { %v2670_v3 = vpop.f32.mrb[154].mxu0  ;;  %16180 = vst [vmem:[#allocation43_spill] sm:$0xff] %v14015_v41  ;;  %v10539_v55 = vunpack.c.h.bf16 %v10542_v32 }
 0x272   : > { %v2672_v46 = vpop.f32.mrb[155].mxu0  ;;  %v3077_v54 = vmax.f32 %v2667_v26, 0.0  ;;  %v10538_v26 = vunpack.c.l.bf16 %v10542_v32 }
 0x273   : > { %9677 = vperm.xlu1 %11457, %v9647_v34   ;;  %11464 = vperm.xlu0 %11456, %v11463_v58   ;;  %v2669_v34 = vadd.f32 %v2668_v12, %v16177_v4  ;;  %v2671_v58 = vadd.f32 %v2670_v3, %v16178_v9  ;;  %v2673_v7 = vadd.f32 %v2672_v46, %v16178_v9  ;;  %v3505_v9 = vld [vmem:[%s16044_s2 + $0x620] sm:$0xff]  ;;  %v14028_v46 = vpop.permute.xlu0 %6981 }
 0x274   : > { %v14032_v0 = vpop.permute.xlu1 %6986 }
 0x275   : > { %v3079_v61 = vmax.f32 %v2671_v58, 0.0  ;;  %v3078_v4 = vmax.f32 %v2669_v34, 0.0  ;;  %v3080_v12 = vmax.f32 %v2673_v7, 0.0  ;;  %v16181_v34 = vld [vmem:[#allocation46_spill] sm:$0xff]  ;;  %v10290_v7 = vcombine.low %v3493_v2, %v3497_v57 }
 0x276   : > { %5482 = vmatmul.mubr.bf16.gmra.mrb[88].mxu1 %v10282_v63  ;;  %16182 = vst [vmem:[#allocation46_spill] sm:$0xff] %v14028_v46 }
 0x277   : > { %9760 = vperm.xlu1 %11457, %v10534_v35   ;;  %9682 = vperm.xlu0 %11456, %v9648_v27   ;;  %v14017_v3 = vpack.c.bf16 %v3079_v61, %v3077_v54  ;;  %v2676_v35 = vpop.f32.mrb[156].mxu0  ;;  %v3501_v27 = vld [vmem:[%s16044_s2 + $0x600] sm:$0xff]  ;;  %v14025_v58 = vpack.c.bf16 %v3080_v12, %v3078_v4  ;;  %v14037_v2 = vpop.permute.xlu0 %6991 }
 0x278   : > { %5491 = vmatprep.mubr.bf16.mxu1 %v10291_v50  ;;  %v2677_v63 = vadd.f32 %v2676_v35, %v16181_v34  ;;  %v2678_v61 = vpop.f32.mrb[157].mxu0  ;;  %v10299_v41 = vcombine.high %v3501_v27, %v3505_v9  ;;  %v9820_v35 = vld [vmem:[#allocation2] sm:$0x1]  ;;  %16185 = vst [vmem:[#allocation116_spill] sm:$0xff] %v14037_v2 }
 0x279   : > { %v2679_v50 = vadd.f32 %v2678_v61, %v16181_v34  ;;  %v3509_v34 = vld [vmem:[%s16044_s2 + $0x640] sm:$0xff] }
 0x27a   : > { %v3081_v4 = vmax.f32 %v2677_v63, 0.0  ;;  %v16186_v63 = vld [vmem:[#allocation48_spill] sm:$0xff] }
 0x27b   : > { %9765 = vperm.xlu1 %11457, %v10535_v52   ;;  %9687 = vperm.xlu0 %11456, %v9649_v49   ;;  %v2680_v49 = vpop.f32.mrb[158].mxu0  ;;  %v16183_v52 = vld [vmem:[#allocation45_spill] sm:$0xff]  ;;  %v3082_v33 = vmax.f32 %v2679_v50, 0.0 }
 0x27c   : > { %v2681_v54 = vadd.f32 %v2680_v49, %v16183_v52  ;;  %v2682_v32 = vpop.f32.mrb[159].mxu0  ;;  %16184 = vst [vmem:[#allocation45_spill] sm:$0xff] %v14032_v0  ;;  %v10298_v49 = vcombine.low %v3501_v27, %v3505_v9  ;;  %v3521_v27 = vld [vmem:[%s16044_s2 + $0x6a0] sm:$0xff] }
 0x27d   : > { %v2683_v16 = vadd.f32 %v2682_v32, %v16183_v52 }
 0x27e   : > { %v3083_v12 = vmax.f32 %v2681_v54, 0.0  ;;  %5492 = vmatmul.mubr.bf16.gmra.mrb[92].mxu1 %v10290_v7  ;;  %v16187_v7 = vld [vmem:[#allocation47_spill] sm:$0xff] }
 0x27f   : > { %9775 = vperm.xlu1 %11457, %v10539_v55   ;;  %9770 = vperm.xlu0 %11456, %v10538_v26   ;;  %v3084_v38 = vmax.f32 %v2683_v16, 0.0  ;;  %v2686_v57 = vpop.f32.mrb[160].mxu0  ;;  %v3513_v55 = vld [vmem:[%s16044_s2 + $0x660] sm:$0xff] }
 0x280   : > { %v14035_v46 = vpack.c.bf16 %v3083_v12, %v3081_v4  ;;  %5501 = vmatprep.mubr.bf16.mxu1 %v10299_v41  ;;  %v2687_v16 = vadd.f32 %v2686_v57, %v16186_v63  ;;  %v2688_v61 = vpop.f32.mrb[161].mxu0  ;;  %v10307_v32 = vcombine.high %v3509_v34, %v3513_v55  ;;  %v3517_v57 = vld [vmem:[%s16044_s2 + $0x680] sm:$0xff] }
 0x281   : > { %v14045_v26 = vpack.c.bf16 %v3084_v38, %v3082_v33  ;;  %v2689_v50 = vadd.f32 %v2688_v61, %v16186_v63  ;;  %v2690_v41 = vpop.f32.mrb[162].mxu0 }
 0x282   : > { %v2691_v52 = vadd.f32 %v2690_v41, %v16187_v7  ;;  %v2692_v54 = vpop.f32.mrb[163].mxu0  ;;  %v3085_v12 = vmax.f32 %v2687_v16, 0.0  ;;  %v10306_v41 = vcombine.low %v3509_v34, %v3513_v55  ;;  %v3529_v34 = vld [vmem:[%s16044_s2 + $0x6e0] sm:$0xff] }
 0x283   : > { %9823 = vperm.xlu0 %11456, %v9820_v35   ;;  %v2693_v4 = vadd.f32 %v2692_v54, %v16187_v7  ;;  %v3086_v2 = vmax.f32 %v2689_v50, 0.0 }
 0x284   : > { %v3087_v35 = vmax.f32 %v2691_v52, 0.0  ;;  %v10315_v52 = vcombine.high %v3517_v57, %v3521_v27 }
 0x285   : > { %v3088_v0 = vmax.f32 %v2693_v4, 0.0 }
 0x286   : > { %5502 = vmatmul.mubr.bf16.gmra.mrb[96].mxu1 %v10298_v49  ;;  %v14051_v33 = vpack.c.bf16 %v3087_v35, %v3085_v12 }
 0x287   : > { %5511 = vmatprep.mubr.bf16.mxu1 %v10307_v32  ;;  %v2696_v38 = vpop.f32.mrb[164].mxu0  ;;  %v14059_v9 = vpack.c.bf16 %v3088_v0, %v3086_v2 }
 0x288   : > { %v2697_v63 = vadd.f32 %v2696_v38, %v12788_v13  ;;  %v2698_v16 = vpop.f32.mrb[165].mxu0 }
 0x289   : > { %v2699_v61 = vadd.f32 %v2698_v16, %v12788_v13  ;;  %v2700_v50 = vpop.f32.mrb[166].mxu0  ;;  %v3525_v13 = vld [vmem:[%s16044_s2 + $0x6c0] sm:$0xff] }
 0x28a   : > { %v2701_v49 = vadd.f32 %v2700_v50, %v12786_v43  ;;  %v2702_v7 = vpop.f32.mrb[167].mxu0  ;;  %v3089_v32 = vmax.f32 %v2697_v63, 0.0  ;;  %v16188_v50 = vld [vmem:[#allocation49_spill] sm:$0xff] }
 0x28b   : > { %v2703_v54 = vadd.f32 %v2702_v7, %v12786_v43  ;;  %v3090_v12 = vmax.f32 %v2699_v61, 0.0  ;;  %v10314_v61 = vcombine.low %v3517_v57, %v3521_v27  ;;  %v10323_v7 = vcombine.high %v3525_v13, %v3529_v34  ;;  %v3537_v57 = vld [vmem:[%s16044_s2 + $0x720] sm:$0xff] }
 0x28c   : > { %v3091_v4 = vmax.f32 %v2701_v49, 0.0 }
 0x28d   : > { %v3092_v35 = vmax.f32 %v2703_v54, 0.0 }
 0x28e   : > { %5512 = vmatmul.mubr.bf16.gmra.mrb[100].mxu1 %v10306_v41  ;;  %v14065_v0 = vpack.c.bf16 %v3091_v4, %v3089_v32 }
 0x28f   : > { %5521 = vmatprep.mubr.bf16.mxu1 %v10315_v52  ;;  %v2706_v2 = vpop.f32.mrb[168].mxu0  ;;  %v14073_v55 = vpack.c.bf16 %v3092_v35, %v3090_v12 }
 0x290   : > { %v2707_v43 = vadd.f32 %v2706_v2, %v12805_v31  ;;  %v2708_v38 = vpop.f32.mrb[169].mxu0 }
 0x291   : > { %v2709_v63 = vadd.f32 %v2708_v38, %v12805_v31  ;;  %v2710_v16 = vpop.f32.mrb[170].mxu0  ;;  %v3533_v31 = vld [vmem:[%s16044_s2 + $0x700] sm:$0xff] }
 0x292   : > { %v2711_v41 = vadd.f32 %v2710_v16, %v16188_v50  ;;  %v2712_v49 = vpop.f32.mrb[171].mxu0  ;;  %v3093_v54 = vmax.f32 %v2707_v43, 0.0  ;;  %v10322_v16 = vcombine.low %v3525_v13, %v3529_v34  ;;  %v3545_v13 = vld [vmem:[%s16044_s2 + $0x760] sm:$0xff] }
 0x293   : > { %v2713_v52 = vadd.f32 %v2712_v49, %v16188_v50  ;;  %v3094_v4 = vmax.f32 %v2709_v63, 0.0 }
 0x294   : > { %v3095_v32 = vmax.f32 %v2711_v41, 0.0  ;;  %v10331_v41 = vcombine.high %v3533_v31, %v3537_v57 }
 0x295   : > { %v3096_v29 = vmax.f32 %v2713_v52, 0.0 }
 0x296   : > { %5522 = vmatmul.mubr.bf16.gmra.mrb[104].mxu1 %v10314_v61  ;;  %v14079_v12 = vpack.c.bf16 %v3095_v32, %v3093_v54 }
 0x297   : > { %5531 = vmatprep.mubr.bf16.mxu1 %v10323_v7  ;;  %v2716_v35 = vpop.f32.mrb[172].mxu0  ;;  %v14087_v27 = vpack.c.bf16 %v3096_v29, %v3094_v4 }
 0x298   : > { %v2717_v2 = vadd.f32 %v2716_v35, %v12817_v28  ;;  %v2718_v43 = vpop.f32.mrb[173].mxu0 }
 0x299   : > { %v2719_v38 = vadd.f32 %v2718_v43, %v12817_v28  ;;  %v2720_v63 = vpop.f32.mrb[174].mxu0  ;;  %v3541_v28 = vld [vmem:[%s16044_s2 + $0x740] sm:$0xff] }
 0x29a   : > { %v2721_v61 = vadd.f32 %v2720_v63, %v12815_v42  ;;  %v2722_v50 = vpop.f32.mrb[175].mxu0  ;;  %v3097_v7 = vmax.f32 %v2717_v2, 0.0  ;;  %v10330_v63 = vcombine.low %v3533_v31, %v3537_v57  ;;  %v3553_v31 = vld [vmem:[%s16044_s2 + $0x7a0] sm:$0xff] }
 0x29b   : > { %v2723_v49 = vadd.f32 %v2722_v50, %v12815_v42  ;;  %v3098_v54 = vmax.f32 %v2719_v38, 0.0  ;;  %v16189_v42 = vld [vmem:[#allocation51_spill] sm:$0xff] }
 0x29c   : > { %v3099_v52 = vmax.f32 %v2721_v61, 0.0 }
 0x29d   : > { %v3100_v32 = vmax.f32 %v2723_v49, 0.0 }
 0x29e   : > { %5532 = vmatmul.mubr.bf16.gmra.mrb[108].mxu1 %v10322_v16  ;;  %v14093_v29 = vpack.c.bf16 %v3099_v52, %v3097_v7  ;;  %v16190_v16 = vld [vmem:[#allocation50_spill] sm:$0xff] }
 0x29f   : > { %5541 = vmatprep.mubr.bf16.mxu1 %v10331_v41  ;;  %v2726_v4 = vpop.f32.mrb[176].mxu0  ;;  %v14101_v34 = vpack.c.bf16 %v3100_v32, %v3098_v54  ;;  %v10339_v41 = vcombine.high %v3541_v28, %v3545_v13 }
 0x2a0   : > { %v2727_v35 = vadd.f32 %v2726_v4, %v16189_v42  ;;  %v2728_v2 = vpop.f32.mrb[177].mxu0  ;;  %v3549_v4 = vld [vmem:[%s16044_s2 + $0x780] sm:$0xff] }
 0x2a1   : > { %v2729_v43 = vadd.f32 %v2728_v2, %v16189_v42  ;;  %v2730_v38 = vpop.f32.mrb[178].mxu0 }
 0x2a2   : > { %v2731_v61 = vadd.f32 %v2730_v38, %v16190_v16  ;;  %v2732_v50 = vpop.f32.mrb[179].mxu0  ;;  %v3101_v7 = vmax.f32 %v2727_v35, 0.0  ;;  %v10338_v38 = vcombine.low %v3541_v28, %v3545_v13  ;;  %v3561_v28 = vld [vmem:[%s16044_s2 + $0x7e0] sm:$0xff] }
 0x2a3   : > { %v2733_v49 = vadd.f32 %v2732_v50, %v16190_v16  ;;  %v3102_v14 = vmax.f32 %v2729_v43, 0.0 }
 0x2a4   : > { %v3103_v52 = vmax.f32 %v2731_v61, 0.0  ;;  %v10347_v61 = vcombine.high %v3549_v4, %v3553_v31 }
 0x2a5   : > { %v3104_v24 = vmax.f32 %v2733_v49, 0.0 }
 0x2a6   : > { %5542 = vmatmul.mubr.bf16.gmra.mrb[112].mxu1 %v10330_v63  ;;  %v14107_v54 = vpack.c.bf16 %v3103_v52, %v3101_v7 }
 0x2a7   : > { %5551 = vmatprep.mubr.bf16.mxu1 %v10339_v41  ;;  %v2736_v32 = vpop.f32.mrb[180].mxu0  ;;  %v14115_v57 = vpack.c.bf16 %v3104_v24, %v3102_v14 }
 0x2a8   : > { %v2737_v42 = vadd.f32 %v2736_v32, %v12846_v53  ;;  %v2738_v35 = vpop.f32.mrb[181].mxu0 }
 0x2a9   : > { %v2739_v2 = vadd.f32 %v2738_v35, %v12846_v53  ;;  %v2740_v43 = vpop.f32.mrb[182].mxu0  ;;  %v3557_v53 = vld [vmem:[%s16044_s2 + $0x7c0] sm:$0xff] }
 0x2aa   : > { %v2741_v63 = vadd.f32 %v2740_v43, %v12844_v47  ;;  %v2742_v16 = vpop.f32.mrb[183].mxu0  ;;  %v3105_v41 = vmax.f32 %v2737_v42, 0.0  ;;  %v10346_v43 = vcombine.low %v3549_v4, %v3553_v31  ;;  %v3314_v4 = vld [vmem:[%s16044_s2 + $0x28] sm:$0xff] }
 0x2ab   : > { %v2743_v50 = vadd.f32 %v2742_v16, %v12844_v47  ;;  %v3106_v7 = vmax.f32 %v2739_v2, 0.0  ;;  %v16191_v47 = vld [vmem:[#allocation53_spill] sm:$0xff] }
 0x2ac   : > { %v3107_v49 = vmax.f32 %v2741_v63, 0.0 }
 0x2ad   : > { %v3108_v52 = vmax.f32 %v2743_v50, 0.0 }
 0x2ae   : > { %5552 = vmatmul.mubr.bf16.gmra.mrb[116].mxu1 %v10338_v38  ;;  %v14121_v24 = vpack.c.bf16 %v3107_v49, %v3105_v41  ;;  %v16192_v38 = vld [vmem:[#allocation52_spill] sm:$0xff] }
 0x2af   : > { %5561 = vmatprep.mubr.bf16.mxu1 %v10347_v61  ;;  %v2746_v14 = vpop.f32.mrb[184].mxu0  ;;  %v14129_v13 = vpack.c.bf16 %v3108_v52, %v3106_v7  ;;  %v10355_v61 = vcombine.high %v3557_v53, %v3561_v28 }
 0x2b0   : > { %v2747_v32 = vadd.f32 %v2746_v14, %v16191_v47  ;;  %v2748_v42 = vpop.f32.mrb[185].mxu0  ;;  %v3310_v14 = vld [vmem:[%s16044_s2 + $0x8] sm:$0xff] }
 0x2b1   : > { %v2749_v35 = vadd.f32 %v2748_v42, %v16191_v47  ;;  %v2750_v2 = vpop.f32.mrb[186].mxu0 }
 0x2b2   : > { %v2751_v63 = vadd.f32 %v2750_v2, %v16192_v38  ;;  %v2752_v16 = vpop.f32.mrb[187].mxu0  ;;  %v3109_v41 = vmax.f32 %v2747_v32, 0.0  ;;  %v10354_v2 = vcombine.low %v3557_v53, %v3561_v28  ;;  %v3322_v53 = vld [vmem:[%s16044_s2 + $0x68] sm:$0xff] }
 0x2b3   : > { %v2753_v50 = vadd.f32 %v2752_v16, %v16192_v38  ;;  %v3110_v5 = vmax.f32 %v2749_v35, 0.0 }
 0x2b4   : > { %v3111_v49 = vmax.f32 %v2751_v63, 0.0  ;;  %v10109_v63 = vcombine.high %v3310_v14, %v3314_v4 }
 0x2b5   : > { %v3112_v20 = vmax.f32 %v2753_v50, 0.0 }
 0x2b6   : > { %5562 = vmatmul.mubr.bf16.gmra.mrb[120].mxu1 %v10346_v43  ;;  %v14135_v7 = vpack.c.bf16 %v3111_v49, %v3109_v41 }
 0x2b7   : > { %5571 = vmatprep.mubr.bf16.mxu1 %v10355_v61  ;;  %v2756_v52 = vpop.f32.mrb[188].mxu0  ;;  %v14143_v31 = vpack.c.bf16 %v3112_v20, %v3110_v5 }
 0x2b8   : > { %v2757_v47 = vadd.f32 %v2756_v52, %v12875_v23  ;;  %v2758_v32 = vpop.f32.mrb[189].mxu0 }
 0x2b9   : > { %v2759_v42 = vadd.f32 %v2758_v32, %v12875_v23  ;;  %v2760_v35 = vpop.f32.mrb[190].mxu0  ;;  %v3318_v23 = vld [vmem:[%s16044_s2 + $0x48] sm:$0xff] }
 0x2ba   : > { %v2761_v43 = vadd.f32 %v2760_v35, %v12873_v51  ;;  %v2762_v38 = vpop.f32.mrb[191].mxu0  ;;  %v3113_v61 = vmax.f32 %v2757_v47, 0.0  ;;  %v10108_v35 = vcombine.low %v3310_v14, %v3314_v4  ;;  %v3326_v14 = vld [vmem:[%s16044_s2 + $0x88] sm:$0xff] }
 0x2bb   : > { %v2763_v16 = vadd.f32 %v2762_v38, %v12873_v51  ;;  %v3114_v41 = vmax.f32 %v2759_v42, 0.0  ;;  %v16193_v51 = vld [vmem:[#allocation55_spill] sm:$0xff]  ;;  %v3330_v4 = vld [vmem:[%s16044_s2 + $0xa8] sm:$0xff] }
 0x2bc   : > { %v3115_v50 = vmax.f32 %v2761_v43, 0.0 }
 0x2bd   : > { %v3116_v49 = vmax.f32 %v2763_v16, 0.0 }
 0x2be   : > { %5572 = vmatmul.mubr.bf16.gmra.mrb[124].mxu1 %v10354_v2  ;;  %v14149_v20 = vpack.c.bf16 %v3115_v50, %v3113_v61  ;;  %v16194_v2 = vld [vmem:[#allocation54_spill] sm:$0xff] }
 0x2bf   : > { %5614 = vmatprep.mubr.bf16.mxu1 %v10109_v63  ;;  %v2766_v5 = vpop.f32.mrb[192].mxu0  ;;  %v14157_v28 = vpack.c.bf16 %v3116_v49, %v3114_v41  ;;  %v10117_v63 = vcombine.high %v3318_v23, %v3322_v53 }
 0x2c0   : > { %v2767_v52 = vadd.f32 %v2766_v5, %v16193_v51  ;;  %v2768_v47 = vpop.f32.mrb[193].mxu0 }
 0x2c1   : > { %v2769_v32 = vadd.f32 %v2768_v47, %v16193_v51  ;;  %v2770_v42 = vpop.f32.mrb[194].mxu0 }
 0x2c2   : > { %v2771_v43 = vadd.f32 %v2770_v42, %v16194_v2  ;;  %v2772_v38 = vpop.f32.mrb[195].mxu0  ;;  %v3117_v61 = vmax.f32 %v2767_v52, 0.0 }
 0x2c3   : > { %v2773_v16 = vadd.f32 %v2772_v38, %v16194_v2  ;;  %v3118_v37 = vmax.f32 %v2769_v32, 0.0  ;;  %v10116_v32 = vcombine.low %v3318_v23, %v3322_v53  ;;  %v16195_v23 = vld [vmem:[#allocation57_spill] sm:$0xff] }
 0x2c4   : > { %v3119_v50 = vmax.f32 %v2771_v43, 0.0 }
 0x2c5   : > { %v3120_v15 = vmax.f32 %v2773_v16, 0.0 }
 0x2c6   : > { %5615 = vmatmul.mubr.bf16.vlgmr.msra.gmra.mrb[0].mxu1 %v10108_v35  ;;  %v14163_v41 = vpack.c.bf16 %v3119_v50, %v3117_v61  ;;  %v10125_v35 = vcombine.high %v3326_v14, %v3330_v4  ;;  %v10124_v50 = vcombine.low %v3326_v14, %v3330_v4  ;;  %v3342_v4 = vld [vmem:[%s16044_s2 + $0x108] sm:$0xff] }
 0x2c7   : > { %5936 = vmatpush1.bf16.msra.mxu1 %v13811_v36  ;;  %5624 = vmatprep.mubr.bf16.mxu1 %v10117_v63  ;;  %v2776_v49 = vpop.f32.mrb[196].mxu0  ;;  %v14173_v5 = vpack.c.bf16 %v3120_v15, %v3118_v37 }
 0x2c8   : > { %5937 = vmatprep.subr.bf16.mxu1 %v13854_v10  ;;  %v2777_v51 = vadd.f32 %v2776_v49, %v12904_v45  ;;  %v2778_v52 = vpop.f32.mrb[197].mxu0  ;;  %v16196_v49 = vld [vmem:[#allocation56_spill] sm:$0xff] }
 0x2c9   : > { %v2779_v47 = vadd.f32 %v2778_v52, %v12904_v45  ;;  %v2780_v36 = vpop.f32.mrb[198].mxu0 }
 0x2ca   : > { %v2781_v10 = vadd.f32 %v2780_v36, %v12902_v56  ;;  %v2782_v42 = vpop.f32.mrb[199].mxu0  ;;  %v3121_v43 = vmax.f32 %v2777_v51, 0.0 }
 0x2cb   : > { %5938 = vmatpush1.bf16.msra.mxu1 %v13844_v25  ;;  %v2783_v2 = vadd.f32 %v2782_v42, %v12902_v56  ;;  %v3122_v37 = vmax.f32 %v2779_v47, 0.0  ;;  %v3334_v25 = vld [vmem:[%s16044_s2 + $0xc8] sm:$0xff] }
 0x2cc   : > { %5939 = vmatprep.subr.bf16.mxu1 %v13891_v40  ;;  %v3123_v15 = vmax.f32 %v2781_v10, 0.0  ;;  %v3338_v56 = vld [vmem:[%s16044_s2 + $0xe8] sm:$0xff] }
 0x2cd   : > { %v3124_v38 = vmax.f32 %v2783_v2, 0.0  ;;  %v10133_v52 = vcombine.high %v3334_v25, %v3338_v56 }
 0x2ce   : > { %5625 = vmatmul.mubr.bf16.gmra.mrb[4].mxu1 %v10116_v32  ;;  %v14181_v63 = vpack.c.bf16 %v3123_v15, %v3121_v43 }
 0x2cf   : > { %5940 = vmatpush1.bf16.msra.mxu1 %v13881_v62  ;;  %5634 = vmatprep.mubr.bf16.mxu1 %v10125_v35  ;;  %v2786_v45 = vpop.f32.mrb[200].mxu0  ;;  %v14191_v40 = vpack.c.bf16 %v3124_v38, %v3122_v37  ;;  %v10132_v37 = vcombine.low %v3334_v25, %v3338_v56  ;;  %v16197_v25 = vld [vmem:[#allocation59_spill] sm:$0xff] }
 0x2d0   : > { %5941 = vmatprep.subr.bf16.mxu1 %v13928_v21  ;;  %v2787_v53 = vadd.f32 %v2786_v45, %v16195_v23  ;;  %v2788_v16 = vpop.f32.mrb[201].mxu0 }
 0x2d1   : > { %v2789_v61 = vadd.f32 %v2788_v16, %v16195_v23  ;;  %v2790_v62 = vpop.f32.mrb[202].mxu0 }
 0x2d2   : > { %v2791_v21 = vadd.f32 %v2790_v62, %v16196_v49  ;;  %v2792_v51 = vpop.f32.mrb[203].mxu0  ;;  %v3125_v36 = vmax.f32 %v2787_v53, 0.0 }
 0x2d3   : > { %5942 = vmatpush1.bf16.msra.mxu1 %v13918_v8  ;;  %v2793_v47 = vadd.f32 %v2792_v51, %v16196_v49  ;;  %v3126_v10 = vmax.f32 %v2789_v61, 0.0 }
 0x2d4   : > { %5943 = vmatprep.subr.bf16.mxu1 %v13968_v17  ;;  %v3127_v32 = vmax.f32 %v2791_v21, 0.0  ;;  %v3346_v17 = vld [vmem:[%s16044_s2 + $0x128] sm:$0xff] }
 0x2d5   : > { %v3128_v42 = vmax.f32 %v2793_v47, 0.0  ;;  %v10141_v45 = vcombine.high %v3342_v4, %v3346_v17  ;;  %v10140_v51 = vcombine.low %v3342_v4, %v3346_v17  ;;  %v3358_v17 = vld [vmem:[%s16044_s2 + $0x188] sm:$0xff] }
 0x2d6   : > { %5635 = vmatmul.mubr.bf16.gmra.mrb[8].mxu1 %v10124_v50  ;;  %v14199_v35 = vpack.c.bf16 %v3127_v32, %v3125_v36 }
 0x2d7   : > { %5944 = vmatpush1.bf16.msra.mxu1 %v13958_v48  ;;  %5644 = vmatprep.mubr.bf16.mxu1 %v10133_v52  ;;  %v14202_v14 = vpack.c.bf16 %v3128_v42, %v3126_v10  ;;  %v2796_v8 = vpop.f32.mrb[204].mxu0  ;;  %v16198_v52 = vld [vmem:[#allocation58_spill] sm:$0xff] }
 0x2d8   : > { %5945 = vmatprep.subr.bf16.mxu1 %v13998_v18  ;;  %v2797_v2 = vadd.f32 %v2796_v8, %v12933_v39  ;;  %v2798_v43 = vpop.f32.mrb[205].mxu0 }
 0x2d9   : > { %v2799_v15 = vadd.f32 %v2798_v43, %v12933_v39  ;;  %v2800_v48 = vpop.f32.mrb[206].mxu0 }
 0x2da   : > { %v2801_v38 = vadd.f32 %v2800_v48, %v12931_v60  ;;  %v2802_v18 = vpop.f32.mrb[207].mxu0  ;;  %v3129_v53 = vmax.f32 %v2797_v2, 0.0 }
 0x2db   : > { %5946 = vmatpush1.bf16.msra.mxu1 %v13988_v30  ;;  %v2803_v23 = vadd.f32 %v2802_v18, %v12931_v60  ;;  %v3130_v61 = vmax.f32 %v2799_v15, 0.0  ;;  %v3350_v60 = vld [vmem:[%s16044_s2 + $0x148] sm:$0xff] }
 0x2dc   : > { %5947 = vmatprep.subr.bf16.mxu1 %v14025_v58  ;;  %v3131_v16 = vmax.f32 %v2801_v38, 0.0  ;;  %v3354_v58 = vld [vmem:[%s16044_s2 + $0x168] sm:$0xff] }
 0x2dd   : > { %v3132_v62 = vmax.f32 %v2803_v23, 0.0  ;;  %v10149_v36 = vcombine.high %v3350_v60, %v3354_v58  ;;  %v10148_v38 = vcombine.low %v3350_v60, %v3354_v58  ;;  %v16199_v60 = vld [vmem:[#allocation61_spill] sm:$0xff] }
 0x2de   : > { %5645 = vmatmul.mubr.bf16.gmra.mrb[12].mxu1 %v10132_v37  ;;  %v14217_v50 = vpack.c.bf16 %v3131_v16, %v3129_v53 }
 0x2df   : > { %5948 = vmatpush1.bf16.msra.mxu1 %v14017_v3  ;;  %5654 = vmatprep.mubr.bf16.mxu1 %v10141_v45  ;;  %v14220_v39 = vpack.c.bf16 %v3132_v62, %v3130_v61  ;;  %v2806_v30 = vpop.f32.mrb[208].mxu0 }
 0x2e0   : > { %5949 = vmatprep.subr.bf16.mxu1 %v14045_v26  ;;  %v2807_v56 = vadd.f32 %v2806_v30, %v16197_v25  ;;  %v2808_v49 = vpop.f32.mrb[209].mxu0 }
 0x2e1   : > { %v2809_v21 = vadd.f32 %v2808_v49, %v16197_v25  ;;  %v2810_v3 = vpop.f32.mrb[210].mxu0 }
 0x2e2   : > { %v2811_v47 = vadd.f32 %v2810_v3, %v16198_v52  ;;  %v2812_v26 = vpop.f32.mrb[211].mxu0  ;;  %v3133_v10 = vmax.f32 %v2807_v56, 0.0 }
 0x2e3   : > { %5950 = vmatpush1.bf16.msra.mxu1 %v14035_v46  ;;  %v2813_v32 = vadd.f32 %v2812_v26, %v16198_v52  ;;  %v3134_v8 = vmax.f32 %v2809_v21, 0.0  ;;  %v16200_v21 = vld [vmem:[#allocation60_spill] sm:$0xff] }
 0x2e4   : > { %5951 = vmatprep.subr.bf16.mxu1 %v14059_v9  ;;  %v3135_v42 = vmax.f32 %v2811_v47, 0.0  ;;  %v3362_v9 = vld [vmem:[%s16044_s2 + $0x1a8] sm:$0xff] }
 0x2e5   : > { %v3136_v2 = vmax.f32 %v2813_v32, 0.0  ;;  %v10157_v45 = vcombine.high %v3358_v17, %v3362_v9  ;;  %v10156_v49 = vcombine.low %v3358_v17, %v3362_v9 }
 0x2e6   : > { %5655 = vmatmul.mubr.bf16.gmra.mrb[16].mxu1 %v10140_v51  ;;  %v14235_v43 = vpack.c.bf16 %v3135_v42, %v3133_v10 }
 0x2e7   : > { %5952 = vmatpush1.bf16.msra.mxu1 %v14051_v33  ;;  %5664 = vmatprep.mubr.bf16.mxu1 %v10149_v36  ;;  %v14238_v4 = vpack.c.bf16 %v3136_v2, %v3134_v8  ;;  %v2816_v46 = vpop.f32.mrb[212].mxu0  ;;  %v3374_v8 = vld [vmem:[%s16044_s2 + $0x208] sm:$0xff] }
 0x2e8   : > { %5953 = vmatprep.subr.bf16.mxu1 %v14073_v55  ;;  %v2817_v15 = vadd.f32 %v2816_v46, %v12962_v22  ;;  %v2818_v48 = vpop.f32.mrb[213].mxu0 }
 0x2e9   : > { %v2819_v37 = vadd.f32 %v2818_v48, %v12962_v22  ;;  %v2820_v33 = vpop.f32.mrb[214].mxu0 }
 0x2ea   : > { %v2821_v18 = vadd.f32 %v2820_v33, %v12960_v1  ;;  %v2822_v55 = vpop.f32.mrb[215].mxu0  ;;  %v3137_v53 = vmax.f32 %v2817_v15, 0.0 }
 0x2eb   : > { %5954 = vmatpush1.bf16.msra.mxu1 %v14065_v0  ;;  %v2823_v23 = vadd.f32 %v2822_v55, %v12960_v1  ;;  %v3138_v61 = vmax.f32 %v2819_v37, 0.0  ;;  %v3366_v1 = vld [vmem:[%s16044_s2 + $0x1c8] sm:$0xff] }
 0x2ec   : > { %5955 = vmatprep.subr.bf16.mxu1 %v14087_v27  ;;  %v3139_v16 = vmax.f32 %v2821_v18, 0.0  ;;  %v3370_v27 = vld [vmem:[%s16044_s2 + $0x1e8] sm:$0xff] }
 0x2ed   : > { %v3140_v62 = vmax.f32 %v2823_v23, 0.0  ;;  %v10165_v51 = vcombine.high %v3366_v1, %v3370_v27  ;;  %v10164_v9 = vcombine.low %v3366_v1, %v3370_v27  ;;  %v16201_v23 = vld [vmem:[#allocation63_spill] sm:$0xff] }
 0x2ee   : > { %5665 = vmatmul.mubr.bf16.gmra.mrb[20].mxu1 %v10148_v38  ;;  %v14253_v30 = vpack.c.bf16 %v3139_v16, %v3137_v53 }
 0x2ef   : > { %5956 = vmatpush1.bf16.msra.mxu1 %v14079_v12  ;;  %5674 = vmatprep.mubr.bf16.mxu1 %v10157_v45  ;;  %v14256_v22 = vpack.c.bf16 %v3140_v62, %v3138_v61  ;;  %v2826_v0 = vpop.f32.mrb[216].mxu0 }
 0x2f0   : > { %5957 = vmatprep.subr.bf16.mxu1 %v14101_v34  ;;  %v2827_v58 = vadd.f32 %v2826_v0, %v16199_v60  ;;  %v2828_v25 = vpop.f32.mrb[217].mxu0  ;;  %v16202_v0 = vld [vmem:[#allocation62_spill] sm:$0xff] }
 0x2f1   : > { %v2829_v56 = vadd.f32 %v2828_v25, %v16199_v60  ;;  %v2830_v12 = vpop.f32.mrb[218].mxu0 }
 0x2f2   : > { %v2831_v3 = vadd.f32 %v2830_v12, %v16200_v21  ;;  %v2832_v34 = vpop.f32.mrb[219].mxu0  ;;  %v3141_v47 = vmax.f32 %v2827_v58, 0.0 }
 0x2f3   : > { %5958 = vmatpush1.bf16.msra.mxu1 %v14093_v29  ;;  %v2833_v52 = vadd.f32 %v2832_v34, %v16200_v21  ;;  %v3142_v36 = vmax.f32 %v2829_v56, 0.0  ;;  %v3394_v34 = vld [vmem:[%s16044_s2 + $0x2a8] sm:$0xff] }
 0x2f4   : > { %5959 = vmatprep.subr.bf16.mxu1 %v14115_v57  ;;  %v3143_v26 = vmax.f32 %v2831_v3, 0.0  ;;  %v3378_v57 = vld [vmem:[%s16044_s2 + $0x228] sm:$0xff] }
 0x2f5   : > { %v3144_v32 = vmax.f32 %v2833_v52, 0.0  ;;  %v10173_v48 = vcombine.high %v3374_v8, %v3378_v57  ;;  %v10172_v62 = vcombine.low %v3374_v8, %v3378_v57 }
 0x2f6   : > { %5675 = vmatmul.mubr.bf16.gmra.mrb[24].mxu1 %v10156_v49  ;;  %v14271_v10 = vpack.c.bf16 %v3143_v26, %v3141_v47 }
 0x2f7   : > { %5960 = vmatpush1.bf16.msra.mxu1 %v14107_v54  ;;  %5684 = vmatprep.mubr.bf16.mxu1 %v10165_v51  ;;  %v14274_v42 = vpack.c.bf16 %v3144_v32, %v3142_v36  ;;  %v2836_v29 = vpop.f32.mrb[220].mxu0 }
 0x2f8   : > { %5961 = vmatprep.subr.bf16.mxu1 %v14129_v13  ;;  %v2837_v2 = vadd.f32 %v2836_v29, %v12991_v44  ;;  %v2838_v46 = vpop.f32.mrb[221].mxu0 }
 0x2f9   : > { %v2839_v17 = vadd.f32 %v2838_v46, %v12991_v44  ;;  %v2840_v54 = vpop.f32.mrb[222].mxu0 }
 0x2fa   : > { %v2841_v15 = vadd.f32 %v2840_v54, %v12989_v6  ;;  %v2842_v13 = vpop.f32.mrb[223].mxu0  ;;  %v3145_v33 = vmax.f32 %v2837_v2, 0.0 }
 0x2fb   : > { %5962 = vmatpush1.bf16.msra.mxu1 %v14121_v24  ;;  %v2843_v37 = vadd.f32 %v2842_v13, %v12989_v6  ;;  %v3146_v18 = vmax.f32 %v2839_v17, 0.0  ;;  %v3382_v6 = vld [vmem:[%s16044_s2 + $0x248] sm:$0xff] }
 0x2fc   : > { %5963 = vmatprep.subr.bf16.mxu1 %v14143_v31  ;;  %v3147_v38 = vmax.f32 %v2841_v15, 0.0  ;;  %v3386_v31 = vld [vmem:[%s16044_s2 + $0x268] sm:$0xff] }
 0x2fd   : > { %v3148_v55 = vmax.f32 %v2843_v37, 0.0  ;;  %v10181_v27 = vcombine.high %v3382_v6, %v3386_v31  ;;  %v10180_v26 = vcombine.low %v3382_v6, %v3386_v31  ;;  %v3402_v13 = vld [vmem:[%s16044_s2 + $0x2e8] sm:$0xff] }
 0x2fe   : > { %5685 = vmatmul.mubr.bf16.gmra.mrb[28].mxu1 %v10164_v9  ;;  %v14289_v45 = vpack.c.bf16 %v3147_v38, %v3145_v33 }
 0x2ff   : > { %5964 = vmatpush1.bf16.msra.mxu1 %v14135_v7  ;;  %5694 = vmatprep.mubr.bf16.mxu1 %v10173_v48  ;;  %v14292_v44 = vpack.c.bf16 %v3148_v55, %v3146_v18  ;;  %v2846_v24 = vpop.f32.mrb[224].mxu0  ;;  %v16204_v55 = vld [vmem:[#allocation64_spill] sm:$0xff] }
 0x300   : > { %5965 = vmatprep.subr.bf16.mxu1 %v14157_v28  ;;  %v2847_v53 = vadd.f32 %v2846_v24, %v16201_v23  ;;  %v2848_v16 = vpop.f32.mrb[225].mxu0 }
 0x301   : > { %v2849_v61 = vadd.f32 %v2848_v16, %v16201_v23  ;;  %v2850_v7 = vpop.f32.mrb[226].mxu0 }
 0x302   : > { %v2851_v1 = vadd.f32 %v2850_v7, %v16202_v0  ;;  %v2852_v28 = vpop.f32.mrb[227].mxu0  ;;  %v3149_v58 = vmax.f32 %v2847_v53, 0.0 }
 0x303   : > { %5966 = vmatpush1.bf16.msra.mxu1 %v14149_v20  ;;  %v2853_v60 = vadd.f32 %v2852_v28, %v16202_v0  ;;  %v3150_v56 = vmax.f32 %v2849_v61, 0.0  ;;  %v3390_v20 = vld [vmem:[%s16044_s2 + $0x288] sm:$0xff] }
 0x304   : > { %6288 = vmatprep.subr.bf16.mxu1 %v14173_v5  ;;  %v3151_v25 = vmax.f32 %v2851_v1, 0.0  ;;  %v10189_v29 = vcombine.high %v3390_v20, %v3394_v34  ;;  %v10188_v18 = vcombine.low %v3390_v20, %v3394_v34  ;;  %v3406_v28 = vld [vmem:[%s16044_s2 + $0x308] sm:$0xff] }
 0x305   : > { %v3152_v12 = vmax.f32 %v2853_v60, 0.0 }
 0x306   : > { %5695 = vmatmul.mubr.bf16.gmra.mrb[32].mxu1 %v10172_v62  ;;  %v14307_v49 = vpack.c.bf16 %v3151_v25, %v3149_v58 }
 0x307   : > { %5704 = vmatprep.mubr.bf16.mxu1 %v10181_v27  ;;  %v14309_v21 = vpack.c.bf16 %v3152_v12, %v3150_v56  ;;  %v2856_v3 = vpop.f32.mrb[228].mxu0  ;;  %v3410_v27 = vld [vmem:[%s16044_s2 + $0x328] sm:$0xff] }
 0x308   : > { %v2857_v5 = vadd.f32 %v2856_v3, %v13020_v19  ;;  %v2858_v51 = vpop.f32.mrb[229].mxu0  ;;  %v16205_v3 = vld [vmem:[#allocation66_spill] sm:$0xff] }
 0x309   : > { %v2859_v52 = vadd.f32 %v2858_v51, %v13020_v19  ;;  %v2860_v47 = vpop.f32.mrb[230].mxu0  ;;  %v3398_v19 = vld [vmem:[%s16044_s2 + $0x2c8] sm:$0xff] }
 0x30a   : > { %v2861_v36 = vadd.f32 %v2860_v47, %v13018_v11  ;;  %v2862_v32 = vpop.f32.mrb[231].mxu0  ;;  %v3153_v57 = vmax.f32 %v2857_v5, 0.0  ;;  %v10197_v31 = vcombine.high %v3398_v19, %v3402_v13  ;;  %v10196_v12 = vcombine.low %v3398_v19, %v3402_v13 }
 0x30b   : > { %v2863_v8 = vadd.f32 %v2862_v32, %v13018_v11  ;;  %v3154_v46 = vmax.f32 %v2859_v52, 0.0  ;;  %v16203_v11 = vld [vmem:[#allocation65_spill] sm:$0xff]  ;;  %v10205_v5 = vcombine.high %v3406_v28, %v3410_v27  ;;  %v10204_v13 = vcombine.low %v3406_v28, %v3410_v27 }
 0x30c   : > { %v3155_v2 = vmax.f32 %v2861_v36, 0.0 }
 0x30d   : > { %v3156_v17 = vmax.f32 %v2863_v8, 0.0 }
 0x30e   : > { %5705 = vmatmul.mubr.bf16.gmra.mrb[36].mxu1 %v10180_v26  ;;  %v14321_v54 = vpack.c.bf16 %v3155_v2, %v3153_v57  ;;  %v3418_v57 = vld [vmem:[%s16044_s2 + $0x368] sm:$0xff] }
 0x30f   : > { %5714 = vmatprep.mubr.bf16.mxu1 %v10189_v29  ;;  %v14323_v9 = vpack.c.bf16 %v3156_v17, %v3154_v46  ;;  %v2866_v15 = vpop.f32.mrb[232].mxu0  ;;  %v16206_v2 = vld [vmem:[#allocation68_spill] sm:$0xff] }
 0x310   : > { %v2867_v48 = vadd.f32 %v2866_v15, %v16203_v11  ;;  %v2868_v37 = vpop.f32.mrb[233].mxu0 }
 0x311   : > { %v2869_v33 = vadd.f32 %v2868_v37, %v16203_v11  ;;  %v2870_v38 = vpop.f32.mrb[234].mxu0  ;;  %v16207_v11 = vld [vmem:[#allocation67_spill] sm:$0xff] }
 0x312   : > { %v2871_v24 = vadd.f32 %v2870_v38, %v16204_v55  ;;  %v2872_v6 = vpop.f32.mrb[235].mxu0  ;;  %v3157_v53 = vmax.f32 %v2867_v48, 0.0 }
 0x313   : > { %v2873_v23 = vadd.f32 %v2872_v6, %v16204_v55  ;;  %v3158_v61 = vmax.f32 %v2869_v33, 0.0 }
 0x314   : > { %v3159_v16 = vmax.f32 %v2871_v24, 0.0 }
 0x315   : > { %v3160_v7 = vmax.f32 %v2873_v23, 0.0 }
 0x316   : > { %5715 = vmatmul.mubr.bf16.gmra.mrb[40].mxu1 %v10188_v18  ;;  %v14335_v62 = vpack.c.bf16 %v3159_v16, %v3157_v53  ;;  %v3422_v16 = vld [vmem:[%s16044_s2 + $0x388] sm:$0xff] }
 0x317   : > { %5724 = vmatprep.mubr.bf16.mxu1 %v10197_v31  ;;  %v14337_v0 = vpack.c.bf16 %v3160_v7, %v3158_v61  ;;  %v2876_v1 = vpop.f32.mrb[236].mxu0  ;;  %v3426_v61 = vld [vmem:[%s16044_s2 + $0x3a8] sm:$0xff]  ;;  %v16208_v7 = vld [vmem:[#allocation70_spill] sm:$0xff] }
 0x318   : > { %v2877_v60 = vadd.f32 %v2876_v1, %v13049_v59  ;;  %v2878_v58 = vpop.f32.mrb[237].mxu0 }
 0x319   : > { %v2879_v25 = vadd.f32 %v2878_v58, %v13049_v59  ;;  %v2880_v56 = vpop.f32.mrb[238].mxu0  ;;  %v3414_v59 = vld [vmem:[%s16044_s2 + $0x348] sm:$0xff] }
 0x31a   : > { %v2881_v20 = vadd.f32 %v2880_v56, %v16205_v3  ;;  %v2882_v34 = vpop.f32.mrb[239].mxu0  ;;  %v3161_v52 = vmax.f32 %v2877_v60, 0.0  ;;  %v10213_v33 = vcombine.high %v3414_v59, %v3418_v57  ;;  %v10212_v58 = vcombine.low %v3414_v59, %v3418_v57  ;;  %v3434_v59 = vld [vmem:[%s16044_s2 + $0x3e8] sm:$0xff] }
 0x31b   : > { %v2883_v51 = vadd.f32 %v2882_v34, %v16205_v3  ;;  %v3162_v26 = vmax.f32 %v2879_v25, 0.0  ;;  %v16209_v25 = vld [vmem:[#allocation69_spill] sm:$0xff]  ;;  %v10221_v3 = vcombine.high %v3422_v16, %v3426_v61  ;;  %v16210_v57 = vld [vmem:[#allocation72_spill] sm:$0xff] }
 0x31c   : > { %v3163_v47 = vmax.f32 %v2881_v20, 0.0 }
 0x31d   : > { %v3164_v36 = vmax.f32 %v2883_v51, 0.0 }
 0x31e   : > { %5725 = vmatmul.mubr.bf16.gmra.mrb[44].mxu1 %v10196_v12  ;;  %v14349_v32 = vpack.c.bf16 %v3163_v47, %v3161_v52 }
 0x31f   : > { %5734 = vmatprep.mubr.bf16.mxu1 %v10205_v5  ;;  %v14351_v29 = vpack.c.bf16 %v3164_v36, %v3162_v26  ;;  %v2886_v8 = vpop.f32.mrb[240].mxu0 }
 0x320   : > { %v2887_v46 = vadd.f32 %v2886_v8, %v16206_v2  ;;  %v2888_v17 = vpop.f32.mrb[241].mxu0  ;;  %v3430_v8 = vld [vmem:[%s16044_s2 + $0x3c8] sm:$0xff] }
 0x321   : > { %v2889_v15 = vadd.f32 %v2888_v17, %v16206_v2  ;;  %v2890_v19 = vpop.f32.mrb[242].mxu0 }
 0x322   : > { %v2891_v48 = vadd.f32 %v2890_v19, %v16207_v11  ;;  %v2892_v37 = vpop.f32.mrb[243].mxu0  ;;  %v3165_v18 = vmax.f32 %v2887_v46, 0.0  ;;  %v10220_v19 = vcombine.low %v3422_v16, %v3426_v61  ;;  %v3438_v16 = vld [vmem:[%s16044_s2 + $0x408] sm:$0xff] }
 0x323   : > { %v2893_v38 = vadd.f32 %v2892_v37, %v16207_v11  ;;  %v3166_v24 = vmax.f32 %v2889_v15, 0.0  ;;  %v10229_v37 = vcombine.high %v3430_v8, %v3434_v59  ;;  %v3442_v61 = vld [vmem:[%s16044_s2 + $0x428] sm:$0xff] }
 0x324   : > { %v3167_v55 = vmax.f32 %v2891_v48, 0.0 }
 0x325   : > { %v3168_v6 = vmax.f32 %v2893_v38, 0.0 }
 0x326   : > { %5735 = vmatmul.mubr.bf16.gmra.mrb[48].mxu1 %v10204_v13  ;;  %v14363_v31 = vpack.c.bf16 %v3167_v55, %v3165_v18  ;;  %v16211_v13 = vld [vmem:[#allocation71_spill] sm:$0xff] }
 0x327   : > { %5744 = vmatprep.mubr.bf16.mxu1 %v10213_v33  ;;  %v14365_v23 = vpack.c.bf16 %v3168_v6, %v3166_v24  ;;  %v2896_v53 = vpop.f32.mrb[244].mxu0 }
 0x328   : > { %v2897_v1 = vadd.f32 %v2896_v53, %v16208_v7  ;;  %v2898_v28 = vpop.f32.mrb[245].mxu0 }
 0x329   : > { %v2899_v27 = vadd.f32 %v2898_v28, %v16208_v7  ;;  %v2900_v60 = vpop.f32.mrb[246].mxu0 }
 0x32a   : > { %v2901_v56 = vadd.f32 %v2900_v60, %v16209_v25  ;;  %v2902_v12 = vpop.f32.mrb[247].mxu0  ;;  %v3169_v34 = vmax.f32 %v2897_v1, 0.0  ;;  %v16212_v1 = vld [vmem:[#allocation74_spill] sm:$0xff] }
 0x32b   : > { %v2903_v20 = vadd.f32 %v2902_v12, %v16209_v25  ;;  %v3170_v51 = vmax.f32 %v2899_v27, 0.0  ;;  %v10228_v25 = vcombine.low %v3430_v8, %v3434_v59  ;;  %v3446_v8 = vld [vmem:[%s16044_s2 + $0x448] sm:$0xff] }
 0x32c   : > { %v3171_v5 = vmax.f32 %v2901_v56, 0.0  ;;  %v16213_v56 = vld [vmem:[#allocation73_spill] sm:$0xff] }
 0x32d   : > { %v3172_v52 = vmax.f32 %v2903_v20, 0.0  ;;  %v10237_v20 = vcombine.high %v3438_v16, %v3442_v61  ;;  %v3450_v59 = vld [vmem:[%s16044_s2 + $0x468] sm:$0xff] }
 0x32e   : > { %5745 = vmatmul.mubr.bf16.gmra.mrb[52].mxu1 %v10212_v58  ;;  %v14377_v47 = vpack.c.bf16 %v3171_v5, %v3169_v34 }
 0x32f   : > { %5754 = vmatprep.mubr.bf16.mxu1 %v10221_v3  ;;  %v14379_v26 = vpack.c.bf16 %v3172_v52, %v3170_v51  ;;  %v2906_v36 = vpop.f32.mrb[248].mxu0 }
 0x330   : > { %v2907_v2 = vadd.f32 %v2906_v36, %v16210_v57  ;;  %v2908_v46 = vpop.f32.mrb[249].mxu0 }
 0x331   : > { %v2909_v17 = vadd.f32 %v2908_v46, %v16210_v57  ;;  %v2910_v15 = vpop.f32.mrb[250].mxu0  ;;  %v10236_v46 = vcombine.low %v3438_v16, %v3442_v61  ;;  %v3478_v16 = vld [vmem:[%s16044_s2 + $0x548] sm:$0xff] }
 0x332   : > { %v2911_v11 = vadd.f32 %v2910_v15, %v16211_v13  ;;  %v2912_v48 = vpop.f32.mrb[251].mxu0  ;;  %v3173_v38 = vmax.f32 %v2907_v2, 0.0  ;;  %v3454_v15 = vld [vmem:[%s16044_s2 + $0x488] sm:$0xff] }
 0x333   : > { %v2913_v33 = vadd.f32 %v2912_v48, %v16211_v13  ;;  %v3174_v55 = vmax.f32 %v2909_v17, 0.0  ;;  %v10245_v17 = vcombine.high %v3446_v8, %v3450_v59  ;;  %v10244_v13 = vcombine.low %v3446_v8, %v3450_v59  ;;  %v3462_v48 = vld [vmem:[%s16044_s2 + $0x4c8] sm:$0xff] }
 0x334   : > { %v3175_v18 = vmax.f32 %v2911_v11, 0.0  ;;  %v3482_v61 = vld [vmem:[%s16044_s2 + $0x568] sm:$0xff] }
 0x335   : > { %v3176_v24 = vmax.f32 %v2913_v33, 0.0  ;;  %v3514_v8 = vld [vmem:[%s16044_s2 + $0x668] sm:$0xff] }
 0x336   : > { %5755 = vmatmul.mubr.bf16.gmra.mrb[56].mxu1 %v10220_v19  ;;  %v14391_v6 = vpack.c.bf16 %v3175_v18, %v3173_v38  ;;  %v3458_v19 = vld [vmem:[%s16044_s2 + $0x4a8] sm:$0xff] }
 0x337   : > { %5764 = vmatprep.mubr.bf16.mxu1 %v10229_v37  ;;  %v14393_v53 = vpack.c.bf16 %v3176_v24, %v3174_v55  ;;  %v2916_v7 = vpop.f32.mrb[252].mxu0  ;;  %v10253_v11 = vcombine.high %v3454_v15, %v3458_v19  ;;  %v3466_v37 = vld [vmem:[%s16044_s2 + $0x4e8] sm:$0xff]  ;;  %v10252_v33 = vcombine.low %v3454_v15, %v3458_v19 }
 0x338   : > { %v2917_v28 = vadd.f32 %v2916_v7, %v16212_v1  ;;  %v2918_v27 = vpop.f32.mrb[253].mxu0  ;;  %v10261_v38 = vcombine.high %v3462_v48, %v3466_v37  ;;  %v3470_v18 = vld [vmem:[%s16044_s2 + $0x508] sm:$0xff]  ;;  %v10260_v24 = vcombine.low %v3462_v48, %v3466_v37 }
 0x339   : > { %v2919_v60 = vadd.f32 %v2918_v27, %v16212_v1  ;;  %v2920_v58 = vpop.f32.mrb[254].mxu0  ;;  %v3474_v55 = vld [vmem:[%s16044_s2 + $0x528] sm:$0xff] }
 0x33a   : > { %v2921_v12 = vadd.f32 %v2920_v58, %v16213_v56  ;;  %v2922_v3 = vpop.f32.mrb[255].mxu0  ;;  %v3177_v5 = vmax.f32 %v2917_v28, 0.0  ;;  %v10269_v7 = vcombine.high %v3470_v18, %v3474_v55  ;;  %v10268_v1 = vcombine.low %v3470_v18, %v3474_v55  ;;  %v3486_v27 = vld [vmem:[%s16044_s2 + $0x588] sm:$0xff] }
 0x33b   : > { %v2923_v34 = vadd.f32 %v2922_v3, %v16213_v56  ;;  %v3178_v52 = vmax.f32 %v2919_v60, 0.0  ;;  %v10277_v28 = vcombine.high %v3478_v16, %v3482_v61  ;;  %v3490_v60 = vld [vmem:[%s16044_s2 + $0x5a8] sm:$0xff]  ;;  %v10276_v58 = vcombine.low %v3478_v16, %v3482_v61 }
 0x33c   : > { %v3179_v51 = vmax.f32 %v2921_v12, 0.0  ;;  %v3494_v56 = vld [vmem:[%s16044_s2 + $0x5c8] sm:$0xff]  ;;  %v10284_v3 = vcombine.low %v3486_v27, %v3490_v60 }
 0x33d   : > { %v3180_v36 = vmax.f32 %v2923_v34, 0.0  ;;  %v3498_v12 = vld [vmem:[%s16044_s2 + $0x5e8] sm:$0xff] }
 0x33e   : > { %5765 = vmatmul.mubr.bf16.gmra.mrb[60].mxu1 %v10228_v25  ;;  %v14405_v57 = vpack.c.bf16 %v3179_v51, %v3177_v5  ;;  %v10285_v25 = vcombine.high %v3486_v27, %v3490_v60  ;;  %v3502_v34 = vld [vmem:[%s16044_s2 + $0x608] sm:$0xff]  ;;  %v10292_v51 = vcombine.low %v3494_v56, %v3498_v12 }
 0x33f   : > { %5774 = vmatprep.mubr.bf16.mxu1 %v10237_v20  ;;  %v14407_v2 = vpack.c.bf16 %v3180_v36, %v3178_v52  ;;  %v10293_v20 = vcombine.high %v3494_v56, %v3498_v12  ;;  %v3506_v5 = vld [vmem:[%s16044_s2 + $0x628] sm:$0xff] }
 0x340   : > { %v10301_v52 = vcombine.high %v3502_v34, %v3506_v5  ;;  %v3510_v36 = vld [vmem:[%s16044_s2 + $0x648] sm:$0xff]  ;;  %v10300_v59 = vcombine.low %v3502_v34, %v3506_v5  ;;  %v3315_v34 = vld [vmem:[%s16044_s2 + $0x30] sm:$0xff] }
 0x341   : > { %v3522_v15 = vld [vmem:[%s16044_s2 + $0x6a8] sm:$0xff]  ;;  %v10308_v19 = vcombine.low %v3510_v36, %v3514_v8 }
 0x342   : > { %v3530_v48 = vld [vmem:[%s16044_s2 + $0x6e8] sm:$0xff] }
 0x343   : > { %v3538_v18 = vld [vmem:[%s16044_s2 + $0x728] sm:$0xff] }
 0x344   : > { %v3546_v16 = vld [vmem:[%s16044_s2 + $0x768] sm:$0xff] }
 0x345   : > { %v3554_v27 = vld [vmem:[%s16044_s2 + $0x7a8] sm:$0xff] }
 0x346   : > { %5775 = vmatmul.mubr.bf16.gmra.mrb[64].mxu1 %v10236_v46  ;;  %v10309_v46 = vcombine.high %v3510_v36, %v3514_v8  ;;  %v3562_v56 = vld [vmem:[%s16044_s2 + $0x7e8] sm:$0xff]  ;;  %v3323_v36 = vld [vmem:[%s16044_s2 + $0x70] sm:$0xff] }
 0x347   : > { %5784 = vmatprep.mubr.bf16.mxu1 %v10245_v17  ;;  %v3518_v17 = vld [vmem:[%s16044_s2 + $0x688] sm:$0xff] }
 0x348   : > { %v10316_v37 = vcombine.low %v3518_v17, %v3522_v15 }
 0x34e   : > { %5785 = vmatmul.mubr.bf16.gmra.mrb[68].mxu1 %v10244_v13  ;;  %v10317_v13 = vcombine.high %v3518_v17, %v3522_v15  ;;  %v3331_v17 = vld [vmem:[%s16044_s2 + $0xb0] sm:$0xff] }
 0x34f   : > { %5794 = vmatprep.mubr.bf16.mxu1 %v10253_v11  ;;  %v3526_v11 = vld [vmem:[%s16044_s2 + $0x6c8] sm:$0xff] }
 0x350   : > { %v10324_v55 = vcombine.low %v3526_v11, %v3530_v48 }
 0x356   : > { %5795 = vmatmul.mubr.bf16.gmra.mrb[72].mxu1 %v10252_v33  ;;  %v10325_v33 = vcombine.high %v3526_v11, %v3530_v48  ;;  %v3399_v48 = vld [vmem:[%s16044_s2 + $0x2d0] sm:$0xff] }
 0x357   : > { %5804 = vmatprep.mubr.bf16.mxu1 %v10261_v38  ;;  %v3534_v38 = vld [vmem:[%s16044_s2 + $0x708] sm:$0xff] }
 0x358   : > { %v10332_v61 = vcombine.low %v3534_v38, %v3538_v18 }
 0x35e   : > { %5805 = vmatmul.mubr.bf16.gmra.mrb[76].mxu1 %v10260_v24  ;;  %v10333_v24 = vcombine.high %v3534_v38, %v3538_v18  ;;  %v3407_v38 = vld [vmem:[%s16044_s2 + $0x310] sm:$0xff] }
 0x35f   : > { %5814 = vmatprep.mubr.bf16.mxu1 %v10269_v7  ;;  %v3542_v7 = vld [vmem:[%s16044_s2 + $0x748] sm:$0xff]  ;;  %v3411_v18 = vld [vmem:[%s16044_s2 + $0x330] sm:$0xff] }
 0x360   : > { %v10340_v60 = vcombine.low %v3542_v7, %v3546_v16 }
 0x366   : > { %5815 = vmatmul.mubr.bf16.gmra.mrb[80].mxu1 %v10268_v1  ;;  %v10341_v1 = vcombine.high %v3542_v7, %v3546_v16  ;;  %v3415_v7 = vld [vmem:[%s16044_s2 + $0x350] sm:$0xff] }
 0x367   : > { %5824 = vmatprep.mubr.bf16.mxu1 %v10277_v28  ;;  %v3550_v28 = vld [vmem:[%s16044_s2 + $0x788] sm:$0xff]  ;;  %v3419_v16 = vld [vmem:[%s16044_s2 + $0x370] sm:$0xff] }
 0x368   : > { %v10348_v12 = vcombine.low %v3550_v28, %v3554_v27 }
 0x36e   : > { %5825 = vmatmul.mubr.bf16.gmra.mrb[84].mxu1 %v10276_v58  ;;  %v10349_v58 = vcombine.high %v3550_v28, %v3554_v27  ;;  %v3423_v28 = vld [vmem:[%s16044_s2 + $0x390] sm:$0xff] }
 0x36f   : > { %5834 = vmatprep.mubr.bf16.mxu1 %v10285_v25  ;;  %v3558_v25 = vld [vmem:[%s16044_s2 + $0x7c8] sm:$0xff]  ;;  %v3427_v27 = vld [vmem:[%s16044_s2 + $0x3b0] sm:$0xff] }
 0x370   : > { %v10356_v5 = vcombine.low %v3558_v25, %v3562_v56 }
 0x376   : > { %5835 = vmatmul.mubr.bf16.gmra.mrb[88].mxu1 %v10284_v3  ;;  %v10357_v3 = vcombine.high %v3558_v25, %v3562_v56  ;;  %v3431_v25 = vld [vmem:[%s16044_s2 + $0x3d0] sm:$0xff] }
 0x377   : > { %5844 = vmatprep.mubr.bf16.mxu1 %v10293_v20  ;;  %v3311_v20 = vld [vmem:[%s16044_s2 + $0x10] sm:$0xff] }
 0x378   : > { %v10110_v8 = vcombine.low %v3311_v20, %v3315_v34  ;;  %v3435_v56 = vld [vmem:[%s16044_s2 + $0x3f0] sm:$0xff] }
 0x37e   : > { %5845 = vmatmul.mubr.bf16.gmra.mrb[92].mxu1 %v10292_v51  ;;  %v10111_v51 = vcombine.high %v3311_v20, %v3315_v34  ;;  %v3439_v20 = vld [vmem:[%s16044_s2 + $0x410] sm:$0xff] }
 0x37f   : > { %5854 = vmatprep.mubr.bf16.mxu1 %v10301_v52  ;;  %v3319_v52 = vld [vmem:[%s16044_s2 + $0x50] sm:$0xff] }
 0x380   : > { %v10118_v15 = vcombine.low %v3319_v52, %v3323_v36  ;;  %v3443_v34 = vld [vmem:[%s16044_s2 + $0x430] sm:$0xff] }
 0x386   : > { %5855 = vmatmul.mubr.bf16.gmra.mrb[96].mxu1 %v10300_v59  ;;  %v10119_v59 = vcombine.high %v3319_v52, %v3323_v36  ;;  %v3447_v52 = vld [vmem:[%s16044_s2 + $0x450] sm:$0xff] }
 0x387   : > { %5864 = vmatprep.mubr.bf16.mxu1 %v10309_v46  ;;  %v3327_v46 = vld [vmem:[%s16044_s2 + $0x90] sm:$0xff] }
 0x388   : > { %v3451_v36 = vld [vmem:[%s16044_s2 + $0x470] sm:$0xff] }
 0x38e   : > { %5865 = vmatmul.mubr.bf16.gmra.mrb[100].mxu1 %v10308_v19  ;;  %v10127_v19 = vcombine.high %v3327_v46, %v3331_v17 }
 0x38f   : > { %5874 = vmatprep.mubr.bf16.mxu1 %v10317_v13  ;;  %v10126_v13 = vcombine.low %v3327_v46, %v3331_v17  ;;  %v3455_v46 = vld [vmem:[%s16044_s2 + $0x490] sm:$0xff] }
 0x390   : > { %v3459_v17 = vld [vmem:[%s16044_s2 + $0x4b0] sm:$0xff] }
 0x396   : > { %5875 = vmatmul.mubr.bf16.gmra.mrb[104].mxu1 %v10316_v37 }
 0x397   : > { %5884 = vmatprep.mubr.bf16.mxu1 %v10325_v33 }
 0x39e   : > { %5885 = vmatmul.mubr.bf16.gmra.mrb[108].mxu1 %v10324_v55 }
 0x39f   : > { %5894 = vmatprep.mubr.bf16.mxu1 %v10333_v24  ;;  %v10207_v24 = vcombine.high %v3407_v38, %v3411_v18 }
 0x3a6   : > { %5895 = vmatmul.mubr.bf16.gmra.mrb[112].mxu1 %v10332_v61  ;;  %v10206_v61 = vcombine.low %v3407_v38, %v3411_v18  ;;  %v3535_v38 = vld [vmem:[%s16044_s2 + $0x710] sm:$0xff] }
 0x3a7   : > { %5904 = vmatprep.mubr.bf16.mxu1 %v10341_v1  ;;  %v10215_v1 = vcombine.high %v3415_v7, %v3419_v16  ;;  %v3539_v18 = vld [vmem:[%s16044_s2 + $0x730] sm:$0xff] }
 0x3ae   : > { %5905 = vmatmul.mubr.bf16.gmra.mrb[116].mxu1 %v10340_v60  ;;  %v10214_v60 = vcombine.low %v3415_v7, %v3419_v16  ;;  %v3543_v7 = vld [vmem:[%s16044_s2 + $0x750] sm:$0xff] }
 0x3af   : > { %5914 = vmatprep.mubr.bf16.mxu1 %v10349_v58  ;;  %v10223_v58 = vcombine.high %v3423_v28, %v3427_v27  ;;  %v3547_v16 = vld [vmem:[%s16044_s2 + $0x770] sm:$0xff] }
 0x3b6   : > { %5915 = vmatmul.mubr.bf16.gmra.mrb[120].mxu1 %v10348_v12  ;;  %v10222_v12 = vcombine.low %v3423_v28, %v3427_v27  ;;  %v3551_v28 = vld [vmem:[%s16044_s2 + $0x790] sm:$0xff] }
 0x3b7   : > { %5924 = vmatprep.mubr.bf16.mxu1 %v10357_v3  ;;  %v10231_v3 = vcombine.high %v3431_v25, %v3435_v56  ;;  %v3555_v27 = vld [vmem:[%s16044_s2 + $0x7b0] sm:$0xff] }
 0x3be   : > { %5925 = vmatmul.mubr.bf16.gmra.mrb[124].mxu1 %v10356_v5  ;;  %v10230_v5 = vcombine.low %v3431_v25, %v3435_v56  ;;  %v3559_v25 = vld [vmem:[%s16044_s2 + $0x7d0] sm:$0xff] }
 0x3bf   : > { %5967 = vmatprep.mubr.bf16.mxu1 %v10111_v51  ;;  %v10239_v51 = vcombine.high %v3439_v20, %v3443_v34  ;;  %v3563_v56 = vld [vmem:[%s16044_s2 + $0x7f0] sm:$0xff] }
 0x3c6   : > { %5968 = vmatmul.mubr.bf16.vlgmr.msra.gmra.mrb[0].mxu1 %v10110_v8  ;;  %v10238_v8 = vcombine.low %v3439_v20, %v3443_v34  ;;  %v3312_v20 = vld [vmem:[%s16044_s2 + $0x18] sm:$0xff] }
 0x3c7   : > { %6289 = vmatpush1.bf16.msra.mxu1 %v14163_v41  ;;  %5977 = vmatprep.mubr.bf16.mxu1 %v10119_v59  ;;  %v3335_v41 = vld [vmem:[%s16044_s2 + $0xd0] sm:$0xff]  ;;  %v10247_v59 = vcombine.high %v3447_v52, %v3451_v36  ;;  %v3316_v34 = vld [vmem:[%s16044_s2 + $0x38] sm:$0xff] }
 0x3c8   : > { %6290 = vmatprep.subr.bf16.mxu1 %v14191_v40  ;;  %v3339_v40 = vld [vmem:[%s16044_s2 + $0xf0] sm:$0xff] }
 0x3cb   : > { %6291 = vmatpush1.bf16.msra.mxu1 %v14181_v63  ;;  %v10135_v63 = vcombine.high %v3335_v41, %v3339_v40 }
 0x3cc   : > { %6292 = vmatprep.subr.bf16.mxu1 %v14202_v14  ;;  %v3347_v14 = vld [vmem:[%s16044_s2 + $0x130] sm:$0xff] }
 0x3ce   : > { %5978 = vmatmul.mubr.bf16.gmra.mrb[4].mxu1 %v10118_v15  ;;  %v10246_v15 = vcombine.low %v3447_v52, %v3451_v36  ;;  %v3320_v52 = vld [vmem:[%s16044_s2 + $0x58] sm:$0xff] }
 0x3cf   : > { %6293 = vmatpush1.bf16.msra.mxu1 %v14199_v35  ;;  %5987 = vmatprep.mubr.bf16.mxu1 %v10127_v19  ;;  %v3343_v35 = vld [vmem:[%s16044_s2 + $0x110] sm:$0xff]  ;;  %v10255_v19 = vcombine.high %v3455_v46, %v3459_v17  ;;  %v3324_v36 = vld [vmem:[%s16044_s2 + $0x78] sm:$0xff] }
 0x3d0   : > { %6294 = vmatprep.subr.bf16.mxu1 %v14220_v39  ;;  %v10134_v39 = vcombine.low %v3335_v41, %v3339_v40  ;;  %v3463_v41 = vld [vmem:[%s16044_s2 + $0x4d0] sm:$0xff] }
 0x3d1   : > { %v3467_v40 = vld [vmem:[%s16044_s2 + $0x4f0] sm:$0xff] }
 0x3d3   : > { %6295 = vmatpush1.bf16.msra.mxu1 %v14217_v50  ;;  %v10143_v50 = vcombine.high %v3343_v35, %v3347_v14 }
 0x3d4   : > { %6296 = vmatprep.subr.bf16.mxu1 %v14238_v4  ;;  %v3355_v4 = vld [vmem:[%s16044_s2 + $0x170] sm:$0xff] }
 0x3d6   : > { %5988 = vmatmul.mubr.bf16.gmra.mrb[8].mxu1 %v10126_v13  ;;  %v10254_v13 = vcombine.low %v3455_v46, %v3459_v17  ;;  %v3328_v46 = vld [vmem:[%s16044_s2 + $0x98] sm:$0xff] }
 0x3d7   : > { %6297 = vmatpush1.bf16.msra.mxu1 %v14235_v43  ;;  %5997 = vmatprep.mubr.bf16.mxu1 %v10135_v63  ;;  %v3351_v43 = vld [vmem:[%s16044_s2 + $0x150] sm:$0xff]  ;;  %v10263_v63 = vcombine.high %v3463_v41, %v3467_v40  ;;  %v3332_v17 = vld [vmem:[%s16044_s2 + $0xb8] sm:$0xff] }
 0x3d8   : > { %6298 = vmatprep.subr.bf16.mxu1 %v14256_v22  ;;  %v10142_v22 = vcombine.low %v3343_v35, %v3347_v14  ;;  %v3471_v35 = vld [vmem:[%s16044_s2 + $0x510] sm:$0xff] }
 0x3d9   : > { %v3475_v14 = vld [vmem:[%s16044_s2 + $0x530] sm:$0xff] }
 0x3db   : > { %6299 = vmatpush1.bf16.msra.mxu1 %v14253_v30  ;;  %v10151_v30 = vcombine.high %v3351_v43, %v3355_v4 }
 0x3dc   : > { %6300 = vmatprep.subr.bf16.mxu1 %v14274_v42  ;;  %v3363_v42 = vld [vmem:[%s16044_s2 + $0x1b0] sm:$0xff] }
 0x3de   : > { %5998 = vmatmul.mubr.bf16.gmra.mrb[12].mxu1 %v10134_v39  ;;  %v10262_v39 = vcombine.low %v3463_v41, %v3467_v40  ;;  %v3336_v41 = vld [vmem:[%s16044_s2 + $0xd8] sm:$0xff] }
 0x3df   : > { %6301 = vmatpush1.bf16.msra.mxu1 %v14271_v10  ;;  %6007 = vmatprep.mubr.bf16.mxu1 %v10143_v50  ;;  %v3359_v10 = vld [vmem:[%s16044_s2 + $0x190] sm:$0xff]  ;;  %v10271_v50 = vcombine.high %v3471_v35, %v3475_v14  ;;  %v3340_v40 = vld [vmem:[%s16044_s2 + $0xf8] sm:$0xff] }
 0x3e0   : > { %6302 = vmatprep.subr.bf16.mxu1 %v14292_v44  ;;  %v10150_v44 = vcombine.low %v3351_v43, %v3355_v4  ;;  %v3479_v43 = vld [vmem:[%s16044_s2 + $0x550] sm:$0xff] }
 0x3e1   : > { %v3483_v4 = vld [vmem:[%s16044_s2 + $0x570] sm:$0xff] }
 0x3e3   : > { %6303 = vmatpush1.bf16.msra.mxu1 %v14289_v45  ;;  %v10159_v45 = vcombine.high %v3359_v10, %v3363_v42 }
 0x3e4   : > { %6304 = vmatprep.subr.bf16.mxu1 %v14309_v21  ;;  %v3371_v21 = vld [vmem:[%s16044_s2 + $0x1f0] sm:$0xff] }
 0x3e6   : > { %6008 = vmatmul.mubr.bf16.gmra.mrb[16].mxu1 %v10142_v22  ;;  %v10270_v22 = vcombine.low %v3471_v35, %v3475_v14  ;;  %v3344_v35 = vld [vmem:[%s16044_s2 + $0x118] sm:$0xff] }
 0x3e7   : > { %6305 = vmatpush1.bf16.msra.mxu1 %v14307_v49  ;;  %6017 = vmatprep.mubr.bf16.mxu1 %v10151_v30  ;;  %v3367_v49 = vld [vmem:[%s16044_s2 + $0x1d0] sm:$0xff]  ;;  %v10279_v30 = vcombine.high %v3479_v43, %v3483_v4  ;;  %v3348_v14 = vld [vmem:[%s16044_s2 + $0x138] sm:$0xff] }
 0x3e8   : > { %6306 = vmatprep.subr.bf16.mxu1 %v14323_v9  ;;  %v10158_v9 = vcombine.low %v3359_v10, %v3363_v42  ;;  %v3487_v10 = vld [vmem:[%s16044_s2 + $0x590] sm:$0xff] }
 0x3e9   : > { %v3491_v42 = vld [vmem:[%s16044_s2 + $0x5b0] sm:$0xff] }
 0x3eb   : > { %6307 = vmatpush1.bf16.msra.mxu1 %v14321_v54  ;;  %v10167_v54 = vcombine.high %v3367_v49, %v3371_v21 }
 0x3ec   : > { %6308 = vmatprep.subr.bf16.mxu1 %v14337_v0  ;;  %v3379_v0 = vld [vmem:[%s16044_s2 + $0x230] sm:$0xff] }
 0x3ee   : > { %6018 = vmatmul.mubr.bf16.gmra.mrb[20].mxu1 %v10150_v44  ;;  %v10278_v44 = vcombine.low %v3479_v43, %v3483_v4  ;;  %v3352_v43 = vld [vmem:[%s16044_s2 + $0x158] sm:$0xff] }
 0x3ef   : > { %6309 = vmatpush1.bf16.msra.mxu1 %v14335_v62  ;;  %6027 = vmatprep.mubr.bf16.mxu1 %v10159_v45  ;;  %v3375_v62 = vld [vmem:[%s16044_s2 + $0x210] sm:$0xff]  ;;  %v10287_v45 = vcombine.high %v3487_v10, %v3491_v42  ;;  %v3356_v4 = vld [vmem:[%s16044_s2 + $0x178] sm:$0xff] }
 0x3f0   : > { %6310 = vmatprep.subr.bf16.mxu1 %v14351_v29  ;;  %v10166_v29 = vcombine.low %v3367_v49, %v3371_v21  ;;  %v3495_v49 = vld [vmem:[%s16044_s2 + $0x5d0] sm:$0xff] }
 0x3f1   : > { %v3499_v21 = vld [vmem:[%s16044_s2 + $0x5f0] sm:$0xff] }
 0x3f3   : > { %6311 = vmatpush1.bf16.msra.mxu1 %v14349_v32  ;;  %v10175_v32 = vcombine.high %v3375_v62, %v3379_v0 }
 0x3f4   : > { %6312 = vmatprep.subr.bf16.mxu1 %v14365_v23  ;;  %v3387_v23 = vld [vmem:[%s16044_s2 + $0x270] sm:$0xff] }
 0x3f6   : > { %6028 = vmatmul.mubr.bf16.gmra.mrb[24].mxu1 %v10158_v9  ;;  %v10286_v9 = vcombine.low %v3487_v10, %v3491_v42  ;;  %v3360_v10 = vld [vmem:[%s16044_s2 + $0x198] sm:$0xff] }
 0x3f7   : > { %6313 = vmatpush1.bf16.msra.mxu1 %v14363_v31  ;;  %6037 = vmatprep.mubr.bf16.mxu1 %v10167_v54  ;;  %v3383_v31 = vld [vmem:[%s16044_s2 + $0x250] sm:$0xff]  ;;  %v10295_v54 = vcombine.high %v3495_v49, %v3499_v21  ;;  %v3364_v42 = vld [vmem:[%s16044_s2 + $0x1b8] sm:$0xff] }
 0x3f8   : > { %6314 = vmatprep.subr.bf16.mxu1 %v14379_v26  ;;  %v10174_v26 = vcombine.low %v3375_v62, %v3379_v0  ;;  %v3503_v62 = vld [vmem:[%s16044_s2 + $0x610] sm:$0xff] }
 0x3f9   : > { %v3507_v0 = vld [vmem:[%s16044_s2 + $0x630] sm:$0xff] }
 0x3fb   : > { %6315 = vmatpush1.bf16.msra.mxu1 %v14377_v47  ;;  %v10183_v47 = vcombine.high %v3383_v31, %v3387_v23 }
 0x3fc   : > { %6316 = vmatprep.subr.bf16.mxu1 %v14393_v53  ;;  %v3395_v53 = vld [vmem:[%s16044_s2 + $0x2b0] sm:$0xff] }
 0x3fe   : > { %6038 = vmatmul.mubr.bf16.gmra.mrb[28].mxu1 %v10166_v29  ;;  %v10294_v29 = vcombine.low %v3495_v49, %v3499_v21  ;;  %v3368_v49 = vld [vmem:[%s16044_s2 + $0x1d8] sm:$0xff] }
 0x3ff   : > { %6317 = vmatpush1.bf16.msra.mxu1 %v14391_v6  ;;  %6047 = vmatprep.mubr.bf16.mxu1 %v10175_v32  ;;  %v3391_v6 = vld [vmem:[%s16044_s2 + $0x290] sm:$0xff]  ;;  %v10303_v32 = vcombine.high %v3503_v62, %v3507_v0  ;;  %v3372_v21 = vld [vmem:[%s16044_s2 + $0x1f8] sm:$0xff] }
 0x400   : > { %6318 = vmatprep.subr.bf16.mxu1 %v14407_v2  ;;  %v10182_v2 = vcombine.low %v3383_v31, %v3387_v23  ;;  %v10191_v11 = vcombine.high %v3391_v6, %v3395_v53  ;;  %v10190_v37 = vcombine.low %v3391_v6, %v3395_v53  ;;  %v3511_v31 = vld [vmem:[%s16044_s2 + $0x650] sm:$0xff] }
 0x401   : > { %v3515_v23 = vld [vmem:[%s16044_s2 + $0x670] sm:$0xff] }
 0x402   : > { %v3519_v6 = vld [vmem:[%s16044_s2 + $0x690] sm:$0xff] }
 0x403   : > { %6319 = vmatpush1.bf16.msra.mxu1 %v14405_v57  ;;  %v3403_v57 = vld [vmem:[%s16044_s2 + $0x2f0] sm:$0xff] }
 0x404   : > { %v10199_v33 = vcombine.high %v3399_v48, %v3403_v57  ;;  %v10198_v55 = vcombine.low %v3399_v48, %v3403_v57  ;;  %v3523_v53 = vld [vmem:[%s16044_s2 + $0x6b0] sm:$0xff] }
 0x405   : > { %v3527_v48 = vld [vmem:[%s16044_s2 + $0x6d0] sm:$0xff] }
 0x406   : > { %6048 = vmatmul.mubr.bf16.gmra.mrb[32].mxu1 %v10174_v26  ;;  %v10302_v26 = vcombine.low %v3503_v62, %v3507_v0  ;;  %v3531_v57 = vld [vmem:[%s16044_s2 + $0x6f0] sm:$0xff]  ;;  %v3376_v62 = vld [vmem:[%s16044_s2 + $0x218] sm:$0xff] }
 0x407   : > { %6057 = vmatprep.mubr.bf16.mxu1 %v10183_v47  ;;  %v10311_v47 = vcombine.high %v3511_v31, %v3515_v23  ;;  %v3380_v0 = vld [vmem:[%s16044_s2 + $0x238] sm:$0xff] }
 0x40e   : > { %6058 = vmatmul.mubr.bf16.gmra.mrb[36].mxu1 %v10182_v2  ;;  %v10310_v2 = vcombine.low %v3511_v31, %v3515_v23  ;;  %v3384_v31 = vld [vmem:[%s16044_s2 + $0x258] sm:$0xff] }
 0x40f   : > { %6067 = vmatprep.mubr.bf16.mxu1 %v10191_v11  ;;  %v10319_v11 = vcombine.high %v3519_v6, %v3523_v53  ;;  %v3388_v23 = vld [vmem:[%s16044_s2 + $0x278] sm:$0xff] }
 0x416   : > { %6068 = vmatmul.mubr.bf16.gmra.mrb[40].mxu1 %v10190_v37  ;;  %v10318_v37 = vcombine.low %v3519_v6, %v3523_v53  ;;  %v3392_v6 = vld [vmem:[%s16044_s2 + $0x298] sm:$0xff] }
 0x417   : > { %6077 = vmatprep.mubr.bf16.mxu1 %v10199_v33  ;;  %v10327_v33 = vcombine.high %v3527_v48, %v3531_v57  ;;  %v3396_v53 = vld [vmem:[%s16044_s2 + $0x2b8] sm:$0xff] }
 0x41e   : > { %6078 = vmatmul.mubr.bf16.gmra.mrb[44].mxu1 %v10198_v55  ;;  %v10326_v55 = vcombine.low %v3527_v48, %v3531_v57  ;;  %v3400_v48 = vld [vmem:[%s16044_s2 + $0x2d8] sm:$0xff] }
 0x41f   : > { %6087 = vmatprep.mubr.bf16.mxu1 %v10207_v24  ;;  %v10335_v24 = vcombine.high %v3535_v38, %v3539_v18  ;;  %v3404_v57 = vld [vmem:[%s16044_s2 + $0x2f8] sm:$0xff] }
 0x426   : > { %6088 = vmatmul.mubr.bf16.gmra.mrb[48].mxu1 %v10206_v61  ;;  %v10334_v61 = vcombine.low %v3535_v38, %v3539_v18  ;;  %v3408_v38 = vld [vmem:[%s16044_s2 + $0x318] sm:$0xff] }
 0x427   : > { %6097 = vmatprep.mubr.bf16.mxu1 %v10215_v1  ;;  %v10343_v1 = vcombine.high %v3543_v7, %v3547_v16  ;;  %v3412_v18 = vld [vmem:[%s16044_s2 + $0x338] sm:$0xff] }
 0x42e   : > { %6098 = vmatmul.mubr.bf16.gmra.mrb[52].mxu1 %v10214_v60  ;;  %v10342_v60 = vcombine.low %v3543_v7, %v3547_v16  ;;  %v3416_v7 = vld [vmem:[%s16044_s2 + $0x358] sm:$0xff] }
 0x42f   : > { %6107 = vmatprep.mubr.bf16.mxu1 %v10223_v58  ;;  %v10351_v58 = vcombine.high %v3551_v28, %v3555_v27  ;;  %v3420_v16 = vld [vmem:[%s16044_s2 + $0x378] sm:$0xff] }
 0x436   : > { %6108 = vmatmul.mubr.bf16.gmra.mrb[56].mxu1 %v10222_v12  ;;  %v10350_v12 = vcombine.low %v3551_v28, %v3555_v27  ;;  %v3424_v28 = vld [vmem:[%s16044_s2 + $0x398] sm:$0xff] }
 0x437   : > { %6117 = vmatprep.mubr.bf16.mxu1 %v10231_v3  ;;  %v10359_v3 = vcombine.high %v3559_v25, %v3563_v56  ;;  %v3428_v27 = vld [vmem:[%s16044_s2 + $0x3b8] sm:$0xff] }
 0x43e   : > { %6118 = vmatmul.mubr.bf16.gmra.mrb[60].mxu1 %v10230_v5  ;;  %v10358_v5 = vcombine.low %v3559_v25, %v3563_v56  ;;  %v3432_v25 = vld [vmem:[%s16044_s2 + $0x3d8] sm:$0xff] }
 0x43f   : > { %6127 = vmatprep.mubr.bf16.mxu1 %v10239_v51  ;;  %v10113_v51 = vcombine.high %v3312_v20, %v3316_v34  ;;  %v3436_v56 = vld [vmem:[%s16044_s2 + $0x3f8] sm:$0xff] }
 0x446   : > { %6128 = vmatmul.mubr.bf16.gmra.mrb[64].mxu1 %v10238_v8  ;;  %v10112_v8 = vcombine.low %v3312_v20, %v3316_v34  ;;  %v3440_v20 = vld [vmem:[%s16044_s2 + $0x418] sm:$0xff] }
 0x447   : > { %6137 = vmatprep.mubr.bf16.mxu1 %v10247_v59  ;;  %v10121_v59 = vcombine.high %v3320_v52, %v3324_v36  ;;  %v3444_v34 = vld [vmem:[%s16044_s2 + $0x438] sm:$0xff] }
 0x44e   : > { %6138 = vmatmul.mubr.bf16.gmra.mrb[68].mxu1 %v10246_v15  ;;  %v10120_v15 = vcombine.low %v3320_v52, %v3324_v36  ;;  %v3448_v52 = vld [vmem:[%s16044_s2 + $0x458] sm:$0xff] }
 0x44f   : > { %6147 = vmatprep.mubr.bf16.mxu1 %v10255_v19  ;;  %v10129_v19 = vcombine.high %v3328_v46, %v3332_v17  ;;  %v3452_v36 = vld [vmem:[%s16044_s2 + $0x478] sm:$0xff] }
 0x456   : > { %6148 = vmatmul.mubr.bf16.gmra.mrb[72].mxu1 %v10254_v13  ;;  %v10128_v13 = vcombine.low %v3328_v46, %v3332_v17  ;;  %v3456_v46 = vld [vmem:[%s16044_s2 + $0x498] sm:$0xff] }
 0x457   : > { %6157 = vmatprep.mubr.bf16.mxu1 %v10263_v63  ;;  %v10137_v63 = vcombine.high %v3336_v41, %v3340_v40  ;;  %v3460_v17 = vld [vmem:[%s16044_s2 + $0x4b8] sm:$0xff] }
 0x45e   : > { %6158 = vmatmul.mubr.bf16.gmra.mrb[76].mxu1 %v10262_v39  ;;  %v10136_v39 = vcombine.low %v3336_v41, %v3340_v40  ;;  %v3464_v41 = vld [vmem:[%s16044_s2 + $0x4d8] sm:$0xff] }
 0x45f   : > { %6167 = vmatprep.mubr.bf16.mxu1 %v10271_v50  ;;  %v10145_v50 = vcombine.high %v3344_v35, %v3348_v14  ;;  %v3468_v40 = vld [vmem:[%s16044_s2 + $0x4f8] sm:$0xff] }
 0x466   : > { %6168 = vmatmul.mubr.bf16.gmra.mrb[80].mxu1 %v10270_v22  ;;  %v10144_v22 = vcombine.low %v3344_v35, %v3348_v14  ;;  %v3472_v35 = vld [vmem:[%s16044_s2 + $0x518] sm:$0xff] }
 0x467   : > { %6177 = vmatprep.mubr.bf16.mxu1 %v10279_v30  ;;  %v10153_v30 = vcombine.high %v3352_v43, %v3356_v4  ;;  %v3476_v14 = vld [vmem:[%s16044_s2 + $0x538] sm:$0xff] }
 0x46e   : > { %6178 = vmatmul.mubr.bf16.gmra.mrb[84].mxu1 %v10278_v44  ;;  %v10152_v44 = vcombine.low %v3352_v43, %v3356_v4  ;;  %v3480_v43 = vld [vmem:[%s16044_s2 + $0x558] sm:$0xff] }
 0x46f   : > { %6187 = vmatprep.mubr.bf16.mxu1 %v10287_v45  ;;  %v10161_v45 = vcombine.high %v3360_v10, %v3364_v42  ;;  %v3484_v4 = vld [vmem:[%s16044_s2 + $0x578] sm:$0xff] }
 0x476   : > { %6188 = vmatmul.mubr.bf16.gmra.mrb[88].mxu1 %v10286_v9  ;;  %v10160_v9 = vcombine.low %v3360_v10, %v3364_v42  ;;  %v3488_v10 = vld [vmem:[%s16044_s2 + $0x598] sm:$0xff] }
 0x477   : > { %6197 = vmatprep.mubr.bf16.mxu1 %v10295_v54  ;;  %v10169_v54 = vcombine.high %v3368_v49, %v3372_v21  ;;  %v3492_v42 = vld [vmem:[%s16044_s2 + $0x5b8] sm:$0xff] }
 0x47e   : > { %6198 = vmatmul.mubr.bf16.gmra.mrb[92].mxu1 %v10294_v29  ;;  %v10168_v29 = vcombine.low %v3368_v49, %v3372_v21  ;;  %v3496_v49 = vld [vmem:[%s16044_s2 + $0x5d8] sm:$0xff] }
 0x47f   : > { %6207 = vmatprep.mubr.bf16.mxu1 %v10303_v32  ;;  %v10177_v32 = vcombine.high %v3376_v62, %v3380_v0  ;;  %v3500_v21 = vld [vmem:[%s16044_s2 + $0x5f8] sm:$0xff] }
 0x486   : > { %6208 = vmatmul.mubr.bf16.gmra.mrb[96].mxu1 %v10302_v26  ;;  %v10176_v26 = vcombine.low %v3376_v62, %v3380_v0  ;;  %v3504_v62 = vld [vmem:[%s16044_s2 + $0x618] sm:$0xff] }
 0x487   : > { %6217 = vmatprep.mubr.bf16.mxu1 %v10311_v47  ;;  %v10185_v47 = vcombine.high %v3384_v31, %v3388_v23  ;;  %v3508_v0 = vld [vmem:[%s16044_s2 + $0x638] sm:$0xff] }
 0x48e   : > { %6218 = vmatmul.mubr.bf16.gmra.mrb[100].mxu1 %v10310_v2  ;;  %v10184_v2 = vcombine.low %v3384_v31, %v3388_v23  ;;  %v3512_v31 = vld [vmem:[%s16044_s2 + $0x658] sm:$0xff] }
 0x48f   : > { %6227 = vmatprep.mubr.bf16.mxu1 %v10319_v11  ;;  %v10193_v11 = vcombine.high %v3392_v6, %v3396_v53  ;;  %v3516_v23 = vld [vmem:[%s16044_s2 + $0x678] sm:$0xff] }
 0x496   : > { %6228 = vmatmul.mubr.bf16.gmra.mrb[104].mxu1 %v10318_v37  ;;  %v10192_v37 = vcombine.low %v3392_v6, %v3396_v53  ;;  %v3520_v6 = vld [vmem:[%s16044_s2 + $0x698] sm:$0xff] }
 0x497   : > { %6237 = vmatprep.mubr.bf16.mxu1 %v10327_v33  ;;  %v10201_v33 = vcombine.high %v3400_v48, %v3404_v57  ;;  %v3524_v53 = vld [vmem:[%s16044_s2 + $0x6b8] sm:$0xff] }
 0x49e   : > { %6238 = vmatmul.mubr.bf16.gmra.mrb[108].mxu1 %v10326_v55  ;;  %v10200_v55 = vcombine.low %v3400_v48, %v3404_v57  ;;  %v3528_v48 = vld [vmem:[%s16044_s2 + $0x6d8] sm:$0xff] }
 0x49f   : > { %6247 = vmatprep.mubr.bf16.mxu1 %v10335_v24  ;;  %v10209_v24 = vcombine.high %v3408_v38, %v3412_v18  ;;  %v3532_v57 = vld [vmem:[%s16044_s2 + $0x6f8] sm:$0xff] }
 0x4a6   : > { %6248 = vmatmul.mubr.bf16.gmra.mrb[112].mxu1 %v10334_v61  ;;  %v10208_v61 = vcombine.low %v3408_v38, %v3412_v18  ;;  %v3536_v38 = vld [vmem:[%s16044_s2 + $0x718] sm:$0xff] }
 0x4a7   : > { %6257 = vmatprep.mubr.bf16.mxu1 %v10343_v1  ;;  %v10217_v1 = vcombine.high %v3416_v7, %v3420_v16  ;;  %v3540_v18 = vld [vmem:[%s16044_s2 + $0x738] sm:$0xff] }
 0x4ae   : > { %6258 = vmatmul.mubr.bf16.gmra.mrb[116].mxu1 %v10342_v60  ;;  %v10216_v60 = vcombine.low %v3416_v7, %v3420_v16 }
 0x4af   : > { %6267 = vmatprep.mubr.bf16.mxu1 %v10351_v58  ;;  %v10225_v58 = vcombine.high %v3424_v28, %v3428_v27 }
 0x4b6   : > { %6268 = vmatmul.mubr.bf16.gmra.mrb[120].mxu1 %v10350_v12  ;;  %v10224_v12 = vcombine.low %v3424_v28, %v3428_v27  ;;  %v10337_v27 = vcombine.high %v3536_v38, %v3540_v18 }
 0x4b7   : > { %6277 = vmatprep.mubr.bf16.mxu1 %v10359_v3  ;;  %v10233_v3 = vcombine.high %v3432_v25, %v3436_v56 }
 0x4be   : > { %6278 = vmatmul.mubr.bf16.gmra.mrb[124].mxu1 %v10358_v5  ;;  %v10232_v5 = vcombine.low %v3432_v25, %v3436_v56 }
 0x4bf   : > { %6320 = vmatprep.mubr.bf16.mxu1 %v10113_v51  ;;  %v10241_v51 = vcombine.high %v3440_v20, %v3444_v34 }
 0x4c6   : > { %6321 = vmatmul.mubr.bf16.vlgmr.msra.gmra.mrb[0].mxu1 %v10112_v8  ;;  %v10240_v8 = vcombine.low %v3440_v20, %v3444_v34 }
 0x4c7   : > { %6330 = vmatprep.mubr.bf16.mxu1 %v10121_v59  ;;  %v10249_v59 = vcombine.high %v3448_v52, %v3452_v36 }
 0x4ce   : > { %6331 = vmatmul.mubr.bf16.gmra.mrb[4].mxu1 %v10120_v15  ;;  %v10248_v15 = vcombine.low %v3448_v52, %v3452_v36  ;;  %v3544_v52 = vld [vmem:[%s16044_s2 + $0x758] sm:$0xff] }
 0x4cf   : > { %6340 = vmatprep.mubr.bf16.mxu1 %v10129_v19  ;;  %v10257_v19 = vcombine.high %v3456_v46, %v3460_v17  ;;  %v3548_v36 = vld [vmem:[%s16044_s2 + $0x778] sm:$0xff] }
 0x4d6   : > { %6341 = vmatmul.mubr.bf16.gmra.mrb[8].mxu1 %v10128_v13  ;;  %v10256_v13 = vcombine.low %v3456_v46, %v3460_v17  ;;  %v16216_v46 = vld [vmem:[#allocation78_spill] sm:$0xff] }
 0x4d7   : > { %6350 = vmatprep.mubr.bf16.mxu1 %v10137_v63  ;;  %v10265_v63 = vcombine.high %v3464_v41, %v3468_v40 }
 0x4de   : > { %6351 = vmatmul.mubr.bf16.gmra.mrb[12].mxu1 %v10136_v39  ;;  %v10264_v39 = vcombine.low %v3464_v41, %v3468_v40 }
 0x4df   : > { %6360 = vmatprep.mubr.bf16.mxu1 %v10145_v50  ;;  %v10273_v50 = vcombine.high %v3472_v35, %v3476_v14 }
 0x4e6   : > { %6361 = vmatmul.mubr.bf16.gmra.mrb[16].mxu1 %v10144_v22  ;;  %v10272_v22 = vcombine.low %v3472_v35, %v3476_v14 }
 0x4e7   : > { %6370 = vmatprep.mubr.bf16.mxu1 %v10153_v30  ;;  %v10281_v30 = vcombine.high %v3480_v43, %v3484_v4 }
 0x4ee   : > { %6371 = vmatmul.mubr.bf16.gmra.mrb[20].mxu1 %v10152_v44  ;;  %v10280_v44 = vcombine.low %v3480_v43, %v3484_v4 }
 0x4ef   : > { %6380 = vmatprep.mubr.bf16.mxu1 %v10161_v45  ;;  %v10289_v45 = vcombine.high %v3488_v10, %v3492_v42 }
 0x4f6   : > { %6381 = vmatmul.mubr.bf16.gmra.mrb[24].mxu1 %v10160_v9  ;;  %v10288_v9 = vcombine.low %v3488_v10, %v3492_v42  ;;  %v3552_v10 = vld [vmem:[%s16044_s2 + $0x798] sm:$0xff] }
 0x4f7   : > { %6390 = vmatprep.mubr.bf16.mxu1 %v10169_v54  ;;  %v10297_v54 = vcombine.high %v3496_v49, %v3500_v21  ;;  %v3556_v42 = vld [vmem:[%s16044_s2 + $0x7b8] sm:$0xff] }
 0x4fe   : > { %6391 = vmatmul.mubr.bf16.gmra.mrb[28].mxu1 %v10168_v29  ;;  %v10296_v29 = vcombine.low %v3496_v49, %v3500_v21  ;;  %v16218_v49 = vld [vmem:[#allocation80_spill] sm:$0xff] }
 0x4ff   : > { %6400 = vmatprep.mubr.bf16.mxu1 %v10177_v32  ;;  %v10305_v32 = vcombine.high %v3504_v62, %v3508_v0 }
 0x506   : > { %6401 = vmatmul.mubr.bf16.gmra.mrb[32].mxu1 %v10176_v26  ;;  %v10304_v26 = vcombine.low %v3504_v62, %v3508_v0 }
 0x507   : > { %6410 = vmatprep.mubr.bf16.mxu1 %v10185_v47  ;;  %v10313_v47 = vcombine.high %v3512_v31, %v3516_v23 }
 0x50e   : > { %6411 = vmatmul.mubr.bf16.gmra.mrb[36].mxu1 %v10184_v2  ;;  %v10312_v2 = vcombine.low %v3512_v31, %v3516_v23 }
 0x50f   : > { %6420 = vmatprep.mubr.bf16.mxu1 %v10193_v11  ;;  %v10321_v11 = vcombine.high %v3520_v6, %v3524_v53 }
 0x516   : > { %6421 = vmatmul.mubr.bf16.gmra.mrb[40].mxu1 %v10192_v37  ;;  %v10320_v37 = vcombine.low %v3520_v6, %v3524_v53 }
 0x517   : > { %6430 = vmatprep.mubr.bf16.mxu1 %v10201_v33  ;;  %v10329_v33 = vcombine.high %v3528_v48, %v3532_v57 }
 0x51e   : > { %6431 = vmatmul.mubr.bf16.gmra.mrb[44].mxu1 %v10200_v55 }
 0x51f   : > { %6440 = vmatprep.mubr.bf16.mxu1 %v10209_v24  ;;  %v16214_v24 = vld [vmem:[#allocation76_spill] sm:$0xff] }
 0x526   : > { %6441 = vmatmul.mubr.bf16.gmra.mrb[48].mxu1 %v10208_v61  ;;  %v10328_v61 = vcombine.low %v3528_v48, %v3532_v57  ;;  %v3560_v48 = vld [vmem:[%s16044_s2 + $0x7d8] sm:$0xff] }
 0x527   : > { %6450 = vmatprep.mubr.bf16.mxu1 %v10217_v1  ;;  %v3564_v57 = vld [vmem:[%s16044_s2 + $0x7f8] sm:$0xff]  ;;  %s668_s2 = scalar_lea.vmem [#allocation3], %s9957_s24  ;;  %s11738_s24 = scalar_lea.vmem %s11737_s29, 64 }
 0x528   : > { %s9882_s25 = sshll.u32 %s668_s2, 4  ;;  %s15755_s25 = int_to_ptr.vmem [resolvable:$true] %s9882_s25 }
 0x529   : > { %s11732_s0 = scalar_lea.vmem %s15755_s25, 32  ;;  %p11739_p0 = scmp.lt.s32.totalorder %s15755_s25, %s11737_s29 }
 0x52a   : > { %p11733_p11 = scmp.ne.s32.totalorder %s15755_s25, %s11732_s0  ;;  %p11740_p1 = scmp.lt.s32.totalorder %s11738_s24, %s11732_s0 }
 0x52c   : > { %p11734_p12 = pnand %p11733_p11, %p11947_p5  ;;  %p11741_p2 = por %p11740_p1, %p11739_p0 }
 0x52e   : > { %6451 = vmatmul.mubr.bf16.gmra.mrb[52].mxu1 %v10216_v60  ;;  %v16215_v60 = vld [vmem:[#allocation75_spill] sm:$0xff]  ;;  %p11735_p13 = pneg %p11734_p12 }
 0x52f   : > { %6460 = vmatprep.mubr.bf16.mxu1 %v10225_v58 }
 0x530   : > { %p11742_p3 = pnand %p11741_p2, %p11735_p13 }
 0x536   : > { %6461 = vmatmul.mubr.bf16.gmra.mrb[56].mxu1 %v10224_v12  ;;  %v11550_v12 = vld [vmem:[%s15801_s6 + $0x4] ss:$16 sps:$4 sm:$0xff]  }
 0x537   : > { %6470 = vmatprep.mubr.bf16.mxu1 %v10233_v3  ;;  %7441 = vmatprep.mubr.bf16.mxu0 %v11550_v12 }
 0x53e   : > { %6471 = vmatmul.mubr.bf16.gmra.mrb[60].mxu1 %v10232_v5 }
 0x53f   : > { %6480 = vmatprep.mubr.bf16.mxu1 %v10241_v51 }
 0x546   : > { %6481 = vmatmul.mubr.bf16.gmra.mrb[64].mxu1 %v10240_v8 }
 0x547   : > { %6490 = vmatprep.mubr.bf16.mxu1 %v10249_v59 }
 0x54e   : > { %6491 = vmatmul.mubr.bf16.gmra.mrb[68].mxu1 %v10248_v15 }
 0x54f   : > { %6500 = vmatprep.mubr.bf16.mxu1 %v10257_v19  ;;  %v10336_v19 = vcombine.low %v3536_v38, %v3540_v18  ;;  %v16220_v38 = vld [vmem:[#allocation82_spill] sm:$0xff] }
 0x556   : > { %6501 = vmatmul.mubr.bf16.gmra.mrb[72].mxu1 %v10256_v13  ;;  %v10345_v13 = vcombine.high %v3544_v52, %v3548_v36 }
 0x557   : > { %6510 = vmatprep.mubr.bf16.mxu1 %v10265_v63  ;;  %v16217_v63 = vld [vmem:[#allocation77_spill] sm:$0xff] }
 0x55e   : > { %6511 = vmatmul.mubr.bf16.gmra.mrb[76].mxu1 %v10264_v39 }
 0x55f   : > { %6520 = vmatprep.mubr.bf16.mxu1 %v10273_v50 }
 0x566   : > { %6521 = vmatmul.mubr.bf16.gmra.mrb[80].mxu1 %v10272_v22 }
 0x567   : > { %6530 = vmatprep.mubr.bf16.mxu1 %v10281_v30 }
 0x56e   : > { %6531 = vmatmul.mubr.bf16.gmra.mrb[84].mxu1 %v10280_v44 }
 0x56f   : > { %6540 = vmatprep.mubr.bf16.mxu1 %v10289_v45 }
 0x576   : > { %6541 = vmatmul.mubr.bf16.gmra.mrb[88].mxu1 %v10288_v9 }
 0x577   : > { %6550 = vmatprep.mubr.bf16.mxu1 %v10297_v54  ;;  %v10344_v54 = vcombine.low %v3544_v52, %v3548_v36  ;;  %v10360_v36 = vcombine.low %v3560_v48, %v3564_v57 }
 0x57e   : > { %6551 = vmatmul.mubr.bf16.gmra.mrb[92].mxu1 %v10296_v29  ;;  %v10353_v29 = vcombine.high %v3552_v10, %v3556_v42 }
 0x57f   : > { %6560 = vmatprep.mubr.bf16.mxu1 %v10305_v32  ;;  %v16219_v32 = vld [vmem:[#allocation79_spill] sm:$0xff] }
 0x586   : > { %6561 = vmatmul.mubr.bf16.gmra.mrb[96].mxu1 %v10304_v26 }
 0x587   : > { %6570 = vmatprep.mubr.bf16.mxu1 %v10313_v47 }
 0x58e   : > { %6571 = vmatmul.mubr.bf16.gmra.mrb[100].mxu1 %v10312_v2 }
 0x58f   : > { %6580 = vmatprep.mubr.bf16.mxu1 %v10321_v11 }
 0x596   : > { %6581 = vmatmul.mubr.bf16.gmra.mrb[104].mxu1 %v10320_v37 }
 0x597   : > { %6590 = vmatprep.mubr.bf16.mxu1 %v10329_v33 }
 0x599   : > { %v6322_v55 = vpop.f32.mrb[0].mxu1 }
 0x59a   : > { %v10743_v7 = vadd.f32 %v6322_v55, %v16214_v24  ;;  %v6324_v16 = vpop.f32.mrb[1].mxu1 }
 0x59b   : > { %v10744_v1 = vadd.f32 %v6324_v16, %v16214_v24  ;;  %v6326_v28 = vpop.f32.mrb[2].mxu1  ;;  %v10352_v24 = vcombine.low %v3552_v10, %v3556_v42  ;;  %v16226_v42 = vld [vmem:[#allocation86_spill] sm:$0xff] }
 0x59c   : > { %v10745_v58 = vadd.f32 %v6326_v28, %v16215_v60  ;;  %v6328_v25 = vpop.f32.mrb[3].mxu1  ;;  %v6641_v3 = vmax.f32 %v10743_v7, 0.0 }
 0x59d   : > { %v10746_v56 = vadd.f32 %v6328_v25, %v16215_v60  ;;  %v6642_v34 = vmax.f32 %v10744_v1, 0.0  ;;  %v16221_v1 = vld [vmem:[#allocation81_spill] sm:$0xff] }
 0x59e   : > { %v6643_v20 = vmax.f32 %v10745_v58, 0.0  ;;  %6591 = vmatmul.mubr.bf16.gmra.mrb[108].mxu1 %v10328_v61  ;;  %v10361_v61 = vcombine.high %v3560_v48, %v3564_v57 }
 0x59f   : > { %v6644_v5 = vmax.f32 %v10746_v56, 0.0  ;;  %6600 = vmatprep.mubr.bf16.mxu1 %v10337_v27 }
 0x5a0   : > { %v6769_v51 = vpack.c.bf16 %v6643_v20, %v6641_v3 }
 0x5a1   : > { %v6770_v8 = vpack.c.bf16 %v6644_v5, %v6642_v34  ;;  %v6332_v59 = vpop.f32.mrb[4].mxu1  ;;  %v16222_v5 = vld [vmem:[#allocation83_spill] sm:$0xff] }
 0x5a2   : > { %v10747_v17 = vadd.f32 %v6332_v59, %v16216_v46  ;;  %v6334_v15 = vpop.f32.mrb[5].mxu1 }
 0x5a3   : > { %v10748_v41 = vadd.f32 %v6334_v15, %v16216_v46  ;;  %v6336_v40 = vpop.f32.mrb[6].mxu1  ;;  %7409 = vmatprep.subr.bf16.mxu0 %v6770_v8  ;;  %v16223_v46 = vld [vmem:[#allocation84_spill] sm:$0xff] }
 0x5a4   : > { %v10749_v35 = vadd.f32 %v6336_v40, %v16217_v63  ;;  %v6338_v14 = vpop.f32.mrb[7].mxu1  ;;  %7410 = vmatpush1.bf16.msra.mxu0 %v6769_v51  ;;  %v6645_v50 = vmax.f32 %v10747_v17, 0.0 }
 0x5a5   : > { %v10750_v39 = vadd.f32 %v6338_v14, %v16217_v63  ;;  %v6646_v4 = vmax.f32 %v10748_v41, 0.0 }
 0x5a6   : > { %v6647_v43 = vmax.f32 %v10749_v35, 0.0  ;;  %6601 = vmatmul.mubr.bf16.gmra.mrb[112].mxu1 %v10336_v19  ;;  %v16224_v35 = vmov 0  }
 0x5a7   : > { %v6648_v22 = vmax.f32 %v10750_v39, 0.0  ;;  %6610 = vmatprep.mubr.bf16.mxu1 %v10345_v13 }
 0x5a8   : > { %v6771_v30 = vpack.c.bf16 %v6647_v43, %v6645_v50  ;;  %v16225_v43 = vld [vmem:[#allocation85_spill] sm:$0xff] }
 0x5a9   : > { %v6772_v44 = vpack.c.bf16 %v6648_v22, %v6646_v4  ;;  %v6342_v45 = vpop.f32.mrb[8].mxu1 }
 0x5aa   : > { %v10751_v21 = vadd.f32 %v6342_v45, %v16218_v49  ;;  %v6344_v9 = vpop.f32.mrb[9].mxu1 }
 0x5ab   : > { %v10752_v62 = vadd.f32 %v6344_v9, %v16218_v49  ;;  %v6346_v0 = vpop.f32.mrb[10].mxu1  ;;  %7411 = vmatprep.subr.bf16.mxu0 %v6772_v44 }
 0x5ac   : > { %v10753_v31 = vadd.f32 %v6346_v0, %v16219_v32  ;;  %v6348_v23 = vpop.f32.mrb[11].mxu1  ;;  %7412 = vmatpush1.bf16.msra.mxu0 %v6771_v30  ;;  %v6649_v47 = vmax.f32 %v10751_v21, 0.0 }
 0x5ad   : > { %v10754_v26 = vadd.f32 %v6348_v23, %v16219_v32  ;;  %v6650_v53 = vmax.f32 %v10752_v62, 0.0 }
 0x5ae   : > { %v6651_v6 = vmax.f32 %v10753_v31, 0.0  ;;  %6611 = vmatmul.mubr.bf16.gmra.mrb[116].mxu1 %v10344_v54  ;;  %v16227_v31 = vld [vmem:[#allocation87_spill] sm:$0xff] }
 0x5af   : > { %v6652_v2 = vmax.f32 %v10754_v26, 0.0  ;;  %6620 = vmatprep.mubr.bf16.mxu1 %v10353_v29 }
 0x5b0   : > { %v6773_v11 = vpack.c.bf16 %v6651_v6, %v6649_v47 }
 0x5b1   : > { %v6774_v37 = vpack.c.bf16 %v6652_v2, %v6650_v53  ;;  %v6352_v33 = vpop.f32.mrb[12].mxu1  ;;  %v16228_v53 = vld [vmem:[#allocation88_spill] sm:$0xff] }
 0x5b2   : > { %v10755_v18 = vadd.f32 %v6352_v33, %v16220_v38  ;;  %v6354_v55 = vpop.f32.mrb[13].mxu1 }
 0x5b3   : > { %v10756_v7 = vadd.f32 %v6354_v55, %v16220_v38  ;;  %v6356_v16 = vpop.f32.mrb[14].mxu1  ;;  %7413 = vmatprep.subr.bf16.mxu0 %v6774_v37 }
 0x5b4   : > { %v10757_v28 = vadd.f32 %v6356_v16, %v16221_v1  ;;  %v6358_v27 = vpop.f32.mrb[15].mxu1  ;;  %7414 = vmatpush1.bf16.msra.mxu0 %v6773_v11  ;;  %v6653_v58 = vmax.f32 %v10755_v18, 0.0 }
 0x5b5   : > { %v10758_v60 = vadd.f32 %v6358_v27, %v16221_v1  ;;  %v6654_v56 = vmax.f32 %v10756_v7, 0.0  ;;  %v16229_v7 = vld [vmem:[#allocation89_spill] sm:$0xff]  ;;  %v16230_v27 = vld [vmem:[#allocation90_spill] sm:$0xff] }
 0x5b6   : > { %v6655_v25 = vmax.f32 %v10757_v28, 0.0  ;;  %6621 = vmatmul.mubr.bf16.gmra.mrb[120].mxu1 %v10352_v24 }
 0x5b7   : > { %v6656_v12 = vmax.f32 %v10758_v60, 0.0  ;;  %6630 = vmatprep.mubr.bf16.mxu1 %v10361_v61 }
 0x5b8   : > { %v6775_v3 = vpack.c.bf16 %v6655_v25, %v6653_v58 }
 0x5b9   : > { %v6776_v20 = vpack.c.bf16 %v6656_v12, %v6654_v56  ;;  %v6362_v34 = vpop.f32.mrb[16].mxu1 }
 0x5ba   : > { %v10759_v51 = vadd.f32 %v6362_v34, %v16222_v5  ;;  %v6364_v52 = vpop.f32.mrb[17].mxu1 }
 0x5bb   : > { %v10760_v8 = vadd.f32 %v6364_v52, %v16222_v5  ;;  %v6366_v59 = vpop.f32.mrb[18].mxu1  ;;  %7415 = vmatprep.subr.bf16.mxu0 %v6776_v20  ;;  %v16231_v52 = vld [vmem:[#allocation91_spill] sm:$0xff] }
 0x5bc   : > { %v10761_v17 = vadd.f32 %v6366_v59, %v16223_v46  ;;  %v6368_v15 = vpop.f32.mrb[19].mxu1  ;;  %7416 = vmatpush1.bf16.msra.mxu0 %v6775_v3  ;;  %v6657_v41 = vmax.f32 %v10759_v51, 0.0 }
 0x5bd   : > { %v10762_v19 = vadd.f32 %v6368_v15, %v16223_v46  ;;  %v6658_v13 = vmax.f32 %v10760_v8, 0.0 }
 0x5be   : > { %v6659_v40 = vmax.f32 %v10761_v17, 0.0  ;;  %6631 = vmatmul.mubr.bf16.gmra.mrb[124].mxu1 %v10360_v36  ;;  %v16232_v17 = vld [vmem:[#allocation92_spill] sm:$0xff] }
 0x5bf   : > { %v6660_v63 = vmax.f32 %v10762_v19, 0.0  ;;  %9516 = vmatprep.mubr.bf16.mxu1 %v16224_v35 }
 0x5c0   : > { %v6777_v14 = vpack.c.bf16 %v6659_v40, %v6657_v41 }
 0x5c1   : > { %v6778_v39 = vpack.c.bf16 %v6660_v63, %v6658_v13  ;;  %v6372_v50 = vpop.f32.mrb[20].mxu1 }
 0x5c2   : > { %v10763_v4 = vadd.f32 %v6372_v50, %v16225_v43  ;;  %v6374_v22 = vpop.f32.mrb[21].mxu1 }
 0x5c3   : > { %v10764_v30 = vadd.f32 %v6374_v22, %v16225_v43  ;;  %v6376_v10 = vpop.f32.mrb[22].mxu1  ;;  %7417 = vmatprep.subr.bf16.mxu0 %v6778_v39 }
 0x5c4   : > { %v10765_v44 = vadd.f32 %v6376_v10, %v16226_v42  ;;  %v6378_v45 = vpop.f32.mrb[23].mxu1  ;;  %7418 = vmatpush1.bf16.msra.mxu0 %v6777_v14  ;;  %v6661_v21 = vmax.f32 %v10763_v4, 0.0  ;;  %v16233_v4 = vld [vmem:[#allocation93_spill] sm:$0xff] }
 0x5c5   : > { %v10766_v49 = vadd.f32 %v6378_v45, %v16226_v42  ;;  %v6662_v54 = vmax.f32 %v10764_v30, 0.0 }
 0x5c6   : > { %v6663_v9 = vmax.f32 %v10765_v44, 0.0  ;;  %v16234_v44 = vld [vmem:[#allocation94_spill] sm:$0xff] }
 0x5c7   : > { %v6664_v62 = vmax.f32 %v10766_v49, 0.0 }
 0x5c8   : > { %v6779_v0 = vpack.c.bf16 %v6663_v9, %v6661_v21 }
 0x5c9   : > { %v6780_v29 = vpack.c.bf16 %v6664_v62, %v6662_v54  ;;  %v6382_v32 = vpop.f32.mrb[24].mxu1 }
 0x5ca   : > { %v10767_v23 = vadd.f32 %v6382_v32, %v16227_v31  ;;  %v6384_v26 = vpop.f32.mrb[25].mxu1 }
 0x5cb   : > { %v10768_v47 = vadd.f32 %v6384_v26, %v16227_v31  ;;  %v6386_v6 = vpop.f32.mrb[26].mxu1  ;;  %7419 = vmatprep.subr.bf16.mxu0 %v6780_v29 }
 0x5cc   : > { %v10769_v2 = vadd.f32 %v6386_v6, %v16228_v53  ;;  %v6388_v11 = vpop.f32.mrb[27].mxu1  ;;  %7420 = vmatpush1.bf16.msra.mxu0 %v6779_v0  ;;  %v6665_v57 = vmax.f32 %v10767_v23, 0.0  ;;  %v16235_v23 = vld [vmem:[#allocation95_spill] sm:$0xff] }
 0x5cd   : > { %v10770_v48 = vadd.f32 %v6388_v11, %v16228_v53  ;;  %v6666_v33 = vmax.f32 %v10768_v47, 0.0 }
 0x5ce   : > { %v6667_v37 = vmax.f32 %v10769_v2, 0.0  ;;  %v16236_v2 = vld [vmem:[#allocation96_spill] sm:$0xff] }
 0x5cf   : > { %v6668_v38 = vmax.f32 %v10770_v48, 0.0 }
 0x5d0   : > { %v6781_v18 = vpack.c.bf16 %v6667_v37, %v6665_v57 }
 0x5d1   : > { %v6782_v55 = vpack.c.bf16 %v6668_v38, %v6666_v33  ;;  %v6392_v24 = vpop.f32.mrb[28].mxu1 }
 0x5d2   : > { %v10771_v16 = vadd.f32 %v6392_v24, %v16229_v7  ;;  %v6394_v61 = vpop.f32.mrb[29].mxu1 }
 0x5d3   : > { %v10772_v1 = vadd.f32 %v6394_v61, %v16229_v7  ;;  %v6396_v28 = vpop.f32.mrb[30].mxu1  ;;  %7421 = vmatprep.subr.bf16.mxu0 %v6782_v55 }
 0x5d4   : > { %v10773_v60 = vadd.f32 %v6396_v28, %v16230_v27  ;;  %v6398_v58 = vpop.f32.mrb[31].mxu1  ;;  %7422 = vmatpush1.bf16.msra.mxu0 %v6781_v18  ;;  %v6669_v56 = vmax.f32 %v10771_v16, 0.0  ;;  %v16237_v16 = vld [vmem:[#allocation97_spill] sm:$0xff] }
 0x5d5   : > { %v10774_v25 = vadd.f32 %v6398_v58, %v16230_v27  ;;  %v6670_v3 = vmax.f32 %v10772_v1, 0.0 }
 0x5d6   : > { %v6671_v12 = vmax.f32 %v10773_v60, 0.0  ;;  %v16238_v60 = vld [vmem:[#allocation98_spill] sm:$0xff] }
 0x5d7   : > { %v6672_v20 = vmax.f32 %v10774_v25, 0.0 }
 0x5d8   : > { %v6783_v34 = vpack.c.bf16 %v6671_v12, %v6669_v56 }
 0x5d9   : > { %v6784_v5 = vpack.c.bf16 %v6672_v20, %v6670_v3  ;;  %v6402_v51 = vpop.f32.mrb[32].mxu1 }
 0x5da   : > { %v10775_v36 = vadd.f32 %v6402_v51, %v16231_v52  ;;  %v6404_v8 = vpop.f32.mrb[33].mxu1 }
 0x5db   : > { %v10776_v59 = vadd.f32 %v6404_v8, %v16231_v52  ;;  %v6406_v46 = vpop.f32.mrb[34].mxu1  ;;  %7423 = vmatprep.subr.bf16.mxu0 %v6784_v5 }
 0x5dc   : > { %v10777_v15 = vadd.f32 %v6406_v46, %v16232_v17  ;;  %v6408_v19 = vpop.f32.mrb[35].mxu1  ;;  %7424 = vmatpush1.bf16.msra.mxu0 %v6783_v34  ;;  %v6673_v40 = vmax.f32 %v10775_v36, 0.0  ;;  %v16239_v36 = vld [vmem:[#allocation99_spill] sm:$0xff] }
 0x5dd   : > { %v10778_v41 = vadd.f32 %v6408_v19, %v16232_v17  ;;  %v6674_v63 = vmax.f32 %v10776_v59, 0.0 }
 0x5de   : > { %v6675_v13 = vmax.f32 %v10777_v15, 0.0  ;;  %v16240_v15 = vld [vmem:[#allocation100_spill] sm:$0xff] }
 0x5df   : > { %v6676_v14 = vmax.f32 %v10778_v41, 0.0 }
 0x5e0   : > { %v6785_v39 = vpack.c.bf16 %v6675_v13, %v6673_v40 }
 0x5e1   : > { %v6786_v50 = vpack.c.bf16 %v6676_v14, %v6674_v63  ;;  %v6412_v43 = vpop.f32.mrb[36].mxu1 }
 0x5e2   : > { %v10779_v22 = vadd.f32 %v6412_v43, %v16233_v4  ;;  %v6414_v30 = vpop.f32.mrb[37].mxu1 }
 0x5e3   : > { %v10780_v10 = vadd.f32 %v6414_v30, %v16233_v4  ;;  %v6416_v42 = vpop.f32.mrb[38].mxu1  ;;  %7425 = vmatprep.subr.bf16.mxu0 %v6786_v50 }
 0x5e4   : > { %v10781_v45 = vadd.f32 %v6416_v42, %v16234_v44  ;;  %v6418_v49 = vpop.f32.mrb[39].mxu1  ;;  %7426 = vmatpush1.bf16.msra.mxu0 %v6785_v39  ;;  %v6677_v9 = vmax.f32 %v10779_v22, 0.0  ;;  %v16241_v22 = vld [vmem:[#allocation101_spill] sm:$0xff] }
 0x5e5   : > { %v10782_v21 = vadd.f32 %v6418_v49, %v16234_v44  ;;  %v6678_v62 = vmax.f32 %v10780_v10, 0.0 }
 0x5e6   : > { %v6679_v54 = vmax.f32 %v10781_v45, 0.0  ;;  %v16242_v45 = vld [vmem:[#allocation102_spill] sm:$0xff] }
 0x5e7   : > { %v6680_v0 = vmax.f32 %v10782_v21, 0.0 }
 0x5e8   : > { %v6787_v29 = vpack.c.bf16 %v6679_v54, %v6677_v9 }
 0x5e9   : > { %v6788_v32 = vpack.c.bf16 %v6680_v0, %v6678_v62  ;;  %v6422_v31 = vpop.f32.mrb[40].mxu1 }
 0x5ea   : > { %v10783_v26 = vadd.f32 %v6422_v31, %v16235_v23  ;;  %v6424_v47 = vpop.f32.mrb[41].mxu1 }
 0x5eb   : > { %v10784_v6 = vadd.f32 %v6424_v47, %v16235_v23  ;;  %v6426_v53 = vpop.f32.mrb[42].mxu1  ;;  %7427 = vmatprep.subr.bf16.mxu0 %v6788_v32 }
 0x5ec   : > { %v10785_v11 = vadd.f32 %v6426_v53, %v16236_v2  ;;  %v6428_v48 = vpop.f32.mrb[43].mxu1  ;;  %7428 = vmatpush1.bf16.msra.mxu0 %v6787_v29  ;;  %v6681_v37 = vmax.f32 %v10783_v26, 0.0  ;;  %v16243_v26 = vld [vmem:[#allocation103_spill] sm:$0xff] }
 0x5ed   : > { %v10786_v57 = vadd.f32 %v6428_v48, %v16236_v2  ;;  %v6682_v38 = vmax.f32 %v10784_v6, 0.0 }
 0x5ee   : > { %v6683_v33 = vmax.f32 %v10785_v11, 0.0  ;;  %v16244_v11 = vld [vmem:[#allocation104_spill] sm:$0xff] }
 0x5ef   : > { %v6684_v18 = vmax.f32 %v10786_v57, 0.0 }
 0x5f0   : > { %v6789_v55 = vpack.c.bf16 %v6683_v33, %v6681_v37 }
 0x5f1   : > { %v6790_v24 = vpack.c.bf16 %v6684_v18, %v6682_v38  ;;  %v6432_v7 = vpop.f32.mrb[44].mxu1 }
 0x5f2   : > { %v10787_v61 = vadd.f32 %v6432_v7, %v16237_v16  ;;  %v6434_v1 = vpop.f32.mrb[45].mxu1 }
 0x5f3   : > { %v10788_v28 = vadd.f32 %v6434_v1, %v16237_v16  ;;  %v6436_v27 = vpop.f32.mrb[46].mxu1  ;;  %7429 = vmatprep.subr.bf16.mxu0 %v6790_v24 }
 0x5f4   : > { %v10789_v58 = vadd.f32 %v6436_v27, %v16238_v60  ;;  %v6438_v25 = vpop.f32.mrb[47].mxu1  ;;  %7430 = vmatpush1.bf16.msra.mxu0 %v6789_v55  ;;  %v6685_v12 = vmax.f32 %v10787_v61, 0.0  ;;  %v16245_v61 = vld [vmem:[#allocation12_spill] sm:$0xff] }
 0x5f5   : > { %v10790_v56 = vadd.f32 %v6438_v25, %v16238_v60  ;;  %v6686_v20 = vmax.f32 %v10788_v28, 0.0 }
 0x5f6   : > { %v6687_v3 = vmax.f32 %v10789_v58, 0.0  ;;  %v16246_v58 = vld [vmem:[#allocation105_spill] sm:$0xff] }
 0x5f7   : > { %v6688_v34 = vmax.f32 %v10790_v56, 0.0 }
 0x5f8   : > { %v6791_v5 = vpack.c.bf16 %v6687_v3, %v6685_v12 }
 0x5f9   : > { %v6792_v51 = vpack.c.bf16 %v6688_v34, %v6686_v20  ;;  %v6442_v52 = vpop.f32.mrb[48].mxu1 }
 0x5fa   : > { %v10791_v8 = vadd.f32 %v6442_v52, %v16239_v36  ;;  %v6444_v59 = vpop.f32.mrb[49].mxu1 }
 0x5fb   : > { %v10792_v46 = vadd.f32 %v6444_v59, %v16239_v36  ;;  %v6446_v17 = vpop.f32.mrb[50].mxu1  ;;  %7431 = vmatprep.subr.bf16.mxu0 %v6792_v51 }
 0x5fc   : > { %v10793_v19 = vadd.f32 %v6446_v17, %v16240_v15  ;;  %v6448_v41 = vpop.f32.mrb[51].mxu1  ;;  %7432 = vmatpush1.bf16.msra.mxu0 %v6791_v5  ;;  %v6689_v13 = vmax.f32 %v10791_v8, 0.0  ;;  %v16247_v8 = vld [vmem:[#allocation14_spill] sm:$0xff] }
 0x5fd   : > { %v10794_v40 = vadd.f32 %v6448_v41, %v16240_v15  ;;  %v6690_v14 = vmax.f32 %v10792_v46, 0.0  ;;  %v16248_v41 = vld [vmem:[#allocation13_spill] sm:$0xff] }
 0x5fe   : > { %v6691_v63 = vmax.f32 %v10793_v19, 0.0  ;;  %v11548_v19 = vld [vmem:[%s15801_s6] ss:$16 sps:$4 sm:$0xff]  }
 0x5ff   : > { %v6692_v39 = vmax.f32 %v10794_v40, 0.0 }
 0x600   : > { %v6793_v50 = vpack.c.bf16 %v6691_v63, %v6689_v13  ;;  %v11553_v63 = vld [vmem:[%s15801_s6 + $0x24] ss:$16 sps:$4 sm:$0xff]  }
 0x601   : > { %v6794_v43 = vpack.c.bf16 %v6692_v39, %v6690_v14  ;;  %v6452_v4 = vpop.f32.mrb[52].mxu1 }
 0x602   : > { %v10795_v30 = vadd.f32 %v6452_v4, %v16241_v22  ;;  %v6454_v10 = vpop.f32.mrb[53].mxu1 }
 0x603   : > { %v10796_v42 = vadd.f32 %v6454_v10, %v16241_v22  ;;  %v6456_v44 = vpop.f32.mrb[54].mxu1  ;;  %7433 = vmatprep.subr.bf16.mxu0 %v6794_v43 }
 0x604   : > { %v10797_v49 = vadd.f32 %v6456_v44, %v16242_v45  ;;  %v6458_v21 = vpop.f32.mrb[55].mxu1  ;;  %7434 = vmatpush1.bf16.msra.mxu0 %v6793_v50  ;;  %v6693_v54 = vmax.f32 %v10795_v30, 0.0 }
 0x605   : > { %v10798_v9 = vadd.f32 %v6458_v21, %v16242_v45  ;;  %v6694_v0 = vmax.f32 %v10796_v42, 0.0  ;;  %v16249_v42 = vld [vmem:[#allocation16_spill] sm:$0xff] }
 0x606   : > { %v6695_v62 = vmax.f32 %v10797_v49, 0.0 }
 0x607   : > { %v6696_v29 = vmax.f32 %v10798_v9, 0.0  ;;  %v11551_v9 = vld [vmem:[%s15801_s6 + $0x20] ss:$16 sps:$4 sm:$0xff]  }
 0x608   : > { %v6795_v32 = vpack.c.bf16 %v6695_v62, %v6693_v54  ;;  %v16250_v54 = vld [vmem:[#allocation15_spill] sm:$0xff] }
 0x609   : > { %v6796_v31 = vpack.c.bf16 %v6696_v29, %v6694_v0  ;;  %v6462_v23 = vpop.f32.mrb[56].mxu1  ;;  %v11556_v29 = vld [vmem:[%s15801_s6 + $0x44] ss:$16 sps:$4 sm:$0xff]  }
 0x60a   : > { %v10799_v47 = vadd.f32 %v6462_v23, %v16243_v26  ;;  %v6464_v6 = vpop.f32.mrb[57].mxu1 }
 0x60b   : > { %v10800_v53 = vadd.f32 %v6464_v6, %v16243_v26  ;;  %v6466_v2 = vpop.f32.mrb[58].mxu1  ;;  %7435 = vmatprep.subr.bf16.mxu0 %v6796_v31 }
 0x60c   : > { %v10801_v48 = vadd.f32 %v6466_v2, %v16244_v11  ;;  %v6468_v57 = vpop.f32.mrb[59].mxu1  ;;  %7436 = vmatpush1.bf16.msra.mxu0 %v6795_v32  ;;  %v6697_v33 = vmax.f32 %v10799_v47, 0.0 }
 0x60d   : > { %v10802_v37 = vadd.f32 %v6468_v57, %v16244_v11  ;;  %v6698_v18 = vmax.f32 %v10800_v53, 0.0  ;;  %v16251_v11 = vld [vmem:[#allocation106_spill] sm:$0xff] }
 0x60e   : > { %v6699_v38 = vmax.f32 %v10801_v48, 0.0 }
 0x60f   : > { %v6700_v55 = vmax.f32 %v10802_v37, 0.0 }
 0x610   : > { %v6797_v24 = vpack.c.bf16 %v6699_v38, %v6697_v33  ;;  %v11554_v38 = vld [vmem:[%s15801_s6 + $0x40] ss:$16 sps:$4 sm:$0xff]  }
 0x611   : > { %v6798_v7 = vpack.c.bf16 %v6700_v55, %v6698_v18  ;;  %v6472_v16 = vpop.f32.mrb[60].mxu1  ;;  %v16252_v18 = vld [vmem:[#allocation18_spill] sm:$0xff] }
 0x612   : > { %v10803_v1 = vadd.f32 %v6472_v16, %v16245_v61  ;;  %v6474_v28 = vpop.f32.mrb[61].mxu1 }
 0x613   : > { %v10804_v27 = vadd.f32 %v6474_v28, %v16245_v61  ;;  %v6476_v60 = vpop.f32.mrb[62].mxu1  ;;  %7437 = vmatprep.subr.bf16.mxu0 %v6798_v7  ;;  %v11559_v7 = vld [vmem:[%s15801_s6 + $0x64] ss:$16 sps:$4 sm:$0xff]  }
 0x614   : > { %v10805_v25 = vadd.f32 %v6476_v60, %v16246_v58  ;;  %v6478_v56 = vpop.f32.mrb[63].mxu1  ;;  %7438 = vmatpush1.bf16.msra.mxu0 %v6797_v24  ;;  %v6701_v3 = vmax.f32 %v10803_v1, 0.0 }
 0x615   : > { %v10806_v12 = vadd.f32 %v6478_v56, %v16246_v58  ;;  %v6702_v34 = vmax.f32 %v10804_v27, 0.0  ;;  %v16253_v56 = vld [vmem:[#allocation17_spill] sm:$0xff] }
 0x616   : > { %v6703_v20 = vmax.f32 %v10805_v25, 0.0 }
 0x617   : > { %v6704_v5 = vmax.f32 %v10806_v12, 0.0 }
 0x618   : > { %v6799_v51 = vpack.c.bf16 %v6703_v20, %v6701_v3 }
 0x619   : > { %v6800_v52 = vpack.c.bf16 %v6704_v5, %v6702_v34  ;;  %v6482_v36 = vpop.f32.mrb[64].mxu1  ;;  %v11557_v5 = vld [vmem:[%s15801_s6 + $0x60] ss:$16 sps:$4 sm:$0xff]  }
 0x61a   : > { %v10807_v59 = vadd.f32 %v6482_v36, %v16247_v8  ;;  %v6484_v46 = vpop.f32.mrb[65].mxu1 }
 0x61b   : > { %v10808_v17 = vadd.f32 %v6484_v46, %v16247_v8  ;;  %v6486_v15 = vpop.f32.mrb[66].mxu1  ;;  %7439 = vmatprep.subr.bf16.mxu0 %v6800_v52  ;;  %v11562_v8 = vld [vmem:[%s15801_s6 + $0x84] ss:$16 sps:$4 sm:$0xff]  }
 0x61c   : > { %v10809_v40 = vadd.f32 %v6486_v15, %v16248_v41  ;;  %v6488_v13 = vpop.f32.mrb[67].mxu1  ;;  %7440 = vmatpush1.bf16.msra.mxu0 %v6799_v51  ;;  %v6705_v39 = vmax.f32 %v10807_v59, 0.0  ;;  %v16254_v51 = vld [vmem:[#allocation107_spill] sm:$0xff] }
 0x61d   : > { %v10810_v14 = vadd.f32 %v6488_v13, %v16248_v41  ;;  %v6706_v43 = vmax.f32 %v10808_v17, 0.0 }
 0x61e   : > { %v6707_v50 = vmax.f32 %v10809_v40, 0.0 }
 0x61f   : > { %v6708_v4 = vmax.f32 %v10810_v14, 0.0  ;;  %7442 = vmatmul.mubr.bf16.vlgmr.msra.gmra.mrb[0].mxu0 %v11548_v19 }
 0x620   : > { %v6801_v22 = vpack.c.bf16 %v6707_v50, %v6705_v39  ;;  %7451 = vmatprep.mubr.bf16.mxu0 %v11553_v63  ;;  %v16255_v63 = vld [vmem:[#allocation20_spill] sm:$0xff] }
 0x621   : > { %v6802_v30 = vpack.c.bf16 %v6708_v4, %v6706_v43  ;;  %v6492_v10 = vpop.f32.mrb[68].mxu1  ;;  %v11560_v4 = vld [vmem:[%s15801_s6 + $0x80] ss:$16 sps:$4 sm:$0xff]  }
 0x622   : > { %v10811_v44 = vadd.f32 %v6492_v10, %v16249_v42  ;;  %v6494_v45 = vpop.f32.mrb[69].mxu1 }
 0x623   : > { %v10812_v49 = vadd.f32 %v6494_v45, %v16249_v42  ;;  %v6496_v21 = vpop.f32.mrb[70].mxu1  ;;  %7602 = vmatprep.subr.bf16.mxu0 %v6802_v30  ;;  %v11565_v42 = vld [vmem:[%s15801_s6 + $0xa4] ss:$16 sps:$4 sm:$0xff]  }
 0x624   : > { %v10813_v62 = vadd.f32 %v6496_v21, %v16250_v54  ;;  %v6498_v0 = vpop.f32.mrb[71].mxu1  ;;  %7603 = vmatpush1.bf16.msra.mxu0 %v6801_v22  ;;  %v6709_v31 = vmax.f32 %v10811_v44, 0.0  ;;  %v16256_v22 = vld [vmem:[#allocation19_spill] sm:$0xff] }
 0x625   : > { %v10814_v32 = vadd.f32 %v6498_v0, %v16250_v54  ;;  %v6710_v26 = vmax.f32 %v10812_v49, 0.0 }
 0x626   : > { %v6711_v23 = vmax.f32 %v10813_v62, 0.0 }
 0x627   : > { %v6712_v47 = vmax.f32 %v10814_v32, 0.0  ;;  %7452 = vmatmul.mubr.bf16.gmra.mrb[4].mxu0 %v11551_v9 }
 0x628   : > { %v6803_v6 = vpack.c.bf16 %v6711_v23, %v6709_v31  ;;  %7461 = vmatprep.mubr.bf16.mxu0 %v11556_v29  ;;  %v16257_v29 = vld [vmem:[#allocation22_spill] sm:$0xff] }
 0x629   : > { %v6804_v53 = vpack.c.bf16 %v6712_v47, %v6710_v26  ;;  %v6502_v2 = vpop.f32.mrb[72].mxu1  ;;  %v11563_v47 = vld [vmem:[%s15801_s6 + $0xa0] ss:$16 sps:$4 sm:$0xff]  }
 0x62a   : > { %v10815_v48 = vadd.f32 %v6502_v2, %v16251_v11  ;;  %v6504_v57 = vpop.f32.mrb[73].mxu1 }
 0x62b   : > { %v10816_v37 = vadd.f32 %v6504_v57, %v16251_v11  ;;  %v6506_v33 = vpop.f32.mrb[74].mxu1  ;;  %7604 = vmatprep.subr.bf16.mxu0 %v6804_v53  ;;  %v11568_v11 = vld [vmem:[%s15801_s6 + $0xc4] ss:$16 sps:$4 sm:$0xff]  }
 0x62c   : > { %v10817_v55 = vadd.f32 %v6506_v33, %v16252_v18  ;;  %v6508_v24 = vpop.f32.mrb[75].mxu1  ;;  %7605 = vmatpush1.bf16.msra.mxu0 %v6803_v6  ;;  %v6713_v61 = vmax.f32 %v10815_v48, 0.0  ;;  %v16258_v6 = vld [vmem:[#allocation21_spill] sm:$0xff] }
 0x62d   : > { %v10818_v16 = vadd.f32 %v6508_v24, %v16252_v18  ;;  %v6714_v28 = vmax.f32 %v10816_v37, 0.0 }
 0x62e   : > { %v6715_v1 = vmax.f32 %v10817_v55, 0.0 }
 0x62f   : > { %v6716_v27 = vmax.f32 %v10818_v16, 0.0  ;;  %7462 = vmatmul.mubr.bf16.gmra.mrb[8].mxu0 %v11554_v38 }
 0x630   : > { %v6805_v60 = vpack.c.bf16 %v6715_v1, %v6713_v61  ;;  %7471 = vmatprep.mubr.bf16.mxu0 %v11559_v7  ;;  %v16259_v7 = vld [vmem:[#allocation108_spill] sm:$0xff] }
 0x631   : > { %v6806_v58 = vpack.c.bf16 %v6716_v27, %v6714_v28  ;;  %v6512_v25 = vpop.f32.mrb[76].mxu1  ;;  %v11566_v27 = vld [vmem:[%s15801_s6 + $0xc0] ss:$16 sps:$4 sm:$0xff]  }
 0x632   : > { %v10819_v12 = vadd.f32 %v6512_v25, %v16253_v56  ;;  %v6514_v3 = vpop.f32.mrb[77].mxu1 }
 0x633   : > { %v10820_v20 = vadd.f32 %v6514_v3, %v16253_v56  ;;  %v6516_v34 = vpop.f32.mrb[78].mxu1  ;;  %7606 = vmatprep.subr.bf16.mxu0 %v6806_v58  ;;  %v11571_v56 = vld [vmem:[%s15801_s6 + $0xe4] ss:$16 sps:$4 sm:$0xff]  }
 0x634   : > { %v10821_v52 = vadd.f32 %v6516_v34, %v16254_v51  ;;  %v6518_v36 = vpop.f32.mrb[79].mxu1  ;;  %7607 = vmatpush1.bf16.msra.mxu0 %v6805_v60  ;;  %v6717_v46 = vmax.f32 %v10819_v12, 0.0  ;;  %v16260_v60 = vld [vmem:[#allocation24_spill] sm:$0xff] }
 0x635   : > { %v10822_v59 = vadd.f32 %v6518_v36, %v16254_v51  ;;  %v6718_v15 = vmax.f32 %v10820_v20, 0.0 }
 0x636   : > { %v6719_v17 = vmax.f32 %v10821_v52, 0.0 }
 0x637   : > { %v6720_v19 = vmax.f32 %v10822_v59, 0.0  ;;  %7472 = vmatmul.mubr.bf16.gmra.mrb[12].mxu0 %v11557_v5 }
 0x638   : > { %v6807_v41 = vpack.c.bf16 %v6719_v17, %v6717_v46  ;;  %7481 = vmatprep.mubr.bf16.mxu0 %v11562_v8  ;;  %v16261_v8 = vld [vmem:[#allocation23_spill] sm:$0xff] }
 0x639   : > { %v6808_v40 = vpack.c.bf16 %v6720_v19, %v6718_v15  ;;  %v6522_v13 = vpop.f32.mrb[80].mxu1  ;;  %v11569_v19 = vld [vmem:[%s15801_s6 + $0xe0] ss:$16 sps:$4 sm:$0xff]  }
 0x63a   : > { %v10823_v14 = vadd.f32 %v6522_v13, %v16255_v63  ;;  %v6524_v39 = vpop.f32.mrb[81].mxu1 }
 0x63b   : > { %v10824_v50 = vadd.f32 %v6524_v39, %v16255_v63  ;;  %v6526_v43 = vpop.f32.mrb[82].mxu1  ;;  %7608 = vmatprep.subr.bf16.mxu0 %v6808_v40  ;;  %v11574_v63 = vld [vmem:[%s15801_s6 + $0x104] ss:$16 sps:$4 sm:$0xff]  }
 0x63c   : > { %v10825_v30 = vadd.f32 %v6526_v43, %v16256_v22  ;;  %v6528_v10 = vpop.f32.mrb[83].mxu1  ;;  %7609 = vmatpush1.bf16.msra.mxu0 %v6807_v41  ;;  %v6721_v45 = vmax.f32 %v10823_v14, 0.0  ;;  %v16262_v41 = vld [vmem:[#allocation109_spill] sm:$0xff] }
 0x63d   : > { %v10826_v44 = vadd.f32 %v6528_v10, %v16256_v22  ;;  %v6722_v21 = vmax.f32 %v10824_v50, 0.0 }
 0x63e   : > { %v6723_v49 = vmax.f32 %v10825_v30, 0.0 }
 0x63f   : > { %v6724_v9 = vmax.f32 %v10826_v44, 0.0  ;;  %7482 = vmatmul.mubr.bf16.gmra.mrb[16].mxu0 %v11560_v4 }
 0x640   : > { %v6809_v54 = vpack.c.bf16 %v6723_v49, %v6721_v45  ;;  %7491 = vmatprep.mubr.bf16.mxu0 %v11565_v42  ;;  %v16263_v42 = vld [vmem:[#allocation26_spill] sm:$0xff] }
 0x641   : > { %v6810_v62 = vpack.c.bf16 %v6724_v9, %v6722_v21  ;;  %v6532_v0 = vpop.f32.mrb[84].mxu1  ;;  %v11572_v9 = vld [vmem:[%s15801_s6 + $0x100] ss:$16 sps:$4 sm:$0xff]  }
 0x642   : > { %v10827_v32 = vadd.f32 %v6532_v0, %v16257_v29  ;;  %v6534_v31 = vpop.f32.mrb[85].mxu1 }
 0x643   : > { %v10828_v23 = vadd.f32 %v6534_v31, %v16257_v29  ;;  %v6536_v26 = vpop.f32.mrb[86].mxu1  ;;  %7610 = vmatprep.subr.bf16.mxu0 %v6810_v62  ;;  %v11577_v29 = vld [vmem:[%s15801_s6 + $0x124] ss:$16 sps:$4 sm:$0xff]  }
 0x644   : > { %v10829_v53 = vadd.f32 %v6536_v26, %v16258_v6  ;;  %v6538_v2 = vpop.f32.mrb[87].mxu1  ;;  %7611 = vmatpush1.bf16.msra.mxu0 %v6809_v54  ;;  %v6725_v57 = vmax.f32 %v10827_v32, 0.0  ;;  %v16264_v54 = vld [vmem:[#allocation25_spill] sm:$0xff] }
 0x645   : > { %v10830_v48 = vadd.f32 %v6538_v2, %v16258_v6  ;;  %v6726_v33 = vmax.f32 %v10828_v23, 0.0 }
 0x646   : > { %v6727_v37 = vmax.f32 %v10829_v53, 0.0 }
 0x647   : > { %v6728_v38 = vmax.f32 %v10830_v48, 0.0  ;;  %7492 = vmatmul.mubr.bf16.gmra.mrb[20].mxu0 %v11563_v47 }
 0x648   : > { %v6811_v18 = vpack.c.bf16 %v6727_v37, %v6725_v57  ;;  %7501 = vmatprep.mubr.bf16.mxu0 %v11568_v11  ;;  %v16265_v11 = vld [vmem:[#allocation28_spill] sm:$0xff] }
 0x649   : > { %v6812_v55 = vpack.c.bf16 %v6728_v38, %v6726_v33  ;;  %v6542_v24 = vpop.f32.mrb[88].mxu1  ;;  %v11575_v38 = vld [vmem:[%s15801_s6 + $0x120] ss:$16 sps:$4 sm:$0xff]  }
 0x64a   : > { %v10831_v16 = vadd.f32 %v6542_v24, %v16259_v7  ;;  %v6544_v61 = vpop.f32.mrb[89].mxu1 }
 0x64b   : > { %v10832_v1 = vadd.f32 %v6544_v61, %v16259_v7  ;;  %v6546_v28 = vpop.f32.mrb[90].mxu1  ;;  %7612 = vmatprep.subr.bf16.mxu0 %v6812_v55  ;;  %v11580_v7 = vld [vmem:[%s15801_s6 + $0x144] ss:$16 sps:$4 sm:$0xff]  }
 0x64c   : > { %v10833_v58 = vadd.f32 %v6546_v28, %v16260_v60  ;;  %v6548_v25 = vpop.f32.mrb[91].mxu1  ;;  %7613 = vmatpush1.bf16.msra.mxu0 %v6811_v18  ;;  %v6729_v3 = vmax.f32 %v10831_v16, 0.0  ;;  %v16266_v18 = vld [vmem:[#allocation27_spill] sm:$0xff] }
 0x64d   : > { %v10834_v12 = vadd.f32 %v6548_v25, %v16260_v60  ;;  %v6730_v34 = vmax.f32 %v10832_v1, 0.0 }
 0x64e   : > { %v6731_v20 = vmax.f32 %v10833_v58, 0.0 }
 0x64f   : > { %v6732_v5 = vmax.f32 %v10834_v12, 0.0  ;;  %7502 = vmatmul.mubr.bf16.gmra.mrb[24].mxu0 %v11566_v27 }
 0x650   : > { %v6813_v51 = vpack.c.bf16 %v6731_v20, %v6729_v3  ;;  %7511 = vmatprep.mubr.bf16.mxu0 %v11571_v56  ;;  %v16267_v56 = vld [vmem:[#allocation110_spill] sm:$0xff] }
 0x651   : > { %v6814_v52 = vpack.c.bf16 %v6732_v5, %v6730_v34  ;;  %v6552_v36 = vpop.f32.mrb[92].mxu1  ;;  %v11578_v5 = vld [vmem:[%s15801_s6 + $0x140] ss:$16 sps:$4 sm:$0xff]  }
 0x652   : > { %v10835_v59 = vadd.f32 %v6552_v36, %v16261_v8  ;;  %v6554_v46 = vpop.f32.mrb[93].mxu1 }
 0x653   : > { %v10836_v17 = vadd.f32 %v6554_v46, %v16261_v8  ;;  %v6556_v15 = vpop.f32.mrb[94].mxu1  ;;  %7614 = vmatprep.subr.bf16.mxu0 %v6814_v52  ;;  %v11583_v8 = vld [vmem:[%s15801_s6 + $0x164] ss:$16 sps:$4 sm:$0xff]  }
 0x654   : > { %v10837_v40 = vadd.f32 %v6556_v15, %v16262_v41  ;;  %v6558_v13 = vpop.f32.mrb[95].mxu1  ;;  %7615 = vmatpush1.bf16.msra.mxu0 %v6813_v51  ;;  %v6733_v39 = vmax.f32 %v10835_v59, 0.0  ;;  %v16268_v51 = vld [vmem:[#allocation30_spill] sm:$0xff] }
 0x655   : > { %v10838_v14 = vadd.f32 %v6558_v13, %v16262_v41  ;;  %v6734_v43 = vmax.f32 %v10836_v17, 0.0 }
 0x656   : > { %v6735_v50 = vmax.f32 %v10837_v40, 0.0 }
 0x657   : > { %v6736_v4 = vmax.f32 %v10838_v14, 0.0  ;;  %7512 = vmatmul.mubr.bf16.gmra.mrb[28].mxu0 %v11569_v19 }
 0x658   : > { %v6815_v22 = vpack.c.bf16 %v6735_v50, %v6733_v39  ;;  %7521 = vmatprep.mubr.bf16.mxu0 %v11574_v63  ;;  %v16269_v63 = vld [vmem:[#allocation29_spill] sm:$0xff] }
 0x659   : > { %v6816_v30 = vpack.c.bf16 %v6736_v4, %v6734_v43  ;;  %v6562_v10 = vpop.f32.mrb[96].mxu1  ;;  %v11581_v4 = vld [vmem:[%s15801_s6 + $0x160] ss:$16 sps:$4 sm:$0xff]  }
 0x65a   : > { %v10839_v44 = vadd.f32 %v6562_v10, %v16263_v42  ;;  %v6564_v45 = vpop.f32.mrb[97].mxu1 }
 0x65b   : > { %v10840_v49 = vadd.f32 %v6564_v45, %v16263_v42  ;;  %v6566_v21 = vpop.f32.mrb[98].mxu1  ;;  %7616 = vmatprep.subr.bf16.mxu0 %v6816_v30  ;;  %v11586_v42 = vld [vmem:[%s15801_s6 + $0x184] ss:$16 sps:$4 sm:$0xff]  }
 0x65c   : > { %v10841_v62 = vadd.f32 %v6566_v21, %v16264_v54  ;;  %v6568_v0 = vpop.f32.mrb[99].mxu1  ;;  %7617 = vmatpush1.bf16.msra.mxu0 %v6815_v22  ;;  %v6737_v31 = vmax.f32 %v10839_v44, 0.0  ;;  %v16270_v22 = vld [vmem:[#allocation111_spill] sm:$0xff] }
 0x65d   : > { %v10842_v32 = vadd.f32 %v6568_v0, %v16264_v54  ;;  %v6738_v26 = vmax.f32 %v10840_v49, 0.0 }
 0x65e   : > { %v6739_v23 = vmax.f32 %v10841_v62, 0.0 }
 0x65f   : > { %v6740_v47 = vmax.f32 %v10842_v32, 0.0  ;;  %7522 = vmatmul.mubr.bf16.gmra.mrb[32].mxu0 %v11572_v9 }
 0x660   : > { %v6817_v6 = vpack.c.bf16 %v6739_v23, %v6737_v31  ;;  %7531 = vmatprep.mubr.bf16.mxu0 %v11577_v29  ;;  %v16271_v29 = vld [vmem:[#allocation32_spill] sm:$0xff] }
 0x661   : > { %v6818_v53 = vpack.c.bf16 %v6740_v47, %v6738_v26  ;;  %v6572_v2 = vpop.f32.mrb[100].mxu1  ;;  %v11584_v47 = vld [vmem:[%s15801_s6 + $0x180] ss:$16 sps:$4 sm:$0xff]  }
 0x662   : > { %v10843_v48 = vadd.f32 %v6572_v2, %v16265_v11  ;;  %v6574_v57 = vpop.f32.mrb[101].mxu1 }
 0x663   : > { %v10844_v37 = vadd.f32 %v6574_v57, %v16265_v11  ;;  %v6576_v33 = vpop.f32.mrb[102].mxu1  ;;  %7618 = vmatprep.subr.bf16.mxu0 %v6818_v53  ;;  %v11589_v11 = vld [vmem:[%s15801_s6 + $0x1a4] ss:$16 sps:$4 sm:$0xff]  }
 0x664   : > { %v10845_v55 = vadd.f32 %v6576_v33, %v16266_v18  ;;  %v6578_v24 = vpop.f32.mrb[103].mxu1  ;;  %7619 = vmatpush1.bf16.msra.mxu0 %v6817_v6  ;;  %v6741_v61 = vmax.f32 %v10843_v48, 0.0  ;;  %v16272_v6 = vld [vmem:[#allocation31_spill] sm:$0xff] }
 0x665   : > { %v10846_v16 = vadd.f32 %v6578_v24, %v16266_v18  ;;  %v6742_v28 = vmax.f32 %v10844_v37, 0.0 }
 0x666   : > { %v6743_v1 = vmax.f32 %v10845_v55, 0.0 }
 0x667   : > { %v6744_v27 = vmax.f32 %v10846_v16, 0.0  ;;  %7532 = vmatmul.mubr.bf16.gmra.mrb[36].mxu0 %v11575_v38 }
 0x668   : > { %v6819_v60 = vpack.c.bf16 %v6743_v1, %v6741_v61  ;;  %7541 = vmatprep.mubr.bf16.mxu0 %v11580_v7  ;;  %v16273_v7 = vld [vmem:[#allocation34_spill] sm:$0xff] }
 0x669   : > { %v6820_v58 = vpack.c.bf16 %v6744_v27, %v6742_v28  ;;  %v6582_v25 = vpop.f32.mrb[104].mxu1  ;;  %v11587_v27 = vld [vmem:[%s15801_s6 + $0x1a0] ss:$16 sps:$4 sm:$0xff]  }
 0x66a   : > { %v10847_v12 = vadd.f32 %v6582_v25, %v16267_v56  ;;  %v6584_v3 = vpop.f32.mrb[105].mxu1 }
 0x66b   : > { %v10848_v20 = vadd.f32 %v6584_v3, %v16267_v56  ;;  %v6586_v34 = vpop.f32.mrb[106].mxu1  ;;  %7620 = vmatprep.subr.bf16.mxu0 %v6820_v58  ;;  %v11592_v56 = vld [vmem:[%s15801_s6 + $0x1c4] ss:$16 sps:$4 sm:$0xff]  }
 0x66c   : > { %v10849_v52 = vadd.f32 %v6586_v34, %v16268_v51  ;;  %v6588_v36 = vpop.f32.mrb[107].mxu1  ;;  %7621 = vmatpush1.bf16.msra.mxu0 %v6819_v60  ;;  %v6745_v46 = vmax.f32 %v10847_v12, 0.0  ;;  %v16274_v60 = vld [vmem:[#allocation33_spill] sm:$0xff] }
 0x66d   : > { %v10850_v59 = vadd.f32 %v6588_v36, %v16268_v51  ;;  %v6746_v15 = vmax.f32 %v10848_v20, 0.0 }
 0x66e   : > { %v6747_v17 = vmax.f32 %v10849_v52, 0.0 }
 0x66f   : > { %v6748_v19 = vmax.f32 %v10850_v59, 0.0  ;;  %7542 = vmatmul.mubr.bf16.gmra.mrb[40].mxu0 %v11578_v5 }
 0x670   : > { %v6821_v41 = vpack.c.bf16 %v6747_v17, %v6745_v46  ;;  %7551 = vmatprep.mubr.bf16.mxu0 %v11583_v8  ;;  %v16275_v8 = vld [vmem:[#allocation112_spill] sm:$0xff] }
 0x671   : > { %v6822_v40 = vpack.c.bf16 %v6748_v19, %v6746_v15  ;;  %v6592_v13 = vpop.f32.mrb[108].mxu1  ;;  %v11590_v19 = vld [vmem:[%s15801_s6 + $0x1c0] ss:$16 sps:$4 sm:$0xff]  }
 0x672   : > { %v10851_v14 = vadd.f32 %v6592_v13, %v16269_v63  ;;  %v6594_v39 = vpop.f32.mrb[109].mxu1 }
 0x673   : > { %v10852_v50 = vadd.f32 %v6594_v39, %v16269_v63  ;;  %v6596_v43 = vpop.f32.mrb[110].mxu1  ;;  %7622 = vmatprep.subr.bf16.mxu0 %v6822_v40  ;;  %v11595_v63 = vld [vmem:[%s15801_s6 + $0x1e4] ss:$16 sps:$4 sm:$0xff]  }
 0x674   : > { %v10853_v30 = vadd.f32 %v6596_v43, %v16270_v22  ;;  %v6598_v10 = vpop.f32.mrb[111].mxu1  ;;  %7623 = vmatpush1.bf16.msra.mxu0 %v6821_v41  ;;  %v6749_v45 = vmax.f32 %v10851_v14, 0.0  ;;  %v16276_v41 = vld [vmem:[#allocation36_spill] sm:$0xff] }
 0x675   : > { %v10854_v44 = vadd.f32 %v6598_v10, %v16270_v22  ;;  %v6750_v21 = vmax.f32 %v10852_v50, 0.0 }
 0x676   : > { %v6751_v49 = vmax.f32 %v10853_v30, 0.0 }
 0x677   : > { %v6752_v9 = vmax.f32 %v10854_v44, 0.0  ;;  %7552 = vmatmul.mubr.bf16.gmra.mrb[44].mxu0 %v11581_v4 }
 0x678   : > { %v6823_v54 = vpack.c.bf16 %v6751_v49, %v6749_v45  ;;  %7561 = vmatprep.mubr.bf16.mxu0 %v11586_v42  ;;  %v16277_v42 = vld [vmem:[#allocation35_spill] sm:$0xff] }
 0x679   : > { %v6824_v62 = vpack.c.bf16 %v6752_v9, %v6750_v21  ;;  %v6602_v0 = vpop.f32.mrb[112].mxu1  ;;  %v11593_v9 = vld [vmem:[%s15801_s6 + $0x1e0] ss:$16 sps:$4 sm:$0xff]  }
 0x67a   : > { %v10855_v32 = vadd.f32 %v6602_v0, %v16271_v29  ;;  %v6604_v31 = vpop.f32.mrb[113].mxu1 }
 0x67b   : > { %v10856_v23 = vadd.f32 %v6604_v31, %v16271_v29  ;;  %v6606_v26 = vpop.f32.mrb[114].mxu1  ;;  %7624 = vmatprep.subr.bf16.mxu0 %v6824_v62  ;;  %v11598_v29 = vld [vmem:[%s15801_s6 + $0xc] ss:$16 sps:$4 sm:$0xff]  }
 0x67c   : > { %v10857_v53 = vadd.f32 %v6606_v26, %v16272_v6  ;;  %v6608_v2 = vpop.f32.mrb[115].mxu1  ;;  %7625 = vmatpush1.bf16.msra.mxu0 %v6823_v54  ;;  %v6753_v57 = vmax.f32 %v10855_v32, 0.0  ;;  %v16278_v54 = vld [vmem:[#allocation113_spill] sm:$0xff] }
 0x67d   : > { %v10858_v48 = vadd.f32 %v6608_v2, %v16272_v6  ;;  %v6754_v33 = vmax.f32 %v10856_v23, 0.0  ;;  %v11596_v2 = vld [vmem:[%s15801_s6 + $0x8] ss:$16 sps:$4 sm:$0xff]  }
 0x67e   : > { %v6755_v37 = vmax.f32 %v10857_v53, 0.0 }
 0x67f   : > { %v6756_v38 = vmax.f32 %v10858_v48, 0.0  ;;  %7562 = vmatmul.mubr.bf16.gmra.mrb[48].mxu0 %v11584_v47  ;;  %v11599_v48 = vld [vmem:[%s15801_s6 + $0x28] ss:$16 sps:$4 sm:$0xff]  }
 0x680   : > { %v6825_v18 = vpack.c.bf16 %v6755_v37, %v6753_v57  ;;  %7571 = vmatprep.mubr.bf16.mxu0 %v11589_v11  ;;  %v11601_v11 = vld [vmem:[%s15801_s6 + $0x2c] ss:$16 sps:$4 sm:$0xff]   ;;  %v11602_v37 = vld [vmem:[%s15801_s6 + $0x48] ss:$16 sps:$4 sm:$0xff]  }
 0x681   : > { %v6826_v55 = vpack.c.bf16 %v6756_v38, %v6754_v33  ;;  %v6612_v24 = vpop.f32.mrb[116].mxu1  ;;  %v11604_v57 = vld [vmem:[%s15801_s6 + $0x4c] ss:$16 sps:$4 sm:$0xff]   ;;  %v11605_v38 = vld [vmem:[%s15801_s6 + $0x68] ss:$16 sps:$4 sm:$0xff]  }
 0x682   : > { %v10859_v16 = vadd.f32 %v6612_v24, %v16273_v7  ;;  %v6614_v61 = vpop.f32.mrb[117].mxu1  ;;  %v11607_v33 = vld [vmem:[%s15801_s6 + $0x6c] ss:$16 sps:$4 sm:$0xff]  }
 0x683   : > { %v10860_v1 = vadd.f32 %v6614_v61, %v16273_v7  ;;  %v6616_v28 = vpop.f32.mrb[118].mxu1  ;;  %7626 = vmatprep.subr.bf16.mxu0 %v6826_v55  ;;  %v11608_v55 = vld [vmem:[%s15801_s6 + $0x88] ss:$16 sps:$4 sm:$0xff]   ;;  %v11613_v24 = vld [vmem:[%s15801_s6 + $0xac] ss:$16 sps:$4 sm:$0xff]  }
 0x684   : > { %v10861_v58 = vadd.f32 %v6616_v28, %v16274_v60  ;;  %v6618_v25 = vpop.f32.mrb[119].mxu1  ;;  %7627 = vmatpush1.bf16.msra.mxu0 %v6825_v18  ;;  %v6757_v3 = vmax.f32 %v10859_v16, 0.0  ;;  %v11610_v18 = vld [vmem:[%s15801_s6 + $0x8c] ss:$16 sps:$4 sm:$0xff]   ;;  %v11611_v7 = vld [vmem:[%s15801_s6 + $0xa8] ss:$16 sps:$4 sm:$0xff]  }
 0x685   : > { %v10862_v12 = vadd.f32 %v6618_v25, %v16274_v60  ;;  %v6758_v34 = vmax.f32 %v10860_v1, 0.0  ;;  %v11616_v16 = vld [vmem:[%s15801_s6 + $0xcc] ss:$16 sps:$4 sm:$0xff]   ;;  %v11614_v61 = vld [vmem:[%s15801_s6 + $0xc8] ss:$16 sps:$4 sm:$0xff]  }
 0x686   : > { %v6759_v20 = vmax.f32 %v10861_v58, 0.0  ;;  %v11619_v1 = vld [vmem:[%s15801_s6 + $0xec] ss:$16 sps:$4 sm:$0xff]   ;;  %v11617_v28 = vld [vmem:[%s15801_s6 + $0xe8] ss:$16 sps:$4 sm:$0xff]  }
 0x687   : > { %v6760_v5 = vmax.f32 %v10862_v12, 0.0  ;;  %7572 = vmatmul.mubr.bf16.gmra.mrb[52].mxu0 %v11587_v27  ;;  %v11622_v27 = vld [vmem:[%s15801_s6 + $0x10c] ss:$16 sps:$4 sm:$0xff]   ;;  %v11620_v60 = vld [vmem:[%s15801_s6 + $0x108] ss:$16 sps:$4 sm:$0xff]  }
 0x688   : > { %v6827_v51 = vpack.c.bf16 %v6759_v20, %v6757_v3  ;;  %7581 = vmatprep.mubr.bf16.mxu0 %v11592_v56  ;;  %v11625_v58 = vld [vmem:[%s15801_s6 + $0x12c] ss:$16 sps:$4 sm:$0xff]   ;;  %v11623_v25 = vld [vmem:[%s15801_s6 + $0x128] ss:$16 sps:$4 sm:$0xff]  }
 0x689   : > { %v6828_v52 = vpack.c.bf16 %v6760_v5, %v6758_v34  ;;  %v6622_v36 = vpop.f32.mrb[120].mxu1  ;;  %v11628_v56 = vld [vmem:[%s15801_s6 + $0x14c] ss:$16 sps:$4 sm:$0xff]   ;;  %v11626_v12 = vld [vmem:[%s15801_s6 + $0x148] ss:$16 sps:$4 sm:$0xff]  }
 0x68a   : > { %v10863_v59 = vadd.f32 %v6622_v36, %v16275_v8  ;;  %v6624_v46 = vpop.f32.mrb[121].mxu1  ;;  %v11631_v3 = vld [vmem:[%s15801_s6 + $0x16c] ss:$16 sps:$4 sm:$0xff]   ;;  %v11629_v20 = vld [vmem:[%s15801_s6 + $0x168] ss:$16 sps:$4 sm:$0xff]  }
 0x68b   : > { %v10864_v17 = vadd.f32 %v6624_v46, %v16275_v8  ;;  %v6626_v15 = vpop.f32.mrb[122].mxu1  ;;  %7628 = vmatprep.subr.bf16.mxu0 %v6828_v52  ;;  %v11634_v34 = vld [vmem:[%s15801_s6 + $0x18c] ss:$16 sps:$4 sm:$0xff]   ;;  %v11632_v5 = vld [vmem:[%s15801_s6 + $0x188] ss:$16 sps:$4 sm:$0xff]  }
 0x68c   : > { %v10865_v40 = vadd.f32 %v6626_v15, %v16276_v41  ;;  %v6628_v13 = vpop.f32.mrb[123].mxu1  ;;  %7629 = vmatpush1.bf16.msra.mxu0 %v6827_v51  ;;  %v6761_v39 = vmax.f32 %v10863_v59, 0.0  ;;  %v11637_v51 = vld [vmem:[%s15801_s6 + $0x1ac] ss:$16 sps:$4 sm:$0xff]   ;;  %v11635_v52 = vld [vmem:[%s15801_s6 + $0x1a8] ss:$16 sps:$4 sm:$0xff]  }
 0x68d   : > { %v10866_v14 = vadd.f32 %v6628_v13, %v16276_v41  ;;  %v6762_v43 = vmax.f32 %v10864_v17, 0.0  ;;  %v11640_v36 = vld [vmem:[%s15801_s6 + $0x1cc] ss:$16 sps:$4 sm:$0xff]   ;;  %v11638_v8 = vld [vmem:[%s15801_s6 + $0x1c8] ss:$16 sps:$4 sm:$0xff]  }
 0x68e   : > { %v6763_v50 = vmax.f32 %v10865_v40, 0.0  ;;  %v11643_v59 = vld [vmem:[%s15801_s6 + $0x1ec] ss:$16 sps:$4 sm:$0xff]   ;;  %v11641_v46 = vld [vmem:[%s15801_s6 + $0x1e8] ss:$16 sps:$4 sm:$0xff]  }
 0x68f   : > { %v6764_v4 = vmax.f32 %v10866_v14, 0.0  ;;  %7582 = vmatmul.mubr.bf16.gmra.mrb[56].mxu0 %v11590_v19  ;;  %v16279_v15 = vld [vmem:[#allocation38_spill] sm:$0xff] }
 0x690   : > { %v6829_v22 = vpack.c.bf16 %v6763_v50, %v6761_v39  ;;  %7591 = vmatprep.mubr.bf16.mxu0 %v11595_v63  ;;  %v16280_v63 = vld [vmem:[#allocation37_spill] sm:$0xff] }
 0x691   : > { %v6830_v30 = vpack.c.bf16 %v6764_v4, %v6762_v43  ;;  %v6632_v10 = vpop.f32.mrb[124].mxu1  ;;  %v11646_v50 = vld [vmem:[%s15803_s8 + $0x4] ss:$8 sps:$4 sm:$0xff]  }
 0x692   : > { %v10867_v44 = vadd.f32 %v6632_v10, %v16277_v42  ;;  %v6634_v45 = vpop.f32.mrb[125].mxu1 }
 0x693   : > { %v10868_v49 = vadd.f32 %v6634_v45, %v16277_v42  ;;  %v6636_v21 = vpop.f32.mrb[126].mxu1  ;;  %7630 = vmatprep.subr.bf16.mxu0 %v6830_v30 }
 0x694   : > { %v10869_v62 = vadd.f32 %v6636_v21, %v16278_v54  ;;  %v6638_v0 = vpop.f32.mrb[127].mxu1  ;;  %7631 = vmatpush1.bf16.msra.mxu0 %v6829_v22  ;;  %v6765_v31 = vmax.f32 %v10867_v44, 0.0 }
 0x695   : > { %v10870_v32 = vadd.f32 %v6638_v0, %v16278_v54  ;;  %v6766_v26 = vmax.f32 %v10868_v49, 0.0  ;;  %v16281_v49 = vld [vmem:[#allocation40_spill] sm:$0xff]  ;;  %v16282_v0 = vld [vmem:[#allocation39_spill] sm:$0xff] }
 0x696   : > { %v6767_v23 = vmax.f32 %v10869_v62, 0.0 }
 0x697   : > { %v6768_v47 = vmax.f32 %v10870_v32, 0.0  ;;  %7592 = vmatmul.mubr.bf16.gmra.mrb[60].mxu0 %v11593_v9 }
 0x698   : > { %v6831_v6 = vpack.c.bf16 %v6767_v23, %v6765_v31  ;;  %7634 = vmatprep.mubr.bf16.mxu0 %v11598_v29 }
 0x699   : > { %v6832_v53 = vpack.c.bf16 %v6768_v47, %v6766_v26 }
 0x69b   : > { %7632 = vmatprep.subr.bf16.mxu0 %v6832_v53 }
 0x69c   : > { %7633 = vmatpush1.bf16.msra.mxu0 %v6831_v6 }
 0x69f   : > { %7635 = vmatmul.mubr.bf16.vlgmr.msra.gmra.mrb[0].mxu0 %v11596_v2 }
 0x6a0   : > { %7644 = vmatprep.mubr.bf16.mxu0 %v11601_v11 }
 0x6a7   : > { %7645 = vmatmul.mubr.bf16.gmra.mrb[4].mxu0 %v11599_v48  ;;  %v16283_v48 = vld [vmem:[#allocation114_spill] sm:$0xff] }
 0x6a8   : > { %7654 = vmatprep.mubr.bf16.mxu0 %v11604_v57 }
 0x6af   : > { %7655 = vmatmul.mubr.bf16.gmra.mrb[8].mxu0 %v11602_v37 }
 0x6b0   : > { %7664 = vmatprep.mubr.bf16.mxu0 %v11607_v33 }
 0x6b7   : > { %7665 = vmatmul.mubr.bf16.gmra.mrb[12].mxu0 %v11605_v38 }
 0x6b8   : > { %7674 = vmatprep.mubr.bf16.mxu0 %v11610_v18  ;;  %v16284_v18 = vld [vmem:[#allocation42_spill] sm:$0xff] }
 0x6bf   : > { %7675 = vmatmul.mubr.bf16.gmra.mrb[16].mxu0 %v11608_v55 }
 0x6c0   : > { %7684 = vmatprep.mubr.bf16.mxu0 %v11613_v24 }
 0x6c7   : > { %7685 = vmatmul.mubr.bf16.gmra.mrb[20].mxu0 %v11611_v7 }
 0x6c8   : > { %7694 = vmatprep.mubr.bf16.mxu0 %v11616_v16 }
 0x6cf   : > { %7695 = vmatmul.mubr.bf16.gmra.mrb[24].mxu0 %v11614_v61 }
 0x6d0   : > { %7704 = vmatprep.mubr.bf16.mxu0 %v11619_v1 }
 0x6d7   : > { %7705 = vmatmul.mubr.bf16.gmra.mrb[28].mxu0 %v11617_v28 }
 0x6d8   : > { %7714 = vmatprep.mubr.bf16.mxu0 %v11622_v27 }
 0x6df   : > { %7715 = vmatmul.mubr.bf16.gmra.mrb[32].mxu0 %v11620_v60 }
 0x6e0   : > { %7724 = vmatprep.mubr.bf16.mxu0 %v11625_v58 }
 0x6e7   : > { %7725 = vmatmul.mubr.bf16.gmra.mrb[36].mxu0 %v11623_v25  ;;  %v16285_v25 = vld [vmem:[#allocation41_spill] sm:$0xff] }
 0x6e8   : > { %7734 = vmatprep.mubr.bf16.mxu0 %v11628_v56 }
 0x6ef   : > { %7735 = vmatmul.mubr.bf16.gmra.mrb[40].mxu0 %v11626_v12 }
 0x6f0   : > { %7744 = vmatprep.mubr.bf16.mxu0 %v11631_v3 }
 0x6f7   : > { %7745 = vmatmul.mubr.bf16.gmra.mrb[44].mxu0 %v11629_v20 }
 0x6f8   : > { %7754 = vmatprep.mubr.bf16.mxu0 %v11634_v34  ;;  %v16286_v34 = vld [vmem:[#allocation115_spill] sm:$0xff] }
 0x6ff   : > { %7755 = vmatmul.mubr.bf16.gmra.mrb[48].mxu0 %v11632_v5 }
 0x700   : > { %7764 = vmatprep.mubr.bf16.mxu0 %v11637_v51 }
 0x707   : > { %7765 = vmatmul.mubr.bf16.gmra.mrb[52].mxu0 %v11635_v52 }
 0x708   : > { %7774 = vmatprep.mubr.bf16.mxu0 %v11640_v36 }
 0x70f   : > { %7775 = vmatmul.mubr.bf16.gmra.mrb[56].mxu0 %v11638_v8 }
 0x710   : > { %7784 = vmatprep.mubr.bf16.mxu0 %v11643_v59 }
 0x717   : > { %7785 = vmatmul.mubr.bf16.gmra.mrb[60].mxu0 %v11641_v46 }
 0x718   : > { %8019 = vmatprep.mubr.bf16.mxu0 %v11646_v50 }
 0x772   : > { %v7636_v17 = vpop.f32.mrb[0].mxu0 }
 0x773   : > { %v10871_v19 = vadd.f32 %v7636_v17, %v16279_v15  ;;  %v7638_v41 = vpop.f32.mrb[1].mxu0 }
 0x774   : > { %v10872_v40 = vadd.f32 %v7638_v41, %v16279_v15  ;;  %v7640_v13 = vpop.f32.mrb[2].mxu0  ;;  %v16287_v41 = vld [vmem:[#allocation44_spill] sm:$0xff] }
 0x775   : > { %v10873_v14 = vadd.f32 %v7640_v13, %v16280_v63  ;;  %v7642_v39 = vpop.f32.mrb[3].mxu0  ;;  %v7795_v4 = vmax.f32 %v10871_v19, 0.0 }
 0x776   : > { %v10874_v43 = vadd.f32 %v7642_v39, %v16280_v63  ;;  %v7796_v30 = vmax.f32 %v10872_v40, 0.0  ;;  %v16288_v39 = vld [vmem:[#allocation43_spill] sm:$0xff] }
 0x777   : > { %v7797_v22 = vmax.f32 %v10873_v14, 0.0 }
 0x778   : > { %v7798_v10 = vmax.f32 %v10874_v43, 0.0 }
 0x779   : > { %v7859_v42 = vpack.c.bf16 %v7797_v22, %v7795_v4 }
 0x77a   : > { %v7860_v44 = vpack.c.bf16 %v7798_v10, %v7796_v30  ;;  %v7646_v45 = vpop.f32.mrb[4].mxu0 }
 0x77b   : > { %v10875_v21 = vadd.f32 %v7646_v45, %v16281_v49  ;;  %v7648_v9 = vpop.f32.mrb[5].mxu0 }
 0x77c   : > { %v10876_v54 = vadd.f32 %v7648_v9, %v16281_v49  ;;  %v7650_v62 = vpop.f32.mrb[6].mxu0  ;;  %7987 = vmatprep.subr.bf16.mxu0 %v7860_v44 }
 0x77d   : > { %v10877_v29 = vadd.f32 %v7650_v62, %v16282_v0  ;;  %v7652_v32 = vpop.f32.mrb[7].mxu0  ;;  %7988 = vmatpush1.bf16.msra.mxu0 %v7859_v42  ;;  %v7799_v23 = vmax.f32 %v10875_v21, 0.0  ;;  %v16289_v21 = vld [vmem:[#allocation46_spill] sm:$0xff] }
 0x77e   : > { %v10878_v31 = vadd.f32 %v7652_v32, %v16282_v0  ;;  %v7800_v47 = vmax.f32 %v10876_v54, 0.0 }
 0x77f   : > { %v7801_v26 = vmax.f32 %v10877_v29, 0.0  ;;  %v16290_v29 = vld [vmem:[#allocation45_spill] sm:$0xff] }
 0x780   : > { %v7802_v6 = vmax.f32 %v10878_v31, 0.0 }
 0x781   : > { %v7861_v53 = vpack.c.bf16 %v7801_v26, %v7799_v23 }
 0x782   : > { %v7862_v2 = vpack.c.bf16 %v7802_v6, %v7800_v47  ;;  %v7656_v11 = vpop.f32.mrb[8].mxu0 }
 0x783   : > { %v10879_v57 = vadd.f32 %v7656_v11, %v16283_v48  ;;  %v7658_v37 = vpop.f32.mrb[9].mxu0 }
 0x784   : > { %v10880_v33 = vadd.f32 %v7658_v37, %v16283_v48  ;;  %v7660_v38 = vpop.f32.mrb[10].mxu0  ;;  %7989 = vmatprep.subr.bf16.mxu0 %v7862_v2 }
 0x785   : > { %v10881_v55 = vadd.f32 %v7660_v38, %v16284_v18  ;;  %v7662_v24 = vpop.f32.mrb[11].mxu0  ;;  %7990 = vmatpush1.bf16.msra.mxu0 %v7861_v53  ;;  %v7803_v16 = vmax.f32 %v10879_v57, 0.0  ;;  %v16291_v57 = vld [vmem:[#allocation116_spill] sm:$0xff]  ;;  %v6997_v38 = vpop.permute.xlu1 %6996 }
 0x786   : > { %v10882_v7 = vadd.f32 %v7662_v24, %v16284_v18  ;;  %v7804_v1 = vmax.f32 %v10880_v33, 0.0 }
 0x787   : > { %v7805_v61 = vmax.f32 %v10881_v55, 0.0 }
 0x788   : > { %v7806_v28 = vmax.f32 %v10882_v7, 0.0 }
 0x789   : > { %v7863_v27 = vpack.c.bf16 %v7805_v61, %v7803_v16 }
 0x78a   : > { %v7864_v60 = vpack.c.bf16 %v7806_v28, %v7804_v1  ;;  %v7666_v58 = vpop.f32.mrb[12].mxu0 }
 0x78b   : > { %v10883_v56 = vadd.f32 %v7666_v58, %v16285_v25  ;;  %v7668_v12 = vpop.f32.mrb[13].mxu0  ;;  %v7002_v58 = vpop.permute.xlu0 %7001 }
 0x78c   : > { %v10884_v3 = vadd.f32 %v7668_v12, %v16285_v25  ;;  %v7670_v20 = vpop.f32.mrb[14].mxu0  ;;  %7991 = vmatprep.subr.bf16.mxu0 %v7864_v60 }
 0x78d   : > { %v10885_v5 = vadd.f32 %v7670_v20, %v16286_v34  ;;  %v7672_v51 = vpop.f32.mrb[15].mxu0  ;;  %7992 = vmatpush1.bf16.msra.mxu0 %v7863_v27  ;;  %v7807_v36 = vmax.f32 %v10883_v56, 0.0  ;;  %v7007_v20 = vpop.permute.xlu1 %7006 }
 0x78e   : > { %v10886_v52 = vadd.f32 %v7672_v51, %v16286_v34  ;;  %v7808_v59 = vmax.f32 %v10884_v3, 0.0 }
 0x78f   : > { %v7809_v8 = vmax.f32 %v10885_v5, 0.0 }
 0x790   : > { %v7810_v46 = vmax.f32 %v10886_v52, 0.0 }
 0x791   : > { %v7865_v17 = vpack.c.bf16 %v7809_v8, %v7807_v36 }
 0x792   : > { %v7866_v15 = vpack.c.bf16 %v7810_v46, %v7808_v59  ;;  %v7676_v19 = vpop.f32.mrb[16].mxu0 }
 0x793   : > { %v10887_v40 = vadd.f32 %v7676_v19, %v16287_v41  ;;  %v7678_v13 = vpop.f32.mrb[17].mxu0  ;;  %v7012_v19 = vpop.permute.xlu0 %7011 }
 0x794   : > { %v10888_v63 = vadd.f32 %v7678_v13, %v16287_v41  ;;  %v7680_v14 = vpop.f32.mrb[18].mxu0  ;;  %7993 = vmatprep.subr.bf16.mxu0 %v7866_v15 }
 0x795   : > { %v10889_v50 = vadd.f32 %v7680_v14, %v16288_v39  ;;  %v7682_v43 = vpop.f32.mrb[19].mxu0  ;;  %7994 = vmatpush1.bf16.msra.mxu0 %v7865_v17  ;;  %v7811_v22 = vmax.f32 %v10887_v40, 0.0  ;;  %v7017_v14 = vpop.permute.xlu1 %7016 }
 0x796   : > { %v10890_v4 = vadd.f32 %v7682_v43, %v16288_v39  ;;  %v7812_v10 = vmax.f32 %v10888_v63, 0.0 }
 0x797   : > { %v7813_v30 = vmax.f32 %v10889_v50, 0.0 }
 0x798   : > { %v7814_v42 = vmax.f32 %v10890_v4, 0.0 }
 0x799   : > { %v7867_v44 = vpack.c.bf16 %v7813_v30, %v7811_v22 }
 0x79a   : > { %v7868_v45 = vpack.c.bf16 %v7814_v42, %v7812_v10  ;;  %v7686_v49 = vpop.f32.mrb[20].mxu0 }
 0x79b   : > { %v10891_v9 = vadd.f32 %v7686_v49, %v16289_v21  ;;  %v7688_v54 = vpop.f32.mrb[21].mxu0  ;;  %v7022_v49 = vpop.permute.xlu0 %7021 }
 0x79c   : > { %v10892_v62 = vadd.f32 %v7688_v54, %v16289_v21  ;;  %v7690_v0 = vpop.f32.mrb[22].mxu0  ;;  %7995 = vmatprep.subr.bf16.mxu0 %v7868_v45 }
 0x79d   : > { %v10893_v32 = vadd.f32 %v7690_v0, %v16290_v29  ;;  %v7692_v31 = vpop.f32.mrb[23].mxu0  ;;  %7996 = vmatpush1.bf16.msra.mxu0 %v7867_v44  ;;  %v7815_v26 = vmax.f32 %v10891_v9, 0.0  ;;  %v7027_v0 = vpop.permute.xlu1 %7026 }
 0x79e   : > { %v10894_v23 = vadd.f32 %v7692_v31, %v16290_v29  ;;  %v7816_v6 = vmax.f32 %v10892_v62, 0.0 }
 0x79f   : > { %v7817_v47 = vmax.f32 %v10893_v32, 0.0 }
 0x7a0   : > { %v7818_v53 = vmax.f32 %v10894_v23, 0.0 }
 0x7a1   : > { %v7869_v2 = vpack.c.bf16 %v7817_v47, %v7815_v26 }
 0x7a2   : > { %v7870_v11 = vpack.c.bf16 %v7818_v53, %v7816_v6  ;;  %v7696_v48 = vpop.f32.mrb[24].mxu0 }
 0x7a3   : > { %v10895_v37 = vadd.f32 %v7696_v48, %v16291_v57  ;;  %v7698_v33 = vpop.f32.mrb[25].mxu0  ;;  %v7032_v48 = vpop.permute.xlu0 %7031 }
 0x7a4   : > { %v10896_v18 = vadd.f32 %v7698_v33, %v16291_v57  ;;  %v7700_v55 = vpop.f32.mrb[26].mxu0  ;;  %7997 = vmatprep.subr.bf16.mxu0 %v7870_v11 }
 0x7a5   : > { %v10897_v24 = vadd.f32 %v7700_v55, %v6997_v38  ;;  %v7702_v7 = vpop.f32.mrb[27].mxu0  ;;  %7998 = vmatpush1.bf16.msra.mxu0 %v7869_v2  ;;  %v7819_v61 = vmax.f32 %v10895_v37, 0.0 }
 0x7a6   : > { %v10898_v16 = vadd.f32 %v7702_v7, %v6997_v38  ;;  %v7820_v28 = vmax.f32 %v10896_v18, 0.0  ;;  %v7037_v18 = vpop.permute.xlu1 %7036 }
 0x7a7   : > { %v7821_v1 = vmax.f32 %v10897_v24, 0.0 }
 0x7a8   : > { %v7822_v27 = vmax.f32 %v10898_v16, 0.0 }
 0x7a9   : > { %v7871_v60 = vpack.c.bf16 %v7821_v1, %v7819_v61 }
 0x7aa   : > { %v7872_v25 = vpack.c.bf16 %v7822_v27, %v7820_v28  ;;  %v7706_v56 = vpop.f32.mrb[28].mxu0 }
 0x7ab   : > { %v10899_v12 = vadd.f32 %v7706_v56, %v7002_v58  ;;  %v7708_v3 = vpop.f32.mrb[29].mxu0 }
 0x7ac   : > { %v10900_v34 = vadd.f32 %v7708_v3, %v7002_v58  ;;  %v7710_v5 = vpop.f32.mrb[30].mxu0  ;;  %7999 = vmatprep.subr.bf16.mxu0 %v7872_v25  ;;  %v7042_v25 = vpop.permute.xlu0 %7041 }
 0x7ad   : > { %v10901_v51 = vadd.f32 %v7710_v5, %v7007_v20  ;;  %v7712_v52 = vpop.f32.mrb[31].mxu0  ;;  %8000 = vmatpush1.bf16.msra.mxu0 %v7871_v60  ;;  %v7823_v8 = vmax.f32 %v10899_v12, 0.0 }
 0x7ae   : > { %v10902_v36 = vadd.f32 %v7712_v52, %v7007_v20  ;;  %v7824_v46 = vmax.f32 %v10900_v34, 0.0  ;;  %v7047_v34 = vpop.permute.xlu1 %7046 }
 0x7af   : > { %v7825_v59 = vmax.f32 %v10901_v51, 0.0 }
 0x7b0   : > { %v7826_v17 = vmax.f32 %v10902_v36, 0.0 }
 0x7b1   : > { %v7873_v15 = vpack.c.bf16 %v7825_v59, %v7823_v8 }
 0x7b2   : > { %v7874_v41 = vpack.c.bf16 %v7826_v17, %v7824_v46  ;;  %v7716_v40 = vpop.f32.mrb[32].mxu0 }
 0x7b3   : > { %v10903_v13 = vadd.f32 %v7716_v40, %v7012_v19  ;;  %v7718_v63 = vpop.f32.mrb[33].mxu0 }
 0x7b4   : > { %v10904_v39 = vadd.f32 %v7718_v63, %v7012_v19  ;;  %v7720_v50 = vpop.f32.mrb[34].mxu0  ;;  %8001 = vmatprep.subr.bf16.mxu0 %v7874_v41  ;;  %v7052_v41 = vpop.permute.xlu0 %7051 }
 0x7b5   : > { %v10905_v43 = vadd.f32 %v7720_v50, %v7017_v14  ;;  %v7722_v4 = vpop.f32.mrb[35].mxu0  ;;  %8002 = vmatpush1.bf16.msra.mxu0 %v7873_v15  ;;  %v7827_v30 = vmax.f32 %v10903_v13, 0.0 }
 0x7b6   : > { %v10906_v22 = vadd.f32 %v7722_v4, %v7017_v14  ;;  %v7828_v42 = vmax.f32 %v10904_v39, 0.0  ;;  %v7057_v39 = vpop.permute.xlu1 %7056 }
 0x7b7   : > { %v7829_v10 = vmax.f32 %v10905_v43, 0.0 }
 0x7b8   : > { %v7830_v44 = vmax.f32 %v10906_v22, 0.0 }
 0x7b9   : > { %v7875_v45 = vpack.c.bf16 %v7829_v10, %v7827_v30 }
 0x7ba   : > { %v7876_v21 = vpack.c.bf16 %v7830_v44, %v7828_v42  ;;  %v7726_v9 = vpop.f32.mrb[36].mxu0 }
 0x7bb   : > { %v10907_v54 = vadd.f32 %v7726_v9, %v7022_v49  ;;  %v7728_v62 = vpop.f32.mrb[37].mxu0 }
 0x7bc   : > { %v10908_v29 = vadd.f32 %v7728_v62, %v7022_v49  ;;  %v7730_v32 = vpop.f32.mrb[38].mxu0  ;;  %8003 = vmatprep.subr.bf16.mxu0 %v7876_v21  ;;  %v7062_v21 = vpop.permute.xlu0 %7061 }
 0x7bd   : > { %v10909_v31 = vadd.f32 %v7730_v32, %v7027_v0  ;;  %v7732_v23 = vpop.f32.mrb[39].mxu0  ;;  %8004 = vmatpush1.bf16.msra.mxu0 %v7875_v45  ;;  %v7831_v47 = vmax.f32 %v10907_v54, 0.0 }
 0x7be   : > { %v10910_v26 = vadd.f32 %v7732_v23, %v7027_v0  ;;  %v7832_v53 = vmax.f32 %v10908_v29, 0.0  ;;  %v7067_v29 = vpop.permute.xlu1 %7066 }
 0x7bf   : > { %v7833_v6 = vmax.f32 %v10909_v31, 0.0 }
 0x7c0   : > { %v7834_v2 = vmax.f32 %v10910_v26, 0.0 }
 0x7c1   : > { %v7877_v11 = vpack.c.bf16 %v7833_v6, %v7831_v47 }
 0x7c2   : > { %v7878_v57 = vpack.c.bf16 %v7834_v2, %v7832_v53  ;;  %v7736_v37 = vpop.f32.mrb[40].mxu0 }
 0x7c3   : > { %v10911_v33 = vadd.f32 %v7736_v37, %v7032_v48  ;;  %v7738_v38 = vpop.f32.mrb[41].mxu0 }
 0x7c4   : > { %v10912_v55 = vadd.f32 %v7738_v38, %v7032_v48  ;;  %v7740_v24 = vpop.f32.mrb[42].mxu0  ;;  %8005 = vmatprep.subr.bf16.mxu0 %v7878_v57  ;;  %v7072_v57 = vpop.permute.xlu0 %7071 }
 0x7c5   : > { %v10913_v7 = vadd.f32 %v7740_v24, %v7037_v18  ;;  %v7742_v16 = vpop.f32.mrb[43].mxu0  ;;  %8006 = vmatpush1.bf16.msra.mxu0 %v7877_v11  ;;  %v7835_v1 = vmax.f32 %v10911_v33, 0.0 }
 0x7c6   : > { %v10914_v61 = vadd.f32 %v7742_v16, %v7037_v18  ;;  %v7836_v27 = vmax.f32 %v10912_v55, 0.0  ;;  %v7077_v55 = vpop.permute.xlu1 %7076 }
 0x7c7   : > { %v7837_v28 = vmax.f32 %v10913_v7, 0.0 }
 0x7c8   : > { %v7838_v60 = vmax.f32 %v10914_v61, 0.0 }
 0x7c9   : > { %v7879_v58 = vpack.c.bf16 %v7837_v28, %v7835_v1 }
 0x7ca   : > { %v7880_v56 = vpack.c.bf16 %v7838_v60, %v7836_v27  ;;  %v7746_v12 = vpop.f32.mrb[44].mxu0 }
 0x7cb   : > { %v10915_v3 = vadd.f32 %v7746_v12, %v7042_v25  ;;  %v7748_v20 = vpop.f32.mrb[45].mxu0 }
 0x7cc   : > { %v10916_v5 = vadd.f32 %v7748_v20, %v7042_v25  ;;  %v7750_v51 = vpop.f32.mrb[46].mxu0  ;;  %8007 = vmatprep.subr.bf16.mxu0 %v7880_v56  ;;  %v7082_v56 = vpop.permute.xlu0 %7081 }
 0x7cd   : > { %v10917_v52 = vadd.f32 %v7750_v51, %v7047_v34  ;;  %v7752_v36 = vpop.f32.mrb[47].mxu0  ;;  %8008 = vmatpush1.bf16.msra.mxu0 %v7879_v58  ;;  %v7839_v59 = vmax.f32 %v10915_v3, 0.0 }
 0x7ce   : > { %v10918_v8 = vadd.f32 %v7752_v36, %v7047_v34  ;;  %v7840_v17 = vmax.f32 %v10916_v5, 0.0  ;;  %v7087_v5 = vpop.permute.xlu1 %7086 }
 0x7cf   : > { %v7841_v46 = vmax.f32 %v10917_v52, 0.0 }
 0x7d0   : > { %v7842_v15 = vmax.f32 %v10918_v8, 0.0 }
 0x7d1   : > { %v7881_v19 = vpack.c.bf16 %v7841_v46, %v7839_v59 }
 0x7d2   : > { %v7882_v40 = vpack.c.bf16 %v7842_v15, %v7840_v17  ;;  %v7756_v13 = vpop.f32.mrb[48].mxu0 }
 0x7d3   : > { %v10919_v63 = vadd.f32 %v7756_v13, %v7052_v41  ;;  %v7758_v14 = vpop.f32.mrb[49].mxu0  ;;  %v11647_v13 = vld [vmem:[%s12264_s3 + $0x40] sm:$0xff]  }
 0x7d4   : > { %v10920_v50 = vadd.f32 %v7758_v14, %v7052_v41  ;;  %v7760_v43 = vpop.f32.mrb[50].mxu0  ;;  %8009 = vmatprep.subr.bf16.mxu0 %v7882_v40  ;;  %v11651_v14 = vld [vmem:[%s15803_s8 + $0x14] ss:$8 sps:$4 sm:$0xff]  }
 0x7d5   : > { %v10921_v4 = vadd.f32 %v7760_v43, %v7057_v39  ;;  %v7762_v22 = vpop.f32.mrb[51].mxu0  ;;  %8010 = vmatpush1.bf16.msra.mxu0 %v7881_v19  ;;  %v7843_v10 = vmax.f32 %v10919_v63, 0.0  ;;  %v11644_v63 = vld [vmem:[%s15803_s8] ss:$8 sps:$4 sm:$0xff]  }
 0x7d6   : > { %v10922_v30 = vadd.f32 %v7762_v22, %v7057_v39  ;;  %v7844_v44 = vmax.f32 %v10920_v50, 0.0  ;;  %v11648_v39 = vld [vmem:[%s12264_s3] sm:$0xff]   ;;  %v11652_v43 = vld [vmem:[%s12264_s3 + $0x48] sm:$0xff]  }
 0x7d7   : > { %v7845_v42 = vmax.f32 %v10921_v4, 0.0  ;;  %v8549_v50 = vsel %vm2011_vm0, %v11648_v39, 0  ;;  %v11649_v4 = vld [vmem:[%s15803_s8 + $0x10] ss:$8 sps:$4 sm:$0xff]   ;;  %v11656_v22 = vld [vmem:[%s15803_s8 + $0x24] ss:$8 sps:$4 sm:$0xff]  }
 0x7d8   : > { %v7846_v45 = vmax.f32 %v10922_v30, 0.0  ;;  %v11653_v30 = vld [vmem:[%s12264_s3 + $0x8] sm:$0xff]   ;;  %v11680_v39 = vld [vmem:[%s15805_s10 + $0x40] sm:$0xff]  }
 0x7d9   : > { %v7883_v49 = vpack.c.bf16 %v7845_v42, %v7843_v10  ;;  %v8552_v10 = vsel %vm2011_vm0, %v11653_v30, 0  ;;  %v11657_v42 = vld [vmem:[%s12264_s3 + $0x50] sm:$0xff]  }
 0x7da   : > { %v7884_v9 = vpack.c.bf16 %v7846_v45, %v7844_v44  ;;  %v7766_v54 = vpop.f32.mrb[52].mxu0  ;;  %v11654_v44 = vld [vmem:[%s15803_s8 + $0x20] ss:$8 sps:$4 sm:$0xff]   ;;  %v11661_v45 = vld [vmem:[%s15803_s8 + $0x34] ss:$8 sps:$4 sm:$0xff]  }
 0x7db   : > { %v10923_v62 = vadd.f32 %v7766_v54, %v7062_v21  ;;  %v7768_v0 = vpop.f32.mrb[53].mxu0  ;;  %v11659_v54 = vld [vmem:[%s15803_s8 + $0x30] ss:$8 sps:$4 sm:$0xff]  }
 0x7dc   : > { %v10924_v32 = vadd.f32 %v7768_v0, %v7062_v21  ;;  %v7770_v31 = vpop.f32.mrb[54].mxu0  ;;  %8011 = vmatprep.subr.bf16.mxu0 %v7884_v9  ;;  %v11662_v9 = vld [vmem:[%s12264_s3 + $0x58] sm:$0xff]  }
 0x7dd   : > { %v10925_v23 = vadd.f32 %v7770_v31, %v7067_v29  ;;  %v7772_v26 = vpop.f32.mrb[55].mxu0  ;;  %8012 = vmatpush1.bf16.msra.mxu0 %v7883_v49  ;;  %v7847_v6 = vmax.f32 %v10923_v62, 0.0  ;;  %v11658_v49 = vld [vmem:[%s12264_s3 + $0x10] sm:$0xff]   ;;  %v11672_v62 = vld [vmem:[%s15805_s10] sm:$0xff]   ;;  %v11663_v0 = vld [vmem:[%s12264_s3 + $0x18] sm:$0xff]  }
 0x7de   : > { %v10926_v47 = vadd.f32 %v7772_v26, %v7067_v29  ;;  %v7848_v2 = vmax.f32 %v10924_v32, 0.0  ;;  %v8555_v21 = vsel %vm2011_vm0, %v11658_v49, 0  ;;  %v8558_v29 = vsel %vm2011_vm0, %v11663_v0, 0  ;;  %v11664_v32 = vld [vmem:[%s12264_s3 + $0x60] sm:$0xff]   ;;  %v11666_v26 = vld [vmem:[%s12264_s3 + $0x68] sm:$0xff]  }
 0x7df   : > { %v7849_v53 = vmax.f32 %v10925_v23, 0.0  ;;  %v11665_v31 = vld [vmem:[%s12264_s3 + $0x20] sm:$0xff]  }
 0x7e0   : > { %v7850_v11 = vmax.f32 %v10926_v47, 0.0  ;;  %v8561_v23 = vsel %vm2011_vm0, %v11665_v31, 0  ;;  %v11667_v47 = vld [vmem:[%s12264_s3 + $0x28] sm:$0xff]   ;;  %v11684_v0 = vld [vmem:[%s15805_s10 + $0x60] sm:$0xff]  }
 0x7e1   : > { %v7885_v48 = vpack.c.bf16 %v7849_v53, %v7847_v6  ;;  %v15312_v6 = vpop.permute.xlu0 %8182  ;;  %v8564_v53 = vsel %vm2011_vm0, %v11667_v47, 0  ;;  %v11685_v31 = vld [vmem:[%s15805_s10 + $0x68] sm:$0xff]  }
 0x7e2   : > { %v7886_v37 = vpack.c.bf16 %v7850_v11, %v7848_v2  ;;  %v7776_v33 = vpop.f32.mrb[56].mxu0  ;;  %v11668_v2 = vld [vmem:[%s12264_s3 + $0x70] sm:$0xff]   ;;  %v15316_v11 = vpop.permute.xlu1 %8187 }
 0x7e3   : > { %v10927_v38 = vadd.f32 %v7776_v33, %v7072_v57  ;;  %v7778_v18 = vpop.f32.mrb[57].mxu0 }
 0x7e4   : > { %v10928_v24 = vadd.f32 %v7778_v18, %v7072_v57  ;;  %v7780_v7 = vpop.f32.mrb[58].mxu0  ;;  %8013 = vmatprep.subr.bf16.mxu0 %v7886_v37 }
 0x7e5   : > { %v10929_v16 = vadd.f32 %v7780_v7, %v7077_v55  ;;  %v7782_v61 = vpop.f32.mrb[59].mxu0  ;;  %8014 = vmatpush1.bf16.msra.mxu0 %v7885_v48  ;;  %v7851_v28 = vmax.f32 %v10927_v38, 0.0  ;;  %v11669_v48 = vld [vmem:[%s12264_s3 + $0x30] sm:$0xff]   ;;  %v15320_v57 = vpop.permute.xlu0 %8192  ;;  %v11670_v38 = vld [vmem:[%s12264_s3 + $0x78] sm:$0xff]  }
 0x7e6   : > { %v10930_v1 = vadd.f32 %v7782_v61, %v7077_v55  ;;  %v7852_v60 = vmax.f32 %v10928_v24, 0.0  ;;  %v15322_v37 = vpop.permute.xlu1 %8197  ;;  %v8567_v33 = vsel %vm2011_vm0, %v11669_v48, 0  ;;  %v11671_v55 = vld [vmem:[%s12264_s3 + $0x38] sm:$0xff]  }
 0x7e7   : > { %v7853_v27 = vmax.f32 %v10929_v16, 0.0  ;;  %v8570_v7 = vsel %vm2011_vm0, %v11671_v55, 0 }
 0x7e8   : > { %v7854_v58 = vmax.f32 %v10930_v1, 0.0  ;;  %v11673_v1 = vld [vmem:[%s15805_s10 + $0x8] sm:$0xff]  }
 0x7e9   : > { %v7887_v25 = vpack.c.bf16 %v7853_v27, %v7851_v28  ;;  %v15326_v18 = vpop.permute.xlu0 %8202 }
 0x7ea   : > { %v7888_v12 = vpack.c.bf16 %v7854_v58, %v7852_v60  ;;  %v7786_v3 = vpop.f32.mrb[60].mxu0  ;;  %v15330_v24 = vpop.permute.xlu1 %8207  ;;  %v11674_v58 = vld [vmem:[%s15805_s10 + $0x10] sm:$0xff]  }
 0x7eb   : > { %v10931_v20 = vadd.f32 %v7786_v3, %v7082_v56  ;;  %v7788_v34 = vpop.f32.mrb[61].mxu0  ;;  %v11675_v3 = vld [vmem:[%s15805_s10 + $0x18] sm:$0xff]  }
 0x7ec   : > { %v10932_v51 = vadd.f32 %v7788_v34, %v7082_v56  ;;  %v7790_v52 = vpop.f32.mrb[62].mxu0  ;;  %8015 = vmatprep.subr.bf16.mxu0 %v7888_v12 }
 0x7ed   : > { %v10933_v36 = vadd.f32 %v7790_v52, %v7087_v5  ;;  %v7792_v8 = vpop.f32.mrb[63].mxu0  ;;  %8016 = vmatpush1.bf16.msra.mxu0 %v7887_v25  ;;  %v7855_v46 = vmax.f32 %v10931_v20, 0.0  ;;  %v15333_v16 = vpop.permute.xlu0 %8212 }
 0x7ee   : > { %v10934_v59 = vadd.f32 %v7792_v8, %v7087_v5  ;;  %v7856_v15 = vmax.f32 %v10932_v51, 0.0  ;;  %v15335_v61 = vpop.permute.xlu1 %8217  ;;  %v11676_v5 = vld [vmem:[%s15805_s10 + $0x20] sm:$0xff]   ;;  %v11677_v8 = vld [vmem:[%s15805_s10 + $0x28] sm:$0xff]  }
 0x7ef   : > { %v7857_v17 = vmax.f32 %v10933_v36, 0.0 }
 0x7f0   : > { %v7858_v19 = vmax.f32 %v10934_v59, 0.0 }
 0x7f1   : > { %v7889_v41 = vpack.c.bf16 %v7857_v17, %v7855_v46  ;;  %v15340_v28 = vpop.permute.xlu0 %8222 }
 0x7f2   : > { %v7890_v40 = vpack.c.bf16 %v7858_v19, %v7856_v15  ;;  %v15342_v27 = vpop.permute.xlu1 %8227  ;;  %v11678_v15 = vld [vmem:[%s15805_s10 + $0x30] sm:$0xff]  }
 0x7f4   : > { %8017 = vmatprep.subr.bf16.mxu0 %v7890_v40  ;;  %v11679_v40 = vld [vmem:[%s15805_s10 + $0x38] sm:$0xff]  }
 0x7f5   : > { %8018 = vmatpush1.bf16.msra.mxu0 %v7889_v41  ;;  %v15346_v60 = vpop.permute.xlu0 %8232 }
 0x7f6   : > { %11407 = vmatprep.subr.msk.bf16.mxu0 %vm2011_vm0, %v11647_v13  ;;  %v15351_v25 = vpop.permute.xlu1 %8237 }
 0x7f8   : > { %8020 = vmatmul.mubr.bf16.vlgmr.msra.gmra.mrb[64].mxu0 %v11644_v63 }
 0x7f9   : > { %8029 = vmatprep.mubr.bf16.mxu0 %v11651_v14  ;;  %v15355_v56 = vpop.permute.xlu0 %8242 }
 0x7fa   : > { %v15357_v12 = vpop.permute.xlu1 %8247 }
 0x7fd   : > { %v15362_v20 = vpop.permute.xlu0 %8252 }
 0x7fe   : > { %10688 = vmatpush3.bf16.xpose.msra.mxu0 %v8549_v50  ;;  %v15366_v34 = vpop.permute.xlu1 %8257 }
 0x7ff   : > { %11408 = vmatprep.subr.msk.bf16.mxu0 %vm2011_vm0, %v11652_v43 }
 0x800   : > { %8030 = vmatmul.mubr.bf16.gmra.mrb[68].mxu0 %v11649_v4 }
 0x801   : > { %8039 = vmatprep.mubr.bf16.mxu0 %v11656_v22  ;;  %v15371_v51 = vpop.permute.xlu0 %8262  ;;  %v11681_v22 = vld [vmem:[%s15805_s10 + $0x48] sm:$0xff]  }
 0x802   : > { %v15373_v52 = vpop.permute.xlu1 %8267 }
 0x805   : > { %v15377_v36 = vpop.permute.xlu0 %8272 }
 0x806   : > { %10690 = vmatpush3.bf16.xpose.msra.mxu0 %v8552_v10  ;;  %v15382_v59 = vpop.permute.xlu1 %8277 }
 0x807   : > { %11409 = vmatprep.subr.msk.bf16.mxu0 %vm2011_vm0, %v11657_v42  ;;  %v11682_v42 = vld [vmem:[%s15805_s10 + $0x50] sm:$0xff]  }
 0x808   : > { %8040 = vmatmul.mubr.bf16.gmra.mrb[72].mxu0 %v11654_v44 }
 0x809   : > { %8049 = vmatprep.mubr.bf16.mxu0 %v11661_v45  ;;  %v15386_v46 = vpop.permute.xlu0 %8282 }
 0x80a   : > { %v15388_v17 = vpop.permute.xlu1 %8287 }
 0x80d   : > { %v15393_v19 = vpop.permute.xlu0 %8292 }
 0x80e   : > { %10692 = vmatpush3.bf16.xpose.msra.mxu0 %v8555_v21  ;;  %v15397_v41 = vpop.permute.xlu1 %8297  ;;  %v11683_v21 = vld [vmem:[%s15805_s10 + $0x58] sm:$0xff]  }
 0x80f   : > { %11410 = vmatprep.subr.msk.bf16.mxu0 %vm2011_vm0, %v11662_v9 }
 0x810   : > { %8050 = vmatmul.mubr.bf16.gmra.mrb[76].mxu0 %v11659_v54 }
 0x811   : > { %10703 = vmatprep.mubr.msk.bf16.mxu0 %vm2011_vm0, %v11672_v62  ;;  %v15402_v13 = vpop.permute.xlu0 %8302 }
 0x812   : > { %v15404_v63 = vpop.permute.xlu1 %8307 }
 0x815   : > { %v15408_v14 = vpop.permute.xlu0 %8312 }
 0x816   : > { %10694 = vmatpush3.bf16.xpose.msra.mxu0 %v8558_v29  ;;  %v15413_v50 = vpop.permute.xlu1 %8317 }
 0x817   : > { %11411 = vmatprep.subr.msk.bf16.mxu0 %vm2011_vm0, %v11664_v32 }
 0x819   : > { %v15417_v43 = vpop.permute.xlu0 %8322 }
 0x81a   : > { %v15419_v4 = vpop.permute.xlu1 %8327 }
 0x81d   : > { %v15424_v30 = vpop.permute.xlu0 %8332 }
 0x81e   : > { %10696 = vmatpush3.bf16.xpose.msra.mxu0 %v8561_v23  ;;  %v15428_v10 = vpop.permute.xlu1 %8337 }
 0x81f   : > { %11412 = vmatprep.subr.msk.bf16.mxu0 %vm2011_vm0, %v11666_v26 }
 0x821   : > { %v15433_v44 = vpop.permute.xlu0 %8919 }
 0x822   : > { %v15435_v45 = vpop.permute.xlu1 %8924 }
 0x825   : > { %v15439_v49 = vpop.permute.xlu0 %8929 }
 0x826   : > { %10698 = vmatpush3.bf16.xpose.msra.mxu0 %v8564_v53  ;;  %v15444_v9 = vpop.permute.xlu1 %8934  ;;  %v11686_v53 = vld [vmem:[%s15805_s10 + $0x70] sm:$0xff]  }
 0x827   : > { %11413 = vmatprep.subr.msk.bf16.mxu0 %vm2011_vm0, %v11668_v2 }
 0x829   : > { %v15448_v54 = vpop.permute.xlu0 %8939 }
 0x82d   : > { %v15455_v29 = vpop.permute.xlu0 %8949 }
 0x82e   : > { %10700 = vmatpush3.bf16.xpose.msra.mxu0 %v8567_v33 }
 0x82f   : > { %11414 = vmatprep.subr.msk.bf16.mxu0 %vm2011_vm0, %v11670_v38  ;;  %v11687_v38 = vld [vmem:[%s15805_s10 + $0x78] sm:$0xff]  }
 0x831   : > { %v15464_v23 = vpop.permute.xlu0 %8959 }
 0x832   : > { %16292 = vst [vmem:[#allocation48_spill] sm:$0xff] %v15464_v23 }
 0x835   : > { %v15470_v47 = vpop.permute.xlu0 %8969 }
 0x836   : > { %10702 = vmatpush3.bf16.xpose.msra.mxu0 %v8570_v7  ;;  %16294 = vst [vmem:[#allocation49_spill] sm:$0xff] %v15470_v47 }
 0x839   : > { %v15479_v48 = vpop.permute.xlu0 %8979 }
 0x83a   : > { %16296 = vst [vmem:[#allocation50_spill] sm:$0xff] %v15479_v48 }
 0x83d   : > { %10704 = vmatmul.mubr.msk.bf16.vlgmr.msra.gmra.mrb[80].mxu0 %vm2011_vm0, %v11672_v62  ;;  %v15450_v62 = vpop.permute.xlu1 %8944  ;;  %v15486_v55 = vpop.permute.xlu0 %8989 }
 0x83e   : > { %10705 = vmatprep.mubr.msk.bf16.mxu0 %vm2011_vm0, %v11673_v1  ;;  %16298 = vst [vmem:[#allocation52_spill] sm:$0xff] %v15486_v55 }
 0x841   : > { %v15459_v32 = vpop.permute.xlu1 %8954 }
 0x845   : > { %10706 = vmatmul.mubr.msk.bf16.gmra.mrb[84].mxu0 %vm2011_vm0, %v11673_v1  ;;  %v15466_v26 = vpop.permute.xlu1 %8964  ;;  %v15492_v1 = vpop.permute.xlu0 %9256 }
 0x846   : > { %10707 = vmatprep.mubr.msk.bf16.mxu0 %vm2011_vm0, %v11674_v58  ;;  %16293 = vst [vmem:[#allocation47_spill] sm:$0xff] %v15466_v26  ;;  %16300 = vst [vmem:[#allocation54_spill] sm:$0xff] %v15492_v1 }
 0x849   : > { %v15475_v2 = vpop.permute.xlu1 %8974 }
 0x84a   : > { %16295 = vst [vmem:[#allocation51_spill] sm:$0xff] %v15475_v2 }
 0x84d   : > { %10708 = vmatmul.mubr.msk.bf16.gmra.mrb[88].mxu0 %vm2011_vm0, %v11674_v58  ;;  %v15481_v33 = vpop.permute.xlu1 %8984 }
 0x84e   : > { %10709 = vmatprep.mubr.msk.bf16.mxu0 %vm2011_vm0, %v11675_v3  ;;  %16297 = vst [vmem:[#allocation53_spill] sm:$0xff] %v15481_v33 }
 0x851   : > { %v15490_v7 = vpop.permute.xlu1 %8994 }
 0x852   : > { %16299 = vst [vmem:[#allocation55_spill] sm:$0xff] %v15490_v7 }
 0x855   : > { %10710 = vmatmul.mubr.msk.bf16.gmra.mrb[92].mxu0 %vm2011_vm0, %v11675_v3  ;;  %v15494_v58 = vpop.permute.xlu1 %9261  ;;  %v15497_v3 = vpop.permute.xlu0 %9266 }
 0x856   : > { %10711 = vmatprep.mubr.msk.bf16.mxu0 %vm2011_vm0, %v11676_v5  ;;  %16301 = vst [vmem:[#allocation57_spill] sm:$0xff] %v15494_v58  ;;  %16302 = vst [vmem:[#allocation56_spill] sm:$0xff] %v15497_v3 }
 0x85d   : > { %10712 = vmatmul.mubr.msk.bf16.gmra.mrb[96].mxu0 %vm2011_vm0, %v11676_v5  ;;  %v15499_v5 = vpop.permute.xlu1 %9271 }
 0x85e   : > { %10713 = vmatprep.mubr.msk.bf16.mxu0 %vm2011_vm0, %v11677_v8  ;;  %16303 = vst [vmem:[#allocation59_spill] sm:$0xff] %v15499_v5 }
 0x865   : > { %10714 = vmatmul.mubr.msk.bf16.gmra.mrb[100].mxu0 %vm2011_vm0, %v11677_v8  ;;  %v15501_v8 = vpop.permute.xlu0 %9276 }
 0x866   : > { %10715 = vmatprep.mubr.msk.bf16.mxu0 %vm2011_vm0, %v11678_v15  ;;  %16304 = vst [vmem:[#allocation58_spill] sm:$0xff] %v15501_v8 }
 0x86d   : > { %10716 = vmatmul.mubr.msk.bf16.gmra.mrb[104].mxu0 %vm2011_vm0, %v11678_v15  ;;  %v15503_v15 = vpop.permute.xlu1 %9281 }
 0x86e   : > { %10717 = vmatprep.mubr.msk.bf16.mxu0 %vm2011_vm0, %v11679_v40  ;;  %16305 = vst [vmem:[#allocation61_spill] sm:$0xff] %v15503_v15 }
 0x875   : > { %10718 = vmatmul.mubr.msk.bf16.gmra.mrb[108].mxu0 %vm2011_vm0, %v11679_v40  ;;  %v15505_v40 = vpop.permute.xlu0 %9286 }
 0x876   : > { %10719 = vmatprep.mubr.msk.bf16.mxu0 %vm2011_vm0, %v11680_v39  ;;  %16306 = vst [vmem:[#allocation60_spill] sm:$0xff] %v15505_v40 }
 0x87d   : > { %10720 = vmatmul.mubr.msk.bf16.gmra.mrb[112].mxu0 %vm2011_vm0, %v11680_v39  ;;  %v15507_v39 = vpop.permute.xlu1 %9291 }
 0x87e   : > { %10721 = vmatprep.mubr.msk.bf16.mxu0 %vm2011_vm0, %v11681_v22  ;;  %16307 = vst [vmem:[#allocation63_spill] sm:$0xff] %v15507_v39 }
 0x885   : > { %10722 = vmatmul.mubr.msk.bf16.gmra.mrb[116].mxu0 %vm2011_vm0, %v11681_v22  ;;  %v7910_v22 = vpop.permute.xlu0 %7909 }
 0x886   : > { %10723 = vmatprep.mubr.msk.bf16.mxu0 %vm2011_vm0, %v11682_v42 }
 0x889   : > { %v7920_v15 = vpop.permute.xlu0 %7919 }
 0x88d   : > { %10724 = vmatmul.mubr.msk.bf16.gmra.mrb[120].mxu0 %vm2011_vm0, %v11682_v42 }
 0x88e   : > { %10725 = vmatprep.mubr.msk.bf16.mxu0 %vm2011_vm0, %v11683_v21 }
 0x895   : > { %10726 = vmatmul.mubr.msk.bf16.gmra.mrb[124].mxu0 %vm2011_vm0, %v11683_v21 }
 0x896   : > { %10727 = vmatprep.mubr.msk.bf16.mxu0 %vm2011_vm0, %v11684_v0 }
 0x89d   : > { %10728 = vmatmul.mubr.msk.bf16.gmra.mrb[128].mxu0 %vm2011_vm0, %v11684_v0 }
 0x89e   : > { %10729 = vmatprep.mubr.msk.bf16.mxu0 %vm2011_vm0, %v11685_v31 }
 0x8a5   : > { %10730 = vmatmul.mubr.msk.bf16.gmra.mrb[132].mxu0 %vm2011_vm0, %v11685_v31  ;;  %v7915_v31 = vpop.permute.xlu1 %7914 }
 0x8a6   : > { %10731 = vmatprep.mubr.msk.bf16.mxu0 %vm2011_vm0, %v11686_v53 }
 0x8ad   : > { %10732 = vmatmul.mubr.msk.bf16.gmra.mrb[136].mxu0 %vm2011_vm0, %v11686_v53 }
 0x8ae   : > { %10733 = vmatprep.mubr.msk.bf16.mxu0 %vm2011_vm0, %v11687_v38 }
 0x8b5   : > { %10734 = vmatmul.mubr.msk.bf16.gmra.mrb[140].mxu0 %vm2011_vm0, %v11687_v38 }
 0x8cb   : > { %v8021_v42 = vpop.f32.mrb[64].mxu0 }
 0x8cc   : > { %v8022_v21 = vadd.f32 %v8021_v42, %v7910_v22  ;;  %v8023_v0 = vpop.f32.mrb[65].mxu0  ;;  %v7925_v42 = vpop.permute.xlu1 %7924 }
 0x8cd   : > { %v8024_v53 = vadd.f32 %v8023_v0, %v7910_v22  ;;  %v8025_v58 = vpop.f32.mrb[66].mxu0 }
 0x8ce   : > { %v8026_v38 = vadd.f32 %v8025_v58, %v7915_v31  ;;  %v8027_v1 = vpop.f32.mrb[67].mxu0  ;;  %v8060_v7 = vmax.f32 %v8022_v21, 0.0 }
 0x8cf   : > { %v8028_v3 = vadd.f32 %v8027_v1, %v7915_v31  ;;  %v8061_v55 = vmax.f32 %v8024_v53, 0.0 }
 0x8d0   : > { %v8062_v5 = vmax.f32 %v8026_v38, 0.0 }
 0x8d1   : > { %v8063_v8 = vmax.f32 %v8028_v3, 0.0 }
 0x8d2   : > { %v15509_v33 = vpack.c.bf16 %v8062_v5, %v8060_v7  ;;  %v7930_v7 = vpop.permute.xlu0 %7929 }
 0x8d3   : > { %v15511_v40 = vpack.c.bf16 %v8063_v8, %v8061_v55  ;;  %v8031_v39 = vpop.f32.mrb[68].mxu0 }
 0x8d4   : > { %16308 = vst [vmem:[#allocation62_spill] sm:$0xff] %v15509_v33  ;;  %v8032_v48 = vadd.f32 %v8031_v39, %v7920_v15  ;;  %v8033_v2 = vpop.f32.mrb[69].mxu0  ;;  %v7935_v39 = vpop.permute.xlu1 %7934 }
 0x8d5   : > { %16309 = vst [vmem:[#allocation65_spill] sm:$0xff] %v15511_v40  ;;  %v8034_v47 = vadd.f32 %v8033_v2, %v7920_v15  ;;  %v8035_v26 = vpop.f32.mrb[70].mxu0 }
 0x8d6   : > { %v8036_v22 = vadd.f32 %v8035_v26, %v7925_v42  ;;  %v8037_v0 = vpop.f32.mrb[71].mxu0  ;;  %v8064_v23 = vmax.f32 %v8032_v48, 0.0 }
 0x8d7   : > { %v8038_v58 = vadd.f32 %v8037_v0, %v7925_v42  ;;  %v8065_v21 = vmax.f32 %v8034_v47, 0.0 }
 0x8d8   : > { %v8066_v1 = vmax.f32 %v8036_v22, 0.0 }
 0x8d9   : > { %v8067_v31 = vmax.f32 %v8038_v58, 0.0 }
 0x8da   : > { %v15513_v53 = vpack.c.bf16 %v8066_v1, %v8064_v23  ;;  %v7940_v23 = vpop.permute.xlu0 %7939 }
 0x8db   : > { %v15515_v3 = vpack.c.bf16 %v8067_v31, %v8065_v21  ;;  %v8041_v55 = vpop.f32.mrb[72].mxu0  ;;  %v7945_v31 = vpop.permute.xlu1 %7944 }
 0x8dc   : > { %16310 = vst [vmem:[#allocation64_spill] sm:$0xff] %v15513_v53  ;;  %v8042_v5 = vadd.f32 %v8041_v55, %v7930_v7  ;;  %v8043_v8 = vpop.f32.mrb[73].mxu0 }
 0x8dd   : > { %16311 = vst [vmem:[#allocation66_spill] sm:$0xff] %v15515_v3  ;;  %v8044_v38 = vadd.f32 %v8043_v8, %v7930_v7  ;;  %v8045_v33 = vpop.f32.mrb[74].mxu0 }
 0x8de   : > { %v8046_v2 = vadd.f32 %v8045_v33, %v7935_v39  ;;  %v8047_v15 = vpop.f32.mrb[75].mxu0  ;;  %v8068_v40 = vmax.f32 %v8042_v5, 0.0 }
 0x8df   : > { %v8048_v26 = vadd.f32 %v8047_v15, %v7935_v39  ;;  %v8069_v48 = vmax.f32 %v8044_v38, 0.0 }
 0x8e0   : > { %v8070_v42 = vmax.f32 %v8046_v2, 0.0 }
 0x8e1   : > { %v8071_v22 = vmax.f32 %v8048_v26, 0.0 }
 0x8e2   : > { %v15517_v47 = vpack.c.bf16 %v8070_v42, %v8068_v40 }
 0x8e3   : > { %v15519_v0 = vpack.c.bf16 %v8071_v22, %v8069_v48  ;;  %v8051_v58 = vpop.f32.mrb[76].mxu0 }
 0x8e4   : > { %v8052_v1 = vadd.f32 %v8051_v58, %v7940_v23  ;;  %v8053_v21 = vpop.f32.mrb[77].mxu0  ;;  %v11690_v58 = vld [vmem:[%s15807_s12 + $0x4] ss:$8 sps:$4 sm:$0xff]  }
 0x8e5   : > { %v8054_v55 = vadd.f32 %v8053_v21, %v7940_v23  ;;  %v8055_v53 = vpop.f32.mrb[78].mxu0  ;;  %9109 = vmatprep.mubr.bf16.mxu0 %v11690_v58 }
 0x8e6   : > { %v8056_v7 = vadd.f32 %v8055_v53, %v7945_v31  ;;  %v8057_v8 = vpop.f32.mrb[79].mxu0  ;;  %v8072_v3 = vmax.f32 %v8052_v1, 0.0 }
 0x8e7   : > { %v8058_v33 = vadd.f32 %v8057_v8, %v7945_v31  ;;  %v8073_v5 = vmax.f32 %v8054_v55, 0.0 }
 0x8e8   : > { %v8074_v39 = vmax.f32 %v8056_v7, 0.0 }
 0x8e9   : > { %v8075_v2 = vmax.f32 %v8058_v33, 0.0 }
 0x8ea   : > { %v15521_v38 = vpack.c.bf16 %v8074_v39, %v8072_v3 }
 0x8eb   : > { %v15523_v40 = vpack.c.bf16 %v8075_v2, %v8073_v5 }
 0x910   : > { %v8630_v15 = vpop.f32.mrb[80].mxu0 }
 0x911   : > { %v8631_v26 = vadd.f32 %v8630_v15, %v15312_v6  ;;  %v8632_v42 = vpop.f32.mrb[81].mxu0 }
 0x912   : > { %v8633_v48 = vadd.f32 %v8632_v42, %v15312_v6  ;;  %v8634_v22 = vpop.f32.mrb[82].mxu0 }
 0x913   : > { %v8635_v23 = vadd.f32 %v8634_v22, %v15316_v11  ;;  %v8636_v53 = vpop.f32.mrb[83].mxu0  ;;  %v8789_v3 = vmax.f32 %v8631_v26, 0.0 }
 0x914   : > { %v8637_v1 = vadd.f32 %v8636_v53, %v15316_v11  ;;  %v8790_v31 = vmax.f32 %v8633_v48, 0.0 }
 0x915   : > { %v8791_v21 = vmax.f32 %v8635_v23, 0.0 }
 0x916   : > { %v8792_v55 = vmax.f32 %v8637_v1, 0.0 }
 0x917   : > { %v8853_v7 = vpack.c.bf16 %v8791_v21, %v8789_v3 }
 0x918   : > { %v8854_v8 = vpack.c.bf16 %v8792_v55, %v8790_v31  ;;  %v8640_v33 = vpop.f32.mrb[84].mxu0 }
 0x919   : > { %v8641_v6 = vadd.f32 %v8640_v33, %v15320_v57  ;;  %v8642_v39 = vpop.f32.mrb[85].mxu0 }
 0x91a   : > { %v8643_v5 = vadd.f32 %v8642_v39, %v15320_v57  ;;  %v8644_v2 = vpop.f32.mrb[86].mxu0  ;;  %9077 = vmatprep.subr.bf16.mxu0 %v8854_v8 }
 0x91b   : > { %v8645_v15 = vadd.f32 %v8644_v2, %v15322_v37  ;;  %v8646_v42 = vpop.f32.mrb[87].mxu0  ;;  %9078 = vmatpush1.bf16.msra.mxu0 %v8853_v7  ;;  %v8793_v26 = vmax.f32 %v8641_v6, 0.0 }
 0x91c   : > { %v8647_v11 = vadd.f32 %v8646_v42, %v15322_v37  ;;  %v8794_v48 = vmax.f32 %v8643_v5, 0.0 }
 0x91d   : > { %v8795_v22 = vmax.f32 %v8645_v15, 0.0 }
 0x91e   : > { %v8796_v23 = vmax.f32 %v8647_v11, 0.0 }
 0x91f   : > { %v8855_v53 = vpack.c.bf16 %v8795_v22, %v8793_v26 }
 0x920   : > { %v8856_v58 = vpack.c.bf16 %v8796_v23, %v8794_v48  ;;  %v8650_v1 = vpop.f32.mrb[88].mxu0 }
 0x921   : > { %v8651_v3 = vadd.f32 %v8650_v1, %v15326_v18  ;;  %v8652_v21 = vpop.f32.mrb[89].mxu0 }
 0x922   : > { %v8653_v57 = vadd.f32 %v8652_v21, %v15326_v18  ;;  %v8654_v31 = vpop.f32.mrb[90].mxu0  ;;  %9079 = vmatprep.subr.bf16.mxu0 %v8856_v58 }
 0x923   : > { %v8655_v55 = vadd.f32 %v8654_v31, %v15330_v24  ;;  %v8656_v8 = vpop.f32.mrb[91].mxu0  ;;  %9080 = vmatpush1.bf16.msra.mxu0 %v8855_v53  ;;  %v8797_v7 = vmax.f32 %v8651_v3, 0.0 }
 0x924   : > { %v8657_v37 = vadd.f32 %v8656_v8, %v15330_v24  ;;  %v8798_v6 = vmax.f32 %v8653_v57, 0.0 }
 0x925   : > { %v8799_v33 = vmax.f32 %v8655_v55, 0.0 }
 0x926   : > { %v8800_v39 = vmax.f32 %v8657_v37, 0.0 }
 0x927   : > { %v8857_v5 = vpack.c.bf16 %v8799_v33, %v8797_v7 }
 0x928   : > { %v8858_v2 = vpack.c.bf16 %v8800_v39, %v8798_v6  ;;  %v8660_v15 = vpop.f32.mrb[92].mxu0 }
 0x929   : > { %v8661_v42 = vadd.f32 %v8660_v15, %v15333_v16  ;;  %v8662_v11 = vpop.f32.mrb[93].mxu0 }
 0x92a   : > { %v8663_v18 = vadd.f32 %v8662_v11, %v15333_v16  ;;  %v8664_v26 = vpop.f32.mrb[94].mxu0  ;;  %9081 = vmatprep.subr.bf16.mxu0 %v8858_v2 }
 0x92b   : > { %v8665_v22 = vadd.f32 %v8664_v26, %v15335_v61  ;;  %v8666_v48 = vpop.f32.mrb[95].mxu0  ;;  %9082 = vmatpush1.bf16.msra.mxu0 %v8857_v5  ;;  %v8801_v23 = vmax.f32 %v8661_v42, 0.0 }
 0x92c   : > { %v8667_v24 = vadd.f32 %v8666_v48, %v15335_v61  ;;  %v8802_v58 = vmax.f32 %v8663_v18, 0.0 }
 0x92d   : > { %v8803_v53 = vmax.f32 %v8665_v22, 0.0 }
 0x92e   : > { %v8804_v1 = vmax.f32 %v8667_v24, 0.0 }
 0x92f   : > { %v8859_v3 = vpack.c.bf16 %v8803_v53, %v8801_v23 }
 0x930   : > { %v8860_v21 = vpack.c.bf16 %v8804_v1, %v8802_v58  ;;  %v8670_v57 = vpop.f32.mrb[96].mxu0 }
 0x931   : > { %v8671_v31 = vadd.f32 %v8670_v57, %v15340_v28  ;;  %v8672_v55 = vpop.f32.mrb[97].mxu0 }
 0x932   : > { %v8673_v16 = vadd.f32 %v8672_v55, %v15340_v28  ;;  %v8674_v8 = vpop.f32.mrb[98].mxu0  ;;  %9083 = vmatprep.subr.bf16.mxu0 %v8860_v21 }
 0x933   : > { %v8675_v37 = vadd.f32 %v8674_v8, %v15342_v27  ;;  %v8676_v7 = vpop.f32.mrb[99].mxu0  ;;  %9084 = vmatpush1.bf16.msra.mxu0 %v8859_v3  ;;  %v8805_v33 = vmax.f32 %v8671_v31, 0.0 }
 0x934   : > { %v8677_v61 = vadd.f32 %v8676_v7, %v15342_v27  ;;  %v8806_v39 = vmax.f32 %v8673_v16, 0.0 }
 0x935   : > { %v8807_v6 = vmax.f32 %v8675_v37, 0.0 }
 0x936   : > { %v8808_v5 = vmax.f32 %v8677_v61, 0.0 }
 0x937   : > { %v8861_v2 = vpack.c.bf16 %v8807_v6, %v8805_v33 }
 0x938   : > { %v8862_v15 = vpack.c.bf16 %v8808_v5, %v8806_v39  ;;  %v8680_v42 = vpop.f32.mrb[100].mxu0 }
 0x939   : > { %v8681_v11 = vadd.f32 %v8680_v42, %v15346_v60  ;;  %v8682_v18 = vpop.f32.mrb[101].mxu0 }
 0x93a   : > { %v8683_v28 = vadd.f32 %v8682_v18, %v15346_v60  ;;  %v8684_v26 = vpop.f32.mrb[102].mxu0  ;;  %9085 = vmatprep.subr.bf16.mxu0 %v8862_v15 }
 0x93b   : > { %v8685_v22 = vadd.f32 %v8684_v26, %v15351_v25  ;;  %v8686_v48 = vpop.f32.mrb[103].mxu0  ;;  %9086 = vmatpush1.bf16.msra.mxu0 %v8861_v2  ;;  %v8809_v24 = vmax.f32 %v8681_v11, 0.0 }
 0x93c   : > { %v8687_v27 = vadd.f32 %v8686_v48, %v15351_v25  ;;  %v8810_v53 = vmax.f32 %v8683_v28, 0.0 }
 0x93d   : > { %v8811_v23 = vmax.f32 %v8685_v22, 0.0 }
 0x93e   : > { %v8812_v58 = vmax.f32 %v8687_v27, 0.0 }
 0x93f   : > { %v8863_v1 = vpack.c.bf16 %v8811_v23, %v8809_v24 }
 0x940   : > { %v8864_v3 = vpack.c.bf16 %v8812_v58, %v8810_v53  ;;  %v8690_v21 = vpop.f32.mrb[104].mxu0 }
 0x941   : > { %v8691_v57 = vadd.f32 %v8690_v21, %v15355_v56  ;;  %v8692_v31 = vpop.f32.mrb[105].mxu0 }
 0x942   : > { %v8693_v60 = vadd.f32 %v8692_v31, %v15355_v56  ;;  %v8694_v55 = vpop.f32.mrb[106].mxu0  ;;  %9087 = vmatprep.subr.bf16.mxu0 %v8864_v3 }
 0x943   : > { %v8695_v16 = vadd.f32 %v8694_v55, %v15357_v12  ;;  %v8696_v8 = vpop.f32.mrb[107].mxu0  ;;  %9088 = vmatpush1.bf16.msra.mxu0 %v8863_v1  ;;  %v8813_v37 = vmax.f32 %v8691_v57, 0.0 }
 0x944   : > { %v8697_v25 = vadd.f32 %v8696_v8, %v15357_v12  ;;  %v8814_v61 = vmax.f32 %v8693_v60, 0.0 }
 0x945   : > { %v8815_v7 = vmax.f32 %v8695_v16, 0.0 }
 0x946   : > { %v8816_v33 = vmax.f32 %v8697_v25, 0.0 }
 0x947   : > { %v8865_v6 = vpack.c.bf16 %v8815_v7, %v8813_v37 }
 0x948   : > { %v8866_v39 = vpack.c.bf16 %v8816_v33, %v8814_v61  ;;  %v8700_v5 = vpop.f32.mrb[108].mxu0 }
 0x949   : > { %v8701_v2 = vadd.f32 %v8700_v5, %v15362_v20  ;;  %v8702_v15 = vpop.f32.mrb[109].mxu0 }
 0x94a   : > { %v8703_v56 = vadd.f32 %v8702_v15, %v15362_v20  ;;  %v8704_v42 = vpop.f32.mrb[110].mxu0  ;;  %9089 = vmatprep.subr.bf16.mxu0 %v8866_v39 }
 0x94b   : > { %v8705_v11 = vadd.f32 %v8704_v42, %v15366_v34  ;;  %v8706_v18 = vpop.f32.mrb[111].mxu0  ;;  %9090 = vmatpush1.bf16.msra.mxu0 %v8865_v6  ;;  %v8817_v28 = vmax.f32 %v8701_v2, 0.0 }
 0x94c   : > { %v8707_v12 = vadd.f32 %v8706_v18, %v15366_v34  ;;  %v8818_v22 = vmax.f32 %v8703_v56, 0.0 }
 0x94d   : > { %v8819_v26 = vmax.f32 %v8705_v11, 0.0 }
 0x94e   : > { %v8820_v48 = vmax.f32 %v8707_v12, 0.0 }
 0x94f   : > { %v8867_v27 = vpack.c.bf16 %v8819_v26, %v8817_v28 }
 0x950   : > { %v8868_v24 = vpack.c.bf16 %v8820_v48, %v8818_v22  ;;  %v8710_v23 = vpop.f32.mrb[112].mxu0 }
 0x951   : > { %v8711_v53 = vadd.f32 %v8710_v23, %v15371_v51  ;;  %v8712_v58 = vpop.f32.mrb[113].mxu0 }
 0x952   : > { %v8713_v20 = vadd.f32 %v8712_v58, %v15371_v51  ;;  %v8714_v1 = vpop.f32.mrb[114].mxu0  ;;  %9091 = vmatprep.subr.bf16.mxu0 %v8868_v24 }
 0x953   : > { %v8715_v3 = vadd.f32 %v8714_v1, %v15373_v52  ;;  %v8716_v21 = vpop.f32.mrb[115].mxu0  ;;  %9092 = vmatpush1.bf16.msra.mxu0 %v8867_v27  ;;  %v8821_v57 = vmax.f32 %v8711_v53, 0.0 }
 0x954   : > { %v8717_v34 = vadd.f32 %v8716_v21, %v15373_v52  ;;  %v8822_v60 = vmax.f32 %v8713_v20, 0.0 }
 0x955   : > { %v8823_v31 = vmax.f32 %v8715_v3, 0.0 }
 0x956   : > { %v8824_v55 = vmax.f32 %v8717_v34, 0.0 }
 0x957   : > { %v8869_v16 = vpack.c.bf16 %v8823_v31, %v8821_v57 }
 0x958   : > { %v8870_v8 = vpack.c.bf16 %v8824_v55, %v8822_v60  ;;  %v8720_v25 = vpop.f32.mrb[116].mxu0 }
 0x959   : > { %v8721_v37 = vadd.f32 %v8720_v25, %v15377_v36  ;;  %v8722_v7 = vpop.f32.mrb[117].mxu0 }
 0x95a   : > { %v8723_v51 = vadd.f32 %v8722_v7, %v15377_v36  ;;  %v8724_v61 = vpop.f32.mrb[118].mxu0  ;;  %9093 = vmatprep.subr.bf16.mxu0 %v8870_v8 }
 0x95b   : > { %v8725_v33 = vadd.f32 %v8724_v61, %v15382_v59  ;;  %v8726_v6 = vpop.f32.mrb[119].mxu0  ;;  %9094 = vmatpush1.bf16.msra.mxu0 %v8869_v16  ;;  %v8825_v39 = vmax.f32 %v8721_v37, 0.0 }
 0x95c   : > { %v8727_v52 = vadd.f32 %v8726_v6, %v15382_v59  ;;  %v8826_v2 = vmax.f32 %v8723_v51, 0.0 }
 0x95d   : > { %v8827_v5 = vmax.f32 %v8725_v33, 0.0 }
 0x95e   : > { %v8828_v15 = vmax.f32 %v8727_v52, 0.0 }
 0x95f   : > { %v8871_v56 = vpack.c.bf16 %v8827_v5, %v8825_v39 }
 0x960   : > { %v8872_v42 = vpack.c.bf16 %v8828_v15, %v8826_v2  ;;  %v8730_v11 = vpop.f32.mrb[120].mxu0 }
 0x961   : > { %v8731_v18 = vadd.f32 %v8730_v11, %v15386_v46  ;;  %v8732_v12 = vpop.f32.mrb[121].mxu0 }
 0x962   : > { %v8733_v36 = vadd.f32 %v8732_v12, %v15386_v46  ;;  %v8734_v28 = vpop.f32.mrb[122].mxu0  ;;  %9095 = vmatprep.subr.bf16.mxu0 %v8872_v42 }
 0x963   : > { %v8735_v26 = vadd.f32 %v8734_v28, %v15388_v17  ;;  %v8736_v22 = vpop.f32.mrb[123].mxu0  ;;  %9096 = vmatpush1.bf16.msra.mxu0 %v8871_v56  ;;  %v8829_v48 = vmax.f32 %v8731_v18, 0.0 }
 0x964   : > { %v8737_v59 = vadd.f32 %v8736_v22, %v15388_v17  ;;  %v8830_v24 = vmax.f32 %v8733_v36, 0.0 }
 0x965   : > { %v8831_v27 = vmax.f32 %v8735_v26, 0.0 }
 0x966   : > { %v8832_v23 = vmax.f32 %v8737_v59, 0.0 }
 0x967   : > { %v8873_v53 = vpack.c.bf16 %v8831_v27, %v8829_v48 }
 0x968   : > { %v8874_v58 = vpack.c.bf16 %v8832_v23, %v8830_v24  ;;  %v8740_v20 = vpop.f32.mrb[124].mxu0 }
 0x969   : > { %v8741_v1 = vadd.f32 %v8740_v20, %v15393_v19  ;;  %v8742_v3 = vpop.f32.mrb[125].mxu0 }
 0x96a   : > { %v8743_v46 = vadd.f32 %v8742_v3, %v15393_v19  ;;  %v8744_v21 = vpop.f32.mrb[126].mxu0  ;;  %9097 = vmatprep.subr.bf16.mxu0 %v8874_v58 }
 0x96b   : > { %v8745_v34 = vadd.f32 %v8744_v21, %v15397_v41  ;;  %v8746_v57 = vpop.f32.mrb[127].mxu0  ;;  %9098 = vmatpush1.bf16.msra.mxu0 %v8873_v53  ;;  %v8833_v31 = vmax.f32 %v8741_v1, 0.0 }
 0x96c   : > { %v8747_v17 = vadd.f32 %v8746_v57, %v15397_v41  ;;  %v8834_v55 = vmax.f32 %v8743_v46, 0.0 }
 0x96d   : > { %v8835_v60 = vmax.f32 %v8745_v34, 0.0 }
 0x96e   : > { %v8836_v16 = vmax.f32 %v8747_v17, 0.0 }
 0x96f   : > { %v8875_v8 = vpack.c.bf16 %v8835_v60, %v8833_v31 }
 0x970   : > { %v8876_v25 = vpack.c.bf16 %v8836_v16, %v8834_v55  ;;  %v8750_v37 = vpop.f32.mrb[128].mxu0 }
 0x971   : > { %v8751_v7 = vadd.f32 %v8750_v37, %v15402_v13  ;;  %v8752_v51 = vpop.f32.mrb[129].mxu0 }
 0x972   : > { %v8753_v19 = vadd.f32 %v8752_v51, %v15402_v13  ;;  %v8754_v61 = vpop.f32.mrb[130].mxu0  ;;  %9099 = vmatprep.subr.bf16.mxu0 %v8876_v25 }
 0x973   : > { %v8755_v33 = vadd.f32 %v8754_v61, %v15404_v63  ;;  %v8756_v6 = vpop.f32.mrb[131].mxu0  ;;  %9100 = vmatpush1.bf16.msra.mxu0 %v8875_v8  ;;  %v8837_v52 = vmax.f32 %v8751_v7, 0.0 }
 0x974   : > { %v8757_v41 = vadd.f32 %v8756_v6, %v15404_v63  ;;  %v8838_v5 = vmax.f32 %v8753_v19, 0.0 }
 0x975   : > { %v8839_v39 = vmax.f32 %v8755_v33, 0.0 }
 0x976   : > { %v8840_v2 = vmax.f32 %v8757_v41, 0.0  ;;  %v11688_v41 = vld [vmem:[%s15807_s12] ss:$8 sps:$4 sm:$0xff]  }
 0x977   : > { %v8877_v15 = vpack.c.bf16 %v8839_v39, %v8837_v52  ;;  %v11696_v52 = vld [vmem:[%s15807_s12 + $0x24] ss:$8 sps:$4 sm:$0xff]   ;;  %v11694_v39 = vld [vmem:[%s15807_s12 + $0x20] ss:$8 sps:$4 sm:$0xff]  }
 0x978   : > { %v8878_v56 = vpack.c.bf16 %v8840_v2, %v8838_v5  ;;  %v8760_v42 = vpop.f32.mrb[132].mxu0  ;;  %v11699_v5 = vld [vmem:[%s15807_s12 + $0x34] ss:$8 sps:$4 sm:$0xff]   ;;  %v11697_v2 = vld [vmem:[%s15807_s12 + $0x30] ss:$8 sps:$4 sm:$0xff]  }
 0x979   : > { %v8761_v11 = vadd.f32 %v8760_v42, %v15408_v14  ;;  %v8762_v18 = vpop.f32.mrb[133].mxu0  ;;  %v11705_v42 = vld [vmem:[%s15807_s12 + $0x54] ss:$8 sps:$4 sm:$0xff]  }
 0x97a   : > { %v8763_v13 = vadd.f32 %v8762_v18, %v15408_v14  ;;  %v8764_v12 = vpop.f32.mrb[134].mxu0  ;;  %9101 = vmatprep.subr.bf16.mxu0 %v8878_v56  ;;  %v11700_v56 = vld [vmem:[%s15807_s12 + $0x40] ss:$8 sps:$4 sm:$0xff]   ;;  %v11708_v18 = vld [vmem:[%s15807_s12 + $0x64] ss:$8 sps:$4 sm:$0xff]  }
 0x97b   : > { %v8765_v36 = vadd.f32 %v8764_v12, %v15413_v50  ;;  %v8766_v28 = vpop.f32.mrb[135].mxu0  ;;  %9102 = vmatpush1.bf16.msra.mxu0 %v8877_v15  ;;  %v8841_v26 = vmax.f32 %v8761_v11, 0.0  ;;  %v11702_v15 = vld [vmem:[%s15807_s12 + $0x44] ss:$8 sps:$4 sm:$0xff]   ;;  %v11703_v11 = vld [vmem:[%s15807_s12 + $0x50] ss:$8 sps:$4 sm:$0xff]  }
 0x97c   : > { %v8767_v63 = vadd.f32 %v8766_v28, %v15413_v50  ;;  %v8842_v59 = vmax.f32 %v8763_v13, 0.0  ;;  %v11706_v13 = vld [vmem:[%s15807_s12 + $0x60] ss:$8 sps:$4 sm:$0xff]   ;;  %v11711_v12 = vld [vmem:[%s15807_s12 + $0x74] ss:$8 sps:$4 sm:$0xff]  }
 0x97d   : > { %v8843_v22 = vmax.f32 %v8765_v36, 0.0  ;;  %v11709_v36 = vld [vmem:[%s15807_s12 + $0x70] ss:$8 sps:$4 sm:$0xff]  }
 0x97e   : > { %v8844_v48 = vmax.f32 %v8767_v63, 0.0 }
 0x97f   : > { %v8879_v27 = vpack.c.bf16 %v8843_v22, %v8841_v26 }
 0x980   : > { %v8880_v24 = vpack.c.bf16 %v8844_v48, %v8842_v59  ;;  %v8770_v23 = vpop.f32.mrb[136].mxu0 }
 0x981   : > { %v8771_v53 = vadd.f32 %v8770_v23, %v15417_v43  ;;  %v8772_v58 = vpop.f32.mrb[137].mxu0 }
 0x982   : > { %v8773_v14 = vadd.f32 %v8772_v58, %v15417_v43  ;;  %v8774_v20 = vpop.f32.mrb[138].mxu0  ;;  %9103 = vmatprep.subr.bf16.mxu0 %v8880_v24 }
 0x983   : > { %v8775_v1 = vadd.f32 %v8774_v20, %v15419_v4  ;;  %v8776_v3 = vpop.f32.mrb[139].mxu0  ;;  %9104 = vmatpush1.bf16.msra.mxu0 %v8879_v27  ;;  %v8845_v46 = vmax.f32 %v8771_v53, 0.0 }
 0x984   : > { %v8777_v50 = vadd.f32 %v8776_v3, %v15419_v4  ;;  %v8846_v34 = vmax.f32 %v8773_v14, 0.0 }
 0x985   : > { %v8847_v21 = vmax.f32 %v8775_v1, 0.0 }
 0x986   : > { %v8848_v57 = vmax.f32 %v8777_v50, 0.0 }
 0x987   : > { %v8881_v17 = vpack.c.bf16 %v8847_v21, %v8845_v46 }
 0x988   : > { %v8882_v31 = vpack.c.bf16 %v8848_v57, %v8846_v34  ;;  %v8780_v60 = vpop.f32.mrb[140].mxu0 }
 0x989   : > { %v8781_v55 = vadd.f32 %v8780_v60, %v15424_v30  ;;  %v8782_v16 = vpop.f32.mrb[141].mxu0 }
 0x98a   : > { %v8783_v43 = vadd.f32 %v8782_v16, %v15424_v30  ;;  %v8784_v8 = vpop.f32.mrb[142].mxu0  ;;  %9105 = vmatprep.subr.bf16.mxu0 %v8882_v31  ;;  %v11693_v30 = vld [vmem:[%s15807_s12 + $0x14] ss:$8 sps:$4 sm:$0xff]  }
 0x98b   : > { %v8785_v25 = vadd.f32 %v8784_v8, %v15428_v10  ;;  %v8786_v37 = vpop.f32.mrb[143].mxu0  ;;  %9106 = vmatpush1.bf16.msra.mxu0 %v8881_v17  ;;  %v8849_v7 = vmax.f32 %v8781_v55, 0.0 }
 0x98c   : > { %v8787_v4 = vadd.f32 %v8786_v37, %v15428_v10  ;;  %v8850_v19 = vmax.f32 %v8783_v43, 0.0  ;;  %v11691_v10 = vld [vmem:[%s15807_s12 + $0x10] ss:$8 sps:$4 sm:$0xff]  }
 0x98d   : > { %v8851_v51 = vmax.f32 %v8785_v25, 0.0 }
 0x98e   : > { %v8852_v61 = vmax.f32 %v8787_v4, 0.0 }
 0x98f   : > { %v8883_v33 = vpack.c.bf16 %v8851_v51, %v8849_v7 }
 0x990   : > { %v8884_v6 = vpack.c.bf16 %v8852_v61, %v8850_v19 }
 0x992   : > { %9107 = vmatprep.subr.bf16.mxu0 %v8884_v6 }
 0x993   : > { %9108 = vmatpush1.bf16.msra.mxu0 %v8883_v33 }
 0x996   : > { %9110 = vmatmul.mubr.bf16.vlgmr.msra.gmra.mrb[144].mxu0 %v11688_v41 }
 0x997   : > { %9119 = vmatprep.mubr.bf16.mxu0 %v11693_v30 }
 0x99e   : > { %9120 = vmatmul.mubr.bf16.gmra.mrb[148].mxu0 %v11691_v10 }
 0x99f   : > { %9129 = vmatprep.mubr.bf16.mxu0 %v11696_v52 }
 0x9a6   : > { %9130 = vmatmul.mubr.bf16.gmra.mrb[152].mxu0 %v11694_v39 }
 0x9a7   : > { %9139 = vmatprep.mubr.bf16.mxu0 %v11699_v5 }
 0x9ae   : > { %9140 = vmatmul.mubr.bf16.gmra.mrb[156].mxu0 %v11697_v2 }
 0x9af   : > { %9149 = vmatprep.mubr.bf16.mxu0 %v11702_v15 }
 0x9b6   : > { %9150 = vmatmul.mubr.bf16.gmra.mrb[160].mxu0 %v11700_v56 }
 0x9b7   : > { %9159 = vmatprep.mubr.bf16.mxu0 %v11705_v42 }
 0x9be   : > { %9160 = vmatmul.mubr.bf16.gmra.mrb[164].mxu0 %v11703_v11 }
 0x9bf   : > { %9169 = vmatprep.mubr.bf16.mxu0 %v11708_v18 }
 0x9c6   : > { %9170 = vmatmul.mubr.bf16.gmra.mrb[168].mxu0 %v11706_v13 }
 0x9c7   : > { %9179 = vmatprep.mubr.bf16.mxu0 %v11711_v12 }
 0x9ce   : > { %9180 = vmatmul.mubr.bf16.gmra.mrb[172].mxu0 %v11709_v36 }
 0x9cf   : > { %9350 = vmatprep.mubr.bf16.mxu0 %v16224_v35 }
 0xa69   : > { %v9111_v28 = vpop.f32.mrb[144].mxu0 }
 0xa6a   : > { %v9112_v63 = vadd.f32 %v9111_v28, %v15433_v44  ;;  %v9113_v26 = vpop.f32.mrb[145].mxu0  ;;  %v16312_v28 = vld [vmem:[#allocation48_spill] sm:$0xff] }
 0xa6b   : > { %v9114_v22 = vadd.f32 %v9113_v26, %v15433_v44  ;;  %v9115_v59 = vpop.f32.mrb[146].mxu0 }
 0xa6c   : > { %v9116_v48 = vadd.f32 %v9115_v59, %v15435_v45  ;;  %v9117_v27 = vpop.f32.mrb[147].mxu0  ;;  %v9190_v23 = vmax.f32 %v9112_v63, 0.0  ;;  %v16313_v59 = vld [vmem:[#allocation47_spill] sm:$0xff] }
 0xa6d   : > { %v9118_v24 = vadd.f32 %v9117_v27, %v15435_v45  ;;  %v9191_v58 = vmax.f32 %v9114_v22, 0.0 }
 0xa6e   : > { %v9192_v53 = vmax.f32 %v9116_v48, 0.0 }
 0xa6f   : > { %v9193_v14 = vmax.f32 %v9118_v24, 0.0 }
 0xa70   : > { %v9222_v20 = vpack.c.bf16 %v9192_v53, %v9190_v23 }
 0xa71   : > { %v9223_v1 = vpack.c.bf16 %v9193_v14, %v9191_v58  ;;  %v9121_v3 = vpop.f32.mrb[148].mxu0 }
 0xa72   : > { %v9122_v50 = vadd.f32 %v9121_v3, %v15439_v49  ;;  %v9123_v46 = vpop.f32.mrb[149].mxu0  ;;  %v16314_v3 = vld [vmem:[#allocation49_spill] sm:$0xff] }
 0xa73   : > { %v9124_v21 = vadd.f32 %v9123_v46, %v15439_v49  ;;  %v9125_v34 = vpop.f32.mrb[150].mxu0  ;;  %9318 = vmatprep.subr.bf16.mxu0 %v9223_v1 }
 0xa74   : > { %v9126_v44 = vadd.f32 %v9125_v34, %v15444_v9  ;;  %v9127_v57 = vpop.f32.mrb[151].mxu0  ;;  %9319 = vmatpush1.bf16.msra.mxu0 %v9222_v20  ;;  %v9194_v17 = vmax.f32 %v9122_v50, 0.0 }
 0xa75   : > { %v9128_v45 = vadd.f32 %v9127_v57, %v15444_v9  ;;  %v9195_v60 = vmax.f32 %v9124_v21, 0.0 }
 0xa76   : > { %v9196_v31 = vmax.f32 %v9126_v44, 0.0  ;;  %v16315_v44 = vld [vmem:[#allocation51_spill] sm:$0xff] }
 0xa77   : > { %v9197_v55 = vmax.f32 %v9128_v45, 0.0 }
 0xa78   : > { %v9224_v16 = vpack.c.bf16 %v9196_v31, %v9194_v17 }
 0xa79   : > { %v9225_v43 = vpack.c.bf16 %v9197_v55, %v9195_v60  ;;  %v9131_v8 = vpop.f32.mrb[152].mxu0 }
 0xa7a   : > { %v9132_v25 = vadd.f32 %v9131_v8, %v15448_v54  ;;  %v9133_v37 = vpop.f32.mrb[153].mxu0 }
 0xa7b   : > { %v9134_v49 = vadd.f32 %v9133_v37, %v15448_v54  ;;  %v9135_v4 = vpop.f32.mrb[154].mxu0  ;;  %9320 = vmatprep.subr.bf16.mxu0 %v9225_v43  ;;  %v16316_v37 = vld [vmem:[#allocation50_spill] sm:$0xff] }
 0xa7c   : > { %v9136_v7 = vadd.f32 %v9135_v4, %v15450_v62  ;;  %v9137_v51 = vpop.f32.mrb[155].mxu0  ;;  %9321 = vmatpush1.bf16.msra.mxu0 %v9224_v16  ;;  %v9198_v19 = vmax.f32 %v9132_v25, 0.0 }
 0xa7d   : > { %v9138_v9 = vadd.f32 %v9137_v51, %v15450_v62  ;;  %v9199_v33 = vmax.f32 %v9134_v49, 0.0 }
 0xa7e   : > { %v9200_v61 = vmax.f32 %v9136_v7, 0.0 }
 0xa7f   : > { %v9201_v6 = vmax.f32 %v9138_v9, 0.0  ;;  %v16317_v9 = vld [vmem:[#allocation53_spill] sm:$0xff] }
 0xa80   : > { %v9226_v41 = vpack.c.bf16 %v9200_v61, %v9198_v19 }
 0xa81   : > { %v9227_v30 = vpack.c.bf16 %v9201_v6, %v9199_v33  ;;  %v9141_v10 = vpop.f32.mrb[156].mxu0 }
 0xa82   : > { %v9142_v52 = vadd.f32 %v9141_v10, %v15455_v29  ;;  %v9143_v39 = vpop.f32.mrb[157].mxu0 }
 0xa83   : > { %v9144_v54 = vadd.f32 %v9143_v39, %v15455_v29  ;;  %v9145_v5 = vpop.f32.mrb[158].mxu0  ;;  %9322 = vmatprep.subr.bf16.mxu0 %v9227_v30 }
 0xa84   : > { %v9146_v2 = vadd.f32 %v9145_v5, %v15459_v32  ;;  %v9147_v15 = vpop.f32.mrb[159].mxu0  ;;  %9323 = vmatpush1.bf16.msra.mxu0 %v9226_v41  ;;  %v9202_v56 = vmax.f32 %v9142_v52, 0.0  ;;  %v16318_v5 = vld [vmem:[#allocation52_spill] sm:$0xff] }
 0xa85   : > { %v9148_v62 = vadd.f32 %v9147_v15, %v15459_v32  ;;  %v9203_v11 = vmax.f32 %v9144_v54, 0.0 }
 0xa86   : > { %v9204_v42 = vmax.f32 %v9146_v2, 0.0 }
 0xa87   : > { %v9205_v18 = vmax.f32 %v9148_v62, 0.0 }
 0xa88   : > { %v9228_v13 = vpack.c.bf16 %v9204_v42, %v9202_v56  ;;  %v16319_v42 = vld [vmem:[#allocation55_spill] sm:$0xff] }
 0xa89   : > { %v9229_v12 = vpack.c.bf16 %v9205_v18, %v9203_v11  ;;  %v9151_v36 = vpop.f32.mrb[160].mxu0 }
 0xa8a   : > { %v9152_v63 = vadd.f32 %v9151_v36, %v16312_v28  ;;  %v9153_v26 = vpop.f32.mrb[161].mxu0 }
 0xa8b   : > { %v9154_v29 = vadd.f32 %v9153_v26, %v16312_v28  ;;  %v9155_v22 = vpop.f32.mrb[162].mxu0  ;;  %9324 = vmatprep.subr.bf16.mxu0 %v9229_v12 }
 0xa8c   : > { %v9156_v48 = vadd.f32 %v9155_v22, %v16313_v59  ;;  %v9157_v27 = vpop.f32.mrb[163].mxu0  ;;  %9325 = vmatpush1.bf16.msra.mxu0 %v9228_v13  ;;  %v9206_v24 = vmax.f32 %v9152_v63, 0.0  ;;  %v11712_v22 = vld [vmem:[%s15809_s14] sm:$0xff]  }
 0xa8d   : > { %v9158_v32 = vadd.f32 %v9157_v27, %v16313_v59  ;;  %v9207_v53 = vmax.f32 %v9154_v29, 0.0  ;;  %v11713_v59 = vld [vmem:[%s15809_s14 + $0x8] sm:$0xff]   ;;  %v11715_v27 = vld [vmem:[%s15809_s14 + $0x18] sm:$0xff]  }
 0xa8e   : > { %v9208_v23 = vmax.f32 %v9156_v48, 0.0  ;;  %v11714_v48 = vld [vmem:[%s15809_s14 + $0x10] sm:$0xff]  }
 0xa8f   : > { %v9209_v58 = vmax.f32 %v9158_v32, 0.0 }
 0xa90   : > { %v9230_v14 = vpack.c.bf16 %v9208_v23, %v9206_v24  ;;  %v16320_v24 = vld [vmem:[#allocation54_spill] sm:$0xff] }
 0xa91   : > { %v9231_v20 = vpack.c.bf16 %v9209_v58, %v9207_v53  ;;  %v9161_v1 = vpop.f32.mrb[164].mxu0 }
 0xa92   : > { %v9162_v50 = vadd.f32 %v9161_v1, %v16314_v3  ;;  %v9163_v46 = vpop.f32.mrb[165].mxu0 }
 0xa93   : > { %v9164_v21 = vadd.f32 %v9163_v46, %v16314_v3  ;;  %v9165_v34 = vpop.f32.mrb[166].mxu0  ;;  %9326 = vmatprep.subr.bf16.mxu0 %v9231_v20  ;;  %v16321_v20 = vld [vmem:[#allocation57_spill] sm:$0xff] }
 0xa94   : > { %v9166_v57 = vadd.f32 %v9165_v34, %v16315_v44  ;;  %v9167_v45 = vpop.f32.mrb[167].mxu0  ;;  %9327 = vmatpush1.bf16.msra.mxu0 %v9230_v14  ;;  %v9210_v31 = vmax.f32 %v9162_v50, 0.0 }
 0xa95   : > { %v9168_v17 = vadd.f32 %v9167_v45, %v16315_v44  ;;  %v9211_v55 = vmax.f32 %v9164_v21, 0.0 }
 0xa96   : > { %v9212_v60 = vmax.f32 %v9166_v57, 0.0 }
 0xa97   : > { %v9213_v16 = vmax.f32 %v9168_v17, 0.0 }
 0xa98   : > { %v9232_v43 = vpack.c.bf16 %v9212_v60, %v9210_v31  ;;  %v16322_v31 = vld [vmem:[#allocation56_spill] sm:$0xff] }
 0xa99   : > { %v9233_v8 = vpack.c.bf16 %v9213_v16, %v9211_v55  ;;  %v9171_v25 = vpop.f32.mrb[168].mxu0 }
 0xa9a   : > { %v9172_v49 = vadd.f32 %v9171_v25, %v16316_v37  ;;  %v9173_v4 = vpop.f32.mrb[169].mxu0 }
 0xa9b   : > { %v9174_v7 = vadd.f32 %v9173_v4, %v16316_v37  ;;  %v9175_v51 = vpop.f32.mrb[170].mxu0  ;;  %9328 = vmatprep.subr.bf16.mxu0 %v9233_v8  ;;  %v16323_v8 = vld [vmem:[#allocation59_spill] sm:$0xff] }
 0xa9c   : > { %v9176_v19 = vadd.f32 %v9175_v51, %v16317_v9  ;;  %v9177_v61 = vpop.f32.mrb[171].mxu0  ;;  %9329 = vmatpush1.bf16.msra.mxu0 %v9232_v43  ;;  %v9214_v6 = vmax.f32 %v9172_v49, 0.0 }
 0xa9d   : > { %v9178_v33 = vadd.f32 %v9177_v61, %v16317_v9  ;;  %v9215_v30 = vmax.f32 %v9174_v7, 0.0 }
 0xa9e   : > { %v9216_v41 = vmax.f32 %v9176_v19, 0.0 }
 0xa9f   : > { %v9217_v10 = vmax.f32 %v9178_v33, 0.0 }
 0xaa0   : > { %v9234_v52 = vpack.c.bf16 %v9216_v41, %v9214_v6  ;;  %v16324_v6 = vld [vmem:[#allocation58_spill] sm:$0xff] }
 0xaa1   : > { %v9235_v39 = vpack.c.bf16 %v9217_v10, %v9215_v30  ;;  %v9181_v54 = vpop.f32.mrb[172].mxu0 }
 0xaa2   : > { %v9182_v2 = vadd.f32 %v9181_v54, %v16318_v5  ;;  %v9183_v15 = vpop.f32.mrb[173].mxu0 }
 0xaa3   : > { %v9184_v62 = vadd.f32 %v9183_v15, %v16318_v5  ;;  %v9185_v56 = vpop.f32.mrb[174].mxu0  ;;  %9330 = vmatprep.subr.bf16.mxu0 %v9235_v39  ;;  %v16325_v39 = vld [vmem:[#allocation61_spill] sm:$0xff] }
 0xaa4   : > { %v9186_v11 = vadd.f32 %v9185_v56, %v16319_v42  ;;  %v9187_v18 = vpop.f32.mrb[175].mxu0  ;;  %9331 = vmatpush1.bf16.msra.mxu0 %v9234_v52  ;;  %v9218_v12 = vmax.f32 %v9182_v2, 0.0 }
 0xaa5   : > { %v9188_v13 = vadd.f32 %v9187_v18, %v16319_v42  ;;  %v9219_v28 = vmax.f32 %v9184_v62, 0.0 }
 0xaa6   : > { %v9220_v36 = vmax.f32 %v9186_v11, 0.0 }
 0xaa7   : > { %v9221_v63 = vmax.f32 %v9188_v13, 0.0 }
 0xaa8   : > { %v9236_v26 = vpack.c.bf16 %v9220_v36, %v9218_v12  ;;  %v16326_v12 = vld [vmem:[#allocation60_spill] sm:$0xff] }
 0xaa9   : > { %v9237_v29 = vpack.c.bf16 %v9221_v63, %v9219_v28 }
 0xaab   : > { %9332 = vmatprep.subr.bf16.mxu0 %v9237_v29  ;;  %v16327_v29 = vld [vmem:[#allocation63_spill] sm:$0xff] }
 0xaac   : > { %9333 = vmatpush1.bf16.msra.mxu0 %v9236_v26 }
 0xaaf   : > { %9351 = vmatmul.mubr.bf16.vlgmr.msra.gmra.mrb[176].mxu0 %v11712_v22 }
 0xab0   : > { %9360 = vmatprep.mubr.bf16.mxu0 %v16224_v35 }
 0xab7   : > { %9361 = vmatmul.mubr.bf16.gmra.mrb[180].mxu0 %v11713_v59 }
 0xab8   : > { %9370 = vmatprep.mubr.bf16.mxu0 %v16224_v35 }
 0xabf   : > { %9371 = vmatmul.mubr.bf16.gmra.mrb[184].mxu0 %v11714_v48 }
 0xac0   : > { %9380 = vmatprep.mubr.bf16.mxu0 %v16224_v35 }
 0xac7   : > { %9381 = vmatmul.mubr.bf16.gmra.mrb[188].mxu0 %v11715_v27 }
 0xac8   : > { %9496 = vmatprep.mubr.bf16.mxu0 %v16224_v35 }
 0xb82   : > { %v9352_v32 = vpop.f32.mrb[176].mxu0 }
 0xb83   : > { %v9353_v23 = vadd.f32 %v9352_v32, %v16320_v24  ;;  %v9354_v53 = vpop.f32.mrb[177].mxu0 }
 0xb84   : > { %v9355_v58 = vadd.f32 %v9354_v53, %v16320_v24  ;;  %v9356_v14 = vpop.f32.mrb[178].mxu0 }
 0xb85   : > { %v9357_v1 = vadd.f32 %v9356_v14, %v16321_v20  ;;  %v9358_v3 = vpop.f32.mrb[179].mxu0  ;;  %v9391_v46 = vmax.f32 %v9353_v23, 0.0  ;;  %v11716_v14 = vld [vmem:[%s15812_s17 + $0x10] sm:$0xff]  }
 0xb86   : > { %v9359_v50 = vadd.f32 %v9358_v3, %v16321_v20  ;;  %v9392_v34 = vmax.f32 %v9355_v58, 0.0  ;;  %v11718_v20 = vld [vmem:[%s15812_s17] sm:$0xff]   ;;  %v16329_v3 = vld [vmem:[#allocation62_spill] sm:$0xff] }
 0xb87   : > { %v9393_v21 = vmax.f32 %v9357_v1, 0.0  ;;  %v16328_v1 = vld [vmem:[#allocation65_spill] sm:$0xff] }
 0xb88   : > { %v9394_v44 = vmax.f32 %v9359_v50, 0.0  ;;  %v16330_v50 = vld [vmem:[#allocation66_spill] sm:$0xff] }
 0xb89   : > { %v9407_v57 = vpack.c.bf16 %v9393_v21, %v9391_v46  ;;  %v11717_v46 = vld [vmem:[%s15812_s17 + $0x18] sm:$0xff]   ;;  %v11720_v21 = vld [vmem:[%s15812_s17 + $0x8] sm:$0xff]  }
 0xb8a   : > { %v9408_v45 = vpack.c.bf16 %v9394_v44, %v9392_v34  ;;  %v9362_v17 = vpop.f32.mrb[180].mxu0  ;;  %v16331_v34 = vld [vmem:[#allocation64_spill] sm:$0xff] }
 0xb8b   : > { %v9363_v60 = vadd.f32 %v9362_v17, %v16322_v31  ;;  %v9364_v55 = vpop.f32.mrb[181].mxu0  ;;  %v11719_v44 = vld [vmem:[%s15811_s16] sm:$0xff]  }
 0xb8c   : > { %v9365_v16 = vadd.f32 %v9364_v55, %v16322_v31  ;;  %v9366_v43 = vpop.f32.mrb[182].mxu0  ;;  %9464 = vmatprep.subr.bf16.mxu0 %v9408_v45  ;;  %10735 = vmatprep.subr.bf16.mxu1 %v9408_v45  ;;  %v9658_v31 = vpop.permute.xlu1 %9657 }
 0xb8d   : > { %v9367_v25 = vadd.f32 %v9366_v43, %v16323_v8  ;;  %v9368_v37 = vpop.f32.mrb[183].mxu0  ;;  %9465 = vmatpush1.bf16.msra.mxu0 %v9407_v57  ;;  %10739 = vmatpush1.bf16.msra.mxu1 %v9407_v57  ;;  %v9395_v4 = vmax.f32 %v9363_v60, 0.0  ;;  %v9653_v60 = vpop.permute.xlu0 %9652 }
 0xb8e   : > { %v9369_v49 = vadd.f32 %v9368_v37, %v16323_v8  ;;  %v9396_v51 = vmax.f32 %v9365_v16, 0.0 }
 0xb8f   : > { %v9397_v7 = vmax.f32 %v9367_v25, 0.0 }
 0xb90   : > { %v9398_v9 = vmax.f32 %v9369_v49, 0.0  ;;  %v9668_v25 = vpop.permute.xlu1 %9667 }
 0xb91   : > { %v9409_v19 = vpack.c.bf16 %v9397_v7, %v9395_v4  ;;  %v9663_v37 = vpop.permute.xlu0 %9662 }
 0xb92   : > { %v9410_v61 = vpack.c.bf16 %v9398_v9, %v9396_v51  ;;  %v9372_v33 = vpop.f32.mrb[184].mxu0 }
 0xb93   : > { %v9373_v41 = vadd.f32 %v9372_v33, %v16324_v6  ;;  %v9374_v30 = vpop.f32.mrb[185].mxu0 }
 0xb94   : > { %v9375_v10 = vadd.f32 %v9374_v30, %v16324_v6  ;;  %v9376_v52 = vpop.f32.mrb[186].mxu0  ;;  %9466 = vmatprep.subr.bf16.mxu0 %v9410_v61  ;;  %10736 = vmatprep.subr.bf16.mxu1 %v9410_v61  ;;  %v9673_v9 = vpop.permute.xlu1 %9672 }
 0xb95   : > { %v9377_v54 = vadd.f32 %v9376_v52, %v16325_v39  ;;  %v9378_v5 = vpop.f32.mrb[187].mxu0  ;;  %9467 = vmatpush1.bf16.msra.mxu0 %v9409_v19  ;;  %10740 = vmatpush1.bf16.msra.mxu1 %v9409_v19  ;;  %v9399_v15 = vmax.f32 %v9373_v41, 0.0  ;;  %v11460_v6 = vpop.permute.xlu0 %11459 }
 0xb96   : > { %v9379_v2 = vadd.f32 %v9378_v5, %v16325_v39  ;;  %v9400_v56 = vmax.f32 %v9375_v10, 0.0  ;;  %v11462_v5 = vunpack.i.h.bf16 %v11460_v6 }
 0xb97   : > { %v9401_v62 = vmax.f32 %v9377_v54, 0.0 }
 0xb98   : > { %v9402_v42 = vmax.f32 %v9379_v2, 0.0  ;;  %v11461_v2 = vunpack.i.l.bf16 %v11460_v6 }
 0xb99   : > { %v9411_v11 = vpack.c.bf16 %v9401_v62, %v9399_v15 }
 0xb9a   : > { %v9412_v18 = vpack.c.bf16 %v9402_v42, %v9400_v56  ;;  %v9382_v13 = vpop.f32.mrb[188].mxu0  ;;  %v9678_v42 = vpop.permute.xlu1 %9677 }
 0xb9b   : > { %v9383_v36 = vadd.f32 %v9382_v13, %v16326_v12  ;;  %v9384_v28 = vpop.f32.mrb[189].mxu0 }
 0xb9c   : > { %v9385_v63 = vadd.f32 %v9384_v28, %v16326_v12  ;;  %v9386_v26 = vpop.f32.mrb[190].mxu0  ;;  %9468 = vmatprep.subr.bf16.mxu0 %v9412_v18  ;;  %10737 = vmatprep.subr.bf16.mxu1 %v9412_v18 }
 0xb9d   : > { %v9387_v22 = vadd.f32 %v9386_v26, %v16327_v29  ;;  %v9388_v59 = vpop.f32.mrb[191].mxu0  ;;  %9469 = vmatpush1.bf16.msra.mxu0 %v9411_v11  ;;  %10741 = vmatpush1.bf16.msra.mxu1 %v9411_v11  ;;  %v9403_v27 = vmax.f32 %v9383_v36, 0.0  ;;  %v11465_v36 = vpop.permute.xlu0 %11464 }
 0xb9e   : > { %v9389_v48 = vadd.f32 %v9388_v59, %v16327_v29  ;;  %v9404_v24 = vmax.f32 %v9385_v63, 0.0 }
 0xb9f   : > { %v9405_v32 = vmax.f32 %v9387_v22, 0.0 }
 0xba0   : > { %v9406_v23 = vmax.f32 %v9389_v48, 0.0 }
 0xba1   : > { %v9413_v53 = vpack.c.bf16 %v9405_v32, %v9403_v27 }
 0xba2   : > { %v9414_v58 = vpack.c.bf16 %v9406_v23, %v9404_v24 }
 0xba4   : > { %9470 = vmatprep.subr.bf16.mxu0 %v9414_v58  ;;  %10738 = vmatprep.subr.bf16.mxu1 %v9414_v58 }
 0xba5   : > { %9471 = vmatpush1.bf16.msra.mxu0 %v9413_v53  ;;  %10742 = vmatpush1.bf16.msra.mxu1 %v9413_v53  ;;  %v11466_v53 = vunpack.i.l.bf16 %v11465_v36 }
 0xba6   : > { %9569 = vmatprep.subr.bf16.mxu1 %v16328_v1 }
 0xba8   : > { %10508 = vmatmul.mubr.msk.bf16.vlgmr.msra.gmra.mrb[128].mxu1 %vm9451_vm1, %v11716_v14  ;;  %10506 = vmatmul.mubr.msk.bf16.vlgmr.msra.gmra.mrb[192].mxu0 %vm9451_vm1, %v11718_v20 }
 0xba9   : > { %9570 = vmatpush1.bf16.msra.mxu1 %v16329_v3  ;;  %9526 = vmatprep.mubr.bf16.mxu1 %v16224_v35  ;;  %v11467_v3 = vunpack.i.h.bf16 %v11465_v36 }
 0xbaa   : > { %9571 = vmatprep.subr.bf16.mxu1 %v16330_v50  ;;  %9506 = vmatprep.mubr.bf16.mxu0 %v16224_v35  ;;  %v9761_v50 = vpop.permute.xlu1 %9760 }
 0xbad   : > { %9572 = vmatpush1.bf16.msra.mxu1 %v16331_v34  ;;  %v9683_v34 = vpop.permute.xlu0 %9682 }
 0xbae   : > { %9573 = vmatprep.subr.bf16.mxu1 %v15519_v0  ;;  %v11721_v0 = vld [vmem:[%s15811_s16 + $0x8] sm:$0xff]  }
 0xbb0   : > { %10509 = vmatmul.mubr.msk.bf16.gmra.mrb[132].mxu1 %vm9451_vm1, %v11717_v46  ;;  %10507 = vmatmul.mubr.msk.bf16.gmra.mrb[196].mxu0 %vm9451_vm1, %v11720_v21 }
 0xbb1   : > { %9574 = vmatpush1.bf16.msra.mxu1 %v15517_v47  ;;  %9601 = vmatprep.mubr.bf16.mxu1 %v16224_v35  ;;  %v11722_v47 = vld [vmem:[%s15811_s16 + $0x10] sm:$0xff]  }
 0xbb2   : > { %9575 = vmatprep.subr.bf16.mxu1 %v15523_v40 }
 0xbb5   : > { %9576 = vmatpush1.bf16.msra.mxu1 %v15521_v38  ;;  %v11723_v38 = vld [vmem:[%s15811_s16 + $0x18] sm:$0xff]  }
 0xbb8   : > { %10514 = vmatmul.mubr.msk.bf16.vlgmr.msra.gmra.mrb[136].mxu1 %vm9451_vm1, %v11719_v44 }
 0xbb9   : > { %9611 = vmatprep.mubr.bf16.mxu1 %v16224_v35 }
 0xbc0   : > { %10515 = vmatmul.mubr.msk.bf16.gmra.mrb[140].mxu1 %vm9451_vm1, %v11721_v0 }
 0xbc1   : > { %9621 = vmatprep.mubr.bf16.mxu1 %v16224_v35 }
 0xbc8   : > { %10516 = vmatmul.mubr.msk.bf16.gmra.mrb[128].mxu1 %vm9451_vm1, %v11722_v47 }
 0xbc9   : > { %9631 = vmatprep.mubr.bf16.mxu1 %v16224_v35 }
 0xbd0   : > { %10517 = vmatmul.mubr.msk.bf16.gmra.mrb[132].mxu1 %vm9451_vm1, %v11723_v38 }
 0xc7b   : > { %v9498_v40 = vpop.f32.mrb[192].mxu0 }
 0xc7c   : > { %v9500_v57 = vpop.f32.mrb[193].mxu0 }
 0xc7d   : > { %v9502_v45 = vpop.f32.mrb[194].mxu0 }
 0xc7e   : > { %v9504_v17 = vpop.f32.mrb[195].mxu0 }
 0xc83   : > { %v9508_v55 = vpop.f32.mrb[196].mxu0 }
 0xc84   : > { %v9510_v16 = vpop.f32.mrb[197].mxu0 }
 0xc85   : > { %v9512_v43 = vpop.f32.mrb[198].mxu0 }
 0xc86   : > { %v9514_v8 = vpop.f32.mrb[199].mxu0 }
 0xc8b   : > { %v9603_v49 = vpop.f32.mrb[136].mxu1 }
 0xc8c   : > { %v9604_v35 = vadd.f32 %v9603_v49, %v9498_v40  ;;  %v9605_v4 = vpop.f32.mrb[137].mxu1 }
 0xc8d   : > { %v9606_v7 = vadd.f32 %v9605_v4, %v9500_v57  ;;  %v9607_v51 = vpop.f32.mrb[138].mxu1 }
 0xc8e   : > { %v9690_v19 = vadd.f32 %v9653_v60, %v9604_v35  ;;  %v9608_v61 = vadd.f32 %v9607_v51, %v9502_v45  ;;  %v9609_v33 = vpop.f32.mrb[139].mxu1  ;;  %v9766_v51 = vpop.permute.xlu1 %9765 }
 0xc8f   : > { %v9691_v41 = vadd.f32 %v9653_v60, %v9606_v7  ;;  %v9610_v30 = vadd.f32 %v9609_v33, %v9504_v17 }
 0xc90   : > { %v9706_v10 = vmax.f32 %v9690_v19, 0.0  ;;  %v9692_v52 = vadd.f32 %v9658_v31, %v9608_v61  ;;  %v9688_v19 = vpop.permute.xlu0 %9687 }
 0xc91   : > { %v9707_v39 = vmax.f32 %v9691_v41, 0.0  ;;  %v9693_v54 = vadd.f32 %v9658_v31, %v9610_v30 }
 0xc92   : > { %v9708_v15 = vmax.f32 %v9692_v52, 0.0  ;;  %v9778_v11 = vmul.f32 %v11461_v2, %v9706_v10 }
 0xc93   : > { %v9709_v62 = vmax.f32 %v9693_v54, 0.0  ;;  %v9613_v56 = vpop.f32.mrb[140].mxu1  ;;  %v9779_v28 = vmul.f32 %v11461_v2, %v9707_v39 }
 0xc94   : > { %v9780_v18 = vmul.f32 %v11462_v5, %v9708_v15  ;;  %v9614_v13 = vadd.f32 %v9613_v56, %v9508_v55  ;;  %v9615_v12 = vpop.f32.mrb[141].mxu1 }
 0xc95   : > { %v9781_v63 = vmul.f32 %v11462_v5, %v9709_v62  ;;  %v9616_v26 = vadd.f32 %v9615_v12, %v9510_v16  ;;  %v9617_v29 = vpop.f32.mrb[142].mxu1 }
 0xc96   : > { %v9794_v22 = vadd.f32 %v9780_v18, %v9778_v11  ;;  %v9694_v59 = vadd.f32 %v9663_v37, %v9614_v13  ;;  %v9618_v48 = vadd.f32 %v9617_v29, %v9512_v43  ;;  %v9619_v27 = vpop.f32.mrb[143].mxu1  ;;  %v9771_v11 = vpop.permute.xlu0 %9770 }
 0xc97   : > { %v9807_v32 = vadd.f32 %v9781_v63, %v9779_v28  ;;  %v9695_v24 = vadd.f32 %v9663_v37, %v9616_v26  ;;  %v9620_v23 = vadd.f32 %v9619_v27, %v9514_v8  ;;  %v9776_v28 = vpop.permute.xlu1 %9775  ;;  %v9826_v27 = vlaneseq }
 0xc98   : > { %v9710_v58 = vmax.f32 %v9694_v59, 0.0  ;;  %v9696_v14 = vadd.f32 %v9668_v25, %v9618_v48 }
 0xc99   : > { %v9711_v20 = vmax.f32 %v9695_v24, 0.0  ;;  %v9697_v1 = vadd.f32 %v9668_v25, %v9620_v23  ;;  %vm9864_vm2 = vcmp.lt.s32.totalorder %v9826_v27, 256 }
 0xc9a   : > { %v9782_v46 = vmul.f32 %v11466_v53, %v9710_v58  ;;  %v9712_v21 = vmax.f32 %v9696_v14, 0.0  ;;  %v9827_v58 = vshrl.u32 %v9826_v27, 7 }
 0xc9b   : > { %v9783_v44 = vmul.f32 %v11466_v53, %v9711_v20  ;;  %v9713_v0 = vmax.f32 %v9697_v1, 0.0  ;;  %v9623_v47 = vpop.f32.mrb[128].mxu1 }
 0xc9c   : > { %v9795_v38 = vadd.f32 %v9794_v22, %v9782_v46  ;;  %v9784_v40 = vmul.f32 %v11467_v3, %v9712_v21  ;;  %v9698_v57 = vadd.f32 %v9673_v9, %v9623_v47  ;;  %v9625_v45 = vpop.f32.mrb[129].mxu1  ;;  %v9824_v21 = vpop.permute.xlu0 %9823 }
 0xc9d   : > { %v9808_v17 = vadd.f32 %v9807_v32, %v9783_v44  ;;  %v9785_v31 = vmul.f32 %v11467_v3, %v9713_v0  ;;  %v9699_v60 = vadd.f32 %v9673_v9, %v9625_v45  ;;  %v9627_v55 = vpop.f32.mrb[130].mxu1 }
 0xc9e   : > { %v9714_v16 = vmax.f32 %v9698_v57, 0.0  ;;  %v9796_v43 = vadd.f32 %v9795_v38, %v9784_v40  ;;  %v9700_v8 = vadd.f32 %v9678_v42, %v9627_v55  ;;  %v9629_v25 = vpop.f32.mrb[131].mxu1 }
 0xc9f   : > { %v9715_v37 = vmax.f32 %v9699_v60, 0.0  ;;  %v9809_v49 = vadd.f32 %v9808_v17, %v9785_v31  ;;  %v9701_v35 = vadd.f32 %v9678_v42, %v9629_v25 }
 0xca0   : > { %v9786_v4 = vmul.f32 %v9761_v50, %v9714_v16  ;;  %v9716_v7 = vmax.f32 %v9700_v8, 0.0 }
 0xca1   : > { %v9787_v61 = vmul.f32 %v9761_v50, %v9715_v37  ;;  %v9717_v33 = vmax.f32 %v9701_v35, 0.0  ;;  %v9828_v50 = vsub.s32 0, %v9827_v58  ;;  %v11797_v37 = vmov 1966171168  }
 0xca2   : > { %v9797_v6 = vadd.f32 %v9796_v43, %v9786_v4  ;;  %v9788_v41 = vmul.f32 %v9766_v51, %v9716_v7 }
 0xca3   : > { %v9810_v30 = vadd.f32 %v9809_v49, %v9787_v61  ;;  %v9789_v10 = vmul.f32 %v9766_v51, %v9717_v33  ;;  %v9633_v52 = vpop.f32.mrb[132].mxu1  ;;  %v9829_v47 = vrot.slane %v9824_v21, %v9828_v50  ;;  %v9848_v49 = vunpack.c.l.s4 %v11797_v37 }
 0xca4   : > { %v9798_v9 = vadd.f32 %v9797_v6, %v9788_v41  ;;  %v9702_v39 = vadd.f32 %v9683_v34, %v9633_v52  ;;  %v9635_v54 = vpop.f32.mrb[133].mxu1 }
 0xca5   : > { %v9811_v5 = vadd.f32 %v9810_v30, %v9789_v10  ;;  %v9703_v2 = vadd.f32 %v9683_v34, %v9635_v54  ;;  %v9637_v15 = vpop.f32.mrb[134].mxu1  ;;  %v9849_v35 = vunpack.c.0.s8 %v9848_v49 }
 0xca6   : > { %v9718_v62 = vmax.f32 %v9702_v39, 0.0  ;;  %v9704_v56 = vadd.f32 %v9688_v19, %v9637_v15  ;;  %v9639_v42 = vpop.f32.mrb[135].mxu1 }
 0xca7   : > { %v9719_v18 = vmax.f32 %v9703_v2, 0.0  ;;  %v9705_v13 = vadd.f32 %v9688_v19, %v9639_v42  ;;  %v9852_v7 = vsub.s32 %v9849_v35, %v9827_v58 }
 0xca8   : > { %v9790_v12 = vmul.f32 %v9771_v11, %v9718_v62  ;;  %v9720_v36 = vmax.f32 %v9704_v56, 0.0 }
 0xca9   : > { %v9791_v63 = vmul.f32 %v9771_v11, %v9719_v18  ;;  %v9721_v26 = vmax.f32 %v9705_v13, 0.0 }
 0xcaa   : > { %v9799_v29 = vadd.f32 %v9798_v9, %v9790_v12  ;;  %v9792_v22 = vmul.f32 %v9776_v28, %v9720_v36 }
 0xcab   : > { %v9812_v59 = vadd.f32 %v9811_v5, %v9791_v63  ;;  %v9793_v48 = vmul.f32 %v9776_v28, %v9721_v26 }
 0xcac   : > { %v9800_v32 = vadd.f32 %v9799_v29, %v9792_v22 }
 0xcad   : > { %v9813_v24 = vadd.f32 %v9812_v59, %v9793_v48 }
 0xcae   : > { %v9801_v23 = vrot.slane %v9800_v32, 4 }
 0xcaf   : > { %v9814_v53 = vrot.slane %v9813_v24, 4 }
 0xcb0   : > { %v9802_v14 = vadd.f32 %v9801_v23, %v9800_v32 }
 0xcb1   : > { %v9815_v20 = vadd.f32 %v9814_v53, %v9813_v24 }
 0xcb2   : > { %v9803_v1 = vrot.slane %v9802_v14, 2 }
 0xcb3   : > { %v9816_v3 = vrot.slane %v9815_v20, 2 }
 0xcb4   : > { %v9804_v46 = vadd.f32 %v9803_v1, %v9802_v14 }
 0xcb5   : > { %v9817_v34 = vadd.f32 %v9816_v3, %v9815_v20 }
 0xcb6   : > { %v9805_v44 = vrot.slane %v9804_v46, 1 }
 0xcb7   : > { %v9818_v0 = vrot.slane %v9817_v34, 1 }
 0xcb8   : > { %v9806_v38 = vadd.f32 %v9805_v44, %v9804_v46 }
 0xcb9   : > { %v9819_v40 = vadd.f32 %v9818_v0, %v9817_v34 }
 0xcba   : > { %v9830_v57 = vadd.f32 %v9829_v47, %v9806_v38 }
 0xcbb   : > { %v9831_v45 = vadd.f32 %v9829_v47, %v9819_v40 }
 0xcbc   : > { %v9832_v17 = vsub.f32 0.0, %v9830_v57 }
 0xcbd   : > { %v9833_v31 = vsub.f32 0.0, %v9831_v45 }
 0xcbe   : > { %v9834_v60 = vmul.f32 1.442695, %v9832_v17 }
 0xcbf   : > { %v9836_v55 = vmul.f32 1.442695, %v9833_v31 }
 0xcc0   : > { %11724 = vpow2.f32 %v9834_v60 }
 0xcc1   : > { %11726 = vpow2.f32 %v9836_v55 }
 0xcca   : > { %v11725_v16 = vpop.eup %11724 }
 0xccb   : > { %v11727_v43 = vpop.eup %11726  ;;  %v9838_v8 = vadd.f32 1.0, %v11725_v16 }
 0xccc   : > { %v9839_v25 = vadd.f32 1.0, %v11727_v43 }
 0xccd   : > { %11728 = vrcp.f32 %v9838_v8 }
 0xcce   : > { %11730 = vrcp.f32 %v9839_v25 }
 0xcd7   : > { %v11729_v4 = vpop.eup %11728 }
 0xcd8   : > { %v11731_v51 = vpop.eup %11730 }
 0xcd9   : > { %v9846_v19 = vcombine.low %v11729_v4, %v11731_v51 }
 0xcdb   : > { %v9853_v61 = vrot.slane %v9846_v19, %v9852_v7 }
 0xcdd   : > { %v9860_v33 = vrot.slane %v9853_v61, %v9852_v7 }
 0xcdf   : > { %9866 = vst.msk [vmem:[%s668_s2] sm:$0x3] %vm9864_vm2, %v9860_v33 }
 0xce0   : > { %11745 = shalt.err (!%p11742_p3)
}
 0xce1   : > { %s11746_s4 = scalar_lea.hbm %s15753_s1, 32  ;;  %s11750_s3 = scalar_lea.hbm %s15816_s21, 64 }
 0xce2   : > { %p11747_p4 = scmp.ne.s32.totalorder %s15753_s1, %s11746_s4  ;;  %p11751_p9 = scmp.lt.u32.totalorder %s15753_s1, %s15816_s21 }
 0xce3   : > { %p11752_p10 = scmp.lt.u32.totalorder %s11750_s3, %s11746_s4  ;;  %p11754_p12 = scmp.lt.u32.totalorder %s11746_s4, %s15753_s1 }
 0xce4   : > { %p11748_p7 = pnand %p11747_p4, %p11947_p5 }
 0xce5   : > { %p11753_p11 = por %p11752_p10, %p11751_p9 }
 0xce6   : > { %p11749_p8 = pneg %p11748_p7 }
 0xce7   : > { %p11755_p13 = por %p11754_p12, %p11753_p11 }
 0xce9   : > { %p11756_p0 = pnand %p11755_p13, %p11749_p8 }
 0xceb   : > { %11759 = shalt.err (!%p11756_p0)
}
 0xcec   : > { %11415 = dma.vmem_to_hbm [thread:$0]  (%p11947_p5), %s15755_s25, 32, %s15753_s1, %s9868_s28  }
 0xced PF: > { %s16332_s0 = sld [smem:[#allocation8_spill]]  ;;  %s16333_s29 = sld [smem:[#allocation6_spill]] }
 0xcf3   : > { %p11421_p1 = scmp.ge.s32.totalorder %s16332_s0, 2  ;;  %s9894_s26 = sand.u32 1, %s16333_s29  }
 0xcf4   : > { %s9895_s2 = scalar_lea.sflag [#allocation4], %s9894_s26 }
 0xcf5   : > { %p11418_p2 = pnand %p11421_p1, %p11951_p6 }
 0xcf7   : > { %11777 = dma.done.wait (!%p11418_p2), %s9895_s2, 32  }
 0xcf8   : > { %11779 = vsyncadd (!%p11418_p2), %s9895_s2, 4294967264  ;;  %s16335_s28 = sld [smem:[#allocation9_spill]]  ;;  %s16336_s4 = sld [smem:[#allocation7_spill]] }
 0xcf9   : > { %s16337_s3 = sld [smem:[#allocation10_spill]]  ;;  %s16338_s26 = smov %s11786_s27 }
 0xcfe   : > { %p33_p3 = scmp.ge.s32.totalorder %s16335_s28, 4   ;;  %s16339_s27 = smov %s16336_s4 }
 0xd00   :  { %35 = sbr.rel (!%p33_p3) target bundleno = 10 (0xa), region = 142 }
 0xd07   :  { %9900 = vsyncpa [#allocation4], 1 }
 0xd08   :  { %9902 = vsyncpa [#allocation4 + $0x1], 1 }

</bundles_post_ra>
